<compile_context>
chip_gen: v5e
topology: v5e:2x2
jax: 0.10.0
libtpu: 0.0.40
codegen_flags: <defaults>
</compile_context>

<pallas_src>
import functools

import jax
import jax.numpy as jnp
from jax.experimental import pallas as pl
from jax.experimental.pallas import tpu as pltpu

# ----------------------- scaled-down configuration --------------------------
CONFIGS = [3, 8, 16, 24, 24, 16]   # orig: [3, 96, 256, 384, 384, 256]
FEATURE_OUT = 16                   # orig: 256
ANCHOR = 1
DEFORM_GROUPS = 4
CORR_K = 4                         # spatial size of the temple() correlation kernels


# ----------------------------- Pallas kernel ---------------------------------
def _matmul_bias_act_kernel(x_ref, w_ref, b_ref, o_ref, *, act):
    acc = jnp.dot(x_ref[...], w_ref[...], preferred_element_type=jnp.float32)
    acc = acc + b_ref[...]
    if act == "relu":
        acc = jnp.maximum(acc, 0.0)
    o_ref[...] = acc.astype(o_ref.dtype)


def _round_up(v, m):
    return ((v + m - 1) // m) * m


def pallas_matmul_bias(x, w, b, act="none", out_dtype=jnp.float32, tm=1024):
    """y = act(x @ w + b); x:[M,K], w:[K,N], b:[N] -> y:[M,N] in out_dtype.

    Operands go to the MXU as bf16 (f32 accumulation).  The output is written
    at its true width N (no lane-padding, no trailing slice) and the M axis is
    tiled with a ragged last block (no pad / unpad HBM round trips).  Calls
    with M >= 128 always get >= 2 parallel row blocks (v7x: both TensorCores).
    """
    M, K = x.shape
    Kw, Nc = w.shape
    assert K == Kw
    xb = x.astype(jnp.bfloat16)
    wb = w.astype(jnp.bfloat16)
    bb = b.astype(jnp.float32).reshape(1, Nc)
    kern = functools.partial(_matmul_bias_act_kernel, act=act)
    out_shape = jax.ShapeDtypeStruct((M, Nc), out_dtype)

    if M >= 128:
        # >= 2 row blocks; tm_eff is a multiple of 16 (bf16 sublane packing).
        # The ragged last block only produces rows that are masked on store,
        # and nothing is accumulated across the grid, so the undefined tail of
        # the last input block is never consumed.
        nblk = max(2, pl.cdiv(M, tm))
        tm_eff = _round_up(pl.cdiv(M, nblk), 16)
        nblk = pl.cdiv(M, tm_eff)
        return pl.pallas_call(
            kern,
            out_shape=out_shape,
            grid_spec=pltpu.PrefetchScalarGridSpec(
                num_scalar_prefetch=0,
                grid=(nblk,),
                in_specs=[
                    pl.BlockSpec((tm_eff, K), lambda i: (i, 0)),
                    pl.BlockSpec((K, Nc), lambda i: (0, 0)),
                    pl.BlockSpec((1, Nc), lambda i: (0, 0)),
                ],
                out_specs=pl.BlockSpec((tm_eff, Nc), lambda i: (i, 0)),
            ),
            compiler_params=pltpu.CompilerParams(
                dimension_semantics=("parallel",)),
        )(xb, wb, bb)

    # Small-M path: single full-extent block, everything VMEM-resident.
    return pl.pallas_call(kern, out_shape=out_shape)(xb, wb, bb)


# ------------------------------ glue (plain JAX) -----------------------------
def _im2col(x, kh, kw, stride=1):
    # x: [N,H,W,C] -> patches [N,OH,OW,kh*kw,C] (same dtype as x; keep bf16)
    N, H, W, C = x.shape
    OH = (H - kh) // stride + 1
    OW = (W - kw) // stride + 1
    cols = []
    for i in range(kh):
        for j in range(kw):
            cols.append(x[:, i:i + stride * (OH - 1) + 1:stride,
                            j:j + stride * (OW - 1) + 1:stride, :])
    patches = jnp.stack(cols, axis=3)
    return patches, OH, OW


def _w2mat(w_oihw):
    OutC, InC, KH, KW = w_oihw.shape
    return jnp.transpose(w_oihw, (2, 3, 1, 0)).reshape(KH * KW * InC, OutC)


def conv2d(x, wmat, b, kh, kw, stride=1, padding=0, act="none",
           out_dtype=jnp.bfloat16):
    # x: [N,H,W,C] (NHWC); wmat: [kh*kw*C, OutC] (already repacked, bf16)
    C = x.shape[-1]
    OutC = wmat.shape[1]
    assert wmat.shape[0] == kh * kw * C
    xb = x.astype(jnp.bfloat16)          # cast BEFORE im2col (bf16 patches)
    if padding:
        xb = jnp.pad(xb, ((0, 0), (padding, padding), (padding, padding), (0, 0)))
    patches, OH, OW = _im2col(xb, kh, kw, stride)
    N = xb.shape[0]
    xm = patches.reshape(N * OH * OW, kh * kw * C)
    y = pallas_matmul_bias(xm, wmat, b, act=act, out_dtype=out_dtype)
    return y.reshape(N, OH, OW, OutC)


def maxpool2d(x, k=3, stride=2):
    # Fused window-max (no 9x im2col materialization in HBM).
    return jax.lax.reduce_window(
        x, jnp.array(-jnp.inf, x.dtype), jax.lax.max,
        window_dimensions=(1, k, k, 1),
        window_strides=(1, stride, stride, 1),
        padding="VALID")


def fold_bn(w, b, gamma, beta, mean, var, eps=1e-5):
    scale = gamma / jnp.sqrt(var + eps)
    return w * scale[:, None, None, None], (b - mean) * scale + beta


def _block_diag(mats):
    n_tot = sum(m.shape[1] for m in mats)
    rows, col = [], 0
    for m in mats:
        rows.append(jnp.pad(m, ((0, 0), (col, n_tot - col - m.shape[1]))))
        col += m.shape[1]
    return jnp.concatenate(rows, axis=0)


def deform_conv2d(x, offset, wmat, out_c, groups, act="relu",
                  out_dtype=jnp.bfloat16):
    """DeformConv (3x3, stride 1, pad 1, no bias) on NHWC input.

    offset: [N,H,W,G*K*K*2] laid out per group / per tap as (dy, dx).
    The bilinear sampling is expressed gather-free as a one-hot (comparison)
    contraction over the H*W spatial domain (fine at toy 5x5; see TODO above);
    the 3x3 contraction runs in the Pallas matmul kernel.  Out-of-range
    corners contribute zero (mmcv style).
    """
    N, H, W, C = x.shape
    K, G = 3, groups
    Cg = C // G
    pad = (K - 1) // 2
    HW = H * W

    off = offset.astype(jnp.float32).reshape(N, H, W, G, K * K, 2)
    dy, dx = off[..., 0], off[..., 1]
    tap_y = jnp.repeat(jnp.arange(K, dtype=jnp.float32), K)   # [K*K]
    tap_x = jnp.tile(jnp.arange(K, dtype=jnp.float32), K)
    hh = jnp.arange(H, dtype=jnp.float32)[None, :, None, None, None]
    ww = jnp.arange(W, dtype=jnp.float32)[None, None, :, None, None]
    py = hh - pad + tap_y + dy          # [N,H,W,G,KK]
    px = ww - pad + tap_x + dx

    y0 = jnp.floor(py)
    x0 = jnp.floor(px)
    fy = py - y0
    fx = px - x0
    pos = jnp.arange(HW, dtype=jnp.int32)

    def corner(yi, xi, wgt):
        valid = (yi >= 0) & (yi <= H - 1) & (xi >= 0) & (xi <= W - 1)
        yc = jnp.clip(yi, 0, H - 1).astype(jnp.int32)
        xc = jnp.clip(xi, 0, W - 1).astype(jnp.int32)
        idx = yc * W + xc                                       # [N,H,W,G,KK]
        onehot = (idx[..., None] == pos).astype(jnp.float32)    # [...,HW]
        return onehot * (wgt * valid.astype(jnp.float32))[..., None]

    A = (corner(y0, x0, (1.0 - fy) * (1.0 - fx))
         + corner(y0, x0 + 1.0, (1.0 - fy) * fx)
         + corner(y0 + 1.0, x0, fy * (1.0 - fx))
         + corner(y0 + 1.0, x0 + 1.0, fy * fx))                 # [N,H,W,G,KK,HW]

    xg = x.reshape(N, HW, G, Cg).transpose(0, 2, 1, 3)          # [N,G,HW,Cg]
    S = jnp.einsum("nhwgkp,ngpc->nhwkgc", A, xg)                # [N,H,W,KK,G,Cg]
    S = S.reshape(N * H * W, K * K * C)

    y = pallas_matmul_bias(S, wmat, jnp.zeros((out_c,), jnp.float32),
                           act=act, out_dtype=out_dtype)
    return y.reshape(N, H, W, out_c)


# ------------------------------- parameters ---------------------------------
def init_params(key):
    params = {}
    keys = iter(jax.random.split(key, 64))

    def conv_w(oc, ic, kh, kw, std=0.05):
        return std * jax.random.normal(next(keys), (oc, ic, kh, kw), jnp.float32)

    def bias(oc):
        return 0.01 * jax.random.normal(next(keys), (oc,), jnp.float32)

    def bn(cch):
        return dict(
            gamma=1.0 + 0.01 * jax.random.normal(next(keys), (cch,), jnp.float32),
            beta=0.01 * jax.random.normal(next(keys), (cch,), jnp.float32),
            mean=0.01 * jax.random.normal(next(keys), (cch,), jnp.float32),
            var=1.0 + 0.01 * jnp.abs(jax.random.normal(next(keys), (cch,), jnp.float32)),
        )

    c = CONFIGS
    feat_in = c[-1]
    fo = FEATURE_OUT
    params["conv1_w"], params["conv1_b"], params["bn1"] = conv_w(c[1], c[0], 11, 11), bias(c[1]), bn(c[1])
    params["conv2_w"], params["conv2_b"], params["bn2"] = conv_w(c[2], c[1], 5, 5), bias(c[2]), bn(c[2])
    params["conv3_w"], params["conv3_b"], params["bn3"] = conv_w(c[3], c[2], 3, 3), bias(c[3]), bn(c[3])
    params["conv4_w"], params["conv4_b"], params["bn4"] = conv_w(c[4], c[3], 3, 3), bias(c[4]), bn(c[4])
    params["conv5_w"], params["conv5_b"], params["bn5"] = conv_w(c[5], c[4], 3, 3), bias(c[5]), bn(c[5])
    params["conv_loc2_w"], params["conv_loc2_b"] = conv_w(fo, feat_in, 3, 3), bias(fo)
    params["conv_r2_w"], params["conv_r2_b"] = conv_w(fo, feat_in, 3, 3), bias(fo)
    params["conv_cls2_w"], params["conv_cls2_b"] = conv_w(fo, feat_in, 3, 3), bias(fo)
    params["regress_adjust_w"] = conv_w(4 * ANCHOR, 4 * ANCHOR, 1, 1, std=0.1)
    params["regress_adjust_b"] = bias(4 * ANCHOR)
    # FeatureAdaption: conv_offset (no bias), DeformConv weights (no bias)
    params["conv_offset_w"] = conv_w(DEFORM_GROUPS * 3 * 3 * 2, 2, 1, 1, std=0.1)
    params["conv_adaption_w"] = conv_w(fo, fo, 3, 3, std=0.01)
    # correlation kernels (normally produced by temple(z)); synthesized here
    params["r1_kernel"] = 0.05 * jax.random.normal(next(keys), (4 * ANCHOR, fo, CORR_K, CORR_K), jnp.float32)
    params["cls1_kernel"] = 0.05 * jax.random.normal(next(keys), (2 * ANCHOR, fo, CORR_K, CORR_K), jnp.float32)
    params["loc1_kernel"] = 0.05 * jax.random.normal(next(keys), (ANCHOR, fo, CORR_K, CORR_K), jnp.float32)
    return params


def prepare_params(p):
    """Hoisted weight preprocessing (run ONCE, outside jit): BN folding,
    OIHW -> [K,N] repack, head concatenation, regress_adjust fold, correlation
    block-diagonal, bf16 casts.  None of this is re-executed per forward."""
    bf = jnp.bfloat16
    prep = {}

    def fold(wk, bk, bnk):
        w, b = fold_bn(p[wk], p[bk], **p[bnk])
        return _w2mat(w).astype(bf), b.astype(jnp.float32)

    prep["conv1"] = fold("conv1_w", "conv1_b", "bn1")
    prep["conv2"] = fold("conv2_w", "conv2_b", "bn2")
    prep["conv3"] = fold("conv3_w", "conv3_b", "bn3")
    prep["conv4"] = fold("conv4_w", "conv4_b", "bn4")
    prep["conv5"] = fold("conv5_w", "conv5_b", "bn5")

    fo = FEATURE_OUT
    w_heads = jnp.concatenate([p["conv_loc2_w"], p["conv_r2_w"], p["conv_cls2_w"]], axis=0)
    b_heads = jnp.concatenate([p["conv_loc2_b"], p["conv_r2_b"], p["conv_cls2_b"]], axis=0)
    prep["heads"] = (_w2mat(w_heads).astype(bf), b_heads.astype(jnp.float32))

    off_oc = p["conv_offset_w"].shape[0]
    prep["offset"] = (_w2mat(p["conv_offset_w"]).astype(bf),
                      jnp.zeros((off_oc,), jnp.float32))
    prep["adaption"] = _w2mat(p["conv_adaption_w"]).astype(bf)

    # template correlations fused into ONE block-diagonal matmul;
    # regress_adjust (1x1 conv + bias) folded into r1_kernel exactly
    r1_folded = jnp.einsum("om,mikl->oikl",
                           p["regress_adjust_w"][:, :, 0, 0], p["r1_kernel"])
    wbd = _block_diag([_w2mat(p["loc1_kernel"]),    # [K, A]
                       _w2mat(r1_folded),           # [K, 4A]
                       _w2mat(p["cls1_kernel"])])   # [K, 2A]
    bias_all = jnp.concatenate([jnp.zeros((ANCHOR,), jnp.float32),
                                p["regress_adjust_b"].astype(jnp.float32),
                                jnp.zeros((2 * ANCHOR,), jnp.float32)])
    prep["corr"] = (wbd.astype(bf), bias_all)
    return prep


# -------------------------------- forward -----------------------------------
def siamrpn_forward(prep, x_nchw, shape_adaption):
    """x_nchw: [N,3,H,W]; shape_adaption: list, element 0 is [N,2,h,w] (NCHW)."""
    fo = FEATURE_OUT
    x = jnp.transpose(x_nchw, (0, 2, 3, 1))                      # -> NHWC

    # featureExtract (Conv, BN(folded), [MaxPool], ReLU ... ; ReLU commutes with MaxPool)
    w, b = prep["conv1"]; y = conv2d(x, w, b, 11, 11, stride=2, act="relu")
    y = maxpool2d(y)
    w, b = prep["conv2"]; y = conv2d(y, w, b, 5, 5, act="relu")
    y = maxpool2d(y)
    w, b = prep["conv3"]; y = conv2d(y, w, b, 3, 3, act="relu")
    w, b = prep["conv4"]; y = conv2d(y, w, b, 3, 3, act="relu")
    w, b = prep["conv5"]; x_f = conv2d(y, w, b, 3, 3, act="none")

    # heads: single fused 3x3 conv (shared input / shared im2col / one launch)
    w, b = prep["heads"]
    xx = conv2d(x_f, w, b, 3, 3, act="none")
    xx0, xx1, xx2 = xx[..., :fo], xx[..., fo:2 * fo], xx[..., 2 * fo:3 * fo]

    # FeatureAdaption: 1x1 offset conv on shapeAdaption[0], then a SINGLE
    # deform-conv call on xx1/xx2 stacked along batch (identical offsets/weights)
    shp = jnp.transpose(shape_adaption[0], (0, 2, 3, 1))
    w, b = prep["offset"]
    offset = conv2d(shp, w, b, 1, 1, act="none", out_dtype=jnp.float32)
    nb = xx1.shape[0]
    stacked = jnp.concatenate([xx1, xx2], axis=0)
    off2 = jnp.concatenate([offset, offset], axis=0)
    adapted = deform_conv2d(stacked, off2, prep["adaption"], fo,
                            DEFORM_GROUPS, act="relu")
    xx1a, xx2a = adapted[:nb], adapted[nb:]

    # template correlations fused into ONE block-diagonal Pallas matmul
    p0, oh, ow = _im2col(xx0, CORR_K, CORR_K, 1)
    p1, _, _ = _im2col(xx1a, CORR_K, CORR_K, 1)
    p2, _, _ = _im2col(xx2a, CORR_K, CORR_K, 1)
    kdim = CORR_K * CORR_K * fo
    m_rows = nb * oh * ow
    xm = jnp.concatenate([p0.reshape(m_rows, kdim),
                          p1.reshape(m_rows, kdim),
                          p2.reshape(m_rows, kdim)], axis=1)     # [M, 3K]
    wbd, bias_all = prep["corr"]
    y_all = pallas_matmul_bias(xm, wbd, bias_all, out_dtype=jnp.float32)

    loc = y_all[:, :ANCHOR].reshape(nb, oh, ow, ANCHOR)
    bbox_pred = y_all[:, ANCHOR:5 * ANCHOR].reshape(nb, oh, ow, 4 * ANCHOR)
    cls_score = y_all[:, 5 * ANCHOR:].reshape(nb, oh, ow, 2 * ANCHOR)

    to_nchw = lambda t: jnp.transpose(t, (0, 3, 1, 2))
    return ([to_nchw(cls_score)], [to_nchw(bbox_pred)], [to_nchw(loc)])


# ----------------------------------- main ------------------------------------
if __name__ == "__main__":
    key = jax.random.PRNGKey(0)
    kp, kx, ks = jax.random.split(key, 3)
    params = init_params(kp)
    prep = prepare_params(params)        # weight prep runs once, outside jit

    N, Himg = 2, 135  # smallest clean size the (11/s2, pool, 5, pool, 3,3,3) stack allows

    # derived spatial sizes (for the shapeAdaption input & output checks)
    s = (Himg - 11) // 2 + 1
    s = (s - 3) // 2 + 1
    s = s - 4
    s = (s - 3) // 2 + 1
    xf_sz = s - 6            # after three 3x3 convs
    xx_sz = xf_sz - 2        # after head 3x3 convs
    corr_sz = xx_sz - CORR_K + 1

    x = jax.random.normal(kx, (N, 3, Himg, Himg), jnp.float32)
    shape0 = jax.random.normal(ks, (N, 2, xx_sz, xx_sz), jnp.float32)

    fwd = jax.jit(siamrpn_forward)
    cls_score, bbox_pred, loc = fwd(prep, x, [shape0])
    jax.block_until_ready((cls_score, bbox_pred, loc))

    assert cls_score[0].shape == (N, 2 * ANCHOR, corr_sz, corr_sz)
    assert bbox_pred[0].shape == (N, 4 * ANCHOR, corr_sz, corr_sz)
    assert loc[0].shape == (N, ANCHOR, corr_sz, corr_sz)
    assert bool(jnp.all(jnp.isfinite(cls_score[0])))
    print("KERNEL_OK")
</pallas_src>

<mosaic_0001>
module attributes {stable_mosaic.version = 11 : i64} {
  func.func @_matmul_bias_act_kernel(%arg0: i32, %arg1: memref<1008x363xbf16, #tpu.memory_space<vmem>>, %arg2: memref<363x8xbf16, #tpu.memory_space<vmem>>, %arg3: memref<1x8xf32, #tpu.memory_space<vmem>>, %arg4: memref<1008x8xbf16, #tpu.memory_space<vmem>>) attributes {dimension_semantics = [#tpu.dimension_semantics<parallel>], iteration_bounds = array<i64: 8>, scalar_prefetch = 0 : i64, scratch_operands = 0 : i64, tpu.core_type = #tpu.core_type<tc>, window_params = [{transform_indices = @transform_0, window_bounds = array<i64: 1008, 363>}, {pipeline_mode = #tpu.pipeline_mode<synchronous>, transform_indices = @transform_1, window_bounds = array<i64: 363, 8>}, {pipeline_mode = #tpu.pipeline_mode<synchronous>, transform_indices = @transform_2, window_bounds = array<i64: 1, 8>}, {transform_indices = @transform_3, window_bounds = array<i64: 1008, 8>}]} {
    %c0 = arith.constant 0 : index
    %c0_0 = arith.constant 0 : index
    %0 = vector.load %arg1[%c0, %c0_0] : memref<1008x363xbf16, #tpu.memory_space<vmem>>, vector<1008x363xbf16>
    %c0_1 = arith.constant 0 : index
    %c0_2 = arith.constant 0 : index
    %1 = vector.load %arg2[%c0_1, %c0_2] : memref<363x8xbf16, #tpu.memory_space<vmem>>, vector<363x8xbf16>
    %cst = arith.constant dense<0.000000e+00> : vector<1008x8xf32>
    %2 = tpu.matmul %0, %1, %cst {dimension_numbers = #tpu.dot_dimension_numbers<[1], [0], [0], [1], [0, 0, 1, 1], [], []>} : vector<1008x363xbf16>, vector<363x8xbf16>, vector<1008x8xf32> -> vector<1008x8xf32>
    %c0_3 = arith.constant 0 : index
    %c0_4 = arith.constant 0 : index
    %3 = vector.load %arg3[%c0_3, %c0_4] : memref<1x8xf32, #tpu.memory_space<vmem>>, vector<1x8xf32>
    %4 = vector.broadcast %3 : vector<1x8xf32> to vector<1008x8xf32>
    %5 = arith.addf %2, %4 : vector<1008x8xf32>
    %cst_5 = arith.constant 0.000000e+00 : f32
    %6 = vector.broadcast %cst_5 : f32 to vector<1008x8xf32>
    %7 = arith.maximumf %5, %6 : vector<1008x8xf32>
    %8 = arith.truncf %7 : vector<1008x8xf32> to vector<1008x8xbf16>
    %c0_6 = arith.constant 0 : index
    %c0_7 = arith.constant 0 : index
    %9 = vector.load %arg4[%c0_6, %c0_7] : memref<1008x8xbf16, #tpu.memory_space<vmem>>, vector<1008x8xbf16>
    tpu.vector_store %arg4[%c0_6, %c0_7], %8 {strides = array<i32>} : memref<1008x8xbf16, #tpu.memory_space<vmem>>, vector<1008x8xbf16>,
    return
  }
  func.func @transform_0(%arg0: i32) -> (i32, i32) {
    %c0_i32 = arith.constant 0 : i32
    %c0_i32_0 = arith.constant 0 : i32
    return %arg0, %c0_i32 : i32, i32
  }
  func.func @transform_1(%arg0: i32) -> (i32, i32) {
    %c0_i32 = arith.constant 0 : i32
    %c0_i32_0 = arith.constant 0 : i32
    %c0_i32_1 = arith.constant 0 : i32
    return %c0_i32, %c0_i32_0 : i32, i32
  }
  func.func @transform_2(%arg0: i32) -> (i32, i32) {
    %c0_i32 = arith.constant 0 : i32
    %c0_i32_0 = arith.constant 0 : i32
    %c0_i32_1 = arith.constant 0 : i32
    return %c0_i32, %c0_i32_0 : i32, i32
  }
  func.func @transform_3(%arg0: i32) -> (i32, i32) {
    %c0_i32 = arith.constant 0 : i32
    %c0_i32_0 = arith.constant 0 : i32
    return %arg0, %c0_i32 : i32, i32
  }
}

module attributes {stable_mosaic.version = 11 : i64} {
  func.func @_matmul_bias_act_kernel(%arg0: i32, %arg1: memref<736x200xbf16, #tpu.memory_space<vmem>>, %arg2: memref<200x16xbf16, #tpu.memory_space<vmem>>, %arg3: memref<1x16xf32, #tpu.memory_space<vmem>>, %arg4: memref<736x16xbf16, #tpu.memory_space<vmem>>) attributes {dimension_semantics = [#tpu.dimension_semantics<parallel>], iteration_bounds = array<i64: 2>, scalar_prefetch = 0 : i64, scratch_operands = 0 : i64, tpu.core_type = #tpu.core_type<tc>, window_params = [{transform_indices = @transform_0, window_bounds = array<i64: 736, 200>}, {pipeline_mode = #tpu.pipeline_mode<synchronous>, transform_indices = @transform_1, window_bounds = array<i64: 200, 16>}, {pipeline_mode = #tpu.pipeline_mode<synchronous>, transform_indices = @transform_2, window_bounds = array<i64: 1, 16>}, {transform_indices = @transform_3, window_bounds = array<i64: 736, 16>}]} {
    %c0 = arith.constant 0 : index
    %c0_0 = arith.constant 0 : index
    %0 = vector.load %arg1[%c0, %c0_0] : memref<736x200xbf16, #tpu.memory_space<vmem>>, vector<736x200xbf16>
    %c0_1 = arith.constant 0 : index
    %c0_2 = arith.constant 0 : index
    %1 = vector.load %arg2[%c0_1, %c0_2] : memref<200x16xbf16, #tpu.memory_space<vmem>>, vector<200x16xbf16>
    %cst = arith.constant dense<0.000000e+00> : vector<736x16xf32>
    %2 = tpu.matmul %0, %1, %cst {dimension_numbers = #tpu.dot_dimension_numbers<[1], [0], [0], [1], [0, 0, 1, 1], [], []>} : vector<736x200xbf16>, vector<200x16xbf16>, vector<736x16xf32> -> vector<736x16xf32>
    %c0_3 = arith.constant 0 : index
    %c0_4 = arith.constant 0 : index
    %3 = vector.load %arg3[%c0_3, %c0_4] : memref<1x16xf32, #tpu.memory_space<vmem>>, vector<1x16xf32>
    %4 = vector.broadcast %3 : vector<1x16xf32> to vector<736x16xf32>
    %5 = arith.addf %2, %4 : vector<736x16xf32>
    %cst_5 = arith.constant 0.000000e+00 : f32
    %6 = vector.broadcast %cst_5 : f32 to vector<736x16xf32>
    %7 = arith.maximumf %5, %6 : vector<736x16xf32>
    %8 = arith.truncf %7 : vector<736x16xf32> to vector<736x16xbf16>
    %c0_6 = arith.constant 0 : index
    %c0_7 = arith.constant 0 : index
    %9 = vector.load %arg4[%c0_6, %c0_7] : memref<736x16xbf16, #tpu.memory_space<vmem>>, vector<736x16xbf16>
    tpu.vector_store %arg4[%c0_6, %c0_7], %8 {strides = array<i32>} : memref<736x16xbf16, #tpu.memory_space<vmem>>, vector<736x16xbf16>,
    return
  }
  func.func @transform_0(%arg0: i32) -> (i32, i32) {
    %c0_i32 = arith.constant 0 : i32
    %c0_i32_0 = arith.constant 0 : i32
    return %arg0, %c0_i32 : i32, i32
  }
  func.func @transform_1(%arg0: i32) -> (i32, i32) {
    %c0_i32 = arith.constant 0 : i32
    %c0_i32_0 = arith.constant 0 : i32
    %c0_i32_1 = arith.constant 0 : i32
    return %c0_i32, %c0_i32_0 : i32, i32
  }
  func.func @transform_2(%arg0: i32) -> (i32, i32) {
    %c0_i32 = arith.constant 0 : i32
    %c0_i32_0 = arith.constant 0 : i32
    %c0_i32_1 = arith.constant 0 : i32
    return %c0_i32, %c0_i32_0 : i32, i32
  }
  func.func @transform_3(%arg0: i32) -> (i32, i32) {
    %c0_i32 = arith.constant 0 : i32
    %c0_i32_0 = arith.constant 0 : i32
    return %arg0, %c0_i32 : i32, i32
  }
}

module attributes {stable_mosaic.version = 11 : i64} {
  func.func @_matmul_bias_act_kernel(%arg0: i32, %arg1: memref<128x144xbf16, #tpu.memory_space<vmem>>, %arg2: memref<144x24xbf16, #tpu.memory_space<vmem>>, %arg3: memref<1x24xf32, #tpu.memory_space<vmem>>, %arg4: memref<128x24xbf16, #tpu.memory_space<vmem>>) attributes {dimension_semantics = [#tpu.dimension_semantics<parallel>], iteration_bounds = array<i64: 2>, scalar_prefetch = 0 : i64, scratch_operands = 0 : i64, tpu.core_type = #tpu.core_type<tc>, window_params = [{transform_indices = @transform_0, window_bounds = array<i64: 128, 144>}, {pipeline_mode = #tpu.pipeline_mode<synchronous>, transform_indices = @transform_1, window_bounds = array<i64: 144, 24>}, {pipeline_mode = #tpu.pipeline_mode<synchronous>, transform_indices = @transform_2, window_bounds = array<i64: 1, 24>}, {transform_indices = @transform_3, window_bounds = array<i64: 128, 24>}]} {
    %c0 = arith.constant 0 : index
    %c0_0 = arith.constant 0 : index
    %0 = vector.load %arg1[%c0, %c0_0] : memref<128x144xbf16, #tpu.memory_space<vmem>>, vector<128x144xbf16>
    %c0_1 = arith.constant 0 : index
    %c0_2 = arith.constant 0 : index
    %1 = vector.load %arg2[%c0_1, %c0_2] : memref<144x24xbf16, #tpu.memory_space<vmem>>, vector<144x24xbf16>
    %cst = arith.constant dense<0.000000e+00> : vector<128x24xf32>
    %2 = tpu.matmul %0, %1, %cst {dimension_numbers = #tpu.dot_dimension_numbers<[1], [0], [0], [1], [0, 0, 1, 1], [], []>} : vector<128x144xbf16>, vector<144x24xbf16>, vector<128x24xf32> -> vector<128x24xf32>
    %c0_3 = arith.constant 0 : index
    %c0_4 = arith.constant 0 : index
    %3 = vector.load %arg3[%c0_3, %c0_4] : memref<1x24xf32, #tpu.memory_space<vmem>>, vector<1x24xf32>
    %4 = vector.broadcast %3 : vector<1x24xf32> to vector<128x24xf32>
    %5 = arith.addf %2, %4 : vector<128x24xf32>
    %cst_5 = arith.constant 0.000000e+00 : f32
    %6 = vector.broadcast %cst_5 : f32 to vector<128x24xf32>
    %7 = arith.maximumf %5, %6 : vector<128x24xf32>
    %8 = arith.truncf %7 : vector<128x24xf32> to vector<128x24xbf16>
    %c0_6 = arith.constant 0 : index
    %c0_7 = arith.constant 0 : index
    %9 = vector.load %arg4[%c0_6, %c0_7] : memref<128x24xbf16, #tpu.memory_space<vmem>>, vector<128x24xbf16>
    tpu.vector_store %arg4[%c0_6, %c0_7], %8 {strides = array<i32>} : memref<128x24xbf16, #tpu.memory_space<vmem>>, vector<128x24xbf16>,
    return
  }
  func.func @transform_0(%arg0: i32) -> (i32, i32) {
    %c0_i32 = arith.constant 0 : i32
    %c0_i32_0 = arith.constant 0 : i32
    return %arg0, %c0_i32 : i32, i32
  }
  func.func @transform_1(%arg0: i32) -> (i32, i32) {
    %c0_i32 = arith.constant 0 : i32
    %c0_i32_0 = arith.constant 0 : i32
    %c0_i32_1 = arith.constant 0 : i32
    return %c0_i32, %c0_i32_0 : i32, i32
  }
  func.func @transform_2(%arg0: i32) -> (i32, i32) {
    %c0_i32 = arith.constant 0 : i32
    %c0_i32_0 = arith.constant 0 : i32
    %c0_i32_1 = arith.constant 0 : i32
    return %c0_i32, %c0_i32_0 : i32, i32
  }
  func.func @transform_3(%arg0: i32) -> (i32, i32) {
    %c0_i32 = arith.constant 0 : i32
    %c0_i32_0 = arith.constant 0 : i32
    return %arg0, %c0_i32 : i32, i32
  }
}

module attributes {stable_mosaic.version = 11 : i64} {
  func.func @_matmul_bias_act_kernel(%arg0: i32, %arg1: memref<96x216xbf16, #tpu.memory_space<vmem>>, %arg2: memref<216x24xbf16, #tpu.memory_space<vmem>>, %arg3: memref<1x24xf32, #tpu.memory_space<vmem>>, %arg4: memref<96x24xbf16, #tpu.memory_space<vmem>>) attributes {dimension_semantics = [#tpu.dimension_semantics<parallel>], iteration_bounds = array<i64: 2>, scalar_prefetch = 0 : i64, scratch_operands = 0 : i64, tpu.core_type = #tpu.core_type<tc>, window_params = [{transform_indices = @transform_0, window_bounds = array<i64: 96, 216>}, {pipeline_mode = #tpu.pipeline_mode<synchronous>, transform_indices = @transform_1, window_bounds = array<i64: 216, 24>}, {pipeline_mode = #tpu.pipeline_mode<synchronous>, transform_indices = @transform_2, window_bounds = array<i64: 1, 24>}, {transform_indices = @transform_3, window_bounds = array<i64: 96, 24>}]} {
    %c0 = arith.constant 0 : index
    %c0_0 = arith.constant 0 : index
    %0 = vector.load %arg1[%c0, %c0_0] : memref<96x216xbf16, #tpu.memory_space<vmem>>, vector<96x216xbf16>
    %c0_1 = arith.constant 0 : index
    %c0_2 = arith.constant 0 : index
    %1 = vector.load %arg2[%c0_1, %c0_2] : memref<216x24xbf16, #tpu.memory_space<vmem>>, vector<216x24xbf16>
    %cst = arith.constant dense<0.000000e+00> : vector<96x24xf32>
    %2 = tpu.matmul %0, %1, %cst {dimension_numbers = #tpu.dot_dimension_numbers<[1], [0], [0], [1], [0, 0, 1, 1], [], []>} : vector<96x216xbf16>, vector<216x24xbf16>, vector<96x24xf32> -> vector<96x24xf32>
    %c0_3 = arith.constant 0 : index
    %c0_4 = arith.constant 0 : index
    %3 = vector.load %arg3[%c0_3, %c0_4] : memref<1x24xf32, #tpu.memory_space<vmem>>, vector<1x24xf32>
    %4 = vector.broadcast %3 : vector<1x24xf32> to vector<96x24xf32>
    %5 = arith.addf %2, %4 : vector<96x24xf32>
    %cst_5 = arith.constant 0.000000e+00 : f32
    %6 = vector.broadcast %cst_5 : f32 to vector<96x24xf32>
    %7 = arith.maximumf %5, %6 : vector<96x24xf32>
    %8 = arith.truncf %7 : vector<96x24xf32> to vector<96x24xbf16>
    %c0_6 = arith.constant 0 : index
    %c0_7 = arith.constant 0 : index
    %9 = vector.load %arg4[%c0_6, %c0_7] : memref<96x24xbf16, #tpu.memory_space<vmem>>, vector<96x24xbf16>
    tpu.vector_store %arg4[%c0_6, %c0_7], %8 {strides = array<i32>} : memref<96x24xbf16, #tpu.memory_space<vmem>>, vector<96x24xbf16>,
    return
  }
  func.func @transform_0(%arg0: i32) -> (i32, i32) {
    %c0_i32 = arith.constant 0 : i32
    %c0_i32_0 = arith.constant 0 : i32
    return %arg0, %c0_i32 : i32, i32
  }
  func.func @transform_1(%arg0: i32) -> (i32, i32) {
    %c0_i32 = arith.constant 0 : i32
    %c0_i32_0 = arith.constant 0 : i32
    %c0_i32_1 = arith.constant 0 : i32
    return %c0_i32, %c0_i32_0 : i32, i32
  }
  func.func @transform_2(%arg0: i32) -> (i32, i32) {
    %c0_i32 = arith.constant 0 : i32
    %c0_i32_0 = arith.constant 0 : i32
    %c0_i32_1 = arith.constant 0 : i32
    return %c0_i32, %c0_i32_0 : i32, i32
  }
  func.func @transform_3(%arg0: i32) -> (i32, i32) {
    %c0_i32 = arith.constant 0 : i32
    %c0_i32_0 = arith.constant 0 : i32
    return %arg0, %c0_i32 : i32, i32
  }
}

module attributes {stable_mosaic.version = 11 : i64} {
  func.func @_matmul_bias_act_kernel(%arg0: memref<98x216xbf16, #tpu.memory_space<vmem>>, %arg1: memref<216x16xbf16, #tpu.memory_space<vmem>>, %arg2: memref<1x16xf32, #tpu.memory_space<vmem>>, %arg3: memref<98x16xbf16, #tpu.memory_space<vmem>>) attributes {dimension_semantics = [], scalar_prefetch = 0 : i64, scratch_operands = 0 : i64, tpu.core_type = #tpu.core_type<tc>} {
    %c0 = arith.constant 0 : index
    %c0_0 = arith.constant 0 : index
    %0 = vector.load %arg0[%c0, %c0_0] : memref<98x216xbf16, #tpu.memory_space<vmem>>, vector<98x216xbf16>
    %c0_1 = arith.constant 0 : index
    %c0_2 = arith.constant 0 : index
    %1 = vector.load %arg1[%c0_1, %c0_2] : memref<216x16xbf16, #tpu.memory_space<vmem>>, vector<216x16xbf16>
    %cst = arith.constant dense<0.000000e+00> : vector<98x16xf32>
    %2 = tpu.matmul %0, %1, %cst {dimension_numbers = #tpu.dot_dimension_numbers<[1], [0], [0], [1], [0, 0, 1, 1], [], []>} : vector<98x216xbf16>, vector<216x16xbf16>, vector<98x16xf32> -> vector<98x16xf32>
    %c0_3 = arith.constant 0 : index
    %c0_4 = arith.constant 0 : index
    %3 = vector.load %arg2[%c0_3, %c0_4] : memref<1x16xf32, #tpu.memory_space<vmem>>, vector<1x16xf32>
    %4 = vector.broadcast %3 : vector<1x16xf32> to vector<98x16xf32>
    %5 = arith.addf %2, %4 : vector<98x16xf32>
    %6 = arith.truncf %5 : vector<98x16xf32> to vector<98x16xbf16>
    %c0_5 = arith.constant 0 : index
    %c0_6 = arith.constant 0 : index
    %7 = vector.load %arg3[%c0_5, %c0_6] : memref<98x16xbf16, #tpu.memory_space<vmem>>, vector<98x16xbf16>
    tpu.vector_store %arg3[%c0_5, %c0_6], %6 {strides = array<i32>} : memref<98x16xbf16, #tpu.memory_space<vmem>>, vector<98x16xbf16>,
    return
  }
}

module attributes {stable_mosaic.version = 11 : i64} {
  func.func @_matmul_bias_act_kernel(%arg0: memref<50x144xbf16, #tpu.memory_space<vmem>>, %arg1: memref<144x48xbf16, #tpu.memory_space<vmem>>, %arg2: memref<1x48xf32, #tpu.memory_space<vmem>>, %arg3: memref<50x48xbf16, #tpu.memory_space<vmem>>) attributes {dimension_semantics = [], scalar_prefetch = 0 : i64, scratch_operands = 0 : i64, tpu.core_type = #tpu.core_type<tc>} {
    %c0 = arith.constant 0 : index
    %c0_0 = arith.constant 0 : index
    %0 = vector.load %arg0[%c0, %c0_0] : memref<50x144xbf16, #tpu.memory_space<vmem>>, vector<50x144xbf16>
    %c0_1 = arith.constant 0 : index
    %c0_2 = arith.constant 0 : index
    %1 = vector.load %arg1[%c0_1, %c0_2] : memref<144x48xbf16, #tpu.memory_space<vmem>>, vector<144x48xbf16>
    %cst = arith.constant dense<0.000000e+00> : vector<50x48xf32>
    %2 = tpu.matmul %0, %1, %cst {dimension_numbers = #tpu.dot_dimension_numbers<[1], [0], [0], [1], [0, 0, 1, 1], [], []>} : vector<50x144xbf16>, vector<144x48xbf16>, vector<50x48xf32> -> vector<50x48xf32>
    %c0_3 = arith.constant 0 : index
    %c0_4 = arith.constant 0 : index
    %3 = vector.load %arg2[%c0_3, %c0_4] : memref<1x48xf32, #tpu.memory_space<vmem>>, vector<1x48xf32>
    %4 = vector.broadcast %3 : vector<1x48xf32> to vector<50x48xf32>
    %5 = arith.addf %2, %4 : vector<50x48xf32>
    %6 = arith.truncf %5 : vector<50x48xf32> to vector<50x48xbf16>
    %c0_5 = arith.constant 0 : index
    %c0_6 = arith.constant 0 : index
    %7 = vector.load %arg3[%c0_5, %c0_6] : memref<50x48xbf16, #tpu.memory_space<vmem>>, vector<50x48xbf16>
    tpu.vector_store %arg3[%c0_5, %c0_6], %6 {strides = array<i32>} : memref<50x48xbf16, #tpu.memory_space<vmem>>, vector<50x48xbf16>,
    return
  }
}

module attributes {stable_mosaic.version = 11 : i64} {
  func.func @_matmul_bias_act_kernel(%arg0: memref<50x2xbf16, #tpu.memory_space<vmem>>, %arg1: memref<2x72xbf16, #tpu.memory_space<vmem>>, %arg2: memref<1x72xf32, #tpu.memory_space<vmem>>, %arg3: memref<50x72xf32, #tpu.memory_space<vmem>>) attributes {dimension_semantics = [], scalar_prefetch = 0 : i64, scratch_operands = 0 : i64, tpu.core_type = #tpu.core_type<tc>} {
    %c0 = arith.constant 0 : index
    %c0_0 = arith.constant 0 : index
    %0 = vector.load %arg0[%c0, %c0_0] : memref<50x2xbf16, #tpu.memory_space<vmem>>, vector<50x2xbf16>
    %c0_1 = arith.constant 0 : index
    %c0_2 = arith.constant 0 : index
    %1 = vector.load %arg1[%c0_1, %c0_2] : memref<2x72xbf16, #tpu.memory_space<vmem>>, vector<2x72xbf16>
    %cst = arith.constant dense<0.000000e+00> : vector<50x72xf32>
    %2 = tpu.matmul %0, %1, %cst {dimension_numbers = #tpu.dot_dimension_numbers<[1], [0], [0], [1], [0, 0, 1, 1], [], []>} : vector<50x2xbf16>, vector<2x72xbf16>, vector<50x72xf32> -> vector<50x72xf32>
    %c0_3 = arith.constant 0 : index
    %c0_4 = arith.constant 0 : index
    %3 = vector.load %arg2[%c0_3, %c0_4] : memref<1x72xf32, #tpu.memory_space<vmem>>, vector<1x72xf32>
    %4 = vector.broadcast %3 : vector<1x72xf32> to vector<50x72xf32>
    %5 = arith.addf %2, %4 : vector<50x72xf32>
    %c0_5 = arith.constant 0 : index
    %c0_6 = arith.constant 0 : index
    %6 = vector.load %arg3[%c0_5, %c0_6] : memref<50x72xf32, #tpu.memory_space<vmem>>, vector<50x72xf32>
    tpu.vector_store %arg3[%c0_5, %c0_6], %5 {strides = array<i32>} : memref<50x72xf32, #tpu.memory_space<vmem>>, vector<50x72xf32>,
    return
  }
}

module attributes {stable_mosaic.version = 11 : i64} {
  func.func @_matmul_bias_act_kernel(%arg0: memref<100x144xbf16, #tpu.memory_space<vmem>>, %arg1: memref<144x16xbf16, #tpu.memory_space<vmem>>, %arg2: memref<1x16xf32, #tpu.memory_space<vmem>>, %arg3: memref<100x16xbf16, #tpu.memory_space<vmem>>) attributes {dimension_semantics = [], scalar_prefetch = 0 : i64, scratch_operands = 0 : i64, tpu.core_type = #tpu.core_type<tc>} {
    %c0 = arith.constant 0 : index
    %c0_0 = arith.constant 0 : index
    %0 = vector.load %arg0[%c0, %c0_0] : memref<100x144xbf16, #tpu.memory_space<vmem>>, vector<100x144xbf16>
    %c0_1 = arith.constant 0 : index
    %c0_2 = arith.constant 0 : index
    %1 = vector.load %arg1[%c0_1, %c0_2] : memref<144x16xbf16, #tpu.memory_space<vmem>>, vector<144x16xbf16>
    %cst = arith.constant dense<0.000000e+00> : vector<100x16xf32>
    %2 = tpu.matmul %0, %1, %cst {dimension_numbers = #tpu.dot_dimension_numbers<[1], [0], [0], [1], [0, 0, 1, 1], [], []>} : vector<100x144xbf16>, vector<144x16xbf16>, vector<100x16xf32> -> vector<100x16xf32>
    %c0_3 = arith.constant 0 : index
    %c0_4 = arith.constant 0 : index
    %3 = vector.load %arg2[%c0_3, %c0_4] : memref<1x16xf32, #tpu.memory_space<vmem>>, vector<1x16xf32>
    %4 = vector.broadcast %3 : vector<1x16xf32> to vector<100x16xf32>
    %5 = arith.addf %2, %4 : vector<100x16xf32>
    %cst_5 = arith.constant 0.000000e+00 : f32
    %6 = vector.broadcast %cst_5 : f32 to vector<100x16xf32>
    %7 = arith.maximumf %5, %6 : vector<100x16xf32>
    %8 = arith.truncf %7 : vector<100x16xf32> to vector<100x16xbf16>
    %c0_6 = arith.constant 0 : index
    %c0_7 = arith.constant 0 : index
    %9 = vector.load %arg3[%c0_6, %c0_7] : memref<100x16xbf16, #tpu.memory_space<vmem>>, vector<100x16xbf16>
    tpu.vector_store %arg3[%c0_6, %c0_7], %8 {strides = array<i32>} : memref<100x16xbf16, #tpu.memory_space<vmem>>, vector<100x16xbf16>,
    return
  }
}

module attributes {stable_mosaic.version = 11 : i64} {
  func.func @_matmul_bias_act_kernel(%arg0: memref<8x768xbf16, #tpu.memory_space<vmem>>, %arg1: memref<768x7xbf16, #tpu.memory_space<vmem>>, %arg2: memref<1x7xf32, #tpu.memory_space<vmem>>, %arg3: memref<8x7xf32, #tpu.memory_space<vmem>>) attributes {dimension_semantics = [], scalar_prefetch = 0 : i64, scratch_operands = 0 : i64, tpu.core_type = #tpu.core_type<tc>} {
    %c0 = arith.constant 0 : index
    %c0_0 = arith.constant 0 : index
    %0 = vector.load %arg0[%c0, %c0_0] : memref<8x768xbf16, #tpu.memory_space<vmem>>, vector<8x768xbf16>
    %c0_1 = arith.constant 0 : index
    %c0_2 = arith.constant 0 : index
    %1 = vector.load %arg1[%c0_1, %c0_2] : memref<768x7xbf16, #tpu.memory_space<vmem>>, vector<768x7xbf16>
    %cst = arith.constant dense<0.000000e+00> : vector<8x7xf32>
    %2 = tpu.matmul %0, %1, %cst {dimension_numbers = #tpu.dot_dimension_numbers<[1], [0], [0], [1], [0, 0, 1, 1], [], []>} : vector<8x768xbf16>, vector<768x7xbf16>, vector<8x7xf32> -> vector<8x7xf32>
    %c0_3 = arith.constant 0 : index
    %c0_4 = arith.constant 0 : index
    %3 = vector.load %arg2[%c0_3, %c0_4] : memref<1x7xf32, #tpu.memory_space<vmem>>, vector<1x7xf32>
    %4 = vector.broadcast %3 : vector<1x7xf32> to vector<8x7xf32>
    %5 = arith.addf %2, %4 : vector<8x7xf32>
    %c0_5 = arith.constant 0 : index
    %c0_6 = arith.constant 0 : index
    %6 = vector.load %arg3[%c0_5, %c0_6] : memref<8x7xf32, #tpu.memory_space<vmem>>, vector<8x7xf32>
    tpu.vector_store %arg3[%c0_5, %c0_6], %5 {strides = array<i32>} : memref<8x7xf32, #tpu.memory_space<vmem>>, vector<8x7xf32>,
    return
  }
}

</mosaic_0001>

<bundles_post_ra>
// kernel: siamrpn_forward.9
= control target key start
LH: loop header
LB: loop body
LE: loop exit
PB: predicated region body
PF: predicated region fallthrough
CT: control target
= control target key end

     0   :  { %s4846_s12 = smov 0   ;;  %s4848_s13 = smov 0   ;;  %s6161_s0 = inlined_call_operand.vmem [shape: bf16[7938,363], index: 0, kind: input, shape index: {}]   ;;  %s6162_s1 = inlined_call_operand.vmem [shape: bf16[363,8], index: 1, kind: input, shape index: {}]   ;;  %s6163_s2 = inlined_call_operand.vmem [shape: f32[1,8], index: 2, kind: input, shape index: {}]   ;;  %s6164_s3 = inlined_call_operand.vmem [shape: bf16[7938,8], index: 3, kind: output, shape index: {}]  }
   0x1   :  { %s4850_s14 = smov 0  }
   0x2 LB: > { %s4859_s15 = sadd.s32 4294967295, %s4791_s14   ;;  %s4861_s16 = sadd.s32 1, %s4791_s14   ;;  %s4791_s14 = sphi %s4850_s14, %s6173_s14   ;;  %s4787_s13 = sphi %s4848_s13, %s6172_s13   ;;  %s4783_s12 = sphi %s4846_s12, %s6171_s12  }
   0x3   : > { %s85_s17 = ssub.s32 %s4791_s14, %s4861_s16  ;;  %s88_s18 = sadd.s32 1, %s4787_s13 }
   0x4   : > { %p86_p0 = scmp.eq.s32.totalorder %s85_s17, 0  ;;  %p98_p1 = scmp.ne.s32.totalorder %s4787_s13, %s4783_s12 }
   0x5   : > { %p99_p2 = scmp.eq.s32.totalorder %s4859_s15, 7  ;;  %p3476_p3 = scmp.ge.s32.totalorder %s4791_s14, 1 }
   0x6   : > { %s4869_s19 = scalar_select %p86_p0, %s4787_s13, %s88_s18  }
   0x7   : > { %p4871_p4 = por %p99_p2, %p98_p1  ;;  %p149_p5 = scmp.lt.s32.totalorder %s4791_s14, 9 }
   0x9   : > { %p150_p6 = pnand %p3476_p3, %p149_p5 }
   0xa   : > { %s4910_s10 = smul.u32 (!%p150_p6), 126, %s4859_s15 }
   0xb   : > { %153 = sbr.rel (%p150_p6) target bundleno = 1012 (0x3f4), region = 32 }
   0xc   : > { %p184_p7 = scmp.lt.s32.totalorder (!%p150_p6), %s4910_s10, 992 }
  0x10   : > { %v4600_v0 = vld [vmem:[%s6162_s1 + $0x38] sm:$0xff]  ;;  %v4324_v2 = vld [vmem:[%s6162_s1 + $0xb0] sm:$0xf]  ;;  %vm1775_vm0 = vcmask 1044480   ;;  %vm1776_vm1 = vcmask 1045504   ;;  %v4825_v5 = vmov 65535  }
  0x11   : > { %v4881_v1 = vld [vmem:[%s6162_s1 + $0x78] sm:$0xff]  ;;  %v4615_v3 = vld [vmem:[%s6162_s1 + $0xb0] sm:$0x30]  ;;  %1782 = vmatpush.bf16.msra.mxu0 %v4600_v0  ;;  %4619 = vmatpush.bf16.msra.mxu3 %v4600_v0  ;;  %v1777_v6 = vsel %vm1775_vm0, 4294967295, %v4825_v5  ;;  %v4904_v11 = vld [vmem:[%s6162_s1 + $0xa8] sm:$0xff]  ;;  %s185_s29 = scalar_select %p184_p7, %s4910_s10, 992 }
  0x12   : > { %v4325_v4 = vor.u32 %v4615_v3, %v4324_v2  ;;  %v4599_v7 = vld [vmem:[%s6162_s1 + $0x30] sm:$0xff]  ;;  %2106 = vmatpush.bf16.msra.mxu1 %v4881_v1  ;;  %v1778_v8 = vsel %vm1776_vm1, %v1777_v6, 0  ;;  %v4598_v12 = vld [vmem:[%s6162_s1 + $0x28] sm:$0xff]  ;;  %v4920_v14 = vld [vmem:[%s6162_s1 + $0xa0] sm:$0xff]  ;;  %vm1585_vm2 = vcmask 875520   ;;  %vm3006_vm3 = vcmask 60416  }
  0x13   : > { %v4896_v9 = vld [vmem:[%s6162_s1 + $0x70] sm:$0xff]  ;;  %v4606_v13 = vld [vmem:[%s6162_s1 + $0x68] sm:$0xff]  ;;  %v4597_v15 = vld [vmem:[%s6162_s1 + $0x20] sm:$0xff]  ;;  %s4643_s9 = smul.u32 12, %s185_s29  ;;  %s3141_s24 = ssub.s32 (%p4871_p4), 993, %s4910_s10 }
  0x14   : > { %v4898_v10 = vand.u32 %v4325_v4, %v1778_v8  ;;  %v4929_v16 = vld [vmem:[%s6162_s1 + $0x60] sm:$0xff]  ;;  %v4935_v17 = vld [vmem:[%s6162_s1 + $0x98] sm:$0xff]  ;;  %v4949_v20 = vld [vmem:[%s6162_s1 + $0x90] sm:$0xff]  ;;  %p3142_p8 = scmp.lt.s32.totalorder (%p4871_p4), %s3141_s24, 126 }
  0x15   : > { %1783 = vmatpush.bf16.msra.mxu0 %v4599_v7  ;;  %4620 = vmatpush.bf16.msra.mxu3 %v4599_v7  ;;  %v4596_v18 = vld [vmem:[%s6162_s1 + $0x18] sm:$0xff]  ;;  %v4595_v21 = vld [vmem:[%s6162_s1 + $0x10] sm:$0xff]  ;;  %v4961_v23 = vld [vmem:[%s6162_s1 + $0x88] sm:$0xff]  ;;  %s4969_s25 = scalar_lea.vmem %s6161_s0, %s4643_s9  ;;  %s175_s9 = sand.u32 1, %s4783_s12  }
  0x16   : > { %2431 = vmatpush.bf16.msra.mxu2 %v4898_v10  ;;  %2107 = vmatpush.bf16.msra.mxu1 %v4896_v9  ;;  %v4604_v19 = vld [vmem:[%s6162_s1 + $0x58] sm:$0xff]  ;;  %v4603_v22 = vld [vmem:[%s6162_s1 + $0x50] sm:$0xff]  ;;  %v4594_v24 = vld [vmem:[%s6162_s1 + $0x8] sm:$0xff]  ;;  %s4642_s11 = smul.u32 504, %s175_s9 }
  0x17   : > { %v4602_v25 = vld [vmem:[%s6162_s1 + $0x48] sm:$0xff]  ;;  %v4977_v26 = vld [vmem:[%s6162_s1 + $0x80] sm:$0xff]  ;;  %v4406_v30 = vld [vmem:[%s4969_s25 + $0x10] sm:$0xf0] }
  0x18   : > { %v4593_v27 = vld [vmem:[%s6162_s1] sm:$0xff]  ;;  %v3488_v29 = vld [vmem:[%s4969_s25 + $0x8] sm:$0xf]  ;;  %v4405_v32 = vld [vmem:[%s4969_s25 + $0x8] sm:$0xf0]  ;;  %s5094_s12 = scalar_lea.vmem [#allocation2], %s4642_s11  }
  0x19   : > { %1784 = vmatpush.bf16.msra.mxu0 %v4598_v12  ;;  %4621 = vmatpush.bf16.msra.mxu3 %v4598_v12  ;;  %v4601_v28 = vld [vmem:[%s6162_s1 + $0x40] sm:$0xff]  ;;  %v4549_v34 = vld [vmem:[%s4969_s25 + $0x488] sm:$0xf0]  ;;  %v3482_v36 = vld [vmem:[%s4969_s25 + $0xc] sm:$0xf0]  ;;  %v3489_v37 = vor.u32 %v4406_v30, %v3488_v29 }
  0x1a   : > { %2432 = vmatpush.bf16.msra.mxu2 %v4904_v11  ;;  %2108 = vmatpush.bf16.msra.mxu1 %v4606_v13  ;;  %v3480_v31 = vld [vmem:[%s4969_s25] sm:$0xf]  ;;  %v4404_v35 = vld [vmem:[%s4969_s25 + $0x4] sm:$0xf]  ;;  %v4409_v42 = vld [vmem:[%s4969_s25 + $0x28] sm:$0xf0] }
  0x1b   : > { %v4056_v33 = vld [vmem:[%s4969_s25 + $0x480] sm:$0xf]  ;;  %v3481_v38 = vor.u32 %v4405_v32, %v3480_v31  ;;  %v3485_v40 = vor.u32 %v4404_v35, %v3482_v36  ;;  %v3492_v43 = vld [vmem:[%s4969_s25 + $0x18] sm:$0xf]  ;;  %v4408_v44 = vld [vmem:[%s4969_s25 + $0x20] sm:$0xf0] }
  0x1c   : > { %v4057_v39 = vor.u32 %v4549_v34, %v4056_v33  ;;  %v3500_v41 = vld [vmem:[%s4969_s25 + $0x20] sm:$0xf]  ;;  %v4068_v45 = vld [vmem:[%s4969_s25 + $0x498] sm:$0xf]  ;;  %v4552_v46 = vld [vmem:[%s4969_s25 + $0x4a0] sm:$0xf0]  ;;  %v3493_v50 = vor.u32 %v4408_v44, %v3492_v43 }
  0x1d   : > { %1785 = vmatpush.bf16.msra.mxu0 %v4597_v15  ;;  %4622 = vmatpush.bf16.msra.mxu3 %v4597_v15  ;;  %v4407_v47 = vld [vmem:[%s4969_s25 + $0x1c] sm:$0xf]  ;;  %v3494_v48 = vld [vmem:[%s4969_s25 + $0x24] sm:$0xf0]  ;;  %v3501_v49 = vor.u32 %v4409_v42, %v3500_v41  ;;  %v4069_v51 = vor.u32 %v4552_v46, %v4068_v45  ;;  %v3512_v53 = vld [vmem:[%s4969_s25 + $0x38] sm:$0xf] }
  0x1e   : > { %2433 = vmatpush.bf16.msra.mxu2 %v4920_v14  ;;  %2109 = vmatpush.bf16.msra.mxu1 %v4929_v16  ;;  %v3497_v52 = vor.u32 %v4407_v47, %v3494_v48  ;;  %v4412_v54 = vld [vmem:[%s4969_s25 + $0x40] sm:$0xf0]  ;;  %v3504_v55 = vld [vmem:[%s4969_s25 + $0x30] sm:$0xf]  ;;  %v4411_v56 = vld [vmem:[%s4969_s25 + $0x38] sm:$0xf0] }
  0x1f   : > { %v4080_v57 = vld [vmem:[%s4969_s25 + $0x4b0] sm:$0xf]  ;;  %v4555_v58 = vld [vmem:[%s4969_s25 + $0x4b8] sm:$0xf0]  ;;  %v4410_v59 = vld [vmem:[%s4969_s25 + $0x34] sm:$0xf]  ;;  %v3513_v61 = vor.u32 %v4412_v54, %v3512_v53  ;;  %v3505_v62 = vor.u32 %v4411_v56, %v3504_v55 }
  0x20   : > { %v3506_v60 = vld [vmem:[%s4969_s25 + $0x3c] sm:$0xf0]  ;;  %v4081_v63 = vor.u32 %v4555_v58, %v4080_v57  ;;  %v4415_v2 = vld [vmem:[%s4969_s25 + $0x58] sm:$0xf0]  ;;  %v3516_v3 = vld [vmem:[%s4969_s25 + $0x48] sm:$0xf] }
  0x21   : > { %1786 = vmatpush.bf16.msra.mxu0 %v4596_v18  ;;  %4623 = vmatpush.bf16.msra.mxu3 %v4596_v18  ;;  %v3509_v0 = vor.u32 %v4410_v59, %v3506_v60  ;;  %v4414_v4 = vld [vmem:[%s4969_s25 + $0x50] sm:$0xf0]  ;;  %v4092_v5 = vld [vmem:[%s4969_s25 + $0x4c8] sm:$0xf]  ;;  %v4413_v7 = vld [vmem:[%s4969_s25 + $0x4c] sm:$0xf] }
  0x22   : > { %2434 = vmatpush.bf16.msra.mxu2 %v4935_v17  ;;  %2110 = vmatpush.bf16.msra.mxu1 %v4604_v19  ;;  %v4558_v6 = vld [vmem:[%s4969_s25 + $0x4d0] sm:$0xf0]  ;;  %v3518_v8 = vld [vmem:[%s4969_s25 + $0x54] sm:$0xf0]  ;;  %v3528_v15 = vld [vmem:[%s4969_s25 + $0x60] sm:$0xf] }
  0x23   : > { %v3521_v12 = vor.u32 %v4413_v7, %v3518_v8  ;;  %v4561_v18 = vld [vmem:[%s4969_s25 + $0x4e8] sm:$0xf0]  ;;  %v4116_v29 = vld [vmem:[%s4969_s25 + $0x4f8] sm:$0xf]  ;;  %v4564_v30 = vld [vmem:[%s4969_s25 + $0x500] sm:$0xf0] }
  0x24   : > { %v4419_v31 = vld [vmem:[%s4969_s25 + $0x7c] sm:$0xf]  ;;  %v3542_v32 = vld [vmem:[%s4969_s25 + $0x84] sm:$0xf0]  ;;  %v4117_v35 = vor.u32 %v4564_v30, %v4116_v29  ;;  %v4128_v41 = vld [vmem:[%s4969_s25 + $0x510] sm:$0xf] }
  0x25   : > { %1787 = vmatpush.bf16.msra.mxu0 %v4595_v21  ;;  %4624 = vmatpush.bf16.msra.mxu3 %v4595_v21  ;;  %v3545_v36 = vor.u32 %v4419_v31, %v3542_v32  ;;  %v4567_v42 = vld [vmem:[%s4969_s25 + $0x518] sm:$0xf0]  ;;  %v4422_v43 = vld [vmem:[%s4969_s25 + $0x94] sm:$0xf]  ;;  %v3554_v44 = vld [vmem:[%s4969_s25 + $0x9c] sm:$0xf0] }
  0x26   : > { %2435 = vmatpush.bf16.msra.mxu2 %v4949_v20  ;;  %2111 = vmatpush.bf16.msra.mxu1 %v4603_v22  ;;  %v4129_v47 = vor.u32 %v4567_v42, %v4128_v41  ;;  %v3557_v48 = vor.u32 %v4422_v43, %v3554_v44  ;;  %v4140_v53 = vld [vmem:[%s4969_s25 + $0x528] sm:$0xf]  ;;  %v4570_v54 = vld [vmem:[%s4969_s25 + $0x530] sm:$0xf0]  ;;  %v4425_v55 = vld [vmem:[%s4969_s25 + $0xac] sm:$0xf] }
  0x27   : > { %v3566_v56 = vld [vmem:[%s4969_s25 + $0xb4] sm:$0xf0]  ;;  %v4141_v59 = vor.u32 %v4570_v54, %v4140_v53  ;;  %v4431_v29 = vld [vmem:[%s4969_s25 + $0xdc] sm:$0xf]  ;;  %v3590_v30 = vld [vmem:[%s4969_s25 + $0xe4] sm:$0xf0] }
  0x28   : > { %v3569_v60 = vor.u32 %v4425_v55, %v3566_v56  ;;  %v3608_v53 = vld [vmem:[%s4969_s25 + $0xf8] sm:$0xf]  ;;  %v4436_v54 = vld [vmem:[%s4969_s25 + $0x100] sm:$0xf0]  ;;  %v3600_v55 = vld [vmem:[%s4969_s25 + $0xf0] sm:$0xf] }
  0x29   : > { %1788 = vmatpush.bf16.msra.mxu0 %v4594_v24  ;;  %4625 = vmatpush.bf16.msra.mxu3 %v4594_v24  ;;  %v4435_v56 = vld [vmem:[%s4969_s25 + $0xf8] sm:$0xf0] }
  0x2a   : > { %2436 = vmatpush.bf16.msra.mxu2 %v4961_v23  ;;  %2112 = vmatpush.bf16.msra.mxu1 %v4602_v25 }
  0x2d   : > { %1789 = vmatpush.bf16.msra.mxu0 %v4593_v27  ;;  %4626 = vmatpush.bf16.msra.mxu3 %v4593_v27  ;;  %v3540_v27 = vld [vmem:[%s4969_s25 + $0x78] sm:$0xf] }
  0x2e   : > { %2437 = vmatpush.bf16.msra.mxu2 %v4977_v26  ;;  %2113 = vmatpush.bf16.msra.mxu1 %v4601_v28 }
  0x30   : > { %1790 = vmatmul.bf16.vlgmr.msra.gmra.mxu0 %v3481_v38  ;;  %2030 = vmatmul.bf16.vlgmr.msra.gmra.mxu3 %v4057_v39  ;;  %v4424_v38 = vld [vmem:[%s4969_s25 + $0xa0] sm:$0xf0]  ;;  %v3552_v39 = vld [vmem:[%s4969_s25 + $0x90] sm:$0xf] }
  0x31   : > { %4627 = vmatpush.bf16.msrb.mxu3 %v4881_v1  ;;  %4326 = vmatmul.msk.bf16.vlgmr.msra.gmra.mxu2 %vm1585_vm2, %v3489_v37  ;;  %v3524_v1 = vld [vmem:[%s4969_s25 + $0x50] sm:$0xf]  ;;  %v3560_v37 = vld [vmem:[%s4969_s25 + $0x98] sm:$0xf] }
  0x32   : > { %2114 = vmatmul.bf16.vlgmr.msra.gmra.mxu1 %v3485_v40  ;;  %v4423_v40 = vld [vmem:[%s4969_s25 + $0x98] sm:$0xf0]  ;;  %v3561_v45 = vor.u32 %v4424_v38, %v3560_v37  ;;  %v3593_v38 = vor.u32 %v4431_v29, %v3590_v30 }
  0x33   : > { %v3553_v46 = vor.u32 %v4423_v40, %v3552_v39 }
  0x35   : > { %4628 = vmatpush.bf16.msrb.mxu3 %v4896_v9  ;;  %v3525_v9 = vor.u32 %v4415_v2, %v3524_v1  ;;  %v4429_v1 = vld [vmem:[%s4969_s25 + $0xc8] sm:$0xf0]  ;;  %v4152_v2 = vld [vmem:[%s4969_s25 + $0x540] sm:$0xf] }
  0x39   : > { %4629 = vmatpush.bf16.msrb.mxu3 %v4606_v13  ;;  %v3536_v13 = vld [vmem:[%s4969_s25 + $0x68] sm:$0xf] }
  0x3d   : > { %4630 = vmatpush.bf16.msrb.mxu3 %v4929_v16  ;;  %v4417_v16 = vld [vmem:[%s4969_s25 + $0x68] sm:$0xf0] }
  0x40   : > { %1795 = vmatmul.bf16.gmra.mxu0 %v3493_v50  ;;  %2035 = vmatmul.bf16.gmra.mxu3 %v4069_v51  ;;  %v4427_v50 = vld [vmem:[%s4969_s25 + $0xb8] sm:$0xf0]  ;;  %v3564_v51 = vld [vmem:[%s4969_s25 + $0xa8] sm:$0xf] }
  0x41   : > { %4631 = vmatpush.bf16.msrb.mxu3 %v4604_v19  ;;  %4327 = vmatmul.msk.bf16.gmra.mxu2 %vm1585_vm2, %v3501_v49  ;;  %v4416_v19 = vld [vmem:[%s4969_s25 + $0x64] sm:$0xf]  ;;  %v3572_v49 = vld [vmem:[%s4969_s25 + $0xb0] sm:$0xf] }
  0x42   : > { %2119 = vmatmul.bf16.gmra.mxu1 %v3497_v52  ;;  %v4426_v52 = vld [vmem:[%s4969_s25 + $0xb0] sm:$0xf0]  ;;  %v3573_v57 = vor.u32 %v4427_v50, %v3572_v49 }
  0x43   : > { %v3565_v58 = vor.u32 %v4426_v52, %v3564_v51 }
  0x45   : > { %4632 = vmatpush.bf16.msrb.mxu3 %v4603_v22  ;;  %v3529_v22 = vor.u32 %v4417_v16, %v3528_v15 }
  0x49   : > { %4633 = vmatpush.bf16.msrb.mxu3 %v4602_v25  ;;  %v3548_v25 = vld [vmem:[%s4969_s25 + $0x80] sm:$0xf] }
  0x4d   : > { %4634 = vmatpush.bf16.msrb.mxu3 %v4601_v28  ;;  %v4420_v28 = vld [vmem:[%s4969_s25 + $0x80] sm:$0xf0] }
  0x4e   : > { %v3541_v34 = vor.u32 %v4420_v28, %v3540_v27  ;;  %v4164_v27 = vld [vmem:[%s4969_s25 + $0x558] sm:$0xf]  ;;  %v4576_v28 = vld [vmem:[%s4969_s25 + $0x560] sm:$0xf0] }
  0x4f   : > { %v4165_v37 = vor.u32 %v4576_v28, %v4164_v27  ;;  %v4437_v27 = vld [vmem:[%s4969_s25 + $0x10c] sm:$0xf]  ;;  %v3614_v28 = vld [vmem:[%s4969_s25 + $0x114] sm:$0xf0] }
  0x50   : > { %1800 = vmatmul.bf16.gmra.mxu0 %v3505_v62  ;;  %2040 = vmatmul.bf16.gmra.mxu3 %v4081_v63  ;;  %v3584_v62 = vld [vmem:[%s4969_s25 + $0xc8] sm:$0xf]  ;;  %v4430_v63 = vld [vmem:[%s4969_s25 + $0xd0] sm:$0xf0] }
  0x51   : > { %4635 = vmatpush.bf16.msra.mxu3 %v4898_v10  ;;  %4328 = vmatmul.msk.bf16.gmra.mxu2 %vm1585_vm2, %v3513_v61  ;;  %v3517_v10 = vor.u32 %v4414_v4, %v3516_v3  ;;  %v5072_v61 = vld [vmem:[%s6163_s2] ss:$0 sm:$0xff]  ;;  %v4573_v3 = vld [vmem:[%s4969_s25 + $0x548] sm:$0xf0]  ;;  %v4428_v4 = vld [vmem:[%s4969_s25 + $0xc4] sm:$0xf] }
  0x52   : > { %2124 = vmatmul.bf16.gmra.mxu1 %v3509_v0  ;;  %v3576_v0 = vld [vmem:[%s4969_s25 + $0xc0] sm:$0xf] }
  0x53   : > { %v3577_v7 = vor.u32 %v4429_v1, %v3576_v0  ;;  %v3609_v1 = vor.u32 %v4436_v54, %v3608_v53  ;;  %v3632_v53 = vld [vmem:[%s4969_s25 + $0x128] sm:$0xf]  ;;  %v4442_v54 = vld [vmem:[%s4969_s25 + $0x130] sm:$0xf0] }
  0x55   : > { %4636 = vmatpush.bf16.msra.mxu3 %v4904_v11  ;;  %v4093_v11 = vor.u32 %v4558_v6, %v4092_v5  ;;  %v3578_v5 = vld [vmem:[%s4969_s25 + $0xcc] sm:$0xf0]  ;;  %v3585_v6 = vor.u32 %v4430_v63, %v3584_v62 }
  0x59   : > { %4637 = vmatpush.bf16.msra.mxu3 %v4920_v14  ;;  %v4418_v14 = vld [vmem:[%s4969_s25 + $0x70] sm:$0xf0] }
  0x5a   : > { %v3537_v21 = vor.u32 %v4418_v14, %v3536_v13 }
  0x5d   : > { %4638 = vmatpush.bf16.msra.mxu3 %v4935_v17  ;;  %v4104_v17 = vld [vmem:[%s4969_s25 + $0x4e0] sm:$0xf] }
  0x60   : > { %1805 = vmatmul.bf16.gmra.mxu0 %v3517_v10  ;;  %2045 = vmatmul.bf16.gmra.mxu3 %v4093_v11  ;;  %v3581_v10 = vor.u32 %v4428_v4, %v3578_v5 }
  0x61   : > { %4639 = vmatpush.bf16.msra.mxu3 %v4949_v20  ;;  %4329 = vmatmul.msk.bf16.gmra.mxu2 %vm1585_vm2, %v3525_v9  ;;  %v3530_v20 = vld [vmem:[%s4969_s25 + $0x6c] sm:$0xf0]  ;;  %v4153_v9 = vor.u32 %v4573_v3, %v4152_v2  ;;  %v3601_v2 = vor.u32 %v4435_v56, %v3600_v55  ;;  %v3624_v55 = vld [vmem:[%s4969_s25 + $0x120] sm:$0xf]  ;;  %v4441_v56 = vld [vmem:[%s4969_s25 + $0x128] sm:$0xf0] }
  0x62   : > { %2129 = vmatmul.bf16.gmra.mxu1 %v3521_v12  ;;  %v3533_v24 = vor.u32 %v4416_v19, %v3530_v20 }
  0x65   : > { %4640 = vmatpush.bf16.msra.mxu3 %v4961_v23  ;;  %v4105_v23 = vor.u32 %v4561_v18, %v4104_v17 }
  0x69   : > { %4641 = vmatpush.bf16.msra.mxu3 %v4977_v26  ;;  %v4421_v26 = vld [vmem:[%s4969_s25 + $0x88] sm:$0xf0] }
  0x6a   : > { %v3549_v33 = vor.u32 %v4421_v26, %v3548_v25  ;;  %v3588_v25 = vld [vmem:[%s4969_s25 + $0xd8] sm:$0xf]  ;;  %v4432_v26 = vld [vmem:[%s4969_s25 + $0xe0] sm:$0xf0] }
  0x70   : > { %1810 = vmatmul.bf16.gmra.mxu0 %v3529_v22  ;;  %2050 = vmatmul.bf16.gmra.mxu3 %v4105_v23  ;;  %v3596_v23 = vld [vmem:[%s4969_s25 + $0xe0] sm:$0xf] }
  0x71   : > { %4330 = vmatmul.msk.bf16.gmra.mxu2 %vm1585_vm2, %v3537_v21 }
  0x72   : > { %2134 = vmatmul.bf16.gmra.mxu1 %v3533_v24  ;;  %v4433_v24 = vld [vmem:[%s4969_s25 + $0xe8] sm:$0xf0] }
  0x80   : > { %1815 = vmatmul.bf16.gmra.mxu0 %v3541_v34  ;;  %2055 = vmatmul.bf16.gmra.mxu3 %v4117_v35  ;;  %v3597_v34 = vor.u32 %v4433_v24, %v3596_v23  ;;  %v3589_v35 = vor.u32 %v4432_v26, %v3588_v25  ;;  %v3612_v23 = vld [vmem:[%s4969_s25 + $0x108] sm:$0xf]  ;;  %v4438_v24 = vld [vmem:[%s4969_s25 + $0x110] sm:$0xf0] }
  0x81   : > { %4331 = vmatmul.msk.bf16.gmra.mxu2 %vm1585_vm2, %v3549_v33  ;;  %v4188_v25 = vld [vmem:[%s4969_s25 + $0x588] sm:$0xf]  ;;  %v4582_v26 = vld [vmem:[%s4969_s25 + $0x590] sm:$0xf0] }
  0x82   : > { %2139 = vmatmul.bf16.gmra.mxu1 %v3545_v36 }
  0x90   : > { %1820 = vmatmul.bf16.gmra.mxu0 %v3553_v46  ;;  %2060 = vmatmul.bf16.gmra.mxu3 %v4129_v47 }
  0x91   : > { %4332 = vmatmul.msk.bf16.gmra.mxu2 %vm1585_vm2, %v3561_v45 }
  0x92   : > { %2144 = vmatmul.bf16.gmra.mxu1 %v3557_v48 }
  0xa0   : > { %1825 = vmatmul.bf16.gmra.mxu0 %v3565_v58  ;;  %2065 = vmatmul.bf16.gmra.mxu3 %v4141_v59  ;;  %v4579_v58 = vld [vmem:[%s4969_s25 + $0x578] sm:$0xf0]  ;;  %v4434_v59 = vld [vmem:[%s4969_s25 + $0xf4] sm:$0xf] }
  0xa1   : > { %4333 = vmatmul.msk.bf16.gmra.mxu2 %vm1585_vm2, %v3573_v57  ;;  %v4176_v57 = vld [vmem:[%s4969_s25 + $0x570] sm:$0xf] }
  0xa2   : > { %2149 = vmatmul.bf16.gmra.mxu1 %v3569_v60  ;;  %v3602_v60 = vld [vmem:[%s4969_s25 + $0xfc] sm:$0xf0]  ;;  %v4177_v4 = vor.u32 %v4579_v58, %v4176_v57  ;;  %v4585_v58 = vld [vmem:[%s4969_s25 + $0x5a8] sm:$0xf0] }
  0xa3   : > { %v3605_v5 = vor.u32 %v4434_v59, %v3602_v60  ;;  %v4200_v57 = vld [vmem:[%s4969_s25 + $0x5a0] sm:$0xf]  ;;  %v4440_v59 = vld [vmem:[%s4969_s25 + $0x124] sm:$0xf]  ;;  %v3626_v60 = vld [vmem:[%s4969_s25 + $0x12c] sm:$0xf0] }
  0xad   : > { %v1791_v8 = vpop.f32.mrf.mxu0 }
  0xae   : > { %v1792_v11 = vadd.f32 %v5072_v61, %v1791_v8 }
  0xaf   : > { %v2115_v12 = vpop.f32.mrf.mxu1 }
  0xb0   : > { %v2116_v13 = vadd.f32 %v2115_v12, %v1792_v11  ;;  %1830 = vmatmul.bf16.gmra.mxu0 %v3577_v7  ;;  %2070 = vmatmul.bf16.gmra.mxu3 %v4153_v9 }
  0xb1   : > { %4334 = vmatmul.msk.bf16.gmra.mxu2 %vm1585_vm2, %v3585_v6 }
  0xb2   : > { %2154 = vmatmul.bf16.gmra.mxu1 %v3581_v10 }
  0xb3   : > { %v5085_v16 = vpop.f32.mrf.mxu3 }
  0xb4   : > { %v2439_v14 = vpop.f32.mrf.mxu2 }
  0xb5   : > { %v2440_v15 = vadd.f32 %v2439_v14, %v2116_v13  ;;  %v1793_v17 = vpop.f32.mrf.mxu0 }
  0xb6   : > { %v1794_v19 = vadd.f32 %v5072_v61, %v1793_v17 }
  0xb7   : > { %v2754_v18 = vmax.f32 %v2440_v15, 0.0  ;;  %v2117_v20 = vpop.f32.mrf.mxu1 }
  0xb8   : > { %v2118_v22 = vadd.f32 %v2117_v20, %v1794_v19 }
  0xb9   : > { %v2880_v21 = vpack.c.bf16 %v2754_v18, %v2754_v18 }
  0xbb   : > { %3007 = vst.msk [vmem:[%s5094_s12] sm:$0xf] %vm3006_vm3, %v2880_v21  ;;  %v5100_v33 = vpop.f32.mrf.mxu3  ;;  %v3620_v21 = vld [vmem:[%s4969_s25 + $0x110] sm:$0xf] }
  0xbc   : > { %v2441_v31 = vpop.f32.mrf.mxu2 }
  0xbd   : > { %v2442_v32 = vadd.f32 %v2441_v31, %v2118_v22  ;;  %v1796_v36 = vpop.f32.mrf.mxu0  ;;  %v4439_v22 = vld [vmem:[%s4969_s25 + $0x118] sm:$0xf0] }
  0xbe   : > { %v1797_v40 = vadd.f32 %v5072_v61, %v1796_v36  ;;  %v4189_v36 = vor.u32 %v4582_v26, %v4188_v25  ;;  %v3636_v25 = vld [vmem:[%s4969_s25 + $0x138] sm:$0xf]  ;;  %v4444_v26 = vld [vmem:[%s4969_s25 + $0x140] sm:$0xf0] }
  0xbf   : > { %v2755_v39 = vmax.f32 %v2442_v32, 0.0  ;;  %v2120_v41 = vpop.f32.mrf.mxu1  ;;  %v3621_v32 = vor.u32 %v4439_v22, %v3620_v21 }
  0xc0   : > { %v2121_v43 = vadd.f32 %v2120_v41, %v1797_v40  ;;  %1835 = vmatmul.bf16.gmra.mxu0 %v3589_v35  ;;  %2075 = vmatmul.bf16.gmra.mxu3 %v4165_v37  ;;  %v3617_v37 = vor.u32 %v4437_v27, %v3614_v28  ;;  %v4212_v27 = vld [vmem:[%s4969_s25 + $0x5b8] sm:$0xf]  ;;  %v4588_v28 = vld [vmem:[%s4969_s25 + $0x5c0] sm:$0xf0] }
  0xc1   : > { %v2881_v42 = vpack.c.bf16 %v2755_v39, %v2755_v39  ;;  %4335 = vmatmul.msk.bf16.gmra.mxu2 %vm1585_vm2, %v3597_v34  ;;  %v3613_v34 = vor.u32 %v4438_v24, %v3612_v23  ;;  %v3644_v23 = vld [vmem:[%s4969_s25 + $0x140] sm:$0xf]  ;;  %v4445_v24 = vld [vmem:[%s4969_s25 + $0x148] sm:$0xf0] }
  0xc2   : > { %2159 = vmatmul.bf16.gmra.mxu1 %v3593_v38 }
  0xc3   : > { %3008 = vst.msk [vmem:[%s5094_s12 + $0x4] sm:$0xf] %vm3006_vm3, %v2881_v42  ;;  %v5106_v46 = vpop.f32.mrf.mxu3 }
  0xc4   : > { %v2444_v44 = vpop.f32.mrf.mxu2 }
  0xc5   : > { %v2445_v45 = vadd.f32 %v2444_v44, %v2121_v43  ;;  %v1798_v47 = vpop.f32.mrf.mxu0 }
  0xc6   : > { %v1799_v49 = vadd.f32 %v5072_v61, %v1798_v47 }
  0xc7   : > { %v2756_v48 = vmax.f32 %v2445_v45, 0.0  ;;  %v2122_v50 = vpop.f32.mrf.mxu1 }
  0xc8   : > { %v2123_v52 = vadd.f32 %v2122_v50, %v1799_v49 }
  0xc9   : > { %v2882_v51 = vpack.c.bf16 %v2756_v48, %v2756_v48 }
  0xcb   : > { %3009 = vst.msk [vmem:[%s5094_s12 + $0x8] sm:$0xf] %vm3006_vm3, %v2882_v51  ;;  %v5119_v0 = vpop.f32.mrf.mxu3 }
  0xcc   : > { %v2446_v62 = vpop.f32.mrf.mxu2 }
  0xcd   : > { %v2447_v63 = vadd.f32 %v2446_v62, %v2123_v52  ;;  %v1801_v3 = vpop.f32.mrf.mxu0 }
  0xce   : > { %v1802_v7 = vadd.f32 %v5072_v61, %v1801_v3  ;;  %v3625_v3 = vor.u32 %v4441_v56, %v3624_v55 }
  0xcf   : > { %v2757_v6 = vmax.f32 %v2447_v63, 0.0  ;;  %v2125_v8 = vpop.f32.mrf.mxu1 }
  0xd0   : > { %v2126_v10 = vadd.f32 %v2125_v8, %v1802_v7  ;;  %1840 = vmatmul.bf16.gmra.mxu0 %v3601_v2  ;;  %2080 = vmatmul.bf16.gmra.mxu3 %v4177_v4  ;;  %v3633_v2 = vor.u32 %v4442_v54, %v3632_v53 }
  0xd1   : > { %v2883_v9 = vpack.c.bf16 %v2757_v6, %v2757_v6  ;;  %4336 = vmatmul.msk.bf16.gmra.mxu2 %vm1585_vm2, %v3609_v1  ;;  %v3629_v6 = vor.u32 %v4440_v59, %v3626_v60  ;;  %v3648_v59 = vld [vmem:[%s4969_s25 + $0x150] sm:$0xf]  ;;  %v4447_v60 = vld [vmem:[%s4969_s25 + $0x158] sm:$0xf0] }
  0xd2   : > { %2164 = vmatmul.bf16.gmra.mxu1 %v3605_v5  ;;  %v4201_v5 = vor.u32 %v4585_v58, %v4200_v57  ;;  %v3656_v57 = vld [vmem:[%s4969_s25 + $0x158] sm:$0xf]  ;;  %v4448_v58 = vld [vmem:[%s4969_s25 + $0x160] sm:$0xf0] }
  0xd3   : > { %3010 = vst.msk [vmem:[%s5094_s12 + $0xc] sm:$0xf] %vm3006_vm3, %v2883_v9  ;;  %v5125_v13 = vpop.f32.mrf.mxu3 }
  0xd4   : > { %v2449_v11 = vpop.f32.mrf.mxu2 }
  0xd5   : > { %v2450_v12 = vadd.f32 %v2449_v11, %v2126_v10  ;;  %v1803_v14 = vpop.f32.mrf.mxu0 }
  0xd6   : > { %v1804_v17 = vadd.f32 %v5072_v61, %v1803_v14 }
  0xd7   : > { %v2758_v15 = vmax.f32 %v2450_v12, 0.0  ;;  %v2127_v18 = vpop.f32.mrf.mxu1 }
  0xd8   : > { %v2128_v20 = vadd.f32 %v2127_v18, %v1804_v17 }
  0xd9   : > { %v2884_v19 = vpack.c.bf16 %v2758_v15, %v2758_v15 }
  0xdb   : > { %3011 = vst.msk [vmem:[%s5094_s12 + $0x10] sm:$0xf] %vm3006_vm3, %v2884_v19  ;;  %v5138_v31 = vpop.f32.mrf.mxu3 }
  0xdc   : > { %v2451_v29 = vpop.f32.mrf.mxu2 }
  0xdd   : > { %v2452_v30 = vadd.f32 %v2451_v29, %v2128_v20  ;;  %v1806_v35 = vpop.f32.mrf.mxu0  ;;  %v4443_v29 = vld [vmem:[%s4969_s25 + $0x13c] sm:$0xf] }
  0xde   : > { %v1807_v39 = vadd.f32 %v5072_v61, %v1806_v35 }
  0xdf   : > { %v2759_v38 = vmax.f32 %v2452_v30, 0.0  ;;  %v2130_v40 = vpop.f32.mrf.mxu1  ;;  %v3638_v30 = vld [vmem:[%s4969_s25 + $0x144] sm:$0xf0] }
  0xe0   : > { %v2131_v42 = vadd.f32 %v2130_v40, %v1807_v39  ;;  %1845 = vmatmul.bf16.gmra.mxu0 %v3613_v34  ;;  %2085 = vmatmul.bf16.gmra.mxu3 %v4189_v36  ;;  %v3645_v36 = vor.u32 %v4445_v24, %v3644_v23  ;;  %v4213_v39 = vor.u32 %v4588_v28, %v4212_v27 }
  0xe1   : > { %v2885_v41 = vpack.c.bf16 %v2759_v38, %v2759_v38  ;;  %4337 = vmatmul.msk.bf16.gmra.mxu2 %vm1585_vm2, %v3621_v32  ;;  %v3641_v40 = vor.u32 %v4443_v29, %v3638_v30  ;;  %v3668_v29 = vld [vmem:[%s4969_s25 + $0x170] sm:$0xf]  ;;  %v4451_v30 = vld [vmem:[%s4969_s25 + $0x178] sm:$0xf0] }
  0xe2   : > { %2169 = vmatmul.bf16.gmra.mxu1 %v3617_v37  ;;  %v3637_v37 = vor.u32 %v4444_v26, %v3636_v25 }
  0xe3   : > { %3012 = vst.msk [vmem:[%s5094_s12 + $0x14] sm:$0xf] %vm3006_vm3, %v2885_v41  ;;  %v5144_v45 = vpop.f32.mrf.mxu3 }
  0xe4   : > { %v2454_v43 = vpop.f32.mrf.mxu2 }
  0xe5   : > { %v2455_v44 = vadd.f32 %v2454_v43, %v2131_v42  ;;  %v1808_v47 = vpop.f32.mrf.mxu0 }
  0xe6   : > { %v1809_v49 = vadd.f32 %v5072_v61, %v1808_v47 }
  0xe7   : > { %v2760_v48 = vmax.f32 %v2455_v44, 0.0  ;;  %v2132_v50 = vpop.f32.mrf.mxu1 }
  0xe8   : > { %v2133_v52 = vadd.f32 %v2132_v50, %v1809_v49 }
  0xe9   : > { %v2886_v51 = vpack.c.bf16 %v2760_v48, %v2760_v48 }
  0xeb   : > { %3013 = vst.msk [vmem:[%s5094_s12 + $0x18] sm:$0xf] %vm3006_vm3, %v2886_v51  ;;  %v5157_v1 = vpop.f32.mrf.mxu3 }
  0xec   : > { %v2456_v62 = vpop.f32.mrf.mxu2 }
  0xed   : > { %v2457_v63 = vadd.f32 %v2456_v62, %v2133_v52  ;;  %v1811_v4 = vpop.f32.mrf.mxu0  ;;  %v4224_v62 = vld [vmem:[%s4969_s25 + $0x5d0] sm:$0xf] }
  0xee   : > { %v1812_v8 = vadd.f32 %v5072_v61, %v1811_v4 }
  0xef   : > { %v2761_v7 = vmax.f32 %v2457_v63, 0.0  ;;  %v2135_v9 = vpop.f32.mrf.mxu1  ;;  %v4591_v63 = vld [vmem:[%s4969_s25 + $0x5d8] sm:$0xf0] }
  0xf0   : > { %v2136_v11 = vadd.f32 %v2135_v9, %v1812_v8  ;;  %1850 = vmatmul.bf16.gmra.mxu0 %v3625_v3  ;;  %2090 = vmatmul.bf16.gmra.mxu3 %v4201_v5  ;;  %v3650_v3 = vld [vmem:[%s4969_s25 + $0x15c] sm:$0xf0]  ;;  %v3649_v8 = vor.u32 %v4447_v60, %v3648_v59 }
  0xf1   : > { %v2887_v10 = vpack.c.bf16 %v2761_v7, %v2761_v7  ;;  %4338 = vmatmul.msk.bf16.gmra.mxu2 %vm1585_vm2, %v3633_v2  ;;  %v4446_v2 = vld [vmem:[%s4969_s25 + $0x154] sm:$0xf]  ;;  %v3657_v7 = vor.u32 %v4448_v58, %v3656_v57 }
  0xf2   : > { %2174 = vmatmul.bf16.gmra.mxu1 %v3629_v6 }
  0xf3   : > { %3014 = vst.msk [vmem:[%s5094_s12 + $0x1c] sm:$0xf] %vm3006_vm3, %v2887_v10  ;;  %v5163_v15 = vpop.f32.mrf.mxu3  ;;  %v4225_v10 = vor.u32 %v4591_v63, %v4224_v62 }
  0xf4   : > { %v2459_v12 = vpop.f32.mrf.mxu2 }
  0xf5   : > { %v2460_v14 = vadd.f32 %v2459_v12, %v2136_v11  ;;  %v1813_v17 = vpop.f32.mrf.mxu0  ;;  %v3653_v11 = vor.u32 %v4446_v2, %v3650_v3 }
  0xf6   : > { %v1814_v19 = vadd.f32 %v5072_v61, %v1813_v17 }
  0xf7   : > { %v2762_v18 = vmax.f32 %v2460_v14, 0.0  ;;  %v2137_v20 = vpop.f32.mrf.mxu1 }
  0xf8   : > { %v2138_v22 = vadd.f32 %v2137_v20, %v1814_v19 }
  0xf9   : > { %v2888_v21 = vpack.c.bf16 %v2762_v18, %v2762_v18 }
  0xfb   : > { %3015 = vst.msk [vmem:[%s5094_s12 + $0x20] sm:$0xf] %vm3006_vm3, %v2888_v21  ;;  %v5176_v35 = vpop.f32.mrf.mxu3 }
  0xfc   : > { %v2461_v32 = vpop.f32.mrf.mxu2 }
  0xfd   : > { %v2462_v34 = vadd.f32 %v2461_v32, %v2138_v22  ;;  %v1816_v38 = vpop.f32.mrf.mxu0  ;;  %v3660_v32 = vld [vmem:[%s4969_s25 + $0x168] sm:$0xf] }
  0xfe   : > { %v1817_v42 = vadd.f32 %v5072_v61, %v1816_v38  ;;  %v4548_v38 = vld [vmem:[%s4969_s25 + $0x484] sm:$0xf] }
  0xff   : > { %v2763_v41 = vmax.f32 %v2462_v34, 0.0  ;;  %v2140_v43 = vpop.f32.mrf.mxu1  ;;  %v4450_v34 = vld [vmem:[%s4969_s25 + $0x170] sm:$0xf0] }
 0x100   : > { %v2141_v47 = vadd.f32 %v2140_v43, %v1817_v42  ;;  %1855 = vmatmul.bf16.gmra.mxu0 %v3637_v37  ;;  %2095 = vmatmul.bf16.gmra.mxu3 %v4213_v39  ;;  %v3662_v37 = vld [vmem:[%s4969_s25 + $0x174] sm:$0xf0]  ;;  %v4058_v39 = vld [vmem:[%s4969_s25 + $0x48c] sm:$0xf0]  ;;  %v3669_v43 = vor.u32 %v4451_v30, %v3668_v29 }
 0x101   : > { %v2889_v44 = vpack.c.bf16 %v2763_v41, %v2763_v41  ;;  %4339 = vmatmul.msk.bf16.gmra.mxu2 %vm1585_vm2, %v3645_v36  ;;  %v4449_v36 = vld [vmem:[%s4969_s25 + $0x16c] sm:$0xf] }
 0x102   : > { %2179 = vmatmul.bf16.gmra.mxu1 %v3641_v40 }
 0x103   : > { %3016 = vst.msk [vmem:[%s5094_s12 + $0x24] sm:$0xf] %vm3006_vm3, %v2889_v44  ;;  %v5182_v50 = vpop.f32.mrf.mxu3  ;;  %v3661_v44 = vor.u32 %v4450_v34, %v3660_v32 }
 0x104   : > { %v2464_v48 = vpop.f32.mrf.mxu2 }
 0x105   : > { %v2465_v49 = vadd.f32 %v2464_v48, %v2141_v47  ;;  %v1818_v51 = vpop.f32.mrf.mxu0  ;;  %v3665_v48 = vor.u32 %v4449_v36, %v3662_v37 }
 0x106   : > { %v1819_v53 = vadd.f32 %v5072_v61, %v1818_v51 }
 0x107   : > { %v2764_v52 = vmax.f32 %v2465_v49, 0.0  ;;  %v2142_v54 = vpop.f32.mrf.mxu1  ;;  %v4061_v49 = vor.u32 %v4548_v38, %v4058_v39 }
 0x108   : > { %v2143_v56 = vadd.f32 %v2142_v54, %v1819_v53 }
 0x109   : > { %v2890_v55 = vpack.c.bf16 %v2764_v52, %v2764_v52 }
 0x10b   : > { %3017 = vst.msk [vmem:[%s5094_s12 + $0x28] sm:$0xf] %vm3006_vm3, %v2890_v55  ;;  %v5195_v6 = vpop.f32.mrf.mxu3 }
 0x10c   : > { %v2466_v4 = vpop.f32.mrf.mxu2 }
 0x10d   : > { %v2467_v5 = vadd.f32 %v2466_v4, %v2143_v56  ;;  %v1821_v9 = vpop.f32.mrf.mxu0  ;;  %v3680_v4 = vld [vmem:[%s4969_s25 + $0x188] sm:$0xf] }
 0x10e   : > { %v1822_v14 = vadd.f32 %v5072_v61, %v1821_v9  ;;  %v4452_v9 = vld [vmem:[%s4969_s25 + $0x184] sm:$0xf] }
 0x10f   : > { %v2765_v12 = vmax.f32 %v2467_v5, 0.0  ;;  %v2145_v17 = vpop.f32.mrf.mxu1  ;;  %v4454_v5 = vld [vmem:[%s4969_s25 + $0x190] sm:$0xf0] }
 0x110   : > { %v2146_v19 = vadd.f32 %v2145_v17, %v1822_v14  ;;  %1860 = vmatmul.bf16.gmra.mxu0 %v3649_v8  ;;  %2100 = vmatmul.bf16.gmra.mxu3 %v4225_v10  ;;  %v4453_v8 = vld [vmem:[%s4969_s25 + $0x188] sm:$0xf0]  ;;  %v3674_v10 = vld [vmem:[%s4969_s25 + $0x18c] sm:$0xf0] }
 0x111   : > { %v2891_v18 = vpack.c.bf16 %v2765_v12, %v2765_v12  ;;  %4340 = vmatmul.msk.bf16.gmra.mxu2 %vm1585_vm2, %v3657_v7  ;;  %v3672_v7 = vld [vmem:[%s4969_s25 + $0x180] sm:$0xf]  ;;  %v4070_v12 = vld [vmem:[%s4969_s25 + $0x4a4] sm:$0xf0] }
 0x112   : > { %2184 = vmatmul.bf16.gmra.mxu1 %v3653_v11  ;;  %v4551_v11 = vld [vmem:[%s4969_s25 + $0x49c] sm:$0xf] }
 0x113   : > { %3018 = vst.msk [vmem:[%s5094_s12 + $0x2c] sm:$0xf] %vm3006_vm3, %v2891_v18  ;;  %v5201_v22 = vpop.f32.mrf.mxu3 }
 0x114   : > { %v2469_v20 = vpop.f32.mrf.mxu2 }
 0x115   : > { %v2470_v21 = vadd.f32 %v2469_v20, %v2146_v19  ;;  %v1823_v23 = vpop.f32.mrf.mxu0  ;;  %v3681_v19 = vor.u32 %v4454_v5, %v3680_v4  ;;  %v3673_v20 = vor.u32 %v4453_v8, %v3672_v7 }
 0x116   : > { %v1824_v25 = vadd.f32 %v5072_v61, %v1823_v23  ;;  %v3677_v23 = vor.u32 %v4452_v9, %v3674_v10 }
 0x117   : > { %v2766_v24 = vmax.f32 %v2470_v21, 0.0  ;;  %v2147_v26 = vpop.f32.mrf.mxu1 }
 0x118   : > { %v2148_v28 = vadd.f32 %v2147_v26, %v1824_v25 }
 0x119   : > { %v2892_v27 = vpack.c.bf16 %v2766_v24, %v2766_v24  ;;  %v4073_v24 = vor.u32 %v4551_v11, %v4070_v12 }
 0x11b   : > { %3019 = vst.msk [vmem:[%s5094_s12 + $0x30] sm:$0xf] %vm3006_vm3, %v2892_v27  ;;  %v5214_v42 = vpop.f32.mrf.mxu3 }
 0x11c   : > { %v2471_v40 = vpop.f32.mrf.mxu2 }
 0x11d   : > { %v2472_v41 = vadd.f32 %v2471_v40, %v2148_v28  ;;  %v1826_v47 = vpop.f32.mrf.mxu0 }
 0x11e   : > { %v1827_v52 = vadd.f32 %v5072_v61, %v1826_v47  ;;  %v3684_v47 = vld [vmem:[%s4969_s25 + $0x198] sm:$0xf] }
 0x11f   : > { %v2767_v51 = vmax.f32 %v2472_v41, 0.0  ;;  %v2150_v53 = vpop.f32.mrf.mxu1 }
 0x120   : > { %v2151_v55 = vadd.f32 %v2150_v53, %v1827_v52  ;;  %1865 = vmatmul.bf16.gmra.mxu0 %v3661_v44  ;;  %2354 = vmatmul.bf16.vlgmr.msrb.gmra.mxu3 %v4061_v49  ;;  %v4457_v44 = vld [vmem:[%s4969_s25 + $0x1a8] sm:$0xf0]  ;;  %v4455_v49 = vld [vmem:[%s4969_s25 + $0x19c] sm:$0xf]  ;;  %v4554_v52 = vld [vmem:[%s4969_s25 + $0x4b4] sm:$0xf] }
 0x121   : > { %v2893_v54 = vpack.c.bf16 %v2767_v51, %v2767_v51  ;;  %4341 = vmatmul.msk.bf16.gmra.mxu2 %vm1585_vm2, %v3669_v43  ;;  %v3692_v43 = vld [vmem:[%s4969_s25 + $0x1a0] sm:$0xf]  ;;  %v3686_v51 = vld [vmem:[%s4969_s25 + $0x1a4] sm:$0xf0] }
 0x122   : > { %2189 = vmatmul.bf16.gmra.mxu1 %v3665_v48  ;;  %v4456_v48 = vld [vmem:[%s4969_s25 + $0x1a0] sm:$0xf0]  ;;  %v4082_v53 = vld [vmem:[%s4969_s25 + $0x4bc] sm:$0xf0] }
 0x123   : > { %3020 = vst.msk [vmem:[%s5094_s12 + $0x34] sm:$0xf] %vm3006_vm3, %v2893_v54  ;;  %v5220_v58 = vpop.f32.mrf.mxu3 }
 0x124   : > { %v2474_v56 = vpop.f32.mrf.mxu2 }
 0x125   : > { %v2475_v57 = vadd.f32 %v2474_v56, %v2151_v55  ;;  %v1828_v59 = vpop.f32.mrf.mxu0 }
 0x126   : > { %v1829_v62 = vadd.f32 %v5072_v61, %v1828_v59  ;;  %v3685_v59 = vor.u32 %v4456_v48, %v3684_v47 }
 0x127   : > { %v2768_v60 = vmax.f32 %v2475_v57, 0.0  ;;  %v2152_v63 = vpop.f32.mrf.mxu1  ;;  %v3693_v57 = vor.u32 %v4457_v44, %v3692_v43 }
 0x128   : > { %v2153_v3 = vadd.f32 %v2152_v63, %v1829_v62  ;;  %v3689_v62 = vor.u32 %v4455_v49, %v3686_v51  ;;  %v4085_v63 = vor.u32 %v4554_v52, %v4082_v53 }
 0x129   : > { %v2894_v2 = vpack.c.bf16 %v2768_v60, %v2768_v60 }
 0x12b   : > { %3021 = vst.msk [vmem:[%s5094_s12 + $0x38] sm:$0xf] %vm3006_vm3, %v2894_v2  ;;  %v5233_v18 = vpop.f32.mrf.mxu3 }
 0x12c   : > { %v2476_v14 = vpop.f32.mrf.mxu2 }
 0x12d   : > { %v2477_v17 = vadd.f32 %v2476_v14, %v2153_v3  ;;  %v1831_v21 = vpop.f32.mrf.mxu0 }
 0x12e   : > { %v1832_v26 = vadd.f32 %v5072_v61, %v1831_v21  ;;  %v3704_v21 = vld [vmem:[%s4969_s25 + $0x1b8] sm:$0xf] }
 0x12f   : > { %v2769_v25 = vmax.f32 %v2477_v17, 0.0  ;;  %v2155_v27 = vpop.f32.mrf.mxu1 }
 0x130   : > { %v2156_v29 = vadd.f32 %v2155_v27, %v1832_v26  ;;  %1870 = vmatmul.bf16.gmra.mxu0 %v3673_v20  ;;  %2359 = vmatmul.bf16.gmra.mxu3 %v4073_v24  ;;  %v3696_v24 = vld [vmem:[%s4969_s25 + $0x1b0] sm:$0xf]  ;;  %v4458_v26 = vld [vmem:[%s4969_s25 + $0x1b4] sm:$0xf]  ;;  %v3698_v27 = vld [vmem:[%s4969_s25 + $0x1bc] sm:$0xf0] }
 0x131   : > { %v2895_v28 = vpack.c.bf16 %v2769_v25, %v2769_v25  ;;  %4342 = vmatmul.msk.bf16.gmra.mxu2 %vm1585_vm2, %v3681_v19  ;;  %v4459_v25 = vld [vmem:[%s4969_s25 + $0x1b8] sm:$0xf0] }
 0x132   : > { %2194 = vmatmul.bf16.gmra.mxu1 %v3677_v23  ;;  %v4460_v23 = vld [vmem:[%s4969_s25 + $0x1c0] sm:$0xf0] }
 0x133   : > { %3022 = vst.msk [vmem:[%s5094_s12 + $0x3c] sm:$0xf] %vm3006_vm3, %v2895_v28  ;;  %v5239_v34 = vpop.f32.mrf.mxu3  ;;  %v4557_v28 = vld [vmem:[%s4969_s25 + $0x4cc] sm:$0xf] }
 0x134   : > { %v2479_v30 = vpop.f32.mrf.mxu2 }
 0x135   : > { %v2480_v32 = vadd.f32 %v2479_v30, %v2156_v29  ;;  %v1833_v36 = vpop.f32.mrf.mxu0  ;;  %v4094_v29 = vld [vmem:[%s4969_s25 + $0x4d4] sm:$0xf0] }
 0x136   : > { %v1834_v38 = vadd.f32 %v5072_v61, %v1833_v36 }
 0x137   : > { %v2770_v37 = vmax.f32 %v2480_v32, 0.0  ;;  %v2157_v39 = vpop.f32.mrf.mxu1 }
 0x138   : > { %v2158_v41 = vadd.f32 %v2157_v39, %v1834_v38  ;;  %v3697_v38 = vor.u32 %v4459_v25, %v3696_v24 }
 0x139   : > { %v2896_v40 = vpack.c.bf16 %v2770_v37, %v2770_v37  ;;  %v3705_v37 = vor.u32 %v4460_v23, %v3704_v21 }
 0x13b   : > { %3023 = vst.msk [vmem:[%s5094_s12 + $0x40] sm:$0xf] %vm3006_vm3, %v2896_v40  ;;  %v5252_v56 = vpop.f32.mrf.mxu3  ;;  %v3701_v40 = vor.u32 %v4458_v26, %v3698_v27 }
 0x13c   : > { %v2481_v54 = vpop.f32.mrf.mxu2 }
 0x13d   : > { %v2482_v55 = vadd.f32 %v2481_v54, %v2158_v41  ;;  %v1836_v60 = vpop.f32.mrf.mxu0  ;;  %v4097_v41 = vor.u32 %v4557_v28, %v4094_v29 }
 0x13e   : > { %v1837_v3 = vadd.f32 %v5072_v61, %v1836_v60 }
 0x13f   : > { %v2771_v2 = vmax.f32 %v2482_v55, 0.0  ;;  %v2160_v4 = vpop.f32.mrf.mxu1 }
 0x140   : > { %v2161_v7 = vadd.f32 %v2160_v4, %v1837_v3  ;;  %1875 = vmatmul.bf16.gmra.mxu0 %v3685_v59  ;;  %2364 = vmatmul.bf16.gmra.mxu3 %v4085_v63  ;;  %v3716_v63 = vld [vmem:[%s4969_s25 + $0x1d0] sm:$0xf]  ;;  %v3708_v3 = vld [vmem:[%s4969_s25 + $0x1c8] sm:$0xf]  ;;  %v4462_v4 = vld [vmem:[%s4969_s25 + $0x1d0] sm:$0xf0] }
 0x141   : > { %v2897_v5 = vpack.c.bf16 %v2771_v2, %v2771_v2  ;;  %4343 = vmatmul.msk.bf16.gmra.mxu2 %vm1585_vm2, %v3693_v57  ;;  %v4463_v2 = vld [vmem:[%s4969_s25 + $0x1d8] sm:$0xf0] }
 0x142   : > { %2199 = vmatmul.bf16.gmra.mxu1 %v3689_v62 }
 0x143   : > { %3024 = vst.msk [vmem:[%s5094_s12 + $0x44] sm:$0xf] %vm3006_vm3, %v2897_v5  ;;  %v5258_v10 = vpop.f32.mrf.mxu3  ;;  %v4461_v5 = vld [vmem:[%s4969_s25 + $0x1cc] sm:$0xf] }
 0x144   : > { %v2484_v8 = vpop.f32.mrf.mxu2 }
 0x145   : > { %v2485_v9 = vadd.f32 %v2484_v8, %v2161_v7  ;;  %v1838_v11 = vpop.f32.mrf.mxu0  ;;  %v3710_v7 = vld [vmem:[%s4969_s25 + $0x1d4] sm:$0xf0]  ;;  %v4560_v8 = vld [vmem:[%s4969_s25 + $0x4e4] sm:$0xf] }
 0x146   : > { %v1839_v14 = vadd.f32 %v5072_v61, %v1838_v11  ;;  %v3713_v21 = vor.u32 %v4461_v5, %v3710_v7 }
 0x147   : > { %v2772_v12 = vmax.f32 %v2485_v9, 0.0  ;;  %v2162_v17 = vpop.f32.mrf.mxu1  ;;  %v4106_v9 = vld [vmem:[%s4969_s25 + $0x4ec] sm:$0xf0] }
 0x148   : > { %v2163_v20 = vadd.f32 %v2162_v17, %v1839_v14  ;;  %v3717_v17 = vor.u32 %v4463_v2, %v3716_v63  ;;  %v4109_v23 = vor.u32 %v4560_v8, %v4106_v9 }
 0x149   : > { %v2898_v19 = vpack.c.bf16 %v2772_v12, %v2772_v12 }
 0x14b   : > { %3025 = vst.msk [vmem:[%s5094_s12 + $0x48] sm:$0xf] %vm3006_vm3, %v2898_v19  ;;  %v5271_v36 = vpop.f32.mrf.mxu3  ;;  %v3709_v19 = vor.u32 %v4462_v4, %v3708_v3 }
 0x14c   : > { %v2486_v30 = vpop.f32.mrf.mxu2 }
 0x14d   : > { %v2487_v32 = vadd.f32 %v2486_v30, %v2163_v20  ;;  %v1841_v39 = vpop.f32.mrf.mxu0 }
 0x14e   : > { %v1842_v44 = vadd.f32 %v5072_v61, %v1841_v39 }
 0x14f   : > { %v2773_v43 = vmax.f32 %v2487_v32, 0.0  ;;  %v2165_v47 = vpop.f32.mrf.mxu1 }
 0x150   : > { %v2166_v49 = vadd.f32 %v2165_v47, %v1842_v44  ;;  %1880 = vmatmul.bf16.gmra.mxu0 %v3697_v38  ;;  %2369 = vmatmul.bf16.gmra.mxu3 %v4097_v41  ;;  %v3728_v44 = vld [vmem:[%s4969_s25 + $0x1e8] sm:$0xf]  ;;  %v4466_v47 = vld [vmem:[%s4969_s25 + $0x1f0] sm:$0xf0] }
 0x151   : > { %v2899_v48 = vpack.c.bf16 %v2773_v43, %v2773_v43  ;;  %4344 = vmatmul.msk.bf16.gmra.mxu2 %vm1585_vm2, %v3705_v37 }
 0x152   : > { %2204 = vmatmul.bf16.gmra.mxu1 %v3701_v40 }
 0x153   : > { %3026 = vst.msk [vmem:[%s5094_s12 + $0x4c] sm:$0xf] %vm3006_vm3, %v2899_v48  ;;  %v5277_v53 = vpop.f32.mrf.mxu3  ;;  %v3720_v48 = vld [vmem:[%s4969_s25 + $0x1e0] sm:$0xf] }
 0x154   : > { %v2489_v51 = vpop.f32.mrf.mxu2 }
 0x155   : > { %v2490_v52 = vadd.f32 %v2489_v51, %v2166_v49  ;;  %v1843_v54 = vpop.f32.mrf.mxu0  ;;  %v4465_v49 = vld [vmem:[%s4969_s25 + $0x1e8] sm:$0xf0]  ;;  %v4464_v51 = vld [vmem:[%s4969_s25 + $0x1e4] sm:$0xf] }
 0x156   : > { %v1844_v57 = vadd.f32 %v5072_v61, %v1843_v54  ;;  %v4563_v54 = vld [vmem:[%s4969_s25 + $0x4fc] sm:$0xf]  ;;  %v3721_v63 = vor.u32 %v4465_v49, %v3720_v48 }
 0x157   : > { %v2774_v55 = vmax.f32 %v2490_v52, 0.0  ;;  %v2167_v59 = vpop.f32.mrf.mxu1  ;;  %v3722_v52 = vld [vmem:[%s4969_s25 + $0x1ec] sm:$0xf0] }
 0x158   : > { %v2168_v62 = vadd.f32 %v2167_v59, %v1844_v57  ;;  %v3725_v3 = vor.u32 %v4464_v51, %v3722_v52 }
 0x159   : > { %v2900_v60 = vpack.c.bf16 %v2774_v55, %v2774_v55  ;;  %v4118_v55 = vld [vmem:[%s4969_s25 + $0x504] sm:$0xf0] }
 0x15a   : > { %v4121_v4 = vor.u32 %v4563_v54, %v4118_v55 }
 0x15b   : > { %3027 = vst.msk [vmem:[%s5094_s12 + $0x50] sm:$0xf] %vm3006_vm3, %v2900_v60  ;;  %v5290_v14 = vpop.f32.mrf.mxu3 }
 0x15c   : > { %v2491_v11 = vpop.f32.mrf.mxu2 }
 0x15d   : > { %v2492_v12 = vadd.f32 %v2491_v11, %v2168_v62  ;;  %v1846_v20 = vpop.f32.mrf.mxu0  ;;  %v3729_v62 = vor.u32 %v4466_v47, %v3728_v44 }
 0x15e   : > { %v1847_v25 = vadd.f32 %v5072_v61, %v1846_v20 }
 0x15f   : > { %v2775_v24 = vmax.f32 %v2492_v12, 0.0  ;;  %v2170_v26 = vpop.f32.mrf.mxu1 }
 0x160   : > { %v2171_v28 = vadd.f32 %v2170_v26, %v1847_v25  ;;  %1885 = vmatmul.bf16.gmra.mxu0 %v3709_v19  ;;  %2374 = vmatmul.bf16.gmra.mxu3 %v4109_v23 }
 0x161   : > { %v2901_v27 = vpack.c.bf16 %v2775_v24, %v2775_v24  ;;  %4345 = vmatmul.msk.bf16.gmra.mxu2 %vm1585_vm2, %v3717_v17 }
 0x162   : > { %2209 = vmatmul.bf16.gmra.mxu1 %v3713_v21 }
 0x163   : > { %3028 = vst.msk [vmem:[%s5094_s12 + $0x54] sm:$0xf] %vm3006_vm3, %v2901_v27  ;;  %v5296_v32 = vpop.f32.mrf.mxu3  ;;  %v3740_v27 = vld [vmem:[%s4969_s25 + $0x200] sm:$0xf] }
 0x164   : > { %v2494_v29 = vpop.f32.mrf.mxu2 }
 0x165   : > { %v2495_v30 = vadd.f32 %v2494_v29, %v2171_v28  ;;  %v1848_v37 = vpop.f32.mrf.mxu0  ;;  %v4469_v28 = vld [vmem:[%s4969_s25 + $0x208] sm:$0xf0]  ;;  %v3732_v29 = vld [vmem:[%s4969_s25 + $0x1f8] sm:$0xf] }
 0x166   : > { %v1849_v39 = vadd.f32 %v5072_v61, %v1848_v37  ;;  %v4467_v37 = vld [vmem:[%s4969_s25 + $0x1fc] sm:$0xf]  ;;  %v3741_v47 = vor.u32 %v4469_v28, %v3740_v27 }
 0x167   : > { %v2776_v38 = vmax.f32 %v2495_v30, 0.0  ;;  %v2172_v40 = vpop.f32.mrf.mxu1  ;;  %v4468_v30 = vld [vmem:[%s4969_s25 + $0x200] sm:$0xf0] }
 0x168   : > { %v2173_v43 = vadd.f32 %v2172_v40, %v1849_v39  ;;  %v4566_v39 = vld [vmem:[%s4969_s25 + $0x514] sm:$0xf]  ;;  %v4130_v40 = vld [vmem:[%s4969_s25 + $0x51c] sm:$0xf0]  ;;  %v3733_v48 = vor.u32 %v4468_v30, %v3732_v29 }
 0x169   : > { %v2902_v41 = vpack.c.bf16 %v2776_v38, %v2776_v38  ;;  %v3734_v38 = vld [vmem:[%s4969_s25 + $0x204] sm:$0xf0]  ;;  %v4133_v52 = vor.u32 %v4566_v39, %v4130_v40 }
 0x16a   : > { %v3737_v51 = vor.u32 %v4467_v37, %v3734_v38 }
 0x16b   : > { %3029 = vst.msk [vmem:[%s5094_s12 + $0x58] sm:$0xf] %vm3006_vm3, %v2902_v41  ;;  %v5309_v60 = vpop.f32.mrf.mxu3 }
 0x16c   : > { %v2496_v57 = vpop.f32.mrf.mxu2 }
 0x16d   : > { %v2497_v59 = vadd.f32 %v2496_v57, %v2173_v43  ;;  %v1851_v2 = vpop.f32.mrf.mxu0 }
 0x16e   : > { %v1852_v7 = vadd.f32 %v5072_v61, %v1851_v2 }
 0x16f   : > { %v2777_v5 = vmax.f32 %v2497_v59, 0.0  ;;  %v2175_v8 = vpop.f32.mrf.mxu1 }
 0x170   : > { %v2176_v11 = vadd.f32 %v2175_v8, %v1852_v7  ;;  %1890 = vmatmul.bf16.gmra.mxu0 %v3721_v63  ;;  %2379 = vmatmul.bf16.gmra.mxu3 %v4121_v4 }
 0x171   : > { %v2903_v9 = vpack.c.bf16 %v2777_v5, %v2777_v5  ;;  %4346 = vmatmul.msk.bf16.gmra.mxu2 %vm1585_vm2, %v3729_v62 }
 0x172   : > { %2214 = vmatmul.bf16.gmra.mxu1 %v3725_v3 }
 0x173   : > { %3030 = vst.msk [vmem:[%s5094_s12 + $0x5c] sm:$0xf] %vm3006_vm3, %v2903_v9  ;;  %v5315_v19 = vpop.f32.mrf.mxu3 }
 0x174   : > { %v2499_v12 = vpop.f32.mrf.mxu2 }
 0x175   : > { %v2500_v17 = vadd.f32 %v2499_v12, %v2176_v11  ;;  %v1853_v20 = vpop.f32.mrf.mxu0  ;;  %v3752_v12 = vld [vmem:[%s4969_s25 + $0x218] sm:$0xf] }
 0x176   : > { %v1854_v23 = vadd.f32 %v5072_v61, %v1853_v20  ;;  %v3744_v20 = vld [vmem:[%s4969_s25 + $0x210] sm:$0xf] }
 0x177   : > { %v2778_v21 = vmax.f32 %v2500_v17, 0.0  ;;  %v2177_v24 = vpop.f32.mrf.mxu1  ;;  %v4472_v17 = vld [vmem:[%s4969_s25 + $0x220] sm:$0xf0] }
 0x178   : > { %v2178_v26 = vadd.f32 %v2177_v24, %v1854_v23  ;;  %v4470_v23 = vld [vmem:[%s4969_s25 + $0x214] sm:$0xf]  ;;  %v3746_v24 = vld [vmem:[%s4969_s25 + $0x21c] sm:$0xf0]  ;;  %v3753_v30 = vor.u32 %v4472_v17, %v3752_v12  ;;  %v4572_v12 = vld [vmem:[%s4969_s25 + $0x544] sm:$0xf] }
 0x179   : > { %v2904_v25 = vpack.c.bf16 %v2778_v21, %v2778_v21  ;;  %v4471_v21 = vld [vmem:[%s4969_s25 + $0x218] sm:$0xf0]  ;;  %v3749_v38 = vor.u32 %v4470_v23, %v3746_v24  ;;  %v4154_v17 = vld [vmem:[%s4969_s25 + $0x54c] sm:$0xf0] }
 0x17b   : > { %3031 = vst.msk [vmem:[%s5094_s12 + $0x60] sm:$0xf] %vm3006_vm3, %v2904_v25  ;;  %v5328_v44 = vpop.f32.mrf.mxu3  ;;  %v4569_v25 = vld [vmem:[%s4969_s25 + $0x52c] sm:$0xf] }
 0x17c   : > { %v2501_v41 = vpop.f32.mrf.mxu2 }
 0x17d   : > { %v2502_v43 = vadd.f32 %v2501_v41, %v2178_v26  ;;  %v1856_v49 = vpop.f32.mrf.mxu0  ;;  %v4142_v26 = vld [vmem:[%s4969_s25 + $0x534] sm:$0xf0]  ;;  %v5352_v41 = vld [vmem:[%s6163_s2] ss:$0 sm:$0xff] }
 0x17e   : > { %v1857_v55 = vadd.f32 %v5072_v61, %v1856_v49  ;;  %v4145_v39 = vor.u32 %v4569_v25, %v4142_v26 }
 0x17f   : > { %v2779_v54 = vmax.f32 %v2502_v43, 0.0  ;;  %v2180_v57 = vpop.f32.mrf.mxu1 }
 0x180   : > { %v2181_v62 = vadd.f32 %v2180_v57, %v1857_v55  ;;  %1895 = vmatmul.bf16.gmra.mxu0 %v3733_v48  ;;  %2384 = vmatmul.bf16.gmra.mxu3 %v4133_v52 }
 0x181   : > { %v2905_v59 = vpack.c.bf16 %v2779_v54, %v2779_v54  ;;  %4347 = vmatmul.msk.bf16.gmra.mxu2 %vm1585_vm2, %v3741_v47 }
 0x182   : > { %2219 = vmatmul.bf16.gmra.mxu1 %v3737_v51 }
 0x183   : > { %3032 = vst.msk [vmem:[%s5094_s12 + $0x64] sm:$0xf] %vm3006_vm3, %v2905_v59  ;;  %v5334_v3 = vpop.f32.mrf.mxu3 }
 0x184   : > { %v2504_v63 = vpop.f32.mrf.mxu2 }
 0x185   : > { %v2505_v2 = vadd.f32 %v2504_v63, %v2181_v62  ;;  %v1858_v4 = vpop.f32.mrf.mxu0 }
 0x186   : > { %v1859_v7 = vadd.f32 %v5072_v61, %v1858_v4  ;;  %v3745_v61 = vor.u32 %v4471_v21, %v3744_v20  ;;  %v3764_v4 = vld [vmem:[%s4969_s25 + $0x230] sm:$0xf] }
 0x187   : > { %v2780_v5 = vmax.f32 %v2505_v2, 0.0  ;;  %v2182_v8 = vpop.f32.mrf.mxu1 }
 0x188   : > { %v2183_v11 = vadd.f32 %v2182_v8, %v1859_v7  ;;  %v3756_v7 = vld [vmem:[%s4969_s25 + $0x228] sm:$0xf]  ;;  %v4474_v8 = vld [vmem:[%s4969_s25 + $0x230] sm:$0xf0] }
 0x189   : > { %v2906_v9 = vpack.c.bf16 %v2780_v5, %v2780_v5  ;;  %v4475_v5 = vld [vmem:[%s4969_s25 + $0x238] sm:$0xf0]  ;;  %v3757_v25 = vor.u32 %v4474_v8, %v3756_v7  ;;  %v3770_v7 = vld [vmem:[%s4969_s25 + $0x24c] sm:$0xf0] }
 0x18a   : > { %v3765_v24 = vor.u32 %v4475_v5, %v3764_v4  ;;  %v3768_v4 = vld [vmem:[%s4969_s25 + $0x240] sm:$0xf]  ;;  %v4476_v5 = vld [vmem:[%s4969_s25 + $0x244] sm:$0xf]  ;;  %v4575_v8 = vld [vmem:[%s4969_s25 + $0x55c] sm:$0xf] }
 0x18b   : > { %3033 = vst.msk [vmem:[%s5094_s12 + $0x68] sm:$0xf] %vm3006_vm3, %v2906_v9  ;;  %v5347_v29 = vpop.f32.mrf.mxu3  ;;  %v4473_v9 = vld [vmem:[%s4969_s25 + $0x22c] sm:$0xf] }
 0x18c   : > { %v2506_v27 = vpop.f32.mrf.mxu2 }
 0x18d   : > { %v2507_v28 = vadd.f32 %v2506_v27, %v2183_v11  ;;  %v1861_v37 = vpop.f32.mrf.mxu0  ;;  %v3758_v11 = vld [vmem:[%s4969_s25 + $0x234] sm:$0xf0] }
 0x18e   : > { %v1862_v43 = vadd.f32 %v5352_v41, %v1861_v37  ;;  %v3761_v27 = vor.u32 %v4473_v9, %v3758_v11  ;;  %v4166_v9 = vld [vmem:[%s4969_s25 + $0x564] sm:$0xf0]  ;;  %v2034_v11 = vadd.f32 %v5352_v41, %v5100_v33  ;;  %v2037_v33 = vadd.f32 %v5352_v41, %v5106_v46  ;;  %v4480_v46 = vld [vmem:[%s4969_s25 + $0x260] sm:$0xf0] }
 0x18f   : > { %v2781_v40 = vmax.f32 %v2507_v28, 0.0  ;;  %v2185_v47 = vpop.f32.mrf.mxu1  ;;  %v4157_v28 = vor.u32 %v4572_v12, %v4154_v17 }
 0x190   : > { %v2186_v49 = vadd.f32 %v2185_v47, %v1862_v43  ;;  %1900 = vmatmul.bf16.gmra.mxu0 %v3745_v61  ;;  %2389 = vmatmul.bf16.gmra.mxu3 %v4145_v39 }
 0x191   : > { %v2907_v48 = vpack.c.bf16 %v2781_v40, %v2781_v40  ;;  %4348 = vmatmul.msk.bf16.gmra.mxu2 %vm1585_vm2, %v3753_v30  ;;  %v2032_v40 = vadd.f32 %v5352_v41, %v5085_v16  ;;  %v4477_v16 = vld [vmem:[%s4969_s25 + $0x248] sm:$0xf0] }
 0x192   : > { %2224 = vmatmul.bf16.gmra.mxu1 %v3749_v38 }
 0x193   : > { %3034 = vst.msk [vmem:[%s5094_s12 + $0x6c] sm:$0xf] %vm3006_vm3, %v2907_v48  ;;  %v5358_v54 = vpop.f32.mrf.mxu3 }
 0x194   : > { %v2509_v51 = vpop.f32.mrf.mxu2 }
 0x195   : > { %v2510_v52 = vadd.f32 %v2509_v51, %v2186_v49  ;;  %v1863_v55 = vpop.f32.mrf.mxu0 }
 0x196   : > { %v1864_v59 = vadd.f32 %v5352_v41, %v1863_v55 }
 0x197   : > { %v2782_v57 = vmax.f32 %v2510_v52, 0.0  ;;  %v2187_v62 = vpop.f32.mrf.mxu1 }
 0x198   : > { %v2188_v2 = vadd.f32 %v2187_v62, %v1864_v59 }
 0x199   : > { %v2908_v63 = vpack.c.bf16 %v2782_v57, %v2782_v57 }
 0x19b   : > { %3035 = vst.msk [vmem:[%s5094_s12 + $0x70] sm:$0xf] %vm3006_vm3, %v2908_v63  ;;  %v5371_v23 = vpop.f32.mrf.mxu3  ;;  %v3776_v63 = vld [vmem:[%s4969_s25 + $0x248] sm:$0xf] }
 0x19c   : > { %v2511_v20 = vpop.f32.mrf.mxu2 }
 0x19d   : > { %v2512_v21 = vadd.f32 %v2511_v20, %v2188_v2  ;;  %v1866_v26 = vpop.f32.mrf.mxu0  ;;  %v4478_v2 = vld [vmem:[%s4969_s25 + $0x250] sm:$0xf0] }
 0x19e   : > { %v1867_v61 = vadd.f32 %v5352_v41, %v1866_v26 }
 0x19f   : > { %v2783_v30 = vmax.f32 %v2512_v21, 0.0  ;;  %v2190_v37 = vpop.f32.mrf.mxu1  ;;  %v3777_v21 = vor.u32 %v4478_v2, %v3776_v63  ;;  %v3788_v63 = vld [vmem:[%s4969_s25 + $0x260] sm:$0xf]  ;;  %v4481_v2 = vld [vmem:[%s4969_s25 + $0x268] sm:$0xf0] }
 0x1a0   : > { %v2191_v39 = vadd.f32 %v2190_v37, %v1867_v61  ;;  %1905 = vmatmul.bf16.gmra.mxu0 %v3757_v25  ;;  %2394 = vmatmul.bf16.gmra.mxu3 %v4157_v28  ;;  %v4169_v28 = vor.u32 %v4575_v8, %v4166_v9  ;;  %v4178_v8 = vld [vmem:[%s4969_s25 + $0x57c] sm:$0xf0]  ;;  %v2039_v9 = vadd.f32 %v5352_v41, %v5119_v0 }
 0x1a1   : > { %v2909_v38 = vpack.c.bf16 %v2783_v30, %v2783_v30  ;;  %4349 = vmatmul.msk.bf16.gmra.mxu2 %vm1585_vm2, %v3765_v24  ;;  %v3769_v24 = vor.u32 %v4477_v16, %v3768_v4  ;;  %v3780_v4 = vld [vmem:[%s4969_s25 + $0x258] sm:$0xf]  ;;  %v4479_v16 = vld [vmem:[%s4969_s25 + $0x25c] sm:$0xf]  ;;  %v2042_v0 = vadd.f32 %v5352_v41, %v5125_v13 }
 0x1a2   : > { %2229 = vmatmul.bf16.gmra.mxu1 %v3761_v27  ;;  %v3773_v27 = vor.u32 %v4476_v5, %v3770_v7  ;;  %v3782_v5 = vld [vmem:[%s4969_s25 + $0x264] sm:$0xf0]  ;;  %v4578_v7 = vld [vmem:[%s4969_s25 + $0x574] sm:$0xf]  ;;  %v4483_v13 = vld [vmem:[%s4969_s25 + $0x278] sm:$0xf0] }
 0x1a3   : > { %3036 = vst.msk [vmem:[%s5094_s12 + $0x74] sm:$0xf] %vm3006_vm3, %v2909_v38  ;;  %v2355_v48 = vpop.f32.mrf.mxu3 }
 0x1a4   : > { %v2514_v43 = vpop.f32.mrf.mxu2  ;;  %v5379_v49 = vadd.f32 %v2355_v48, %v2032_v40 }
 0x1a5   : > { %v2515_v47 = vadd.f32 %v2514_v43, %v2191_v39  ;;  %v1868_v51 = vpop.f32.mrf.mxu0 }
 0x1a6   : > { %v1869_v55 = vadd.f32 %v5352_v41, %v1868_v51 }
 0x1a7   : > { %v2784_v52 = vmax.f32 %v2515_v47, 0.0  ;;  %v2192_v57 = vpop.f32.mrf.mxu1 }
 0x1a8   : > { %v2193_v62 = vadd.f32 %v2192_v57, %v1869_v55 }
 0x1a9   : > { %v2910_v59 = vpack.c.bf16 %v2784_v52, %v2784_v52 }
 0x1ab   : > { %3037 = vst.msk [vmem:[%s5094_s12 + $0x78] sm:$0xf] %vm3006_vm3, %v2910_v59  ;;  %v2357_v20 = vpop.f32.mrf.mxu3 }
 0x1ac   : > { %v2516_v12 = vpop.f32.mrf.mxu2  ;;  %v5394_v25 = vadd.f32 %v2357_v20, %v2034_v11  ;;  %v3789_v20 = vor.u32 %v4481_v2, %v3788_v63  ;;  %v3800_v63 = vld [vmem:[%s4969_s25 + $0x278] sm:$0xf]  ;;  %v4484_v2 = vld [vmem:[%s4969_s25 + $0x280] sm:$0xf0] }
 0x1ad   : > { %v2517_v17 = vadd.f32 %v2516_v12, %v2193_v62  ;;  %v1871_v26 = vpop.f32.mrf.mxu0 }
 0x1ae   : > { %v1872_v61 = vadd.f32 %v5352_v41, %v1871_v26 }
 0x1af   : > { %v2785_v30 = vmax.f32 %v2517_v17, 0.0  ;;  %v2195_v37 = vpop.f32.mrf.mxu1 }
 0x1b0   : > { %v2196_v39 = vadd.f32 %v2195_v37, %v1872_v61  ;;  %1910 = vmatmul.bf16.gmra.mxu0 %v3769_v24  ;;  %2399 = vmatmul.bf16.gmra.mxu3 %v4169_v28  ;;  %v4181_v28 = vor.u32 %v4578_v7, %v4178_v8  ;;  %v4190_v7 = vld [vmem:[%s4969_s25 + $0x594] sm:$0xf0]  ;;  %v2044_v8 = vadd.f32 %v5352_v41, %v5138_v31 }
 0x1b1   : > { %v2911_v38 = vpack.c.bf16 %v2785_v30, %v2785_v30  ;;  %4350 = vmatmul.msk.bf16.gmra.mxu2 %vm1585_vm2, %v3777_v21  ;;  %v3781_v21 = vor.u32 %v4480_v46, %v3780_v4  ;;  %v3792_v4 = vld [vmem:[%s4969_s25 + $0x270] sm:$0xf]  ;;  %v4482_v46 = vld [vmem:[%s4969_s25 + $0x274] sm:$0xf]  ;;  %v2047_v31 = vadd.f32 %v5352_v41, %v5144_v45 }
 0x1b2   : > { %2234 = vmatmul.bf16.gmra.mxu1 %v3773_v27  ;;  %v3785_v27 = vor.u32 %v4479_v16, %v3782_v5  ;;  %v3794_v16 = vld [vmem:[%s4969_s25 + $0x27c] sm:$0xf0]  ;;  %v4581_v5 = vld [vmem:[%s4969_s25 + $0x58c] sm:$0xf]  ;;  %v4486_v45 = vld [vmem:[%s4969_s25 + $0x290] sm:$0xf0] }
 0x1b3   : > { %3038 = vst.msk [vmem:[%s5094_s12 + $0x7c] sm:$0xf] %vm3006_vm3, %v2911_v38  ;;  %v2360_v47 = vpop.f32.mrf.mxu3 }
 0x1b4   : > { %v2519_v40 = vpop.f32.mrf.mxu2  ;;  %v5402_v48 = vadd.f32 %v2360_v47, %v2037_v33 }
 0x1b5   : > { %v2520_v43 = vadd.f32 %v2519_v40, %v2196_v39  ;;  %v1873_v51 = vpop.f32.mrf.mxu0 }
 0x1b6   : > { %v1874_v55 = vadd.f32 %v5352_v41, %v1873_v51 }
 0x1b7   : > { %v2786_v52 = vmax.f32 %v2520_v43, 0.0  ;;  %v2197_v57 = vpop.f32.mrf.mxu1 }
 0x1b8   : > { %v2198_v62 = vadd.f32 %v2197_v57, %v1874_v55 }
 0x1b9   : > { %v2912_v59 = vpack.c.bf16 %v2786_v52, %v2786_v52 }
 0x1bb   : > { %3039 = vst.msk [vmem:[%s5094_s12 + $0x80] sm:$0xf] %vm3006_vm3, %v2912_v59  ;;  %v2362_v17 = vpop.f32.mrf.mxu3 }
 0x1bc   : > { %v2521_v11 = vpop.f32.mrf.mxu2  ;;  %v5417_v24 = vadd.f32 %v2362_v17, %v2039_v9  ;;  %v3801_v17 = vor.u32 %v4484_v2, %v3800_v63  ;;  %v3812_v63 = vld [vmem:[%s4969_s25 + $0x290] sm:$0xf]  ;;  %v4487_v2 = vld [vmem:[%s4969_s25 + $0x298] sm:$0xf0] }
 0x1bd   : > { %v2522_v12 = vadd.f32 %v2521_v11, %v2198_v62  ;;  %v1876_v26 = vpop.f32.mrf.mxu0 }
 0x1be   : > { %v1877_v61 = vadd.f32 %v5352_v41, %v1876_v26 }
 0x1bf   : > { %v2787_v30 = vmax.f32 %v2522_v12, 0.0  ;;  %v2200_v37 = vpop.f32.mrf.mxu1 }
 0x1c0   : > { %v2201_v39 = vadd.f32 %v2200_v37, %v1877_v61  ;;  %1915 = vmatmul.bf16.gmra.mxu0 %v3781_v21  ;;  %2404 = vmatmul.bf16.gmra.mxu3 %v4181_v28  ;;  %v4193_v28 = vor.u32 %v4581_v5, %v4190_v7  ;;  %v4202_v5 = vld [vmem:[%s4969_s25 + $0x5ac] sm:$0xf0]  ;;  %v2049_v7 = vadd.f32 %v5352_v41, %v5157_v1 }
 0x1c1   : > { %v2913_v38 = vpack.c.bf16 %v2787_v30, %v2787_v30  ;;  %4351 = vmatmul.msk.bf16.gmra.mxu2 %vm1585_vm2, %v3789_v20  ;;  %v3793_v20 = vor.u32 %v4483_v13, %v3792_v4  ;;  %v3804_v4 = vld [vmem:[%s4969_s25 + $0x288] sm:$0xf]  ;;  %v4485_v13 = vld [vmem:[%s4969_s25 + $0x28c] sm:$0xf]  ;;  %v2052_v1 = vadd.f32 %v5352_v41, %v5163_v15 }
 0x1c2   : > { %2239 = vmatmul.bf16.gmra.mxu1 %v3785_v27  ;;  %v3797_v27 = vor.u32 %v4482_v46, %v3794_v16  ;;  %v3806_v46 = vld [vmem:[%s4969_s25 + $0x294] sm:$0xf0]  ;;  %v4584_v16 = vld [vmem:[%s4969_s25 + $0x5a4] sm:$0xf]  ;;  %v4489_v15 = vld [vmem:[%s4969_s25 + $0x2a8] sm:$0xf0] }
 0x1c3   : > { %3040 = vst.msk [vmem:[%s5094_s12 + $0x84] sm:$0xf] %vm3006_vm3, %v2913_v38  ;;  %v2365_v43 = vpop.f32.mrf.mxu3 }
 0x1c4   : > { %v2524_v33 = vpop.f32.mrf.mxu2  ;;  %v5425_v47 = vadd.f32 %v2365_v43, %v2042_v0 }
 0x1c5   : > { %v2525_v40 = vadd.f32 %v2524_v33, %v2201_v39  ;;  %v1878_v51 = vpop.f32.mrf.mxu0 }
 0x1c6   : > { %v1879_v55 = vadd.f32 %v5352_v41, %v1878_v51 }
 0x1c7   : > { %v2788_v52 = vmax.f32 %v2525_v40, 0.0  ;;  %v2202_v57 = vpop.f32.mrf.mxu1 }
 0x1c8   : > { %v2203_v62 = vadd.f32 %v2202_v57, %v1879_v55 }
 0x1c9   : > { %v2914_v59 = vpack.c.bf16 %v2788_v52, %v2788_v52 }
 0x1cb   : > { %3041 = vst.msk [vmem:[%s5094_s12 + $0x88] sm:$0xf] %vm3006_vm3, %v2914_v59  ;;  %v2367_v12 = vpop.f32.mrf.mxu3 }
 0x1cc   : > { %v2526_v9 = vpop.f32.mrf.mxu2  ;;  %v5440_v21 = vadd.f32 %v2367_v12, %v2044_v8  ;;  %v3813_v12 = vor.u32 %v4487_v2, %v3812_v63  ;;  %v3824_v63 = vld [vmem:[%s4969_s25 + $0x2a8] sm:$0xf]  ;;  %v4490_v2 = vld [vmem:[%s4969_s25 + $0x2b0] sm:$0xf0] }
 0x1cd   : > { %v2527_v11 = vadd.f32 %v2526_v9, %v2203_v62  ;;  %v1881_v26 = vpop.f32.mrf.mxu0 }
 0x1ce   : > { %v1882_v61 = vadd.f32 %v5352_v41, %v1881_v26 }
 0x1cf   : > { %v2789_v30 = vmax.f32 %v2527_v11, 0.0  ;;  %v2205_v37 = vpop.f32.mrf.mxu1 }
 0x1d0   : > { %v2206_v39 = vadd.f32 %v2205_v37, %v1882_v61  ;;  %1920 = vmatmul.bf16.gmra.mxu0 %v3793_v20  ;;  %2409 = vmatmul.bf16.gmra.mxu3 %v4193_v28  ;;  %v4205_v28 = vor.u32 %v4584_v16, %v4202_v5  ;;  %v4214_v16 = vld [vmem:[%s4969_s25 + $0x5c4] sm:$0xf0]  ;;  %v2054_v5 = vadd.f32 %v5352_v41, %v5176_v35 }
 0x1d1   : > { %v2915_v38 = vpack.c.bf16 %v2789_v30, %v2789_v30  ;;  %4352 = vmatmul.msk.bf16.gmra.mxu2 %vm1585_vm2, %v3801_v17  ;;  %v3805_v17 = vor.u32 %v4486_v45, %v3804_v4  ;;  %v3816_v4 = vld [vmem:[%s4969_s25 + $0x2a0] sm:$0xf]  ;;  %v4488_v45 = vld [vmem:[%s4969_s25 + $0x2a4] sm:$0xf]  ;;  %v2057_v35 = vadd.f32 %v5352_v41, %v5182_v50 }
 0x1d2   : > { %2244 = vmatmul.bf16.gmra.mxu1 %v3797_v27  ;;  %v3809_v27 = vor.u32 %v4485_v13, %v3806_v46  ;;  %v3818_v13 = vld [vmem:[%s4969_s25 + $0x2ac] sm:$0xf0]  ;;  %v4587_v46 = vld [vmem:[%s4969_s25 + $0x5bc] sm:$0xf]  ;;  %v4492_v50 = vld [vmem:[%s4969_s25 + $0x2c0] sm:$0xf0] }
 0x1d3   : > { %3042 = vst.msk [vmem:[%s5094_s12 + $0x8c] sm:$0xf] %vm3006_vm3, %v2915_v38  ;;  %v2370_v40 = vpop.f32.mrf.mxu3 }
 0x1d4   : > { %v2529_v0 = vpop.f32.mrf.mxu2  ;;  %v5448_v43 = vadd.f32 %v2370_v40, %v2047_v31 }
 0x1d5   : > { %v2530_v33 = vadd.f32 %v2529_v0, %v2206_v39  ;;  %v1883_v51 = vpop.f32.mrf.mxu0 }
 0x1d6   : > { %v1884_v55 = vadd.f32 %v5352_v41, %v1883_v51 }
 0x1d7   : > { %v2790_v52 = vmax.f32 %v2530_v33, 0.0  ;;  %v2207_v57 = vpop.f32.mrf.mxu1 }
 0x1d8   : > { %v2208_v62 = vadd.f32 %v2207_v57, %v1884_v55 }
 0x1d9   : > { %v2916_v59 = vpack.c.bf16 %v2790_v52, %v2790_v52 }
 0x1db   : > { %3043 = vst.msk [vmem:[%s5094_s12 + $0x90] sm:$0xf] %vm3006_vm3, %v2916_v59  ;;  %v2372_v11 = vpop.f32.mrf.mxu3 }
 0x1dc   : > { %v2531_v8 = vpop.f32.mrf.mxu2  ;;  %v5463_v20 = vadd.f32 %v2372_v11, %v2049_v7  ;;  %v3825_v11 = vor.u32 %v4490_v2, %v3824_v63  ;;  %v3836_v63 = vld [vmem:[%s4969_s25 + $0x2c0] sm:$0xf]  ;;  %v4493_v2 = vld [vmem:[%s4969_s25 + $0x2c8] sm:$0xf0] }
 0x1dd   : > { %v2532_v9 = vadd.f32 %v2531_v8, %v2208_v62  ;;  %v1886_v26 = vpop.f32.mrf.mxu0 }
 0x1de   : > { %v1887_v61 = vadd.f32 %v5352_v41, %v1886_v26 }
 0x1df   : > { %v2791_v30 = vmax.f32 %v2532_v9, 0.0  ;;  %v2210_v37 = vpop.f32.mrf.mxu1 }
 0x1e0   : > { %v2211_v39 = vadd.f32 %v2210_v37, %v1887_v61  ;;  %1925 = vmatmul.bf16.gmra.mxu0 %v3805_v17  ;;  %2414 = vmatmul.bf16.gmra.mxu3 %v4205_v28  ;;  %v4217_v28 = vor.u32 %v4587_v46, %v4214_v16  ;;  %v4226_v46 = vld [vmem:[%s4969_s25 + $0x5dc] sm:$0xf0]  ;;  %v2059_v16 = vadd.f32 %v5352_v41, %v5195_v6 }
 0x1e1   : > { %v2917_v38 = vpack.c.bf16 %v2791_v30, %v2791_v30  ;;  %4353 = vmatmul.msk.bf16.gmra.mxu2 %vm1585_vm2, %v3813_v12  ;;  %v3817_v12 = vor.u32 %v4489_v15, %v3816_v4  ;;  %v3828_v4 = vld [vmem:[%s4969_s25 + $0x2b8] sm:$0xf]  ;;  %v4491_v15 = vld [vmem:[%s4969_s25 + $0x2bc] sm:$0xf]  ;;  %v2062_v6 = vadd.f32 %v5352_v41, %v5201_v22 }
 0x1e2   : > { %2249 = vmatmul.bf16.gmra.mxu1 %v3809_v27  ;;  %v3821_v27 = vor.u32 %v4488_v45, %v3818_v13  ;;  %v3830_v45 = vld [vmem:[%s4969_s25 + $0x2c4] sm:$0xf0]  ;;  %v4590_v13 = vld [vmem:[%s4969_s25 + $0x5d4] sm:$0xf]  ;;  %v4495_v22 = vld [vmem:[%s4969_s25 + $0x2d8] sm:$0xf0] }
 0x1e3   : > { %3044 = vst.msk [vmem:[%s5094_s12 + $0x94] sm:$0xf] %vm3006_vm3, %v2917_v38  ;;  %v2375_v33 = vpop.f32.mrf.mxu3 }
 0x1e4   : > { %v2534_v31 = vpop.f32.mrf.mxu2  ;;  %v5471_v40 = vadd.f32 %v2375_v33, %v2052_v1 }
 0x1e5   : > { %v2535_v0 = vadd.f32 %v2534_v31, %v2211_v39  ;;  %v1888_v51 = vpop.f32.mrf.mxu0 }
 0x1e6   : > { %v1889_v55 = vadd.f32 %v5352_v41, %v1888_v51 }
 0x1e7   : > { %v2792_v52 = vmax.f32 %v2535_v0, 0.0  ;;  %v2212_v57 = vpop.f32.mrf.mxu1 }
 0x1e8   : > { %v2213_v62 = vadd.f32 %v2212_v57, %v1889_v55 }
 0x1e9   : > { %v2918_v59 = vpack.c.bf16 %v2792_v52, %v2792_v52 }
 0x1eb   : > { %3045 = vst.msk [vmem:[%s5094_s12 + $0x98] sm:$0xf] %vm3006_vm3, %v2918_v59  ;;  %v2377_v9 = vpop.f32.mrf.mxu3 }
 0x1ec   : > { %v2536_v7 = vpop.f32.mrf.mxu2  ;;  %v5486_v17 = vadd.f32 %v2377_v9, %v2054_v5  ;;  %v3837_v9 = vor.u32 %v4493_v2, %v3836_v63  ;;  %v3848_v63 = vld [vmem:[%s4969_s25 + $0x2d8] sm:$0xf]  ;;  %v4496_v2 = vld [vmem:[%s4969_s25 + $0x2e0] sm:$0xf0] }
 0x1ed   : > { %v2537_v8 = vadd.f32 %v2536_v7, %v2213_v62  ;;  %v1891_v26 = vpop.f32.mrf.mxu0 }
 0x1ee   : > { %v1892_v61 = vadd.f32 %v5352_v41, %v1891_v26 }
 0x1ef   : > { %v2793_v30 = vmax.f32 %v2537_v8, 0.0  ;;  %v2215_v37 = vpop.f32.mrf.mxu1 }
 0x1f0   : > { %v2216_v39 = vadd.f32 %v2215_v37, %v1892_v61  ;;  %1930 = vmatmul.bf16.gmra.mxu0 %v3817_v12  ;;  %2419 = vmatmul.bf16.gmra.mxu3 %v4217_v28  ;;  %v4229_v28 = vor.u32 %v4590_v13, %v4226_v46  ;;  %v4550_v13 = vld [vmem:[%s4969_s25 + $0x490] sm:$0xf0]  ;;  %v2064_v46 = vadd.f32 %v5352_v41, %v5214_v42 }
 0x1f1   : > { %v2919_v38 = vpack.c.bf16 %v2793_v30, %v2793_v30  ;;  %4354 = vmatmul.msk.bf16.gmra.mxu2 %vm1585_vm2, %v3825_v11  ;;  %v3829_v11 = vor.u32 %v4492_v50, %v3828_v4  ;;  %v3840_v4 = vld [vmem:[%s4969_s25 + $0x2d0] sm:$0xf]  ;;  %v4494_v50 = vld [vmem:[%s4969_s25 + $0x2d4] sm:$0xf]  ;;  %v2067_v42 = vadd.f32 %v5352_v41, %v5220_v58 }
 0x1f2   : > { %2254 = vmatmul.bf16.gmra.mxu1 %v3821_v27  ;;  %v3833_v27 = vor.u32 %v4491_v15, %v3830_v45  ;;  %v3842_v15 = vld [vmem:[%s4969_s25 + $0x2dc] sm:$0xf0]  ;;  %v4064_v45 = vld [vmem:[%s4969_s25 + $0x488] sm:$0xf]  ;;  %v4498_v58 = vld [vmem:[%s4969_s25 + $0x2f0] sm:$0xf0] }
 0x1f3   : > { %3046 = vst.msk [vmem:[%s5094_s12 + $0x9c] sm:$0xf] %vm3006_vm3, %v2919_v38  ;;  %v2380_v0 = vpop.f32.mrf.mxu3 }
 0x1f4   : > { %v2539_v1 = vpop.f32.mrf.mxu2  ;;  %v5494_v33 = vadd.f32 %v2380_v0, %v2057_v35 }
 0x1f5   : > { %v2540_v31 = vadd.f32 %v2539_v1, %v2216_v39  ;;  %v1893_v51 = vpop.f32.mrf.mxu0 }
 0x1f6   : > { %v1894_v55 = vadd.f32 %v5352_v41, %v1893_v51 }
 0x1f7   : > { %v2794_v52 = vmax.f32 %v2540_v31, 0.0  ;;  %v2217_v57 = vpop.f32.mrf.mxu1 }
 0x1f8   : > { %v2218_v62 = vadd.f32 %v2217_v57, %v1894_v55 }
 0x1f9   : > { %v2920_v59 = vpack.c.bf16 %v2794_v52, %v2794_v52 }
 0x1fb   : > { %3047 = vst.msk [vmem:[%s5094_s12 + $0xa0] sm:$0xf] %vm3006_vm3, %v2920_v59  ;;  %v2382_v8 = vpop.f32.mrf.mxu3 }
 0x1fc   : > { %v2541_v5 = vpop.f32.mrf.mxu2  ;;  %v5509_v12 = vadd.f32 %v2382_v8, %v2059_v16  ;;  %v3849_v8 = vor.u32 %v4496_v2, %v3848_v63  ;;  %v3860_v63 = vld [vmem:[%s4969_s25 + $0x2f0] sm:$0xf]  ;;  %v4499_v2 = vld [vmem:[%s4969_s25 + $0x2f8] sm:$0xf0] }
 0x1fd   : > { %v2542_v7 = vadd.f32 %v2541_v5, %v2218_v62  ;;  %v1896_v26 = vpop.f32.mrf.mxu0 }
 0x1fe   : > { %v1897_v61 = vadd.f32 %v5352_v41, %v1896_v26 }
 0x1ff   : > { %v2795_v30 = vmax.f32 %v2542_v7, 0.0  ;;  %v2220_v37 = vpop.f32.mrf.mxu1 }
 0x200   : > { %v2221_v39 = vadd.f32 %v2220_v37, %v1897_v61  ;;  %1935 = vmatmul.bf16.gmra.mxu0 %v3829_v11  ;;  %2424 = vmatmul.bf16.gmra.mxu3 %v4229_v28  ;;  %v4065_v28 = vor.u32 %v4550_v13, %v4064_v45  ;;  %v4553_v45 = vld [vmem:[%s4969_s25 + $0x4a8] sm:$0xf0]  ;;  %v2069_v13 = vadd.f32 %v5352_v41, %v5233_v18 }
 0x201   : > { %v2921_v38 = vpack.c.bf16 %v2795_v30, %v2795_v30  ;;  %4355 = vmatmul.msk.bf16.gmra.mxu2 %vm1585_vm2, %v3837_v9  ;;  %v3841_v9 = vor.u32 %v4495_v22, %v3840_v4  ;;  %v3852_v4 = vld [vmem:[%s4969_s25 + $0x2e8] sm:$0xf]  ;;  %v4497_v22 = vld [vmem:[%s4969_s25 + $0x2ec] sm:$0xf]  ;;  %v2072_v18 = vadd.f32 %v5352_v41, %v5239_v34 }
 0x202   : > { %2259 = vmatmul.bf16.gmra.mxu1 %v3833_v27  ;;  %v3845_v27 = vor.u32 %v4494_v50, %v3842_v15  ;;  %v3854_v50 = vld [vmem:[%s4969_s25 + $0x2f4] sm:$0xf0]  ;;  %v4076_v15 = vld [vmem:[%s4969_s25 + $0x4a0] sm:$0xf]  ;;  %v4501_v34 = vld [vmem:[%s4969_s25 + $0x308] sm:$0xf0] }
 0x203   : > { %3048 = vst.msk [vmem:[%s5094_s12 + $0xa4] sm:$0xf] %vm3006_vm3, %v2921_v38  ;;  %v2385_v31 = vpop.f32.mrf.mxu3 }
 0x204   : > { %v2544_v35 = vpop.f32.mrf.mxu2  ;;  %v5517_v0 = vadd.f32 %v2385_v31, %v2062_v6 }
 0x205   : > { %v2545_v1 = vadd.f32 %v2544_v35, %v2221_v39  ;;  %v1898_v51 = vpop.f32.mrf.mxu0 }
 0x206   : > { %v1899_v55 = vadd.f32 %v5352_v41, %v1898_v51 }
 0x207   : > { %v2796_v52 = vmax.f32 %v2545_v1, 0.0  ;;  %v2222_v57 = vpop.f32.mrf.mxu1 }
 0x208   : > { %v2223_v62 = vadd.f32 %v2222_v57, %v1899_v55 }
 0x209   : > { %v2922_v59 = vpack.c.bf16 %v2796_v52, %v2796_v52 }
 0x20b   : > { %3049 = vst.msk [vmem:[%s5094_s12 + $0xa8] sm:$0xf] %vm3006_vm3, %v2922_v59  ;;  %v2387_v7 = vpop.f32.mrf.mxu3 }
 0x20c   : > { %v2546_v16 = vpop.f32.mrf.mxu2  ;;  %v5532_v11 = vadd.f32 %v2387_v7, %v2064_v46  ;;  %v3861_v7 = vor.u32 %v4499_v2, %v3860_v63  ;;  %v3872_v63 = vld [vmem:[%s4969_s25 + $0x308] sm:$0xf]  ;;  %v4502_v2 = vld [vmem:[%s4969_s25 + $0x310] sm:$0xf0] }
 0x20d   : > { %v2547_v5 = vadd.f32 %v2546_v16, %v2223_v62  ;;  %v1901_v26 = vpop.f32.mrf.mxu0 }
 0x20e   : > { %v1902_v61 = vadd.f32 %v5352_v41, %v1901_v26 }
 0x20f   : > { %v2797_v30 = vmax.f32 %v2547_v5, 0.0  ;;  %v2225_v37 = vpop.f32.mrf.mxu1 }
 0x210   : > { %v2226_v39 = vadd.f32 %v2225_v37, %v1902_v61  ;;  %1940 = vmatmul.bf16.gmra.mxu0 %v3841_v9  ;;  %4374 = vmatmul.msk.bf16.vlgmr.msra.gmra.mxu3 %vm1585_vm2, %v4065_v28  ;;  %v4077_v28 = vor.u32 %v4553_v45, %v4076_v15  ;;  %v4556_v15 = vld [vmem:[%s4969_s25 + $0x4c0] sm:$0xf0]  ;;  %v2074_v45 = vadd.f32 %v5352_v41, %v5252_v56 }
 0x211   : > { %v2923_v38 = vpack.c.bf16 %v2797_v30, %v2797_v30  ;;  %4356 = vmatmul.msk.bf16.gmra.mxu2 %vm1585_vm2, %v3849_v8  ;;  %v3853_v8 = vor.u32 %v4498_v58, %v3852_v4  ;;  %v3864_v4 = vld [vmem:[%s4969_s25 + $0x300] sm:$0xf]  ;;  %v4500_v58 = vld [vmem:[%s4969_s25 + $0x304] sm:$0xf]  ;;  %v2077_v56 = vadd.f32 %v5352_v41, %v5258_v10 }
 0x212   : > { %2264 = vmatmul.bf16.gmra.mxu1 %v3845_v27  ;;  %v3857_v27 = vor.u32 %v4497_v22, %v3854_v50  ;;  %v3866_v22 = vld [vmem:[%s4969_s25 + $0x30c] sm:$0xf0]  ;;  %v4088_v50 = vld [vmem:[%s4969_s25 + $0x4b8] sm:$0xf]  ;;  %v4504_v10 = vld [vmem:[%s4969_s25 + $0x320] sm:$0xf0] }
 0x213   : > { %3050 = vst.msk [vmem:[%s5094_s12 + $0xac] sm:$0xf] %vm3006_vm3, %v2923_v38  ;;  %v2390_v1 = vpop.f32.mrf.mxu3 }
 0x214   : > { %v2549_v6 = vpop.f32.mrf.mxu2  ;;  %v5541_v31 = vadd.f32 %v2390_v1, %v2067_v42 }
 0x215   : > { %v2550_v35 = vadd.f32 %v2549_v6, %v2226_v39  ;;  %v1903_v51 = vpop.f32.mrf.mxu0 }
 0x216   : > { %v1904_v55 = vadd.f32 %v5352_v41, %v1903_v51 }
 0x217   : > { %v2798_v52 = vmax.f32 %v2550_v35, 0.0  ;;  %v2227_v57 = vpop.f32.mrf.mxu1 }
 0x218   : > { %v2228_v62 = vadd.f32 %v2227_v57, %v1904_v55 }
 0x219   : > { %v2924_v59 = vpack.c.bf16 %v2798_v52, %v2798_v52 }
 0x21b   : > { %3051 = vst.msk [vmem:[%s5094_s12 + $0xb0] sm:$0xf] %vm3006_vm3, %v2924_v59  ;;  %v2392_v5 = vpop.f32.mrf.mxu3 }
 0x21c   : > { %v2551_v46 = vpop.f32.mrf.mxu2  ;;  %v5556_v9 = vadd.f32 %v2392_v5, %v2069_v13  ;;  %v3873_v5 = vor.u32 %v4502_v2, %v3872_v63  ;;  %v3884_v63 = vld [vmem:[%s4969_s25 + $0x320] sm:$0xf]  ;;  %v4505_v2 = vld [vmem:[%s4969_s25 + $0x328] sm:$0xf0] }
 0x21d   : > { %v2552_v16 = vadd.f32 %v2551_v46, %v2228_v62  ;;  %v1906_v26 = vpop.f32.mrf.mxu0 }
 0x21e   : > { %v1907_v61 = vadd.f32 %v5352_v41, %v1906_v26 }
 0x21f   : > { %v2799_v30 = vmax.f32 %v2552_v16, 0.0  ;;  %v2230_v37 = vpop.f32.mrf.mxu1 }
 0x220   : > { %v2231_v39 = vadd.f32 %v2230_v37, %v1907_v61  ;;  %1945 = vmatmul.bf16.gmra.mxu0 %v3853_v8  ;;  %4375 = vmatmul.msk.bf16.gmra.mxu3 %vm1585_vm2, %v4077_v28  ;;  %v4089_v28 = vor.u32 %v4556_v15, %v4088_v50  ;;  %v4559_v50 = vld [vmem:[%s4969_s25 + $0x4d8] sm:$0xf0]  ;;  %v2079_v15 = vadd.f32 %v5352_v41, %v5271_v36 }
 0x221   : > { %v2925_v38 = vpack.c.bf16 %v2799_v30, %v2799_v30  ;;  %4357 = vmatmul.msk.bf16.gmra.mxu2 %vm1585_vm2, %v3861_v7  ;;  %v3865_v7 = vor.u32 %v4501_v34, %v3864_v4  ;;  %v3876_v4 = vld [vmem:[%s4969_s25 + $0x318] sm:$0xf]  ;;  %v4503_v34 = vld [vmem:[%s4969_s25 + $0x31c] sm:$0xf]  ;;  %v2082_v36 = vadd.f32 %v5352_v41, %v5277_v53 }
 0x222   : > { %2269 = vmatmul.bf16.gmra.mxu1 %v3857_v27  ;;  %v3869_v27 = vor.u32 %v4500_v58, %v3866_v22  ;;  %v3878_v58 = vld [vmem:[%s4969_s25 + $0x324] sm:$0xf0]  ;;  %v4100_v22 = vld [vmem:[%s4969_s25 + $0x4d0] sm:$0xf]  ;;  %v4507_v53 = vld [vmem:[%s4969_s25 + $0x338] sm:$0xf0] }
 0x223   : > { %3052 = vst.msk [vmem:[%s5094_s12 + $0xb4] sm:$0xf] %vm3006_vm3, %v2925_v38  ;;  %v2395_v35 = vpop.f32.mrf.mxu3 }
 0x224   : > { %v2554_v42 = vpop.f32.mrf.mxu2  ;;  %v5565_v1 = vadd.f32 %v2395_v35, %v2072_v18 }
 0x225   : > { %v2555_v6 = vadd.f32 %v2554_v42, %v2231_v39  ;;  %v1908_v51 = vpop.f32.mrf.mxu0 }
 0x226   : > { %v1909_v55 = vadd.f32 %v5352_v41, %v1908_v51 }
 0x227   : > { %v2800_v52 = vmax.f32 %v2555_v6, 0.0  ;;  %v2232_v57 = vpop.f32.mrf.mxu1 }
 0x228   : > { %v2233_v62 = vadd.f32 %v2232_v57, %v1909_v55 }
 0x229   : > { %v2926_v59 = vpack.c.bf16 %v2800_v52, %v2800_v52 }
 0x22b   : > { %3053 = vst.msk [vmem:[%s5094_s12 + $0xb8] sm:$0xf] %vm3006_vm3, %v2926_v59  ;;  %v2397_v16 = vpop.f32.mrf.mxu3 }
 0x22c   : > { %v2556_v13 = vpop.f32.mrf.mxu2  ;;  %v5580_v8 = vadd.f32 %v2397_v16, %v2074_v45  ;;  %v3885_v16 = vor.u32 %v4505_v2, %v3884_v63  ;;  %v3896_v63 = vld [vmem:[%s4969_s25 + $0x338] sm:$0xf]  ;;  %v4508_v2 = vld [vmem:[%s4969_s25 + $0x340] sm:$0xf0] }
 0x22d   : > { %v2557_v46 = vadd.f32 %v2556_v13, %v2233_v62  ;;  %v1911_v26 = vpop.f32.mrf.mxu0 }
 0x22e   : > { %v1912_v61 = vadd.f32 %v5352_v41, %v1911_v26 }
 0x22f   : > { %v2801_v30 = vmax.f32 %v2557_v46, 0.0  ;;  %v2235_v37 = vpop.f32.mrf.mxu1 }
 0x230   : > { %v2236_v39 = vadd.f32 %v2235_v37, %v1912_v61  ;;  %1950 = vmatmul.bf16.gmra.mxu0 %v3865_v7  ;;  %4376 = vmatmul.msk.bf16.gmra.mxu3 %vm1585_vm2, %v4089_v28  ;;  %v4101_v28 = vor.u32 %v4559_v50, %v4100_v22  ;;  %v4562_v22 = vld [vmem:[%s4969_s25 + $0x4f0] sm:$0xf0]  ;;  %v2084_v50 = vadd.f32 %v5352_v41, %v5290_v14 }
 0x231   : > { %v2927_v38 = vpack.c.bf16 %v2801_v30, %v2801_v30  ;;  %4358 = vmatmul.msk.bf16.gmra.mxu2 %vm1585_vm2, %v3873_v5  ;;  %v3877_v5 = vor.u32 %v4504_v10, %v3876_v4  ;;  %v3888_v4 = vld [vmem:[%s4969_s25 + $0x330] sm:$0xf]  ;;  %v4506_v10 = vld [vmem:[%s4969_s25 + $0x334] sm:$0xf]  ;;  %v2087_v14 = vadd.f32 %v5352_v41, %v5296_v32 }
 0x232   : > { %2274 = vmatmul.bf16.gmra.mxu1 %v3869_v27  ;;  %v3881_v27 = vor.u32 %v4503_v34, %v3878_v58  ;;  %v3890_v34 = vld [vmem:[%s4969_s25 + $0x33c] sm:$0xf0]  ;;  %v4112_v58 = vld [vmem:[%s4969_s25 + $0x4e8] sm:$0xf]  ;;  %v4510_v32 = vld [vmem:[%s4969_s25 + $0x350] sm:$0xf0] }
 0x233   : > { %3054 = vst.msk [vmem:[%s5094_s12 + $0xbc] sm:$0xf] %vm3006_vm3, %v2927_v38  ;;  %v2400_v6 = vpop.f32.mrf.mxu3 }
 0x234   : > { %v2559_v18 = vpop.f32.mrf.mxu2  ;;  %v5589_v35 = vadd.f32 %v2400_v6, %v2077_v56 }
 0x235   : > { %v2560_v42 = vadd.f32 %v2559_v18, %v2236_v39  ;;  %v1913_v51 = vpop.f32.mrf.mxu0 }
 0x236   : > { %v1914_v55 = vadd.f32 %v5352_v41, %v1913_v51 }
 0x237   : > { %v2802_v52 = vmax.f32 %v2560_v42, 0.0  ;;  %v2237_v57 = vpop.f32.mrf.mxu1 }
 0x238   : > { %v2238_v62 = vadd.f32 %v2237_v57, %v1914_v55 }
 0x239   : > { %v2928_v59 = vpack.c.bf16 %v2802_v52, %v2802_v52 }
 0x23b   : > { %3055 = vst.msk [vmem:[%s5094_s12 + $0xc0] sm:$0xf] %vm3006_vm3, %v2928_v59  ;;  %v2402_v46 = vpop.f32.mrf.mxu3 }
 0x23c   : > { %v2561_v45 = vpop.f32.mrf.mxu2  ;;  %v5604_v7 = vadd.f32 %v2402_v46, %v2079_v15  ;;  %v3897_v46 = vor.u32 %v4508_v2, %v3896_v63  ;;  %v3908_v63 = vld [vmem:[%s4969_s25 + $0x350] sm:$0xf]  ;;  %v4511_v2 = vld [vmem:[%s4969_s25 + $0x358] sm:$0xf0] }
 0x23d   : > { %v2562_v13 = vadd.f32 %v2561_v45, %v2238_v62  ;;  %v1916_v26 = vpop.f32.mrf.mxu0 }
 0x23e   : > { %v1917_v61 = vadd.f32 %v5352_v41, %v1916_v26 }
 0x23f   : > { %v2803_v30 = vmax.f32 %v2562_v13, 0.0  ;;  %v2240_v37 = vpop.f32.mrf.mxu1 }
 0x240   : > { %v2241_v39 = vadd.f32 %v2240_v37, %v1917_v61  ;;  %1955 = vmatmul.bf16.gmra.mxu0 %v3877_v5  ;;  %4377 = vmatmul.msk.bf16.gmra.mxu3 %vm1585_vm2, %v4101_v28  ;;  %v4113_v28 = vor.u32 %v4562_v22, %v4112_v58  ;;  %v4565_v58 = vld [vmem:[%s4969_s25 + $0x508] sm:$0xf0]  ;;  %v2089_v22 = vadd.f32 %v5352_v41, %v5309_v60 }
 0x241   : > { %v2929_v38 = vpack.c.bf16 %v2803_v30, %v2803_v30  ;;  %4359 = vmatmul.msk.bf16.gmra.mxu2 %vm1585_vm2, %v3885_v16  ;;  %v3889_v16 = vor.u32 %v4507_v53, %v3888_v4  ;;  %v3900_v4 = vld [vmem:[%s4969_s25 + $0x348] sm:$0xf]  ;;  %v4509_v53 = vld [vmem:[%s4969_s25 + $0x34c] sm:$0xf] }
 0x242   : > { %2279 = vmatmul.bf16.gmra.mxu1 %v3881_v27  ;;  %v3893_v27 = vor.u32 %v4506_v10, %v3890_v34  ;;  %v3902_v10 = vld [vmem:[%s4969_s25 + $0x354] sm:$0xf0]  ;;  %v4124_v34 = vld [vmem:[%s4969_s25 + $0x500] sm:$0xf] }
 0x243   : > { %3056 = vst.msk [vmem:[%s5094_s12 + $0xc4] sm:$0xf] %vm3006_vm3, %v2929_v38  ;;  %v2405_v42 = vpop.f32.mrf.mxu3 }
 0x244   : > { %v2564_v56 = vpop.f32.mrf.mxu2  ;;  %v5613_v6 = vadd.f32 %v2405_v42, %v2082_v36 }
 0x245   : > { %v2565_v18 = vadd.f32 %v2564_v56, %v2241_v39  ;;  %v1918_v51 = vpop.f32.mrf.mxu0 }
 0x246   : > { %v1919_v55 = vadd.f32 %v5352_v41, %v1918_v51 }
 0x247   : > { %v2804_v52 = vmax.f32 %v2565_v18, 0.0  ;;  %v2242_v57 = vpop.f32.mrf.mxu1 }
 0x248   : > { %v2243_v62 = vadd.f32 %v2242_v57, %v1919_v55 }
 0x249   : > { %v2930_v59 = vpack.c.bf16 %v2804_v52, %v2804_v52 }
 0x24b   : > { %3057 = vst.msk [vmem:[%s5094_s12 + $0xc8] sm:$0xf] %vm3006_vm3, %v2930_v59  ;;  %v2407_v13 = vpop.f32.mrf.mxu3 }
 0x24c   : > { %v2566_v15 = vpop.f32.mrf.mxu2  ;;  %v5628_v5 = vadd.f32 %v2407_v13, %v2084_v50  ;;  %v3909_v13 = vor.u32 %v4511_v2, %v3908_v63  ;;  %v3920_v63 = vld [vmem:[%s4969_s25 + $0x368] sm:$0xf]  ;;  %v4514_v2 = vld [vmem:[%s4969_s25 + $0x370] sm:$0xf0] }
 0x24d   : > { %v2567_v45 = vadd.f32 %v2566_v15, %v2243_v62  ;;  %v1921_v26 = vpop.f32.mrf.mxu0 }
 0x24e   : > { %v1922_v61 = vadd.f32 %v5352_v41, %v1921_v26 }
 0x24f   : > { %v2805_v30 = vmax.f32 %v2567_v45, 0.0  ;;  %v2245_v37 = vpop.f32.mrf.mxu1 }
 0x250   : > { %v2246_v39 = vadd.f32 %v2245_v37, %v1922_v61  ;;  %1960 = vmatmul.bf16.gmra.mxu0 %v3889_v16  ;;  %4378 = vmatmul.msk.bf16.gmra.mxu3 %vm1585_vm2, %v4113_v28  ;;  %v4125_v28 = vor.u32 %v4565_v58, %v4124_v34  ;;  %v5657_v61 = vld [vmem:[%s6163_s2] ss:$0 sm:$0xff]  ;;  %v4568_v34 = vld [vmem:[%s4969_s25 + $0x520] sm:$0xf0] }
 0x251   : > { %v2931_v38 = vpack.c.bf16 %v2805_v30, %v2805_v30  ;;  %4360 = vmatmul.msk.bf16.gmra.mxu2 %vm1585_vm2, %v3897_v46  ;;  %v3901_v46 = vor.u32 %v4510_v32, %v3900_v4  ;;  %v3912_v4 = vld [vmem:[%s4969_s25 + $0x360] sm:$0xf]  ;;  %v4512_v32 = vld [vmem:[%s4969_s25 + $0x364] sm:$0xf]  ;;  %v2094_v58 = vadd.f32 %v5657_v61, %v5328_v44  ;;  %v2097_v44 = vadd.f32 %v5657_v61, %v5334_v3 }
 0x252   : > { %2284 = vmatmul.bf16.gmra.mxu1 %v3893_v27  ;;  %v3905_v27 = vor.u32 %v4509_v53, %v3902_v10  ;;  %v3914_v53 = vld [vmem:[%s4969_s25 + $0x36c] sm:$0xf0]  ;;  %v4136_v10 = vld [vmem:[%s4969_s25 + $0x518] sm:$0xf]  ;;  %v4516_v3 = vld [vmem:[%s4969_s25 + $0x380] sm:$0xf0] }
 0x253   : > { %3058 = vst.msk [vmem:[%s5094_s12 + $0xcc] sm:$0xf] %vm3006_vm3, %v2931_v38  ;;  %v2410_v18 = vpop.f32.mrf.mxu3 }
 0x254   : > { %v2569_v36 = vpop.f32.mrf.mxu2  ;;  %v5637_v42 = vadd.f32 %v2410_v18, %v2087_v14 }
 0x255   : > { %v2570_v56 = vadd.f32 %v2569_v36, %v2246_v39  ;;  %v1923_v51 = vpop.f32.mrf.mxu0  ;;  %v2092_v39 = vadd.f32 %v5657_v61, %v5315_v19  ;;  %v4513_v19 = vld [vmem:[%s4969_s25 + $0x368] sm:$0xf0] }
 0x256   : > { %v1924_v55 = vadd.f32 %v5352_v41, %v1923_v51 }
 0x257   : > { %v2806_v52 = vmax.f32 %v2570_v56, 0.0  ;;  %v2247_v57 = vpop.f32.mrf.mxu1 }
 0x258   : > { %v2248_v62 = vadd.f32 %v2247_v57, %v1924_v55 }
 0x259   : > { %v2932_v59 = vpack.c.bf16 %v2806_v52, %v2806_v52 }
 0x25b   : > { %3059 = vst.msk [vmem:[%s5094_s12 + $0xd0] sm:$0xf] %vm3006_vm3, %v2932_v59  ;;  %v2412_v45 = vpop.f32.mrf.mxu3 }
 0x25c   : > { %v2571_v50 = vpop.f32.mrf.mxu2  ;;  %v5652_v16 = vadd.f32 %v2412_v45, %v2089_v22  ;;  %v3921_v45 = vor.u32 %v4514_v2, %v3920_v63  ;;  %v3932_v63 = vld [vmem:[%s4969_s25 + $0x380] sm:$0xf]  ;;  %v4517_v2 = vld [vmem:[%s4969_s25 + $0x388] sm:$0xf0] }
 0x25d   : > { %v2572_v15 = vadd.f32 %v2571_v50, %v2248_v62  ;;  %v1926_v26 = vpop.f32.mrf.mxu0 }
 0x25e   : > { %v1927_v37 = vadd.f32 %v5657_v61, %v1926_v26 }
 0x25f   : > { %v2807_v30 = vmax.f32 %v2572_v15, 0.0  ;;  %v2250_v60 = vpop.f32.mrf.mxu1 }
 0x260   : > { %v2251_v38 = vadd.f32 %v2250_v60, %v1927_v37  ;;  %1965 = vmatmul.bf16.gmra.mxu0 %v3901_v46  ;;  %4379 = vmatmul.msk.bf16.gmra.mxu3 %vm1585_vm2, %v4125_v28  ;;  %v4137_v28 = vor.u32 %v4568_v34, %v4136_v10  ;;  %v4571_v10 = vld [vmem:[%s4969_s25 + $0x538] sm:$0xf0]  ;;  %v2099_v34 = vadd.f32 %v5657_v61, %v5347_v29 }
 0x261   : > { %v2933_v41 = vpack.c.bf16 %v2807_v30, %v2807_v30  ;;  %4361 = vmatmul.msk.bf16.gmra.mxu2 %vm1585_vm2, %v3909_v13  ;;  %v3913_v13 = vor.u32 %v4513_v19, %v3912_v4  ;;  %v3924_v4 = vld [vmem:[%s4969_s25 + $0x378] sm:$0xf]  ;;  %v4515_v19 = vld [vmem:[%s4969_s25 + $0x37c] sm:$0xf]  ;;  %v2102_v29 = vadd.f32 %v5657_v61, %v5358_v54 }
 0x262   : > { %2289 = vmatmul.bf16.gmra.mxu1 %v3905_v27  ;;  %v3917_v27 = vor.u32 %v4512_v32, %v3914_v53  ;;  %v3926_v32 = vld [vmem:[%s4969_s25 + $0x384] sm:$0xf0]  ;;  %v4148_v53 = vld [vmem:[%s4969_s25 + $0x530] sm:$0xf]  ;;  %v4519_v54 = vld [vmem:[%s4969_s25 + $0x398] sm:$0xf0] }
 0x263   : > { %3060 = vst.msk [vmem:[%s5094_s12 + $0xd4] sm:$0xf] %vm3006_vm3, %v2933_v41  ;;  %v2415_v56 = vpop.f32.mrf.mxu3 }
 0x264   : > { %v2574_v14 = vpop.f32.mrf.mxu2  ;;  %v5666_v18 = vadd.f32 %v2415_v56, %v2092_v39 }
 0x265   : > { %v2575_v36 = vadd.f32 %v2574_v14, %v2251_v38  ;;  %v1928_v51 = vpop.f32.mrf.mxu0 }
 0x266   : > { %v1929_v55 = vadd.f32 %v5657_v61, %v1928_v51 }
 0x267   : > { %v2808_v52 = vmax.f32 %v2575_v36, 0.0  ;;  %v2252_v57 = vpop.f32.mrf.mxu1 }
 0x268   : > { %v2253_v62 = vadd.f32 %v2252_v57, %v1929_v55 }
 0x269   : > { %v2934_v59 = vpack.c.bf16 %v2808_v52, %v2808_v52 }
 0x26b   : > { %3061 = vst.msk [vmem:[%s5094_s12 + $0xd8] sm:$0xf] %vm3006_vm3, %v2934_v59  ;;  %v2417_v15 = vpop.f32.mrf.mxu3 }
 0x26c   : > { %v2576_v22 = vpop.f32.mrf.mxu2  ;;  %v5681_v46 = vadd.f32 %v2417_v15, %v2094_v58  ;;  %v3933_v15 = vor.u32 %v4517_v2, %v3932_v63  ;;  %v3944_v63 = vld [vmem:[%s4969_s25 + $0x398] sm:$0xf]  ;;  %v4520_v2 = vld [vmem:[%s4969_s25 + $0x3a0] sm:$0xf0] }
 0x26d   : > { %v2577_v50 = vadd.f32 %v2576_v22, %v2253_v62  ;;  %v1931_v26 = vpop.f32.mrf.mxu0 }
 0x26e   : > { %v1932_v37 = vadd.f32 %v5657_v61, %v1931_v26 }
 0x26f   : > { %v2809_v30 = vmax.f32 %v2577_v50, 0.0  ;;  %v2255_v60 = vpop.f32.mrf.mxu1 }
 0x270   : > { %v2256_v38 = vadd.f32 %v2255_v60, %v1932_v37  ;;  %1970 = vmatmul.bf16.gmra.mxu0 %v3913_v13  ;;  %4380 = vmatmul.msk.bf16.gmra.mxu3 %vm1585_vm2, %v4137_v28  ;;  %v4149_v28 = vor.u32 %v4571_v10, %v4148_v53  ;;  %v4574_v53 = vld [vmem:[%s4969_s25 + $0x550] sm:$0xf0]  ;;  %v2104_v10 = vadd.f32 %v5657_v61, %v5371_v23 }
 0x271   : > { %v2935_v41 = vpack.c.bf16 %v2809_v30, %v2809_v30  ;;  %4362 = vmatmul.msk.bf16.gmra.mxu2 %vm1585_vm2, %v3921_v45  ;;  %v3925_v45 = vor.u32 %v4516_v3, %v3924_v4  ;;  %v3936_v4 = vld [vmem:[%s4969_s25 + $0x390] sm:$0xf]  ;;  %v4518_v3 = vld [vmem:[%s4969_s25 + $0x394] sm:$0xf] }
 0x272   : > { %2294 = vmatmul.bf16.gmra.mxu1 %v3917_v27  ;;  %v3929_v27 = vor.u32 %v4515_v19, %v3926_v32  ;;  %v3938_v19 = vld [vmem:[%s4969_s25 + $0x39c] sm:$0xf0]  ;;  %v4160_v32 = vld [vmem:[%s4969_s25 + $0x548] sm:$0xf] }
 0x273   : > { %3062 = vst.msk [vmem:[%s5094_s12 + $0xdc] sm:$0xf] %vm3006_vm3, %v2935_v41  ;;  %v2420_v36 = vpop.f32.mrf.mxu3 }
 0x274   : > { %v2579_v39 = vpop.f32.mrf.mxu2  ;;  %v5690_v56 = vadd.f32 %v2420_v36, %v2097_v44 }
 0x275   : > { %v2580_v14 = vadd.f32 %v2579_v39, %v2256_v38  ;;  %v1933_v51 = vpop.f32.mrf.mxu0 }
 0x276   : > { %v1934_v55 = vadd.f32 %v5657_v61, %v1933_v51 }
 0x277   : > { %v2810_v52 = vmax.f32 %v2580_v14, 0.0  ;;  %v2257_v57 = vpop.f32.mrf.mxu1 }
 0x278   : > { %v2258_v62 = vadd.f32 %v2257_v57, %v1934_v55 }
 0x279   : > { %v2936_v59 = vpack.c.bf16 %v2810_v52, %v2810_v52 }
 0x27b   : > { %3063 = vst.msk [vmem:[%s5094_s12 + $0xe0] sm:$0xf] %vm3006_vm3, %v2936_v59  ;;  %v2422_v50 = vpop.f32.mrf.mxu3 }
 0x27c   : > { %v2581_v58 = vpop.f32.mrf.mxu2  ;;  %v5705_v13 = vadd.f32 %v2422_v50, %v2099_v34  ;;  %v3945_v50 = vor.u32 %v4520_v2, %v3944_v63  ;;  %v3956_v63 = vld [vmem:[%s4969_s25 + $0x3b0] sm:$0xf]  ;;  %v4523_v2 = vld [vmem:[%s4969_s25 + $0x3b8] sm:$0xf0] }
 0x27d   : > { %v2582_v22 = vadd.f32 %v2581_v58, %v2258_v62  ;;  %v1936_v26 = vpop.f32.mrf.mxu0 }
 0x27e   : > { %v1937_v37 = vadd.f32 %v5657_v61, %v1936_v26 }
 0x27f   : > { %v2811_v30 = vmax.f32 %v2582_v22, 0.0  ;;  %v2260_v60 = vpop.f32.mrf.mxu1 }
 0x280   : > { %v2261_v38 = vadd.f32 %v2260_v60, %v1937_v37  ;;  %1975 = vmatmul.bf16.gmra.mxu0 %v3925_v45  ;;  %4381 = vmatmul.msk.bf16.gmra.mxu3 %vm1585_vm2, %v4149_v28  ;;  %v4161_v28 = vor.u32 %v4574_v53, %v4160_v32  ;;  %v3950_v32 = vld [vmem:[%s4969_s25 + $0x3b4] sm:$0xf0]  ;;  %v4577_v53 = vld [vmem:[%s4969_s25 + $0x568] sm:$0xf0] }
 0x281   : > { %v2937_v41 = vpack.c.bf16 %v2811_v30, %v2811_v30  ;;  %4363 = vmatmul.msk.bf16.gmra.mxu2 %vm1585_vm2, %v3933_v15  ;;  %v3937_v15 = vor.u32 %v4519_v54, %v3936_v4  ;;  %v3948_v4 = vld [vmem:[%s4969_s25 + $0x3a8] sm:$0xf] }
 0x282   : > { %2299 = vmatmul.bf16.gmra.mxu1 %v3929_v27  ;;  %v3941_v27 = vor.u32 %v4518_v3, %v3938_v19  ;;  %v4522_v3 = vld [vmem:[%s4969_s25 + $0x3b0] sm:$0xf0]  ;;  %v4521_v19 = vld [vmem:[%s4969_s25 + $0x3ac] sm:$0xf] }
 0x283   : > { %3064 = vst.msk [vmem:[%s5094_s12 + $0xe4] sm:$0xf] %vm3006_vm3, %v2937_v41  ;;  %v2425_v14 = vpop.f32.mrf.mxu3 }
 0x284   : > { %v2584_v44 = vpop.f32.mrf.mxu2  ;;  %v5714_v36 = vadd.f32 %v2425_v14, %v2102_v29 }
 0x285   : > { %v2585_v39 = vadd.f32 %v2584_v44, %v2261_v38  ;;  %v1938_v51 = vpop.f32.mrf.mxu0 }
 0x286   : > { %v1939_v55 = vadd.f32 %v5657_v61, %v1938_v51 }
 0x287   : > { %v2812_v52 = vmax.f32 %v2585_v39, 0.0  ;;  %v2262_v57 = vpop.f32.mrf.mxu1 }
 0x288   : > { %v2263_v62 = vadd.f32 %v2262_v57, %v1939_v55 }
 0x289   : > { %v2938_v59 = vpack.c.bf16 %v2812_v52, %v2812_v52 }
 0x28b   : > { %3065 = vst.msk [vmem:[%s5094_s12 + $0xe8] sm:$0xf] %vm3006_vm3, %v2938_v59  ;;  %v2427_v22 = vpop.f32.mrf.mxu3 }
 0x28c   : > { %v2586_v34 = vpop.f32.mrf.mxu2  ;;  %v5729_v45 = vadd.f32 %v2427_v22, %v2104_v10  ;;  %v3957_v22 = vor.u32 %v4523_v2, %v3956_v63  ;;  %v3968_v2 = vld [vmem:[%s4969_s25 + $0x3c8] sm:$0xf] }
 0x28d   : > { %v2587_v58 = vadd.f32 %v2586_v34, %v2263_v62  ;;  %v1941_v26 = vpop.f32.mrf.mxu0 }
 0x28e   : > { %v1942_v37 = vadd.f32 %v5657_v61, %v1941_v26 }
 0x28f   : > { %v2813_v30 = vmax.f32 %v2587_v58, 0.0  ;;  %v2265_v60 = vpop.f32.mrf.mxu1 }
 0x290   : > { %v2266_v38 = vadd.f32 %v2265_v60, %v1942_v37  ;;  %1980 = vmatmul.bf16.gmra.mxu0 %v3937_v15  ;;  %4382 = vmatmul.msk.bf16.gmra.mxu3 %vm1585_vm2, %v4161_v28 }
 0x291   : > { %v2939_v41 = vpack.c.bf16 %v2813_v30, %v2813_v30  ;;  %4364 = vmatmul.msk.bf16.gmra.mxu2 %vm1585_vm2, %v3945_v50  ;;  %v3949_v50 = vor.u32 %v4522_v3, %v3948_v4  ;;  %v4526_v4 = vld [vmem:[%s4969_s25 + $0x3d0] sm:$0xf0] }
 0x292   : > { %2304 = vmatmul.bf16.gmra.mxu1 %v3941_v27  ;;  %v3953_v27 = vor.u32 %v4521_v19, %v3950_v32  ;;  %v4525_v19 = vld [vmem:[%s4969_s25 + $0x3c8] sm:$0xf0]  ;;  %v4524_v32 = vld [vmem:[%s4969_s25 + $0x3c4] sm:$0xf] }
 0x293   : > { %3066 = vst.msk [vmem:[%s5094_s12 + $0xec] sm:$0xf] %vm3006_vm3, %v2939_v41  ;;  %v2679_v44 = vpop.f32.mrf.mxu3 }
 0x294   : > { %v2589_v23 = vpop.f32.mrf.mxu2  ;;  %v2680_v39 = vadd.f32 %v2679_v44, %v5379_v49  ;;  %v4172_v49 = vld [vmem:[%s4969_s25 + $0x560] sm:$0xf] }
 0x295   : > { %v2590_v29 = vadd.f32 %v2589_v23, %v2266_v38  ;;  %v1943_v14 = vpop.f32.mrf.mxu0  ;;  %v4173_v28 = vor.u32 %v4577_v53, %v4172_v49  ;;  %v3962_v49 = vld [vmem:[%s4969_s25 + $0x3cc] sm:$0xf0]  ;;  %v4580_v53 = vld [vmem:[%s4969_s25 + $0x580] sm:$0xf0] }
 0x296   : > { %v1944_v52 = vadd.f32 %v5657_v61, %v1943_v14  ;;  %v2850_v57 = vmax.f32 %v2680_v39, 0.0 }
 0x297   : > { %v2814_v51 = vmax.f32 %v2590_v29, 0.0  ;;  %v2267_v55 = vpop.f32.mrf.mxu1 }
 0x298   : > { %v2268_v62 = vadd.f32 %v2267_v55, %v1944_v52  ;;  %v2976_v54 = vpack.c.bf16 %v2850_v57, %v2850_v57 }
 0x299   : > { %v2940_v59 = vpack.c.bf16 %v2814_v51, %v2814_v51 }
 0x29a   : > { %3103 = vst.msk [vmem:[%s5094_s12 + $0x180] sm:$0xf] %vm3006_vm3, %v2976_v54  ;;  %v3960_v54 = vld [vmem:[%s4969_s25 + $0x3c0] sm:$0xf] }
 0x29b   : > { %3067 = vst.msk [vmem:[%s5094_s12 + $0xf0] sm:$0xf] %vm3006_vm3, %v2940_v59  ;;  %v2681_v58 = vpop.f32.mrf.mxu3 }
 0x29c   : > { %v2591_v10 = vpop.f32.mrf.mxu2  ;;  %v2682_v15 = vadd.f32 %v2681_v58, %v5394_v25 }
 0x29d   : > { %v2592_v34 = vadd.f32 %v2591_v10, %v2268_v62  ;;  %v1946_v26 = vpop.f32.mrf.mxu0 }
 0x29e   : > { %v1947_v37 = vadd.f32 %v5657_v61, %v1946_v26  ;;  %v2851_v41 = vmax.f32 %v2682_v15, 0.0 }
 0x29f   : > { %v2815_v30 = vmax.f32 %v2592_v34, 0.0  ;;  %v2270_v60 = vpop.f32.mrf.mxu1 }
 0x2a0   : > { %v2271_v23 = vadd.f32 %v2270_v60, %v1947_v37  ;;  %1985 = vmatmul.bf16.gmra.mxu0 %v3949_v50  ;;  %v2977_v29 = vpack.c.bf16 %v2851_v41, %v2851_v41  ;;  %4383 = vmatmul.msk.bf16.gmra.mxu3 %vm1585_vm2, %v4173_v28  ;;  %v3961_v50 = vor.u32 %v4525_v19, %v3960_v54  ;;  %v4527_v19 = vld [vmem:[%s4969_s25 + $0x3dc] sm:$0xf] }
 0x2a1   : > { %v2941_v38 = vpack.c.bf16 %v2815_v30, %v2815_v30  ;;  %4365 = vmatmul.msk.bf16.gmra.mxu2 %vm1585_vm2, %v3957_v22  ;;  %v3969_v22 = vor.u32 %v4526_v4, %v3968_v2  ;;  %v4529_v2 = vld [vmem:[%s4969_s25 + $0x3e8] sm:$0xf0]  ;;  %v3972_v4 = vld [vmem:[%s4969_s25 + $0x3d8] sm:$0xf] }
 0x2a2   : > { %2309 = vmatmul.bf16.gmra.mxu1 %v3953_v27  ;;  %3104 = vst.msk [vmem:[%s5094_s12 + $0x184] sm:$0xf] %vm3006_vm3, %v2977_v29  ;;  %v3965_v27 = vor.u32 %v4524_v32, %v3962_v49  ;;  %v3974_v32 = vld [vmem:[%s4969_s25 + $0x3e4] sm:$0xf0]  ;;  %v4583_v49 = vld [vmem:[%s4969_s25 + $0x598] sm:$0xf0] }
 0x2a3   : > { %3068 = vst.msk [vmem:[%s5094_s12 + $0xf4] sm:$0xf] %vm3006_vm3, %v2941_v38  ;;  %v2684_v39 = vpop.f32.mrf.mxu3 }
 0x2a4   : > { %v2594_v25 = vpop.f32.mrf.mxu2  ;;  %v2685_v14 = vadd.f32 %v2684_v39, %v5402_v48  ;;  %v4184_v48 = vld [vmem:[%s4969_s25 + $0x578] sm:$0xf] }
 0x2a5   : > { %v2595_v44 = vadd.f32 %v2594_v25, %v2271_v23  ;;  %v1948_v51 = vpop.f32.mrf.mxu0  ;;  %v4185_v28 = vor.u32 %v4580_v53, %v4184_v48 }
 0x2a6   : > { %v1949_v55 = vadd.f32 %v5657_v61, %v1948_v51  ;;  %v2852_v59 = vmax.f32 %v2685_v14, 0.0 }
 0x2a7   : > { %v2816_v52 = vmax.f32 %v2595_v44, 0.0  ;;  %v2272_v57 = vpop.f32.mrf.mxu1 }
 0x2a8   : > { %v2273_v63 = vadd.f32 %v2272_v57, %v1949_v55  ;;  %v2978_v3 = vpack.c.bf16 %v2852_v59, %v2852_v59 }
 0x2a9   : > { %v2942_v62 = vpack.c.bf16 %v2816_v52, %v2816_v52 }
 0x2aa   : > { %3105 = vst.msk [vmem:[%s5094_s12 + $0x188] sm:$0xf] %vm3006_vm3, %v2978_v3  ;;  %v4528_v3 = vld [vmem:[%s4969_s25 + $0x3e0] sm:$0xf0] }
 0x2ab   : > { %3069 = vst.msk [vmem:[%s5094_s12 + $0xf8] sm:$0xf] %vm3006_vm3, %v2942_v62  ;;  %v2686_v58 = vpop.f32.mrf.mxu3 }
 0x2ac   : > { %v2596_v10 = vpop.f32.mrf.mxu2  ;;  %v2687_v15 = vadd.f32 %v2686_v58, %v5417_v24  ;;  %v3973_v58 = vor.u32 %v4528_v3, %v3972_v4  ;;  %v4530_v4 = vld [vmem:[%s4969_s25 + $0x3f4] sm:$0xf] }
 0x2ad   : > { %v2597_v34 = vadd.f32 %v2596_v10, %v2273_v63  ;;  %v1951_v26 = vpop.f32.mrf.mxu0  ;;  %v3980_v63 = vld [vmem:[%s4969_s25 + $0x3e0] sm:$0xf]  ;;  %v4586_v3 = vld [vmem:[%s4969_s25 + $0x5b0] sm:$0xf0] }
 0x2ae   : > { %v1952_v37 = vadd.f32 %v5657_v61, %v1951_v26  ;;  %v2853_v41 = vmax.f32 %v2687_v15, 0.0  ;;  %v3977_v15 = vor.u32 %v4527_v19, %v3974_v32 }
 0x2af   : > { %v2817_v30 = vmax.f32 %v2597_v34, 0.0  ;;  %v2275_v60 = vpop.f32.mrf.mxu1  ;;  %v3981_v34 = vor.u32 %v4529_v2, %v3980_v63  ;;  %v4531_v2 = vld [vmem:[%s4969_s25 + $0x3f8] sm:$0xf0] }
 0x2b0   : > { %v2276_v23 = vadd.f32 %v2275_v60, %v1952_v37  ;;  %1990 = vmatmul.bf16.gmra.mxu0 %v3961_v50  ;;  %v2979_v29 = vpack.c.bf16 %v2853_v41, %v2853_v41  ;;  %4384 = vmatmul.msk.bf16.gmra.mxu3 %vm1585_vm2, %v4185_v28 }
 0x2b1   : > { %v2943_v38 = vpack.c.bf16 %v2817_v30, %v2817_v30  ;;  %4366 = vmatmul.msk.bf16.gmra.mxu2 %vm1585_vm2, %v3969_v22 }
 0x2b2   : > { %2314 = vmatmul.bf16.gmra.mxu1 %v3965_v27  ;;  %3106 = vst.msk [vmem:[%s5094_s12 + $0x18c] sm:$0xf] %vm3006_vm3, %v2979_v29 }
 0x2b3   : > { %3070 = vst.msk [vmem:[%s5094_s12 + $0xfc] sm:$0xf] %vm3006_vm3, %v2943_v38  ;;  %v2689_v44 = vpop.f32.mrf.mxu3 }
 0x2b4   : > { %v2599_v24 = vpop.f32.mrf.mxu2  ;;  %v2690_v39 = vadd.f32 %v2689_v44, %v5425_v47  ;;  %v4196_v47 = vld [vmem:[%s4969_s25 + $0x590] sm:$0xf] }
 0x2b5   : > { %v2600_v25 = vadd.f32 %v2599_v24, %v2276_v23  ;;  %v1953_v14 = vpop.f32.mrf.mxu0  ;;  %v4197_v26 = vor.u32 %v4583_v49, %v4196_v47 }
 0x2b6   : > { %v1954_v52 = vadd.f32 %v5657_v61, %v1953_v14  ;;  %v2854_v57 = vmax.f32 %v2690_v39, 0.0 }
 0x2b7   : > { %v2818_v51 = vmax.f32 %v2600_v25, 0.0  ;;  %v2277_v55 = vpop.f32.mrf.mxu1 }
 0x2b8   : > { %v2278_v62 = vadd.f32 %v2277_v55, %v1954_v52  ;;  %v2980_v54 = vpack.c.bf16 %v2854_v57, %v2854_v57  ;;  %v3992_v57 = vld [vmem:[%s4969_s25 + $0x3f8] sm:$0xf] }
 0x2b9   : > { %v2944_v59 = vpack.c.bf16 %v2818_v51, %v2818_v51 }
 0x2ba   : > { %3107 = vst.msk [vmem:[%s5094_s12 + $0x190] sm:$0xf] %vm3006_vm3, %v2980_v54  ;;  %v3986_v54 = vld [vmem:[%s4969_s25 + $0x3fc] sm:$0xf0] }
 0x2bb   : > { %3071 = vst.msk [vmem:[%s5094_s12 + $0x100] sm:$0xf] %vm3006_vm3, %v2944_v59  ;;  %v2691_v10 = vpop.f32.mrf.mxu3  ;;  %v4532_v59 = vld [vmem:[%s4969_s25 + $0x400] sm:$0xf0] }
 0x2bc   : > { %v2601_v48 = vpop.f32.mrf.mxu2  ;;  %v2692_v22 = vadd.f32 %v2691_v10, %v5440_v21  ;;  %v3993_v49 = vor.u32 %v4532_v59, %v3992_v57  ;;  %v4533_v57 = vld [vmem:[%s4969_s25 + $0x40c] sm:$0xf]  ;;  %v3998_v59 = vld [vmem:[%s4969_s25 + $0x414] sm:$0xf0] }
 0x2bd   : > { %v2602_v53 = vadd.f32 %v2601_v48, %v2278_v62  ;;  %v1956_v50 = vpop.f32.mrf.mxu0  ;;  %v3984_v62 = vld [vmem:[%s4969_s25 + $0x3f0] sm:$0xf] }
 0x2be   : > { %v1957_v28 = vadd.f32 %v5657_v61, %v1956_v50  ;;  %v2855_v37 = vmax.f32 %v2692_v22, 0.0  ;;  %v3985_v48 = vor.u32 %v4531_v2, %v3984_v62  ;;  %v4589_v62 = vld [vmem:[%s4969_s25 + $0x5c8] sm:$0xf0] }
 0x2bf   : > { %v2819_v27 = vmax.f32 %v2602_v53, 0.0  ;;  %v2280_v30 = vpop.f32.mrf.mxu1 }
 0x2c0   : > { %v2281_v41 = vadd.f32 %v2280_v30, %v1957_v28  ;;  %1995 = vmatmul.bf16.gmra.mxu0 %v3973_v58  ;;  %v2981_v38 = vpack.c.bf16 %v2855_v37, %v2855_v37  ;;  %4385 = vmatmul.msk.bf16.gmra.mxu3 %vm1585_vm2, %v4197_v26 }
 0x2c1   : > { %v2945_v60 = vpack.c.bf16 %v2819_v27, %v2819_v27  ;;  %4367 = vmatmul.msk.bf16.gmra.mxu2 %vm1585_vm2, %v3981_v34  ;;  %v3989_v34 = vor.u32 %v4530_v4, %v3986_v54 }
 0x2c2   : > { %2319 = vmatmul.bf16.gmra.mxu1 %v3977_v15  ;;  %3108 = vst.msk [vmem:[%s5094_s12 + $0x194] sm:$0xf] %vm3006_vm3, %v2981_v38 }
 0x2c3   : > { %3072 = vst.msk [vmem:[%s5094_s12 + $0x104] sm:$0xf] %vm3006_vm3, %v2945_v60  ;;  %v2694_v29 = vpop.f32.mrf.mxu3 }
 0x2c4   : > { %v2604_v21 = vpop.f32.mrf.mxu2  ;;  %v2695_v24 = vadd.f32 %v2694_v29, %v5448_v43  ;;  %v4208_v43 = vld [vmem:[%s4969_s25 + $0x5a8] sm:$0xf] }
 0x2c5   : > { %v2605_v23 = vadd.f32 %v2604_v21, %v2281_v41  ;;  %v1958_v25 = vpop.f32.mrf.mxu0  ;;  %v4209_v58 = vor.u32 %v4586_v3, %v4208_v43 }
 0x2c6   : > { %v1959_v39 = vadd.f32 %v5657_v61, %v1958_v25  ;;  %v2856_v51 = vmax.f32 %v2695_v24, 0.0 }
 0x2c7   : > { %v2820_v44 = vmax.f32 %v2605_v23, 0.0  ;;  %v2282_v14 = vpop.f32.mrf.mxu1 }
 0x2c8   : > { %v2283_v55 = vadd.f32 %v2282_v14, %v1959_v39  ;;  %v2982_v63 = vpack.c.bf16 %v2856_v51, %v2856_v51  ;;  %v4004_v39 = vld [vmem:[%s4969_s25 + $0x410] sm:$0xf]  ;;  %v4535_v14 = vld [vmem:[%s4969_s25 + $0x418] sm:$0xf0]  ;;  %v3996_v51 = vld [vmem:[%s4969_s25 + $0x408] sm:$0xf] }
 0x2c9   : > { %v2946_v52 = vpack.c.bf16 %v2820_v44, %v2820_v44  ;;  %v4005_v54 = vor.u32 %v4535_v14, %v4004_v39  ;;  %v4592_v39 = vld [vmem:[%s4969_s25 + $0x5e0] sm:$0xf0] }
 0x2ca   : > { %3109 = vst.msk [vmem:[%s5094_s12 + $0x198] sm:$0xf] %vm3006_vm3, %v2982_v63 }
 0x2cb   : > { %3073 = vst.msk [vmem:[%s5094_s12 + $0x108] sm:$0xf] %vm3006_vm3, %v2946_v52  ;;  %v2696_v47 = vpop.f32.mrf.mxu3 }
 0x2cc   : > { %v2606_v19 = vpop.f32.mrf.mxu2  ;;  %v2697_v53 = vadd.f32 %v2696_v47, %v5463_v20 }
 0x2cd   : > { %v2607_v32 = vadd.f32 %v2606_v19, %v2283_v55  ;;  %v1961_v10 = vpop.f32.mrf.mxu0  ;;  %v4534_v55 = vld [vmem:[%s4969_s25 + $0x410] sm:$0xf0] }
 0x2ce   : > { %v1962_v50 = vadd.f32 %v5657_v61, %v1961_v10  ;;  %v2857_v26 = vmax.f32 %v2697_v53, 0.0  ;;  %v3997_v43 = vor.u32 %v4534_v55, %v3996_v51 }
 0x2cf   : > { %v2821_v22 = vmax.f32 %v2607_v32, 0.0  ;;  %v2285_v15 = vpop.f32.mrf.mxu1  ;;  %v4001_v32 = vor.u32 %v4533_v57, %v3998_v59 }
 0x2d0   : > { %v2286_v28 = vadd.f32 %v2285_v15, %v1962_v50  ;;  %2000 = vmatmul.bf16.gmra.mxu0 %v3985_v48  ;;  %v2983_v30 = vpack.c.bf16 %v2857_v26, %v2857_v26  ;;  %4386 = vmatmul.msk.bf16.gmra.mxu3 %vm1585_vm2, %v4209_v58 }
 0x2d1   : > { %v2947_v27 = vpack.c.bf16 %v2821_v22, %v2821_v22  ;;  %4368 = vmatmul.msk.bf16.gmra.mxu2 %vm1585_vm2, %v3993_v49 }
 0x2d2   : > { %2324 = vmatmul.bf16.gmra.mxu1 %v3989_v34  ;;  %3110 = vst.msk [vmem:[%s5094_s12 + $0x19c] sm:$0xf] %vm3006_vm3, %v2983_v30 }
 0x2d3   : > { %3074 = vst.msk [vmem:[%s5094_s12 + $0x10c] sm:$0xf] %vm3006_vm3, %v2947_v27  ;;  %v2699_v60 = vpop.f32.mrf.mxu3 }
 0x2d4   : > { %v2609_v20 = vpop.f32.mrf.mxu2  ;;  %v2700_v41 = vadd.f32 %v2699_v60, %v5471_v40  ;;  %v4220_v40 = vld [vmem:[%s4969_s25 + $0x5c0] sm:$0xf] }
 0x2d5   : > { %v2610_v37 = vadd.f32 %v2609_v20, %v2286_v28  ;;  %v1963_v38 = vpop.f32.mrf.mxu0  ;;  %v4221_v47 = vor.u32 %v4589_v62, %v4220_v40 }
 0x2d6   : > { %v1964_v23 = vadd.f32 %v5657_v61, %v1963_v38  ;;  %v2858_v24 = vmax.f32 %v2700_v41, 0.0  ;;  %v4016_v38 = vld [vmem:[%s4969_s25 + $0x428] sm:$0xf] }
 0x2d7   : > { %v2822_v21 = vmax.f32 %v2610_v37, 0.0  ;;  %v2287_v29 = vpop.f32.mrf.mxu1 }
 0x2d8   : > { %v2288_v44 = vadd.f32 %v2287_v29, %v1964_v23  ;;  %v2984_v52 = vpack.c.bf16 %v2858_v24, %v2858_v24  ;;  %v4008_v23 = vld [vmem:[%s4969_s25 + $0x420] sm:$0xf]  ;;  %v4537_v24 = vld [vmem:[%s4969_s25 + $0x428] sm:$0xf0] }
 0x2d9   : > { %v2948_v25 = vpack.c.bf16 %v2822_v21, %v2822_v21  ;;  %v4538_v21 = vld [vmem:[%s4969_s25 + $0x430] sm:$0xf0]  ;;  %v4009_v57 = vor.u32 %v4537_v24, %v4008_v23 }
 0x2da   : > { %3111 = vst.msk [vmem:[%s5094_s12 + $0x1a0] sm:$0xf] %vm3006_vm3, %v2984_v52  ;;  %v4017_v55 = vor.u32 %v4538_v21, %v4016_v38 }
 0x2db   : > { %3075 = vst.msk [vmem:[%s5094_s12 + $0x110] sm:$0xf] %vm3006_vm3, %v2948_v25  ;;  %v2701_v4 = vpop.f32.mrf.mxu3  ;;  %v4536_v25 = vld [vmem:[%s4969_s25 + $0x424] sm:$0xf] }
 0x2dc   : > { %v2611_v63 = vpop.f32.mrf.mxu2  ;;  %v2702_v3 = vadd.f32 %v2701_v4, %v5486_v17 }
 0x2dd   : > { %v2612_v2 = vadd.f32 %v2611_v63, %v2288_v44  ;;  %v1966_v19 = vpop.f32.mrf.mxu0  ;;  %v4010_v44 = vld [vmem:[%s4969_s25 + $0x42c] sm:$0xf0] }
 0x2de   : > { %v1967_v48 = vadd.f32 %v5657_v61, %v1966_v19  ;;  %v2859_v10 = vmax.f32 %v2702_v3, 0.0  ;;  %v4013_v62 = vor.u32 %v4536_v25, %v4010_v44 }
 0x2df   : > { %v2823_v49 = vmax.f32 %v2612_v2, 0.0  ;;  %v2290_v53 = vpop.f32.mrf.mxu1 }
 0x2e0   : > { %v2291_v58 = vadd.f32 %v2290_v53, %v1967_v48  ;;  %2005 = vmatmul.bf16.gmra.mxu0 %v3997_v43  ;;  %v2985_v22 = vpack.c.bf16 %v2859_v10, %v2859_v10  ;;  %4387 = vmatmul.msk.bf16.gmra.mxu3 %vm1585_vm2, %v4221_v47 }
 0x2e1   : > { %v2949_v34 = vpack.c.bf16 %v2823_v49, %v2823_v49  ;;  %4369 = vmatmul.msk.bf16.gmra.mxu2 %vm1585_vm2, %v4005_v54 }
 0x2e2   : > { %2329 = vmatmul.bf16.gmra.mxu1 %v4001_v32  ;;  %3112 = vst.msk [vmem:[%s5094_s12 + $0x1a4] sm:$0xf] %vm3006_vm3, %v2985_v22 }
 0x2e3   : > { %3076 = vst.msk [vmem:[%s5094_s12 + $0x114] sm:$0xf] %vm3006_vm3, %v2949_v34  ;;  %v2704_v15 = vpop.f32.mrf.mxu3 }
 0x2e4   : > { %v2614_v17 = vpop.f32.mrf.mxu2  ;;  %v2705_v26 = vadd.f32 %v2704_v15, %v5494_v33  ;;  %v4232_v33 = vld [vmem:[%s4969_s25 + $0x5d8] sm:$0xf]  ;;  %v4028_v15 = vld [vmem:[%s4969_s25 + $0x440] sm:$0xf] }
 0x2e5   : > { %v2615_v50 = vadd.f32 %v2614_v17, %v2291_v58  ;;  %v1968_v27 = vpop.f32.mrf.mxu0  ;;  %v4233_v63 = vor.u32 %v4592_v39, %v4232_v33 }
 0x2e6   : > { %v1969_v30 = vadd.f32 %v5657_v61, %v1968_v27  ;;  %v2860_v37 = vmax.f32 %v2705_v26, 0.0  ;;  %v4541_v27 = vld [vmem:[%s4969_s25 + $0x448] sm:$0xf0] }
 0x2e7   : > { %v2824_v28 = vmax.f32 %v2615_v50, 0.0  ;;  %v2292_v20 = vpop.f32.mrf.mxu1  ;;  %v4029_v38 = vor.u32 %v4541_v27, %v4028_v15 }
 0x2e8   : > { %v2293_v41 = vadd.f32 %v2292_v20, %v1969_v30  ;;  %v2986_v29 = vpack.c.bf16 %v2860_v37, %v2860_v37  ;;  %v4540_v30 = vld [vmem:[%s4969_s25 + $0x440] sm:$0xf0]  ;;  %v4539_v20 = vld [vmem:[%s4969_s25 + $0x43c] sm:$0xf]  ;;  %v4022_v37 = vld [vmem:[%s4969_s25 + $0x444] sm:$0xf0] }
 0x2e9   : > { %v2950_v60 = vpack.c.bf16 %v2824_v28, %v2824_v28  ;;  %v4020_v28 = vld [vmem:[%s4969_s25 + $0x438] sm:$0xf]  ;;  %v4025_v24 = vor.u32 %v4539_v20, %v4022_v37 }
 0x2ea   : > { %3113 = vst.msk [vmem:[%s5094_s12 + $0x1a8] sm:$0xf] %vm3006_vm3, %v2986_v29  ;;  %v4021_v21 = vor.u32 %v4540_v30, %v4020_v28 }
 0x2eb   : > { %3077 = vst.msk [vmem:[%s5094_s12 + $0x118] sm:$0xf] %vm3006_vm3, %v2950_v60  ;;  %v2706_v52 = vpop.f32.mrf.mxu3 }
 0x2ec   : > { %v2616_v14 = vpop.f32.mrf.mxu2  ;;  %v2707_v59 = vadd.f32 %v2706_v52, %v5509_v12 }
 0x2ed   : > { %v2617_v51 = vadd.f32 %v2616_v14, %v2293_v41  ;;  %v1971_v40 = vpop.f32.mrf.mxu0 }
 0x2ee   : > { %v1972_v4 = vadd.f32 %v5657_v61, %v1971_v40  ;;  %v2861_v43 = vmax.f32 %v2707_v59, 0.0 }
 0x2ef   : > { %v2825_v2 = vmax.f32 %v2617_v51, 0.0  ;;  %v2295_v54 = vpop.f32.mrf.mxu1 }
 0x2f0   : > { %v2296_v19 = vadd.f32 %v2295_v54, %v1972_v4  ;;  %2010 = vmatmul.bf16.gmra.mxu0 %v4009_v57  ;;  %v2987_v32 = vpack.c.bf16 %v2861_v43, %v2861_v43  ;;  %4388 = vmatmul.msk.bf16.gmra.mxu3 %vm1585_vm2, %v4233_v63 }
 0x2f1   : > { %v2951_v3 = vpack.c.bf16 %v2825_v2, %v2825_v2  ;;  %4370 = vmatmul.msk.bf16.gmra.mxu2 %vm1585_vm2, %v4017_v55 }
 0x2f2   : > { %2334 = vmatmul.bf16.gmra.mxu1 %v4013_v62  ;;  %3114 = vst.msk [vmem:[%s5094_s12 + $0x1ac] sm:$0xf] %vm3006_vm3, %v2987_v32  ;;  %v4544_v32 = vld [vmem:[%s4969_s25 + $0x460] sm:$0xf0] }
 0x2f3   : > { %3078 = vst.msk [vmem:[%s5094_s12 + $0x11c] sm:$0xf] %vm3006_vm3, %v2951_v3  ;;  %v2709_v49 = vpop.f32.mrf.mxu3  ;;  %v4040_v3 = vld [vmem:[%s4969_s25 + $0x458] sm:$0xf] }
 0x2f4   : > { %v2619_v12 = vpop.f32.mrf.mxu2  ;;  %v2710_v48 = vadd.f32 %v2709_v49, %v5517_v0  ;;  %v4542_v49 = vld [vmem:[%s4969_s25 + $0x454] sm:$0xf] }
 0x2f5   : > { %v2620_v47 = vadd.f32 %v2619_v12, %v2296_v19  ;;  %v1973_v53 = vpop.f32.mrf.mxu0  ;;  %v4032_v12 = vld [vmem:[%s4969_s25 + $0x450] sm:$0xf] }
 0x2f6   : > { %v1974_v34 = vadd.f32 %v5657_v61, %v1973_v53  ;;  %v2862_v22 = vmax.f32 %v2710_v48, 0.0  ;;  %v4034_v48 = vld [vmem:[%s4969_s25 + $0x45c] sm:$0xf0] }
 0x2f7   : > { %v2826_v10 = vmax.f32 %v2620_v47, 0.0  ;;  %v2297_v58 = vpop.f32.mrf.mxu1  ;;  %v4543_v47 = vld [vmem:[%s4969_s25 + $0x458] sm:$0xf0] }
 0x2f8   : > { %v2298_v50 = vadd.f32 %v2297_v58, %v1974_v34  ;;  %v2988_v26 = vpack.c.bf16 %v2862_v22, %v2862_v22  ;;  %v4041_v34 = vor.u32 %v4544_v32, %v4040_v3  ;;  %v4033_v58 = vor.u32 %v4543_v47, %v4032_v12 }
 0x2f9   : > { %v2952_v17 = vpack.c.bf16 %v2826_v10, %v2826_v10 }
 0x2fa   : > { %3115 = vst.msk [vmem:[%s5094_s12 + $0x1b0] sm:$0xf] %vm3006_vm3, %v2988_v26 }
 0x2fb   : > { %3079 = vst.msk [vmem:[%s5094_s12 + $0x120] sm:$0xf] %vm3006_vm3, %v2952_v17  ;;  %v2711_v41 = vpop.f32.mrf.mxu3 }
 0x2fc   : > { %v2621_v0 = vpop.f32.mrf.mxu2  ;;  %v2712_v23 = vadd.f32 %v2711_v41, %v5532_v11 }
 0x2fd   : > { %v2622_v60 = vadd.f32 %v2621_v0, %v2298_v50  ;;  %v1976_v29 = vpop.f32.mrf.mxu0  ;;  %v4037_v50 = vor.u32 %v4542_v49, %v4034_v48 }
 0x2fe   : > { %v1977_v44 = vadd.f32 %v5657_v61, %v1976_v29  ;;  %v2863_v39 = vmax.f32 %v2712_v23, 0.0 }
 0x2ff   : > { %v2827_v25 = vmax.f32 %v2622_v60, 0.0  ;;  %v2300_v33 = vpop.f32.mrf.mxu1 }
 0x300   : > { %v2301_v51 = vadd.f32 %v2300_v33, %v1977_v44  ;;  %2015 = vmatmul.bf16.gmra.mxu0 %v4021_v21  ;;  %v2989_v52 = vpack.c.bf16 %v2863_v39, %v2863_v39  ;;  %v4052_v33 = vld [vmem:[%s4969_s25 + $0x470] sm:$0xf] }
 0x301   : > { %v2953_v14 = vpack.c.bf16 %v2827_v25, %v2827_v25  ;;  %4371 = vmatmul.msk.bf16.gmra.mxu2 %vm1585_vm2, %v4029_v38 }
 0x302   : > { %2339 = vmatmul.bf16.gmra.mxu1 %v4025_v24  ;;  %3116 = vst.msk [vmem:[%s5094_s12 + $0x1b4] sm:$0xf] %vm3006_vm3, %v2989_v52  ;;  %v4546_v52 = vld [vmem:[%s4969_s25 + $0x470] sm:$0xf0] }
 0x303   : > { %3080 = vst.msk [vmem:[%s5094_s12 + $0x124] sm:$0xf] %vm3006_vm3, %v2953_v14  ;;  %v2714_v57 = vpop.f32.mrf.mxu3  ;;  %v4547_v14 = vld [vmem:[%s4969_s25 + $0x478] sm:$0xf0] }
 0x304   : > { %v2624_v11 = vpop.f32.mrf.mxu2  ;;  %v2715_v59 = vadd.f32 %v2714_v57, %v5541_v31 }
 0x305   : > { %v2625_v55 = vadd.f32 %v2624_v11, %v2301_v51  ;;  %v1978_v40 = vpop.f32.mrf.mxu0  ;;  %v4044_v51 = vld [vmem:[%s4969_s25 + $0x468] sm:$0xf]  ;;  %v4545_v11 = vld [vmem:[%s4969_s25 + $0x46c] sm:$0xf] }
 0x306   : > { %v1979_v63 = vadd.f32 %v5657_v61, %v1978_v40  ;;  %v2864_v4 = vmax.f32 %v2715_v59, 0.0  ;;  %v4053_v40 = vor.u32 %v4547_v14, %v4052_v33 }
 0x307   : > { %v2828_v62 = vmax.f32 %v2625_v55, 0.0  ;;  %v2302_v2 = vpop.f32.mrf.mxu1  ;;  %v4046_v55 = vld [vmem:[%s4969_s25 + $0x474] sm:$0xf0]  ;;  %s4616_s25 = smul.u32 (%p4871_p4), 504, %s4859_s15 }
 0x308   : > { %v2303_v43 = vadd.f32 %v2302_v2, %v1979_v63  ;;  %v2990_v19 = vpack.c.bf16 %v2864_v4, %v2864_v4  ;;  %v4049_v4 = vor.u32 %v4545_v11, %v4046_v55 }
 0x309   : > { %v2954_v54 = vpack.c.bf16 %v2828_v62, %v2828_v62  ;;  %v4045_v62 = vor.u32 %v4546_v52, %v4044_v51  ;;  %s6026_s28 = scalar_lea.vmem (%p4871_p4), %s6164_s3, %s4616_s25  }
 0x30a   : > { %3117 = vst.msk [vmem:[%s5094_s12 + $0x1b8] sm:$0xf] %vm3006_vm3, %v2990_v19 }
 0x30b   : > { %3081 = vst.msk [vmem:[%s5094_s12 + $0x128] sm:$0xf] %vm3006_vm3, %v2954_v54  ;;  %v2716_v10 = vpop.f32.mrf.mxu3 }
 0x30c   : > { %v2626_v31 = vpop.f32.mrf.mxu2  ;;  %v2717_v22 = vadd.f32 %v2716_v10, %v5556_v9  ;;  %v5929_v10 = vld [vmem:[%s6163_s2] ss:$0 sm:$0xff] }
 0x30d   : > { %v2627_v53 = vadd.f32 %v2626_v31, %v2303_v43  ;;  %v1981_v17 = vpop.f32.mrf.mxu0 }
 0x30e   : > { %v1982_v26 = vadd.f32 %v5657_v61, %v1981_v17  ;;  %v2865_v28 = vmax.f32 %v2717_v22, 0.0 }
 0x30f   : > { %v2829_v15 = vmax.f32 %v2627_v53, 0.0  ;;  %v2305_v27 = vpop.f32.mrf.mxu1 }
 0x310   : > { %v2306_v20 = vadd.f32 %v2305_v27, %v1982_v26  ;;  %2020 = vmatmul.bf16.gmra.mxu0 %v4033_v58  ;;  %v2991_v37 = vpack.c.bf16 %v2865_v28, %v2865_v28 }
 0x311   : > { %v2955_v30 = vpack.c.bf16 %v2829_v15, %v2829_v15  ;;  %4372 = vmatmul.msk.bf16.gmra.mxu2 %vm1585_vm2, %v4041_v34 }
 0x312   : > { %2344 = vmatmul.bf16.gmra.mxu1 %v4037_v50  ;;  %3118 = vst.msk [vmem:[%s5094_s12 + $0x1bc] sm:$0xf] %vm3006_vm3, %v2991_v37 }
 0x313   : > { %3082 = vst.msk [vmem:[%s5094_s12 + $0x12c] sm:$0xf] %vm3006_vm3, %v2955_v30  ;;  %v2719_v60 = vpop.f32.mrf.mxu3 }
 0x314   : > { %v2629_v9 = vpop.f32.mrf.mxu2  ;;  %v2720_v41 = vadd.f32 %v2719_v60, %v5565_v1 }
 0x315   : > { %v2630_v0 = vadd.f32 %v2629_v9, %v2306_v20  ;;  %v1983_v38 = vpop.f32.mrf.mxu0 }
 0x316   : > { %v1984_v23 = vadd.f32 %v5657_v61, %v1983_v38  ;;  %v2866_v24 = vmax.f32 %v2720_v41, 0.0 }
 0x317   : > { %v2830_v21 = vmax.f32 %v2630_v0, 0.0  ;;  %v2307_v29 = vpop.f32.mrf.mxu1 }
 0x318   : > { %v2308_v44 = vadd.f32 %v2307_v29, %v1984_v23  ;;  %v2992_v39 = vpack.c.bf16 %v2866_v24, %v2866_v24 }
 0x319   : > { %v2956_v25 = vpack.c.bf16 %v2830_v21, %v2830_v21 }
 0x31a   : > { %3119 = vst.msk [vmem:[%s5094_s12 + $0x1c0] sm:$0xf] %vm3006_vm3, %v2992_v39 }
 0x31b   : > { %3083 = vst.msk [vmem:[%s5094_s12 + $0x130] sm:$0xf] %vm3006_vm3, %v2956_v25  ;;  %v2721_v59 = vpop.f32.mrf.mxu3 }
 0x31c   : > { %v2631_v1 = vpop.f32.mrf.mxu2  ;;  %v2722_v63 = vadd.f32 %v2721_v59, %v5580_v8 }
 0x31d   : > { %v2632_v57 = vadd.f32 %v2631_v1, %v2308_v44  ;;  %v1986_v2 = vpop.f32.mrf.mxu0 }
 0x31e   : > { %v1987_v43 = vadd.f32 %v5657_v61, %v1986_v2  ;;  %v2867_v19 = vmax.f32 %v2722_v63, 0.0 }
 0x31f   : > { %v2831_v54 = vmax.f32 %v2632_v57, 0.0  ;;  %v2310_v3 = vpop.f32.mrf.mxu1 }
 0x320   : > { %v2311_v12 = vadd.f32 %v2310_v3, %v1987_v43  ;;  %2025 = vmatmul.bf16.gmra.mxu0 %v4045_v62  ;;  %v2993_v47 = vpack.c.bf16 %v2867_v19, %v2867_v19 }
 0x321   : > { %v2957_v32 = vpack.c.bf16 %v2831_v54, %v2831_v54  ;;  %4373 = vmatmul.msk.bf16.gmra.mxu2 %vm1585_vm2, %v4053_v40 }
 0x322   : > { %2349 = vmatmul.bf16.gmra.mxu1 %v4049_v4  ;;  %3120 = vst.msk [vmem:[%s5094_s12 + $0x1c4] sm:$0xf] %vm3006_vm3, %v2993_v47 }
 0x323   : > { %3084 = vst.msk [vmem:[%s5094_s12 + $0x134] sm:$0xf] %vm3006_vm3, %v2957_v32  ;;  %v2724_v48 = vpop.f32.mrf.mxu3 }
 0x324   : > { %v2634_v8 = vpop.f32.mrf.mxu2  ;;  %v2725_v61 = vadd.f32 %v2724_v48, %v5589_v35 }
 0x325   : > { %v2635_v49 = vadd.f32 %v2634_v8, %v2311_v12  ;;  %v1988_v31 = vpop.f32.mrf.mxu0 }
 0x326   : > { %v1989_v34 = vadd.f32 %v5929_v10, %v1988_v31  ;;  %v2868_v22 = vmax.f32 %v2725_v61, 0.0 }
 0x327   : > { %v2832_v53 = vmax.f32 %v2635_v49, 0.0  ;;  %v2312_v58 = vpop.f32.mrf.mxu1 }
 0x328   : > { %v2313_v50 = vadd.f32 %v2312_v58, %v1989_v34  ;;  %v2994_v15 = vpack.c.bf16 %v2868_v22, %v2868_v22 }
 0x329   : > { %v2958_v17 = vpack.c.bf16 %v2832_v53, %v2832_v53 }
 0x32a   : > { %3121 = vst.msk [vmem:[%s5094_s12 + $0x1c8] sm:$0xf] %vm3006_vm3, %v2994_v15 }
 0x32b   : > { %3085 = vst.msk [vmem:[%s5094_s12 + $0x138] sm:$0xf] %vm3006_vm3, %v2958_v17  ;;  %v2726_v27 = vpop.f32.mrf.mxu3 }
 0x32c   : > { %v2636_v35 = vpop.f32.mrf.mxu2  ;;  %v2727_v28 = vadd.f32 %v2726_v27, %v5604_v7 }
 0x32d   : > { %v2637_v26 = vadd.f32 %v2636_v35, %v2313_v50  ;;  %v1991_v30 = vpop.f32.mrf.mxu0 }
 0x32e   : > { %v1992_v37 = vadd.f32 %v5929_v10, %v1991_v30  ;;  %v2869_v0 = vmax.f32 %v2727_v28, 0.0 }
 0x32f   : > { %v2833_v20 = vmax.f32 %v2637_v26, 0.0  ;;  %v2315_v9 = vpop.f32.mrf.mxu1 }
 0x330   : > { %v2316_v41 = vadd.f32 %v2315_v9, %v1992_v37  ;;  %v2995_v38 = vpack.c.bf16 %v2869_v0, %v2869_v0 }
 0x331   : > { %v2959_v60 = vpack.c.bf16 %v2833_v20, %v2833_v20 }
 0x332   : > { %3122 = vst.msk [vmem:[%s5094_s12 + $0x1cc] sm:$0xf] %vm3006_vm3, %v2995_v38 }
 0x333   : > { %3086 = vst.msk [vmem:[%s5094_s12 + $0x13c] sm:$0xf] %vm3006_vm3, %v2959_v60  ;;  %v2729_v29 = vpop.f32.mrf.mxu3 }
 0x334   : > { %v2639_v21 = vpop.f32.mrf.mxu2  ;;  %v2730_v7 = vadd.f32 %v2729_v29, %v5613_v6 }
 0x335   : > { %v2640_v23 = vadd.f32 %v2639_v21, %v2316_v41  ;;  %v1993_v24 = vpop.f32.mrf.mxu0 }
 0x336   : > { %v1994_v44 = vadd.f32 %v5929_v10, %v1993_v24  ;;  %v2870_v39 = vmax.f32 %v2730_v7, 0.0 }
 0x337   : > { %v2834_v25 = vmax.f32 %v2640_v23, 0.0  ;;  %v2317_v33 = vpop.f32.mrf.mxu1 }
 0x338   : > { %v2318_v51 = vadd.f32 %v2317_v33, %v1994_v44  ;;  %v2996_v52 = vpack.c.bf16 %v2870_v39, %v2870_v39 }
 0x339   : > { %v2960_v14 = vpack.c.bf16 %v2834_v25, %v2834_v25 }
 0x33a   : > { %3123 = vst.msk [vmem:[%s5094_s12 + $0x1d0] sm:$0xf] %vm3006_vm3, %v2996_v52 }
 0x33b   : > { %3087 = vst.msk [vmem:[%s5094_s12 + $0x140] sm:$0xf] %vm3006_vm3, %v2960_v14  ;;  %v2731_v1 = vpop.f32.mrf.mxu3 }
 0x33c   : > { %v2641_v11 = vpop.f32.mrf.mxu2  ;;  %v2732_v6 = vadd.f32 %v2731_v1, %v5628_v5 }
 0x33d   : > { %v2642_v55 = vadd.f32 %v2641_v11, %v2318_v51  ;;  %v1996_v57 = vpop.f32.mrf.mxu0 }
 0x33e   : > { %v1997_v40 = vadd.f32 %v5929_v10, %v1996_v57  ;;  %v2871_v63 = vmax.f32 %v2732_v6, 0.0 }
 0x33f   : > { %v2835_v59 = vmax.f32 %v2642_v55, 0.0  ;;  %v2320_v62 = vpop.f32.mrf.mxu1 }
 0x340   : > { %v2321_v4 = vadd.f32 %v2320_v62, %v1997_v40  ;;  %v2997_v54 = vpack.c.bf16 %v2871_v63, %v2871_v63 }
 0x341   : > { %v2961_v2 = vpack.c.bf16 %v2835_v59, %v2835_v59 }
 0x342   : > { %3124 = vst.msk [vmem:[%s5094_s12 + $0x1d4] sm:$0xf] %vm3006_vm3, %v2997_v54 }
 0x343   : > { %3088 = vst.msk [vmem:[%s5094_s12 + $0x144] sm:$0xf] %vm3006_vm3, %v2961_v2  ;;  %v2734_v19 = vpop.f32.mrf.mxu3 }
 0x344   : > { %v2644_v43 = vpop.f32.mrf.mxu2  ;;  %v2735_v5 = vadd.f32 %v2734_v19, %v5637_v42 }
 0x345   : > { %v2645_v3 = vadd.f32 %v2644_v43, %v2321_v4  ;;  %v1998_v32 = vpop.f32.mrf.mxu0 }
 0x346   : > { %v1999_v47 = vadd.f32 %v5929_v10, %v1998_v32  ;;  %v2872_v49 = vmax.f32 %v2735_v5, 0.0 }
 0x347   : > { %v2836_v12 = vmax.f32 %v2645_v3, 0.0  ;;  %v2322_v8 = vpop.f32.mrf.mxu1 }
 0x348   : > { %v2323_v61 = vadd.f32 %v2322_v8, %v1999_v47  ;;  %v2998_v31 = vpack.c.bf16 %v2872_v49, %v2872_v49 }
 0x349   : > { %v2962_v48 = vpack.c.bf16 %v2836_v12, %v2836_v12 }
 0x34a   : > { %3125 = vst.msk [vmem:[%s5094_s12 + $0x1d8] sm:$0xf] %vm3006_vm3, %v2998_v31 }
 0x34b   : > { %3089 = vst.msk [vmem:[%s5094_s12 + $0x148] sm:$0xf] %vm3006_vm3, %v2962_v48  ;;  %v2736_v58 = vpop.f32.mrf.mxu3 }
 0x34c   : > { %v2646_v53 = vpop.f32.mrf.mxu2  ;;  %v2737_v42 = vadd.f32 %v2736_v58, %v5652_v16 }
 0x34d   : > { %v2647_v34 = vadd.f32 %v2646_v53, %v2323_v61  ;;  %v2001_v22 = vpop.f32.mrf.mxu0 }
 0x34e   : > { %v2002_v50 = vadd.f32 %v5929_v10, %v2001_v22  ;;  %v2873_v35 = vmax.f32 %v2737_v42, 0.0 }
 0x34f   : > { %v2837_v17 = vmax.f32 %v2647_v34, 0.0  ;;  %v2325_v15 = vpop.f32.mrf.mxu1 }
 0x350   : > { %v2326_v27 = vadd.f32 %v2325_v15, %v2002_v50  ;;  %v2999_v28 = vpack.c.bf16 %v2873_v35, %v2873_v35 }
 0x351   : > { %v2963_v26 = vpack.c.bf16 %v2837_v17, %v2837_v17 }
 0x352   : > { %3126 = vst.msk [vmem:[%s5094_s12 + $0x1dc] sm:$0xf] %vm3006_vm3, %v2999_v28 }
 0x353   : > { %3090 = vst.msk [vmem:[%s5094_s12 + $0x14c] sm:$0xf] %vm3006_vm3, %v2963_v26  ;;  %v2739_v37 = vpop.f32.mrf.mxu3 }
 0x354   : > { %v2649_v30 = vpop.f32.mrf.mxu2  ;;  %v2740_v16 = vadd.f32 %v2739_v37, %v5666_v18 }
 0x355   : > { %v2650_v20 = vadd.f32 %v2649_v30, %v2326_v27  ;;  %v2003_v9 = vpop.f32.mrf.mxu0 }
 0x356   : > { %v2004_v60 = vadd.f32 %v5929_v10, %v2003_v9  ;;  %v2874_v38 = vmax.f32 %v2740_v16, 0.0 }
 0x357   : > { %v2838_v0 = vmax.f32 %v2650_v20, 0.0  ;;  %v2327_v41 = vpop.f32.mrf.mxu1 }
 0x358   : > { %v2328_v23 = vadd.f32 %v2327_v41, %v2004_v60  ;;  %v3000_v29 = vpack.c.bf16 %v2874_v38, %v2874_v38 }
 0x359   : > { %v2964_v21 = vpack.c.bf16 %v2838_v0, %v2838_v0 }
 0x35a   : > { %3127 = vst.msk [vmem:[%s5094_s12 + $0x1e0] sm:$0xf] %vm3006_vm3, %v3000_v29 }
 0x35b   : > { %3091 = vst.msk [vmem:[%s5094_s12 + $0x150] sm:$0xf] %vm3006_vm3, %v2964_v21  ;;  %v2741_v25 = vpop.f32.mrf.mxu3 }
 0x35c   : > { %v2651_v7 = vpop.f32.mrf.mxu2  ;;  %v2742_v18 = vadd.f32 %v2741_v25, %v5681_v46 }
 0x35d   : > { %v2652_v24 = vadd.f32 %v2651_v7, %v2328_v23  ;;  %v2006_v44 = vpop.f32.mrf.mxu0 }
 0x35e   : > { %v2007_v39 = vadd.f32 %v5929_v10, %v2006_v44  ;;  %v2875_v51 = vmax.f32 %v2742_v18, 0.0 }
 0x35f   : > { %v2839_v33 = vmax.f32 %v2652_v24, 0.0  ;;  %v2330_v14 = vpop.f32.mrf.mxu1 }
 0x360   : > { %v2331_v11 = vadd.f32 %v2330_v14, %v2007_v39  ;;  %v3001_v55 = vpack.c.bf16 %v2875_v51, %v2875_v51 }
 0x361   : > { %v2965_v52 = vpack.c.bf16 %v2839_v33, %v2839_v33 }
 0x362   : > { %3128 = vst.msk [vmem:[%s5094_s12 + $0x1e4] sm:$0xf] %vm3006_vm3, %v3001_v55 }
 0x363   : > { %3092 = vst.msk [vmem:[%s5094_s12 + $0x154] sm:$0xf] %vm3006_vm3, %v2965_v52  ;;  %v2744_v57 = vpop.f32.mrf.mxu3 }
 0x364   : > { %v2654_v1 = vpop.f32.mrf.mxu2  ;;  %v2745_v46 = vadd.f32 %v2744_v57, %v5690_v56 }
 0x365   : > { %v2655_v6 = vadd.f32 %v2654_v1, %v2331_v11  ;;  %v2008_v59 = vpop.f32.mrf.mxu0 }
 0x366   : > { %v2009_v62 = vadd.f32 %v5929_v10, %v2008_v59  ;;  %v2876_v2 = vmax.f32 %v2745_v46, 0.0 }
 0x367   : > { %v2840_v40 = vmax.f32 %v2655_v6, 0.0  ;;  %v2332_v63 = vpop.f32.mrf.mxu1 }
 0x368   : > { %v2333_v54 = vadd.f32 %v2332_v63, %v2009_v62  ;;  %v3002_v43 = vpack.c.bf16 %v2876_v2, %v2876_v2 }
 0x369   : > { %v2966_v4 = vpack.c.bf16 %v2840_v40, %v2840_v40 }
 0x36a   : > { %3129 = vst.msk [vmem:[%s5094_s12 + $0x1e8] sm:$0xf] %vm3006_vm3, %v3002_v43 }
 0x36b   : > { %3093 = vst.msk [vmem:[%s5094_s12 + $0x158] sm:$0xf] %vm3006_vm3, %v2966_v4  ;;  %v2746_v5 = vpop.f32.mrf.mxu3 }
 0x36c   : > { %v2656_v3 = vpop.f32.mrf.mxu2  ;;  %v2747_v56 = vadd.f32 %v2746_v5, %v5705_v13 }
 0x36d   : > { %v2657_v19 = vadd.f32 %v2656_v3, %v2333_v54  ;;  %v2011_v32 = vpop.f32.mrf.mxu0 }
 0x36e   : > { %v2012_v47 = vadd.f32 %v5929_v10, %v2011_v32  ;;  %v2877_v49 = vmax.f32 %v2747_v56, 0.0 }
 0x36f   : > { %v2841_v12 = vmax.f32 %v2657_v19, 0.0  ;;  %v2335_v8 = vpop.f32.mrf.mxu1 }
 0x370   : > { %v2336_v61 = vadd.f32 %v2335_v8, %v2012_v47  ;;  %v3003_v31 = vpack.c.bf16 %v2877_v49, %v2877_v49 }
 0x371   : > { %v2967_v48 = vpack.c.bf16 %v2841_v12, %v2841_v12 }
 0x372   : > { %3130 = vst.msk [vmem:[%s5094_s12 + $0x1ec] sm:$0xf] %vm3006_vm3, %v3003_v31 }
 0x373   : > { %3094 = vst.msk [vmem:[%s5094_s12 + $0x15c] sm:$0xf] %vm3006_vm3, %v2967_v48  ;;  %v2749_v58 = vpop.f32.mrf.mxu3 }
 0x374   : > { %v2659_v53 = vpop.f32.mrf.mxu2  ;;  %v2750_v13 = vadd.f32 %v2749_v58, %v5714_v36 }
 0x375   : > { %v2660_v34 = vadd.f32 %v2659_v53, %v2336_v61  ;;  %v2013_v42 = vpop.f32.mrf.mxu0 }
 0x376   : > { %v2014_v17 = vadd.f32 %v5929_v10, %v2013_v42  ;;  %v2878_v15 = vmax.f32 %v2750_v13, 0.0 }
 0x377   : > { %v2842_v22 = vmax.f32 %v2660_v34, 0.0  ;;  %v2337_v50 = vpop.f32.mrf.mxu1 }
 0x378   : > { %v2338_v26 = vadd.f32 %v2337_v50, %v2014_v17  ;;  %v3004_v27 = vpack.c.bf16 %v2878_v15, %v2878_v15 }
 0x379   : > { %v2968_v35 = vpack.c.bf16 %v2842_v22, %v2842_v22 }
 0x37a   : > { %3131 = vst.msk [vmem:[%s5094_s12 + $0x1f0] sm:$0xf] %vm3006_vm3, %v3004_v27 }
 0x37b   : > { %3095 = vst.msk [vmem:[%s5094_s12 + $0x160] sm:$0xf] %vm3006_vm3, %v2968_v35  ;;  %v2751_v20 = vpop.f32.mrf.mxu3 }
 0x37c   : > { %v2661_v28 = vpop.f32.mrf.mxu2  ;;  %v2752_v36 = vadd.f32 %v2751_v20, %v5729_v45 }
 0x37d   : > { %v2662_v30 = vadd.f32 %v2661_v28, %v2338_v26  ;;  %v2016_v37 = vpop.f32.mrf.mxu0 }
 0x37e   : > { %v2017_v9 = vadd.f32 %v5929_v10, %v2016_v37  ;;  %v2879_v60 = vmax.f32 %v2752_v36, 0.0 }
 0x37f   : > { %v2843_v16 = vmax.f32 %v2662_v30, 0.0  ;;  %v2340_v0 = vpop.f32.mrf.mxu1 }
 0x380   : > { %v2341_v38 = vadd.f32 %v2340_v0, %v2017_v9  ;;  %v3005_v21 = vpack.c.bf16 %v2879_v60, %v2879_v60 }
 0x381   : > { %v2969_v41 = vpack.c.bf16 %v2843_v16, %v2843_v16 }
 0x382   : > { %3132 = vst.msk [vmem:[%s5094_s12 + $0x1f4] sm:$0xf] %vm3006_vm3, %v3005_v21 }
 0x383   : > { %3096 = vst.msk [vmem:[%s5094_s12 + $0x164] sm:$0xf] %vm3006_vm3, %v2969_v41 }
 0x384   : > { %v2664_v23 = vpop.f32.mrf.mxu2 }
 0x385   : > { %v2665_v29 = vadd.f32 %v2664_v23, %v2341_v38  ;;  %v2018_v7 = vpop.f32.mrf.mxu0 }
 0x386   : > { %v2019_v45 = vadd.f32 %v5929_v10, %v2018_v7 }
 0x387   : > { %v2844_v24 = vmax.f32 %v2665_v29, 0.0  ;;  %v2342_v25 = vpop.f32.mrf.mxu1 }
 0x388   : > { %v2343_v44 = vadd.f32 %v2342_v25, %v2019_v45 }
 0x389   : > { %v2970_v18 = vpack.c.bf16 %v2844_v24, %v2844_v24 }
 0x38b   : > { %3097 = vst.msk [vmem:[%s5094_s12 + $0x168] sm:$0xf] %vm3006_vm3, %v2970_v18 }
 0x38c   : > { %v2666_v33 = vpop.f32.mrf.mxu2 }
 0x38d   : > { %v2667_v39 = vadd.f32 %v2666_v33, %v2343_v44  ;;  %v2021_v14 = vpop.f32.mrf.mxu0 }
 0x38e   : > { %v2022_v52 = vadd.f32 %v5929_v10, %v2021_v14 }
 0x38f   : > { %v2845_v51 = vmax.f32 %v2667_v39, 0.0  ;;  %v2345_v11 = vpop.f32.mrf.mxu1 }
 0x390   : > { %v2346_v1 = vadd.f32 %v2345_v11, %v2022_v52 }
 0x391   : > { %v2971_v55 = vpack.c.bf16 %v2845_v51, %v2845_v51 }
 0x393   : > { %3098 = vst.msk [vmem:[%s5094_s12 + $0x16c] sm:$0xf] %vm3006_vm3, %v2971_v55 }
 0x394   : > { %v2669_v6 = vpop.f32.mrf.mxu2 }
 0x395   : > { %v2670_v57 = vadd.f32 %v2669_v6, %v2346_v1  ;;  %v2023_v46 = vpop.f32.mrf.mxu0 }
 0x396   : > { %v2024_v40 = vadd.f32 %v5929_v10, %v2023_v46 }
 0x397   : > { %v2846_v59 = vmax.f32 %v2670_v57, 0.0  ;;  %v2347_v62 = vpop.f32.mrf.mxu1 }
 0x398   : > { %v2348_v2 = vadd.f32 %v2347_v62, %v2024_v40 }
 0x399   : > { %v2972_v63 = vpack.c.bf16 %v2846_v59, %v2846_v59 }
 0x39b   : > { %3099 = vst.msk [vmem:[%s5094_s12 + $0x170] sm:$0xf] %vm3006_vm3, %v2972_v63 }
 0x39c   : > { %v2671_v4 = vpop.f32.mrf.mxu2 }
 0x39d   : > { %v2672_v54 = vadd.f32 %v2671_v4, %v2348_v2  ;;  %v2026_v43 = vpop.f32.mrf.mxu0 }
 0x39e   : > { %v2027_v19 = vadd.f32 %v5929_v10, %v2026_v43 }
 0x39f   : > { %v2847_v3 = vmax.f32 %v2672_v54, 0.0  ;;  %v2350_v5 = vpop.f32.mrf.mxu1 }
 0x3a0   : > { %v2351_v32 = vadd.f32 %v2350_v5, %v2027_v19 }
 0x3a1   : > { %v2973_v56 = vpack.c.bf16 %v2847_v3, %v2847_v3 }
 0x3a3   : > { %3100 = vst.msk [vmem:[%s5094_s12 + $0x174] sm:$0xf] %vm3006_vm3, %v2973_v56 }
 0x3a4   : > { %v2674_v12 = vpop.f32.mrf.mxu2 }
 0x3a5   : > { %v2675_v47 = vadd.f32 %v2674_v12, %v2351_v32  ;;  %v2028_v8 = vpop.f32.mrf.mxu0 }
 0x3a6   : > { %v2029_v48 = vadd.f32 %v5929_v10, %v2028_v8 }
 0x3a7   : > { %v2848_v49 = vmax.f32 %v2675_v47, 0.0  ;;  %v2352_v61 = vpop.f32.mrf.mxu1 }
 0x3a8   : > { %v2353_v53 = vadd.f32 %v2352_v61, %v2029_v48 }
 0x3a9   : > { %v2974_v31 = vpack.c.bf16 %v2848_v49, %v2848_v49 }
 0x3ab   : > { %3101 = vst.msk [vmem:[%s5094_s12 + $0x178] sm:$0xf] %vm3006_vm3, %v2974_v31 }
 0x3ac   : > { %v2676_v34 = vpop.f32.mrf.mxu2 }
 0x3ad   : > { %v2677_v58 = vadd.f32 %v2676_v34, %v2353_v53 }
 0x3af   : > { %v2849_v13 = vmax.f32 %v2677_v58, 0.0  ;;  %3139 = sbr.rel (!%p4871_p4) target bundleno = 1012 (0x3f4), region = 36 }
 0x3b1   : > { %v2975_v42 = vpack.c.bf16 %v2849_v13, %v2849_v13 }
 0x3b3   : > { %3102 = vst.msk [vmem:[%s5094_s12 + $0x17c] sm:$0xf] %vm3006_vm3, %v2975_v42 }
 0x3b4   : > { %s6175_s24 = smov (!%p3142_p8, %s3141_s24), 126 }
 0x3b5   : > { %s4389_s29 = sshll.u32 %s6175_s24, 2 }
 0x3b6   : > { %p4392_p9 = scmp.eq.s32.totalorder %s4389_s29, 0 }
 0x3b7   : > { %s6032_s30 = sshrl.u32 (!%p4392_p9), %s6175_s24, 5 }
 0x3b8   : > { %3150 = sbr.rel (%p4392_p9) target bundleno = 1012 (0x3f4), region = 40  ;;  %p4393_p10 = scmp.le.s32.totalorder (!%p4392_p9), %s6032_s30, 0 }
 0x3bd   : > { %3429 = sbr.rel (%p4393_p10) target bundleno = 995 (0x3e3), region = 112  ;;  %s6166_s15 = smov (!%p4393_p10), %s6026_s28 }
 0x3be   : > { %s6167_s20 = smov (!%p4393_p10), %s5094_s12  ;;  %s6041_s10 = smov (!%p4393_p10), 0  }
 0x3bf   : > { %s6043_s4 = smov (!%p4393_p10), 0  }
 0x3c2 LB: >> { %v3167_v10 = vld [vmem:[%s4799_s20] sm:$0xf]  ;;  %v3169_v22 = vld [vmem:[%s4799_s20 + $0x4] sm:$0xf]  ;;  %v3171_v17 = vld [vmem:[%s4799_s20 + $0x8] sm:$0xf]  ;;  %s4807_s4 = sphi %s6043_s4, %s3161_s4   ;;  %s4803_s10 = sphi %s6041_s10, %s6170_s10   ;;  %s4799_s20 = sphi %s6167_s20, %s6169_s20   ;;  %s4795_s15 = sphi %s6166_s15, %s6168_s15  }
 0x3c3   : >> { %3168 = vst [vmem:[%s4795_s15] sm:$0xf] %v3167_v10  ;;  %v3173_v50 = vld [vmem:[%s4799_s20 + $0xc] sm:$0xf]  ;;  %v3175_v15 = vld [vmem:[%s4799_s20 + $0x10] sm:$0xf]  ;;  %s3231_s5 = sadd.s32 1, %s4803_s10 }
 0x3c4   : >> { %3170 = vst [vmem:[%s4795_s15 + $0x4] sm:$0xf] %v3169_v22  ;;  %v3177_v35 = vld [vmem:[%s4799_s20 + $0x14] sm:$0xf]  ;;  %v3179_v26 = vld [vmem:[%s4799_s20 + $0x18] sm:$0xf]  ;;  %p3232_p11 = scmp.ge.s32.totalorder %s3231_s5, %s6032_s30 }
 0x3c5   : >> { %3172 = vst [vmem:[%s4795_s15 + $0x8] sm:$0xf] %v3171_v17  ;;  %v3181_v27 = vld [vmem:[%s4799_s20 + $0x1c] sm:$0xf]  ;;  %v3183_v28 = vld [vmem:[%s4799_s20 + $0x20] sm:$0xf] }
 0x3c6   : >> { %3174 = vst [vmem:[%s4795_s15 + $0xc] sm:$0xf] %v3173_v50  ;;  %v3185_v30 = vld [vmem:[%s4799_s20 + $0x24] sm:$0xf]  ;;  %v3187_v20 = vld [vmem:[%s4799_s20 + $0x28] sm:$0xf] }
 0x3c7   : >> { %3176 = vst [vmem:[%s4795_s15 + $0x10] sm:$0xf] %v3175_v15  ;;  %v3189_v36 = vld [vmem:[%s4799_s20 + $0x2c] sm:$0xf]  ;;  %v3191_v37 = vld [vmem:[%s4799_s20 + $0x30] sm:$0xf] }
 0x3c8   : >> { %3178 = vst [vmem:[%s4795_s15 + $0x14] sm:$0xf] %v3177_v35  ;;  %v3193_v16 = vld [vmem:[%s4799_s20 + $0x34] sm:$0xf]  ;;  %v3195_v9 = vld [vmem:[%s4799_s20 + $0x38] sm:$0xf] }
 0x3c9   : >> { %3180 = vst [vmem:[%s4795_s15 + $0x18] sm:$0xf] %v3179_v26  ;;  %v3197_v0 = vld [vmem:[%s4799_s20 + $0x3c] sm:$0xf]  ;;  %v3199_v60 = vld [vmem:[%s4799_s20 + $0x40] sm:$0xf] }
 0x3ca   : >> { %3182 = vst [vmem:[%s4795_s15 + $0x1c] sm:$0xf] %v3181_v27  ;;  %v3201_v41 = vld [vmem:[%s4799_s20 + $0x44] sm:$0xf]  ;;  %s6177_s5 = smov (%p3232_p11, %s3231_s5), 0  ;;  %s3161_s4 = sadd.s32 1, %s4807_s4  }
 0x3cb   : >> { %3184 = vst [vmem:[%s4795_s15 + $0x20] sm:$0xf] %v3183_v28  ;;  %v3203_v38 = vld [vmem:[%s4799_s20 + $0x48] sm:$0xf]  ;;  %v3205_v21 = vld [vmem:[%s4799_s20 + $0x4c] sm:$0xf]  ;;  %p3160_p12 = scmp.ge.s32.totalorder %s3161_s4, %s6032_s30  ;;  %s6170_s10 = smov %s6177_s5 }
 0x3cc   : >> { %3186 = vst [vmem:[%s4795_s15 + $0x24] sm:$0xf] %v3185_v30  ;;  %s4394_s6 = sshll.u32 %s6177_s5, 7  ;;  %v3207_v23 = vld [vmem:[%s4799_s20 + $0x50] sm:$0xf] }
 0x3cd   : >> { %3188 = vst [vmem:[%s4795_s15 + $0x28] sm:$0xf] %v3187_v20  ;;  %s6102_s7 = scalar_lea.vmem %s5094_s12, %s4394_s6 [#allocation2]   ;;  %s3237_s8 = scalar_lea.vmem %s6026_s28, %s4394_s6   ;;  %v3209_v29 = vld [vmem:[%s4799_s20 + $0x54] sm:$0xf]  ;;  %v3211_v7 = vld [vmem:[%s4799_s20 + $0x58] sm:$0xf] }
 0x3ce   : >> { %3190 = vst [vmem:[%s4795_s15 + $0x2c] sm:$0xf] %v3189_v36  ;;  %v3213_v24 = vld [vmem:[%s4799_s20 + $0x5c] sm:$0xf]  ;;  %v3215_v45 = vld [vmem:[%s4799_s20 + $0x60] sm:$0xf] }
 0x3cf   : >> { %3192 = vst [vmem:[%s4795_s15 + $0x30] sm:$0xf] %v3191_v37  ;;  %v3217_v25 = vld [vmem:[%s4799_s20 + $0x64] sm:$0xf]  ;;  %v3219_v18 = vld [vmem:[%s4799_s20 + $0x68] sm:$0xf] }
 0x3d0   : >> { %3194 = vst [vmem:[%s4795_s15 + $0x34] sm:$0xf] %v3193_v16  ;;  %v3221_v44 = vld [vmem:[%s4799_s20 + $0x6c] sm:$0xf]  ;;  %v3223_v33 = vld [vmem:[%s4799_s20 + $0x70] sm:$0xf] }
 0x3d1   : >> { %3196 = vst [vmem:[%s4795_s15 + $0x38] sm:$0xf] %v3195_v9  ;;  %v3225_v39 = vld [vmem:[%s4799_s20 + $0x74] sm:$0xf]  ;;  %v3227_v14 = vld [vmem:[%s4799_s20 + $0x78] sm:$0xf] }
 0x3d2   : >> { %3198 = vst [vmem:[%s4795_s15 + $0x3c] sm:$0xf] %v3197_v0  ;;  %v3229_v51 = vld [vmem:[%s4799_s20 + $0x7c] sm:$0xf]  ;;  %s6169_s20 = smov %s6102_s7 }
 0x3d3   : >> { %3200 = vst [vmem:[%s4795_s15 + $0x40] sm:$0xf] %v3199_v60 }
 0x3d4   : >> { %3202 = vst [vmem:[%s4795_s15 + $0x44] sm:$0xf] %v3201_v41 }
 0x3d5   : >> { %3204 = vst [vmem:[%s4795_s15 + $0x48] sm:$0xf] %v3203_v38 }
 0x3d6   : >> { %3206 = vst [vmem:[%s4795_s15 + $0x4c] sm:$0xf] %v3205_v21 }
 0x3d7   : >> { %3208 = vst [vmem:[%s4795_s15 + $0x50] sm:$0xf] %v3207_v23 }
 0x3d8   : >> { %3210 = vst [vmem:[%s4795_s15 + $0x54] sm:$0xf] %v3209_v29 }
 0x3d9   : >> { %3212 = vst [vmem:[%s4795_s15 + $0x58] sm:$0xf] %v3211_v7 }
 0x3da   : >> { %3214 = vst [vmem:[%s4795_s15 + $0x5c] sm:$0xf] %v3213_v24 }
 0x3db   : >> { %3216 = vst [vmem:[%s4795_s15 + $0x60] sm:$0xf] %v3215_v45 }
 0x3dc   : >> { %3218 = vst [vmem:[%s4795_s15 + $0x64] sm:$0xf] %v3217_v25 }
 0x3dd   : >> { %3220 = vst [vmem:[%s4795_s15 + $0x68] sm:$0xf] %v3219_v18 }
 0x3de   : >> { %3222 = vst [vmem:[%s4795_s15 + $0x6c] sm:$0xf] %v3221_v44  ;;  %3163 = sbr.rel (!%p3160_p12) target bundleno = 962 (0x3c2), region = 118 }
 0x3df   : >> { %3224 = vst [vmem:[%s4795_s15 + $0x70] sm:$0xf] %v3223_v33 }
 0x3e0   : >> { %3226 = vst [vmem:[%s4795_s15 + $0x74] sm:$0xf] %v3225_v39 }
 0x3e1   : >> { %3228 = vst [vmem:[%s4795_s15 + $0x78] sm:$0xf] %v3227_v14 }
 0x3e2   : >> { %3230 = vst [vmem:[%s4795_s15 + $0x7c] sm:$0xf] %v3229_v51  ;;  %s6168_s15 = smov %s3237_s8 }
 0x3e3 PF: > { %s6143_s9 = sand.u32 31, %s6175_s24   ;;  %s4617_s11 = sshll.u32 %s6032_s30, 7 }
 0x3e4   : > { %s3242_s14 = scalar_lea.vmem %s5094_s12, %s4617_s11 [#allocation2]   ;;  %s3244_s17 = scalar_lea.vmem %s6026_s28, %s4617_s11  }
 0x3e5   : > { %p4399_p13 = scmp.le.s32.totalorder %s6143_s9, 0 }
 0x3e6   : > { %s4809_s18 = smov (!%p4399_p13), %s3244_s17   ;;  %s4813_s21 = smov (!%p4399_p13), %s3242_s14  }
 0x3e7   : > { %3443 = sbr.rel (%p4399_p13) target bundleno = 1012 (0x3f4), region = 123  ;;  %s4817_s22 = smov (!%p4399_p13), 0  }
 0x3e8   : > { %s4821_s23 = smov (!%p4399_p13), 0  }
 0x3ec LB: >> { %v3254_v52 = vld [vmem:[%s4815_s21] sm:$0xf]  ;;  %s3256_s24 = sadd.s32 1, %s4819_s22  ;;  %s3248_s23 = sadd.s32 1, %s4823_s23   ;;  %s4823_s23 = sphi %s4821_s23, %s3248_s23   ;;  %s4819_s22 = sphi %s4817_s22, %s4818_s22   ;;  %s4815_s21 = sphi %s4813_s21, %s3261_s21   ;;  %s4811_s18 = sphi %s4809_s18, %s3262_s18  }
 0x3ed   : >> { %3255 = vst [vmem:[%s4811_s18] sm:$0xf] %v3254_v52  ;;  %p3257_p0 = scmp.ge.s32.totalorder %s3256_s24, %s6143_s9  ;;  %p3247_p1 = scmp.ge.s32.totalorder %s3248_s23, %s6143_s9 }
 0x3ef   : >> { %s6179_s24 = smov (%p3257_p0, %s3256_s24), 0  ;;  %3250 = sbr.rel (!%p3247_p1) target bundleno = 1004 (0x3ec), region = 129 }
 0x3f0   : >> { %s4400_s12 = sshll.u32 %s6179_s24, 2  ;;  %s4818_s22 = smov %s6179_s24  }
 0x3f1   : >> { %s3261_s21 = scalar_lea.vmem %s3242_s14, %s4400_s12 [#allocation2]   ;;  %s3262_s18 = scalar_lea.vmem %s3244_s17, %s4400_s12  }
 0x3f4 PF: > { %p10_p2 = scmp.ge.s32.totalorder %s4861_s16, 10   ;;  %s6171_s12 = smov %s4787_s13 }
 0x3f5   : > { %s6172_s13 = smov %s4869_s19  ;;  %s6173_s14 = smov %s4861_s16 }
 0x3f6   :  { %12 = sbr.rel (!%p10_p2) target bundleno = 2 (0x2), region = 140 }

// kernel: siamrpn_forward.10
= control target key start
LH: loop header
LB: loop body
LE: loop exit
PB: predicated region body
PF: predicated region fallthrough
CT: control target
= control target key end

     0   :  { %s2852_s12 = smov 0   ;;  %s2854_s13 = smov 0   ;;  %s3675_s0 = inlined_call_operand.vmem [shape: bf16[1458,200], index: 0, kind: input, shape index: {}]   ;;  %s3676_s1 = inlined_call_operand.vmem [shape: bf16[200,16], index: 1, kind: input, shape index: {}]   ;;  %s3677_s2 = inlined_call_operand.vmem [shape: f32[1,16], index: 2, kind: input, shape index: {}]   ;;  %s3678_s3 = inlined_call_operand.vmem [shape: bf16[1458,16], index: 3, kind: output, shape index: {}]  }
   0x1   :  { %s2856_s14 = smov 0  }
   0x2 LB: > { %s2865_s15 = sadd.s32 4294967295, %s2798_s14   ;;  %s2867_s16 = sadd.s32 1, %s2798_s14   ;;  %s2798_s14 = sphi %s2856_s14, %s3687_s14   ;;  %s2794_s13 = sphi %s2854_s13, %s3686_s13   ;;  %s2790_s12 = sphi %s2852_s12, %s3685_s12  }
   0x3   : > { %s85_s17 = ssub.s32 %s2798_s14, %s2867_s16  ;;  %s88_s18 = sadd.s32 1, %s2794_s13 }
   0x4   : > { %p86_p0 = scmp.eq.s32.totalorder %s85_s17, 0  ;;  %p98_p1 = scmp.ne.s32.totalorder %s2794_s13, %s2790_s12 }
   0x5   : > { %p99_p2 = scmp.eq.s32.totalorder %s2865_s15, 1  ;;  %p2052_p3 = scmp.ge.s32.totalorder %s2798_s14, 1 }
   0x6   : > { %s2875_s19 = scalar_select %p86_p0, %s2794_s13, %s88_s18  }
   0x7   : > { %p2877_p4 = por %p99_p2, %p98_p1  ;;  %p149_p5 = scmp.lt.s32.totalorder %s2798_s14, 3 }
   0x9   : > { %p150_p6 = pnand %p2052_p3, %p149_p5 }
   0xa   : > { %s2888_s25 = smul.u32 (!%p150_p6), 92, %s2865_s15  ;;  %s175_s8 = sand.u32 (!%p150_p6), 1, %s2790_s12  }
   0xb   : > { %153 = sbr.rel (%p150_p6) target bundleno = 615 (0x267), region = 32 }
   0xc   : > { %p184_p7 = scmp.lt.s32.totalorder (!%p150_p6), %s2888_s25, 182  ;;  %s2653_s9 = smul.u32 (!%p150_p6), 368, %s175_s8 }
   0xe   : > { %s3035_s12 = scalar_lea.vmem (!%p150_p6), [#allocation2], %s2653_s9  }
  0x10   : > { %v2632_v0 = vld [vmem:[%s3676_s1 + $0x38] sm:$0xff]  ;;  %v317_v1 = vld [vmem:[%s3676_s1 + $0x60] sm:$0xf]  ;;  %vm950_vm0 = vcmask 1043456   ;;  %v2631_v3 = vld [vmem:[%s3676_s1 + $0x30] sm:$0xff]  ;;  %s185_s5 = scalar_select %p184_p7, %s2888_s25, 182 }
  0x11   : > { %v785_v2 = vunpack.c.l.b16 %v317_v1  ;;  %954 = vmatpush.bf16.msra.mxu0 %v2632_v0  ;;  %2640 = vmatpush.bf16.msra.mxu2 %v2632_v0  ;;  %v2636_v6 = vld [vmem:[%s3676_s1 + $0x58] sm:$0xff]  ;;  %v2630_v7 = vld [vmem:[%s3676_s1 + $0x28] sm:$0xff]  ;;  %v2635_v8 = vld [vmem:[%s3676_s1 + $0x50] sm:$0xff]  ;;  %vm811_vm1 = vcmask 588800   ;;  %vm1616_vm2 = vcmask 125952   ;;  %s1717_s14 = ssub.s32 (%p2877_p4), 183, %s2888_s25 }
  0x12   : > { %v2629_v9 = vld [vmem:[%s3676_s1 + $0x20] sm:$0xff]  ;;  %s2532_s10 = sshll.u32 %s185_s5, 3  ;;  %v2634_v10 = vld [vmem:[%s3676_s1 + $0x48] sm:$0xff]  ;;  %v2628_v11 = vld [vmem:[%s3676_s1 + $0x18] sm:$0xff]  ;;  %s2637_s17 = smul.u32 (%p2877_p4), 368, %s2865_s15 }
  0x13   : > { %v798_v4 = vpack.c.b16 %v785_v2, %v785_v2  ;;  %s2916_s23 = scalar_lea.vmem %s3675_s0, %s2532_s10  ;;  %v2633_v12 = vld [vmem:[%s3676_s1 + $0x40] sm:$0xff]  ;;  %v2627_v13 = vld [vmem:[%s3676_s1 + $0x10] sm:$0xff]  ;;  %v2626_v19 = vld [vmem:[%s3676_s1 + $0x8] sm:$0xff]  ;;  %p1718_p8 = scmp.lt.s32.totalorder (%p2877_p4), %s1717_s14, 92 }
  0x14   : > { %v2533_v14 = vld [vmem:[%s2916_s23 + $0x4] sm:$0xf]  ;;  %v2059_v15 = vld [vmem:[%s2916_s23 + $0x8] sm:$0xf0]  ;;  %v2057_v22 = vld [vmem:[%s2916_s23] sm:$0xf]  ;;  %s3540_s22 = scalar_lea.vmem (%p2877_p4), %s3678_s3, %s2637_s17  }
  0x15   : > { %v952_v5 = vsel %vm950_vm0, %v798_v4, 0  ;;  %955 = vmatpush.bf16.msra.mxu0 %v2631_v3  ;;  %2641 = vmatpush.bf16.msra.mxu2 %v2631_v3  ;;  %v2581_v16 = vld [vmem:[%s2916_s23 + $0x184] sm:$0xf]  ;;  %v2251_v17 = vld [vmem:[%s2916_s23 + $0x188] sm:$0xf0]  ;;  %v2062_v18 = vor.u32 %v2533_v14, %v2059_v15 }
  0x16   : > { %1196 = vmatpush.bf16.msra.mxu1 %v952_v5  ;;  %2648 = vmatpush.bf16.msra.mxu3 %v952_v5  ;;  %v2254_v20 = vor.u32 %v2581_v16, %v2251_v17  ;;  %v2625_v21 = vld [vmem:[%s3676_s1] sm:$0xff]  ;;  %v2534_v23 = vld [vmem:[%s2916_s23 + $0x4] sm:$0xf0]  ;;  %v2241_v24 = vld [vmem:[%s2916_s23 + $0x170] sm:$0xf] }
  0x17   : > { %v2580_v25 = vld [vmem:[%s2916_s23 + $0x174] sm:$0xf0]  ;;  %v2058_v26 = vor.u32 %v2534_v23, %v2057_v22  ;;  %v2535_v28 = vld [vmem:[%s2916_s23 + $0x14] sm:$0xf]  ;;  %v2067_v29 = vld [vmem:[%s2916_s23 + $0x18] sm:$0xf0] }
  0x18   : > { %v2242_v27 = vor.u32 %v2580_v25, %v2241_v24  ;;  %v2583_v30 = vld [vmem:[%s2916_s23 + $0x194] sm:$0xf]  ;;  %v2259_v31 = vld [vmem:[%s2916_s23 + $0x198] sm:$0xf0]  ;;  %v2070_v32 = vor.u32 %v2535_v28, %v2067_v29  ;;  %v2065_v34 = vld [vmem:[%s2916_s23 + $0x10] sm:$0xf] }
  0x19   : > { %956 = vmatpush.bf16.msra.mxu0 %v2630_v7  ;;  %2642 = vmatpush.bf16.msra.mxu2 %v2630_v7  ;;  %v2262_v33 = vor.u32 %v2583_v30, %v2259_v31  ;;  %v2536_v35 = vld [vmem:[%s2916_s23 + $0x14] sm:$0xf0]  ;;  %v2249_v36 = vld [vmem:[%s2916_s23 + $0x180] sm:$0xf]  ;;  %v2582_v37 = vld [vmem:[%s2916_s23 + $0x184] sm:$0xf0] }
  0x1a   : > { %1197 = vmatpush.bf16.msra.mxu1 %v2636_v6  ;;  %2649 = vmatpush.bf16.msra.mxu3 %v2636_v6  ;;  %v2066_v38 = vor.u32 %v2536_v35, %v2065_v34  ;;  %v2250_v39 = vor.u32 %v2582_v37, %v2249_v36  ;;  %v2537_v40 = vld [vmem:[%s2916_s23 + $0x24] sm:$0xf]  ;;  %v2075_v41 = vld [vmem:[%s2916_s23 + $0x28] sm:$0xf0]  ;;  %v2073_v46 = vld [vmem:[%s2916_s23 + $0x20] sm:$0xf] }
  0x1b   : > { %v2585_v42 = vld [vmem:[%s2916_s23 + $0x1a4] sm:$0xf]  ;;  %v2267_v43 = vld [vmem:[%s2916_s23 + $0x1a8] sm:$0xf0]  ;;  %v2078_v44 = vor.u32 %v2537_v40, %v2075_v41  ;;  %v2538_v47 = vld [vmem:[%s2916_s23 + $0x24] sm:$0xf0] }
  0x1c   : > { %v2270_v45 = vor.u32 %v2585_v42, %v2267_v43  ;;  %v2257_v48 = vld [vmem:[%s2916_s23 + $0x190] sm:$0xf]  ;;  %v2584_v49 = vld [vmem:[%s2916_s23 + $0x194] sm:$0xf0]  ;;  %v2074_v50 = vor.u32 %v2538_v47, %v2073_v46  ;;  %v2539_v52 = vld [vmem:[%s2916_s23 + $0x34] sm:$0xf] }
  0x1d   : > { %957 = vmatpush.bf16.msra.mxu0 %v2629_v9  ;;  %2643 = vmatpush.bf16.msra.mxu2 %v2629_v9  ;;  %v2258_v51 = vor.u32 %v2584_v49, %v2257_v48  ;;  %v2083_v53 = vld [vmem:[%s2916_s23 + $0x38] sm:$0xf0]  ;;  %v2587_v54 = vld [vmem:[%s2916_s23 + $0x1b4] sm:$0xf]  ;;  %v2081_v58 = vld [vmem:[%s2916_s23 + $0x30] sm:$0xf] }
  0x1e   : > { %1198 = vmatpush.bf16.msra.mxu1 %v2635_v8  ;;  %2650 = vmatpush.bf16.msra.mxu3 %v2635_v8  ;;  %v2275_v55 = vld [vmem:[%s2916_s23 + $0x1b8] sm:$0xf0]  ;;  %v2086_v56 = vor.u32 %v2539_v52, %v2083_v53  ;;  %v2540_v59 = vld [vmem:[%s2916_s23 + $0x34] sm:$0xf0]  ;;  %v2265_v60 = vld [vmem:[%s2916_s23 + $0x1a0] sm:$0xf] }
  0x1f   : > { %v2278_v57 = vor.u32 %v2587_v54, %v2275_v55  ;;  %v2586_v61 = vld [vmem:[%s2916_s23 + $0x1a4] sm:$0xf0]  ;;  %v2082_v62 = vor.u32 %v2540_v59, %v2081_v58  ;;  %v2541_v0 = vld [vmem:[%s2916_s23 + $0x44] sm:$0xf]  ;;  %v2091_v1 = vld [vmem:[%s2916_s23 + $0x48] sm:$0xf0] }
  0x20   : > { %v2266_v63 = vor.u32 %v2586_v61, %v2265_v60  ;;  %v2589_v2 = vld [vmem:[%s2916_s23 + $0x1c4] sm:$0xf]  ;;  %v2283_v3 = vld [vmem:[%s2916_s23 + $0x1c8] sm:$0xf0]  ;;  %v2094_v4 = vor.u32 %v2541_v0, %v2091_v1  ;;  %v2089_v6 = vld [vmem:[%s2916_s23 + $0x40] sm:$0xf] }
  0x21   : > { %958 = vmatpush.bf16.msra.mxu0 %v2628_v11  ;;  %2644 = vmatpush.bf16.msra.mxu2 %v2628_v11  ;;  %v2286_v5 = vor.u32 %v2589_v2, %v2283_v3  ;;  %v2542_v7 = vld [vmem:[%s2916_s23 + $0x44] sm:$0xf0]  ;;  %v2273_v8 = vld [vmem:[%s2916_s23 + $0x1b0] sm:$0xf]  ;;  %v2588_v9 = vld [vmem:[%s2916_s23 + $0x1b4] sm:$0xf0] }
  0x22   : > { %1199 = vmatpush.bf16.msra.mxu1 %v2634_v10  ;;  %2651 = vmatpush.bf16.msra.mxu3 %v2634_v10  ;;  %v2090_v10 = vor.u32 %v2542_v7, %v2089_v6  ;;  %v2274_v11 = vor.u32 %v2588_v9, %v2273_v8  ;;  %v2591_v14 = vld [vmem:[%s2916_s23 + $0x1d4] sm:$0xf]  ;;  %v2291_v15 = vld [vmem:[%s2916_s23 + $0x1d8] sm:$0xf0]  ;;  %v2545_v24 = vld [vmem:[%s2916_s23 + $0x64] sm:$0xf] }
  0x23   : > { %v2294_v17 = vor.u32 %v2591_v14, %v2291_v15  ;;  %v2107_v25 = vld [vmem:[%s2916_s23 + $0x68] sm:$0xf0]  ;;  %v2105_v30 = vld [vmem:[%s2916_s23 + $0x60] sm:$0xf]  ;;  %v2546_v31 = vld [vmem:[%s2916_s23 + $0x64] sm:$0xf0] }
  0x24   : > { %v2110_v28 = vor.u32 %v2545_v24, %v2107_v25  ;;  %v2106_v34 = vor.u32 %v2546_v31, %v2105_v30  ;;  %v2547_v36 = vld [vmem:[%s2916_s23 + $0x74] sm:$0xf]  ;;  %v2115_v37 = vld [vmem:[%s2916_s23 + $0x78] sm:$0xf0]  ;;  %v2113_v42 = vld [vmem:[%s2916_s23 + $0x70] sm:$0xf] }
  0x25   : > { %959 = vmatpush.bf16.msra.mxu0 %v2627_v13  ;;  %2645 = vmatpush.bf16.msra.mxu2 %v2627_v13  ;;  %v2099_v13 = vld [vmem:[%s2916_s23 + $0x58] sm:$0xf0]  ;;  %v2118_v40 = vor.u32 %v2547_v36, %v2115_v37  ;;  %v2548_v43 = vld [vmem:[%s2916_s23 + $0x74] sm:$0xf0]  ;;  %v2549_v48 = vld [vmem:[%s2916_s23 + $0x84] sm:$0xf] }
  0x26   : > { %1200 = vmatpush.bf16.msra.mxu1 %v2633_v12  ;;  %2652 = vmatpush.bf16.msra.mxu3 %v2633_v12  ;;  %v2543_v12 = vld [vmem:[%s2916_s23 + $0x54] sm:$0xf]  ;;  %v2114_v46 = vor.u32 %v2548_v43, %v2113_v42  ;;  %v2123_v49 = vld [vmem:[%s2916_s23 + $0x88] sm:$0xf0]  ;;  %v2121_v55 = vld [vmem:[%s2916_s23 + $0x80] sm:$0xf] }
  0x27   : > { %v2102_v16 = vor.u32 %v2543_v12, %v2099_v13  ;;  %v2126_v52 = vor.u32 %v2549_v48, %v2123_v49  ;;  %v2305_v58 = vld [vmem:[%s2916_s23 + $0x1f0] sm:$0xf]  ;;  %v2596_v59 = vld [vmem:[%s2916_s23 + $0x1f4] sm:$0xf0]  ;;  %v2551_v3 = vld [vmem:[%s2916_s23 + $0x94] sm:$0xf] }
  0x28   : > { %v2306_v0 = vor.u32 %v2596_v59, %v2305_v58  ;;  %v2599_v6 = vld [vmem:[%s2916_s23 + $0x214] sm:$0xf]  ;;  %v2323_v7 = vld [vmem:[%s2916_s23 + $0x218] sm:$0xf0]  ;;  %v2553_v31 = vld [vmem:[%s2916_s23 + $0xa4] sm:$0xf] }
  0x29   : > { %2471 = vmatmul.msk.bf16.vlgmr.msra.gmra.mxu1 %vm811_vm1, %v2062_v18  ;;  %960 = vmatpush.bf16.msra.mxu0 %v2626_v19  ;;  %v2097_v18 = vld [vmem:[%s2916_s23 + $0x50] sm:$0xf]  ;;  %v2326_v14 = vor.u32 %v2599_v6, %v2323_v7  ;;  %v2137_v48 = vld [vmem:[%s2916_s23 + $0xa0] sm:$0xf]  ;;  %v2554_v49 = vld [vmem:[%s2916_s23 + $0xa4] sm:$0xf0] }
  0x2a   : > { %2495 = vmatmul.msk.bf16.vlgmr.msra.gmra.mxu3 %vm811_vm1, %v2254_v20  ;;  %2646 = vmatpush.bf16.msra.mxu2 %v2626_v19  ;;  %v2544_v19 = vld [vmem:[%s2916_s23 + $0x54] sm:$0xf0]  ;;  %v2281_v20 = vld [vmem:[%s2916_s23 + $0x1c0] sm:$0xf]  ;;  %v2603_v6 = vld [vmem:[%s2916_s23 + $0x234] sm:$0xf] }
  0x2b   : > { %v2098_v22 = vor.u32 %v2544_v19, %v2097_v18  ;;  %v2552_v18 = vld [vmem:[%s2916_s23 + $0x94] sm:$0xf0]  ;;  %v2339_v7 = vld [vmem:[%s2916_s23 + $0x238] sm:$0xf0] }
  0x2d   : > { %961 = vmatpush.bf16.msra.mxu0 %v2625_v21 }
  0x2e   : > { %2647 = vmatpush.bf16.msra.mxu2 %v2625_v21  ;;  %v2590_v21 = vld [vmem:[%s2916_s23 + $0x1c4] sm:$0xf0] }
  0x2f   : > { %v2282_v23 = vor.u32 %v2590_v21, %v2281_v20  ;;  %v2313_v20 = vld [vmem:[%s2916_s23 + $0x200] sm:$0xf]  ;;  %v2598_v21 = vld [vmem:[%s2916_s23 + $0x204] sm:$0xf0] }
  0x30   : > { %962 = vmatmul.bf16.vlgmr.msra.gmra.mxu0 %v2058_v26  ;;  %v2593_v26 = vld [vmem:[%s2916_s23 + $0x1e4] sm:$0xf] }
  0x31   : > { %1077 = vmatmul.bf16.vlgmr.msra.gmra.mxu2 %v2242_v27  ;;  %v2299_v27 = vld [vmem:[%s2916_s23 + $0x1e8] sm:$0xf0] }
  0x32   : > { %v2302_v29 = vor.u32 %v2593_v26, %v2299_v27 }
  0x39   : > { %2472 = vmatmul.msk.bf16.gmra.mxu1 %vm811_vm1, %v2070_v32  ;;  %v2289_v32 = vld [vmem:[%s2916_s23 + $0x1d0] sm:$0xf] }
  0x3a   : > { %2496 = vmatmul.msk.bf16.gmra.mxu3 %vm811_vm1, %v2262_v33  ;;  %v2592_v33 = vld [vmem:[%s2916_s23 + $0x1d4] sm:$0xf0] }
  0x3b   : > { %v2290_v35 = vor.u32 %v2592_v33, %v2289_v32  ;;  %v2139_v32 = vld [vmem:[%s2916_s23 + $0xa8] sm:$0xf0] }
  0x40   : > { %967 = vmatmul.bf16.gmra.mxu0 %v2066_v38  ;;  %v2595_v38 = vld [vmem:[%s2916_s23 + $0x1f4] sm:$0xf] }
  0x41   : > { %1082 = vmatmul.bf16.gmra.mxu2 %v2250_v39  ;;  %v2307_v39 = vld [vmem:[%s2916_s23 + $0x1f8] sm:$0xf0] }
  0x42   : > { %v2310_v41 = vor.u32 %v2595_v38, %v2307_v39  ;;  %v2142_v38 = vor.u32 %v2553_v31, %v2139_v32 }
  0x49   : > { %2473 = vmatmul.msk.bf16.gmra.mxu1 %vm811_vm1, %v2078_v44  ;;  %v2297_v44 = vld [vmem:[%s2916_s23 + $0x1e0] sm:$0xf] }
  0x4a   : > { %2497 = vmatmul.msk.bf16.gmra.mxu3 %vm811_vm1, %v2270_v45  ;;  %v2594_v45 = vld [vmem:[%s2916_s23 + $0x1e4] sm:$0xf0] }
  0x4b   : > { %v2298_v47 = vor.u32 %v2594_v45, %v2297_v44 }
  0x50   : > { %972 = vmatmul.bf16.gmra.mxu0 %v2074_v50  ;;  %v2597_v50 = vld [vmem:[%s2916_s23 + $0x204] sm:$0xf] }
  0x51   : > { %1087 = vmatmul.bf16.gmra.mxu2 %v2258_v51  ;;  %v2315_v51 = vld [vmem:[%s2916_s23 + $0x208] sm:$0xf0] }
  0x52   : > { %v2318_v54 = vor.u32 %v2597_v50, %v2315_v51  ;;  %v2321_v51 = vld [vmem:[%s2916_s23 + $0x210] sm:$0xf] }
  0x59   : > { %2474 = vmatmul.msk.bf16.gmra.mxu1 %vm811_vm1, %v2086_v56  ;;  %v2550_v56 = vld [vmem:[%s2916_s23 + $0x84] sm:$0xf0] }
  0x5a   : > { %2498 = vmatmul.msk.bf16.gmra.mxu3 %vm811_vm1, %v2278_v57  ;;  %v3021_v57 = vld [vmem:[%s3677_s2] ss:$0 sm:$0xff]  ;;  %v2122_v60 = vor.u32 %v2550_v56, %v2121_v55  ;;  %v2138_v56 = vor.u32 %v2554_v49, %v2137_v48 }
  0x60   : > { %977 = vmatmul.bf16.gmra.mxu0 %v2082_v62 }
  0x61   : > { %1092 = vmatmul.bf16.gmra.mxu2 %v2266_v63 }
  0x69   : > { %2475 = vmatmul.msk.bf16.gmra.mxu1 %vm811_vm1, %v2094_v4  ;;  %v2131_v4 = vld [vmem:[%s2916_s23 + $0x98] sm:$0xf0] }
  0x6a   : > { %2499 = vmatmul.msk.bf16.gmra.mxu3 %vm811_vm1, %v2286_v5 }
  0x70   : > { %982 = vmatmul.bf16.gmra.mxu0 %v2090_v10  ;;  %v2134_v10 = vor.u32 %v2551_v3, %v2131_v4  ;;  %v2555_v3 = vld [vmem:[%s2916_s23 + $0xb4] sm:$0xf]  ;;  %v2147_v4 = vld [vmem:[%s2916_s23 + $0xb8] sm:$0xf0] }
  0x71   : > { %1097 = vmatmul.bf16.gmra.mxu2 %v2274_v11 }
  0x79   : > { %2476 = vmatmul.msk.bf16.gmra.mxu1 %vm811_vm1, %v2102_v16 }
  0x7a   : > { %2500 = vmatmul.msk.bf16.gmra.mxu3 %vm811_vm1, %v2294_v17  ;;  %v2129_v17 = vld [vmem:[%s2916_s23 + $0x90] sm:$0xf] }
  0x7b   : > { %v2130_v24 = vor.u32 %v2552_v18, %v2129_v17  ;;  %v2342_v17 = vor.u32 %v2603_v6, %v2339_v7 }
  0x80   : > { %987 = vmatmul.bf16.gmra.mxu0 %v2098_v22 }
  0x81   : > { %1102 = vmatmul.bf16.gmra.mxu2 %v2282_v23 }
  0x89   : > { %2477 = vmatmul.msk.bf16.gmra.mxu1 %vm811_vm1, %v2110_v28  ;;  %v2314_v28 = vor.u32 %v2598_v21, %v2313_v20 }
  0x8a   : > { %2501 = vmatmul.msk.bf16.gmra.mxu3 %vm811_vm1, %v2302_v29 }
  0x90   : > { %992 = vmatmul.bf16.gmra.mxu0 %v2106_v34  ;;  %v2601_v34 = vld [vmem:[%s2916_s23 + $0x224] sm:$0xf] }
  0x91   : > { %1107 = vmatmul.bf16.gmra.mxu2 %v2290_v35  ;;  %v2331_v35 = vld [vmem:[%s2916_s23 + $0x228] sm:$0xf0] }
  0x92   : > { %v2334_v43 = vor.u32 %v2601_v34, %v2331_v35 }
  0x99   : > { %2478 = vmatmul.msk.bf16.gmra.mxu1 %vm811_vm1, %v2118_v40 }
  0x9a   : > { %2502 = vmatmul.msk.bf16.gmra.mxu3 %vm811_vm1, %v2310_v41 }
  0xa0   : > { %997 = vmatmul.bf16.gmra.mxu0 %v2114_v46 }
  0xa1   : > { %1112 = vmatmul.bf16.gmra.mxu2 %v2298_v47 }
  0xa6   : > { %v1202_v53 = vpop.f32.mrf.mxu1 }
  0xa9   : > { %2479 = vmatmul.msk.bf16.gmra.mxu1 %vm811_vm1, %v2126_v52  ;;  %v2600_v52 = vld [vmem:[%s2916_s23 + $0x214] sm:$0xf0] }
  0xaa   : > { %2503 = vmatmul.msk.bf16.gmra.mxu3 %vm811_vm1, %v2318_v54 }
  0xad   : > { %v1322_v61 = vpop.f32.mrf.mxu3  ;;  %v963_v63 = vpop.f32.mrf.mxu0 }
  0xae   : > { %v1204_v62 = vpop.f32.mrf.mxu1  ;;  %v964_v1 = vadd.f32 %v3021_v57, %v963_v63 }
  0xb0   : > { %v1203_v2 = vadd.f32 %v1202_v53, %v964_v1  ;;  %1002 = vmatmul.bf16.gmra.mxu0 %v2122_v60 }
  0xb1   : > { %1117 = vmatmul.bf16.gmra.mxu2 %v2306_v0 }
  0xb2   : > { %v1432_v5 = vmax.f32 %v1203_v2, 0.0 }
  0xb4   : > { %v1524_v8 = vpack.c.bf16 %v1432_v5, %v1432_v5  ;;  %v3031_v9 = vpop.f32.mrf.mxu2 }
  0xb5   : > { %v3033_v11 = vpop.f32.mrf.mxu3  ;;  %v965_v13 = vpop.f32.mrf.mxu0 }
  0xb6   : > { %v1207_v12 = vpop.f32.mrf.mxu1  ;;  %1617 = vst.msk [vmem:[%s3035_s12] sm:$0xf] %vm1616_vm2, %v1524_v8  ;;  %v966_v15 = vadd.f32 %v3021_v57, %v965_v13  ;;  %v2150_v13 = vor.u32 %v2555_v3, %v2147_v4 }
  0xb8   : > { %v1205_v16 = vadd.f32 %v1204_v62, %v966_v15  ;;  %v2322_v62 = vor.u32 %v2600_v52, %v2321_v51 }
  0xb9   : > { %2480 = vmatmul.msk.bf16.gmra.mxu1 %vm811_vm1, %v2134_v10 }
  0xba   : > { %2504 = vmatmul.msk.bf16.gmra.mxu3 %vm811_vm1, %v2326_v14  ;;  %v1433_v19 = vmax.f32 %v1205_v16, 0.0 }
  0xbc   : > { %v1525_v22 = vpack.c.bf16 %v1433_v19, %v1433_v19  ;;  %v3046_v23 = vpop.f32.mrf.mxu2 }
  0xbd   : > { %v3048_v25 = vpop.f32.mrf.mxu3  ;;  %v968_v27 = vpop.f32.mrf.mxu0 }
  0xbe   : > { %v1209_v26 = vpop.f32.mrf.mxu1  ;;  %1618 = vst.msk [vmem:[%s3035_s12 + $0x4] sm:$0xf] %vm1616_vm2, %v1525_v22  ;;  %v969_v29 = vadd.f32 %v3021_v57, %v968_v27  ;;  %v2145_v22 = vld [vmem:[%s2916_s23 + $0xb0] sm:$0xf]  ;;  %v2329_v27 = vld [vmem:[%s2916_s23 + $0x220] sm:$0xf] }
  0xc0   : > { %v1208_v30 = vadd.f32 %v1207_v12, %v969_v29  ;;  %1007 = vmatmul.bf16.gmra.mxu0 %v2130_v24  ;;  %v2556_v24 = vld [vmem:[%s2916_s23 + $0xb4] sm:$0xf0] }
  0xc1   : > { %1122 = vmatmul.bf16.gmra.mxu2 %v2314_v28  ;;  %v2602_v28 = vld [vmem:[%s2916_s23 + $0x224] sm:$0xf0]  ;;  %v2146_v32 = vor.u32 %v2556_v24, %v2145_v22 }
  0xc2   : > { %v1434_v33 = vmax.f32 %v1208_v30, 0.0 }
  0xc4   : > { %v1526_v36 = vpack.c.bf16 %v1434_v33, %v1434_v33  ;;  %v1083_v37 = vpop.f32.mrf.mxu2 }
  0xc5   : > { %v3057_v39 = vpop.f32.mrf.mxu3  ;;  %v1084_v40 = vadd.f32 %v3021_v57, %v1083_v37  ;;  %v970_v42 = vpop.f32.mrf.mxu0 }
  0xc6   : > { %v1212_v41 = vpop.f32.mrf.mxu1  ;;  %1619 = vst.msk [vmem:[%s3035_s12 + $0x8] sm:$0xf] %vm1616_vm2, %v1526_v36  ;;  %v971_v44 = vadd.f32 %v3021_v57, %v970_v42  ;;  %v2330_v36 = vor.u32 %v2602_v28, %v2329_v27  ;;  %v2557_v42 = vld [vmem:[%s2916_s23 + $0xc4] sm:$0xf] }
  0xc7   : > { %v1323_v45 = vadd.f32 %v1322_v61, %v1084_v40 }
  0xc8   : > { %v1210_v46 = vadd.f32 %v1209_v26, %v971_v44 }
  0xc9   : > { %2481 = vmatmul.msk.bf16.gmra.mxu1 %vm811_vm1, %v2142_v38  ;;  %v1480_v47 = vmax.f32 %v1323_v45, 0.0  ;;  %v2605_v45 = vld [vmem:[%s2916_s23 + $0x244] sm:$0xf] }
  0xca   : > { %2505 = vmatmul.msk.bf16.gmra.mxu3 %vm811_vm1, %v2334_v43  ;;  %v1435_v50 = vmax.f32 %v1210_v46, 0.0  ;;  %v2155_v43 = vld [vmem:[%s2916_s23 + $0xc8] sm:$0xf0] }
  0xcb   : > { %v1572_v53 = vpack.c.bf16 %v1480_v47, %v1480_v47  ;;  %v2347_v46 = vld [vmem:[%s2916_s23 + $0x248] sm:$0xf0] }
  0xcc   : > { %v1527_v54 = vpack.c.bf16 %v1435_v50, %v1435_v50  ;;  %v1085_v55 = vpop.f32.mrf.mxu2  ;;  %v2158_v50 = vor.u32 %v2557_v42, %v2155_v43 }
  0xcd   : > { %v3069_v58 = vpop.f32.mrf.mxu3  ;;  %1665 = vst.msk [vmem:[%s3035_s12 + $0xc0] sm:$0xf] %vm1616_vm2, %v1572_v53  ;;  %v1086_v59 = vadd.f32 %v3021_v57, %v1085_v55  ;;  %v973_v61 = vpop.f32.mrf.mxu0 }
  0xce   : > { %v1214_v60 = vpop.f32.mrf.mxu1  ;;  %1620 = vst.msk [vmem:[%s3035_s12 + $0xc] sm:$0xf] %vm1616_vm2, %v1527_v54  ;;  %v974_v63 = vadd.f32 %v3021_v57, %v973_v61  ;;  %v2350_v54 = vor.u32 %v2605_v45, %v2347_v46  ;;  %v2153_v61 = vld [vmem:[%s2916_s23 + $0xc0] sm:$0xf] }
  0xcf   : > { %v1325_v0 = vadd.f32 %v3033_v11, %v1086_v59 }
  0xd0   : > { %v1213_v1 = vadd.f32 %v1212_v41, %v974_v63  ;;  %1012 = vmatmul.bf16.gmra.mxu0 %v2138_v56 }
  0xd1   : > { %v1481_v2 = vmax.f32 %v1325_v0, 0.0  ;;  %1127 = vmatmul.bf16.gmra.mxu2 %v2322_v62  ;;  %v2558_v62 = vld [vmem:[%s2916_s23 + $0xc4] sm:$0xf0]  ;;  %v2337_v0 = vld [vmem:[%s2916_s23 + $0x230] sm:$0xf] }
  0xd2   : > { %v1436_v5 = vmax.f32 %v1213_v1, 0.0  ;;  %v2604_v1 = vld [vmem:[%s2916_s23 + $0x234] sm:$0xf0] }
  0xd3   : > { %v1573_v8 = vpack.c.bf16 %v1481_v2, %v1481_v2 }
  0xd4   : > { %v1528_v10 = vpack.c.bf16 %v1436_v5, %v1436_v5  ;;  %v1088_v12 = vpop.f32.mrf.mxu2  ;;  %v2154_v5 = vor.u32 %v2558_v62, %v2153_v61 }
  0xd5   : > { %v3082_v14 = vpop.f32.mrf.mxu3  ;;  %1666 = vst.msk [vmem:[%s3035_s12 + $0xc4] sm:$0xf] %vm1616_vm2, %v1573_v8  ;;  %v1089_v11 = vadd.f32 %v3021_v57, %v1088_v12  ;;  %v975_v16 = vpop.f32.mrf.mxu0 }
  0xd6   : > { %v1217_v15 = vpop.f32.mrf.mxu1  ;;  %1621 = vst.msk [vmem:[%s3035_s12 + $0x10] sm:$0xf] %vm1616_vm2, %v1528_v10  ;;  %v976_v18 = vadd.f32 %v3021_v57, %v975_v16  ;;  %v2338_v10 = vor.u32 %v2604_v1, %v2337_v0  ;;  %v2559_v16 = vld [vmem:[%s2916_s23 + $0xd4] sm:$0xf] }
  0xd7   : > { %v1328_v19 = vadd.f32 %v3048_v25, %v1089_v11 }
  0xd8   : > { %v1215_v20 = vadd.f32 %v1214_v60, %v976_v18 }
  0xd9   : > { %2482 = vmatmul.msk.bf16.gmra.mxu1 %vm811_vm1, %v2150_v13  ;;  %v1482_v21 = vmax.f32 %v1328_v19, 0.0  ;;  %v2607_v19 = vld [vmem:[%s2916_s23 + $0x254] sm:$0xf] }
  0xda   : > { %2506 = vmatmul.msk.bf16.gmra.mxu3 %vm811_vm1, %v2342_v17  ;;  %v1437_v26 = vmax.f32 %v1215_v20, 0.0  ;;  %v2163_v17 = vld [vmem:[%s2916_s23 + $0xd8] sm:$0xf0] }
  0xdb   : > { %v1574_v29 = vpack.c.bf16 %v1482_v21, %v1482_v21  ;;  %v2355_v20 = vld [vmem:[%s2916_s23 + $0x258] sm:$0xf0] }
  0xdc   : > { %v1529_v30 = vpack.c.bf16 %v1437_v26, %v1437_v26  ;;  %v1090_v31 = vpop.f32.mrf.mxu2  ;;  %v2166_v26 = vor.u32 %v2559_v16, %v2163_v17 }
  0xdd   : > { %v3097_v33 = vpop.f32.mrf.mxu3  ;;  %1667 = vst.msk [vmem:[%s3035_s12 + $0xc8] sm:$0xf] %vm1616_vm2, %v1574_v29  ;;  %v1091_v25 = vadd.f32 %v3021_v57, %v1090_v31  ;;  %v978_v35 = vpop.f32.mrf.mxu0 }
  0xde   : > { %v1219_v34 = vpop.f32.mrf.mxu1  ;;  %1622 = vst.msk [vmem:[%s3035_s12 + $0x14] sm:$0xf] %vm1616_vm2, %v1529_v30  ;;  %v979_v37 = vadd.f32 %v3021_v57, %v978_v35  ;;  %v2358_v30 = vor.u32 %v2607_v19, %v2355_v20  ;;  %v2161_v35 = vld [vmem:[%s2916_s23 + $0xd0] sm:$0xf] }
  0xdf   : > { %v1330_v38 = vadd.f32 %v3057_v39, %v1091_v25 }
  0xe0   : > { %v1218_v40 = vadd.f32 %v1217_v15, %v979_v37  ;;  %1017 = vmatmul.bf16.gmra.mxu0 %v2146_v32 }
  0xe1   : > { %v1483_v41 = vmax.f32 %v1330_v38, 0.0  ;;  %1132 = vmatmul.bf16.gmra.mxu2 %v2330_v36  ;;  %v2560_v36 = vld [vmem:[%s2916_s23 + $0xd4] sm:$0xf0]  ;;  %v2345_v38 = vld [vmem:[%s2916_s23 + $0x240] sm:$0xf] }
  0xe2   : > { %v1438_v44 = vmax.f32 %v1218_v40, 0.0  ;;  %v2606_v40 = vld [vmem:[%s2916_s23 + $0x244] sm:$0xf0] }
  0xe3   : > { %v1575_v47 = vpack.c.bf16 %v1483_v41, %v1483_v41 }
  0xe4   : > { %v1530_v48 = vpack.c.bf16 %v1438_v44, %v1438_v44  ;;  %v1093_v49 = vpop.f32.mrf.mxu2  ;;  %v2162_v44 = vor.u32 %v2560_v36, %v2161_v35 }
  0xe5   : > { %v3110_v51 = vpop.f32.mrf.mxu3  ;;  %1668 = vst.msk [vmem:[%s3035_s12 + $0xcc] sm:$0xf] %vm1616_vm2, %v1575_v47  ;;  %v1094_v39 = vadd.f32 %v3021_v57, %v1093_v49  ;;  %v980_v53 = vpop.f32.mrf.mxu0 }
  0xe6   : > { %v1222_v52 = vpop.f32.mrf.mxu1  ;;  %1623 = vst.msk [vmem:[%s3035_s12 + $0x18] sm:$0xf] %vm1616_vm2, %v1530_v48  ;;  %v981_v55 = vadd.f32 %v3021_v57, %v980_v53  ;;  %v2346_v48 = vor.u32 %v2606_v40, %v2345_v38  ;;  %v2561_v53 = vld [vmem:[%s2916_s23 + $0xe4] sm:$0xf] }
  0xe7   : > { %v1333_v56 = vadd.f32 %v3069_v58, %v1094_v39 }
  0xe8   : > { %v1220_v59 = vadd.f32 %v1219_v34, %v981_v55 }
  0xe9   : > { %2483 = vmatmul.msk.bf16.gmra.mxu1 %vm811_vm1, %v2158_v50  ;;  %v1484_v60 = vmax.f32 %v1333_v56, 0.0  ;;  %v2609_v56 = vld [vmem:[%s2916_s23 + $0x264] sm:$0xf] }
  0xea   : > { %2507 = vmatmul.msk.bf16.gmra.mxu3 %vm811_vm1, %v2350_v54  ;;  %v1439_v63 = vmax.f32 %v1220_v59, 0.0  ;;  %v2171_v54 = vld [vmem:[%s2916_s23 + $0xe8] sm:$0xf0] }
  0xeb   : > { %v1576_v2 = vpack.c.bf16 %v1484_v60, %v1484_v60  ;;  %v2363_v59 = vld [vmem:[%s2916_s23 + $0x268] sm:$0xf0] }
  0xec   : > { %v1531_v3 = vpack.c.bf16 %v1439_v63, %v1439_v63  ;;  %v1095_v4 = vpop.f32.mrf.mxu2  ;;  %v2174_v63 = vor.u32 %v2561_v53, %v2171_v54 }
  0xed   : > { %v3125_v6 = vpop.f32.mrf.mxu3  ;;  %1669 = vst.msk [vmem:[%s3035_s12 + $0xd0] sm:$0xf] %vm1616_vm2, %v1576_v2  ;;  %v1096_v58 = vadd.f32 %v3021_v57, %v1095_v4  ;;  %v983_v8 = vpop.f32.mrf.mxu0 }
  0xee   : > { %v1224_v7 = vpop.f32.mrf.mxu1  ;;  %1624 = vst.msk [vmem:[%s3035_s12 + $0x1c] sm:$0xf] %vm1616_vm2, %v1531_v3  ;;  %v984_v12 = vadd.f32 %v3021_v57, %v983_v8  ;;  %v2366_v3 = vor.u32 %v2609_v56, %v2363_v59  ;;  %v2169_v8 = vld [vmem:[%s2916_s23 + $0xe0] sm:$0xf] }
  0xef   : > { %v1335_v13 = vadd.f32 %v3082_v14, %v1096_v58 }
  0xf0   : > { %v1223_v11 = vadd.f32 %v1222_v52, %v984_v12  ;;  %1022 = vmatmul.bf16.gmra.mxu0 %v2154_v5 }
  0xf1   : > { %v1485_v15 = vmax.f32 %v1335_v13, 0.0  ;;  %1137 = vmatmul.bf16.gmra.mxu2 %v2338_v10  ;;  %v2562_v10 = vld [vmem:[%s2916_s23 + $0xe4] sm:$0xf0]  ;;  %v2353_v13 = vld [vmem:[%s2916_s23 + $0x250] sm:$0xf] }
  0xf2   : > { %v1440_v18 = vmax.f32 %v1223_v11, 0.0  ;;  %v2608_v11 = vld [vmem:[%s2916_s23 + $0x254] sm:$0xf0] }
  0xf3   : > { %v1577_v21 = vpack.c.bf16 %v1485_v15, %v1485_v15 }
  0xf4   : > { %v1532_v22 = vpack.c.bf16 %v1440_v18, %v1440_v18  ;;  %v1098_v24 = vpop.f32.mrf.mxu2  ;;  %v2170_v18 = vor.u32 %v2562_v10, %v2169_v8 }
  0xf5   : > { %v3138_v27 = vpop.f32.mrf.mxu3  ;;  %1670 = vst.msk [vmem:[%s3035_s12 + $0xd4] sm:$0xf] %vm1616_vm2, %v1577_v21  ;;  %v1099_v14 = vadd.f32 %v3021_v57, %v1098_v24  ;;  %v985_v29 = vpop.f32.mrf.mxu0 }
  0xf6   : > { %v1227_v28 = vpop.f32.mrf.mxu1  ;;  %1625 = vst.msk [vmem:[%s3035_s12 + $0x20] sm:$0xf] %vm1616_vm2, %v1532_v22  ;;  %v986_v31 = vadd.f32 %v3021_v57, %v985_v29  ;;  %v2354_v22 = vor.u32 %v2608_v11, %v2353_v13  ;;  %v2563_v29 = vld [vmem:[%s2916_s23 + $0xf4] sm:$0xf] }
  0xf7   : > { %v1338_v32 = vadd.f32 %v3097_v33, %v1099_v14 }
  0xf8   : > { %v1225_v25 = vadd.f32 %v1224_v7, %v986_v31 }
  0xf9   : > { %2484 = vmatmul.msk.bf16.gmra.mxu1 %vm811_vm1, %v2166_v26  ;;  %v1486_v34 = vmax.f32 %v1338_v32, 0.0  ;;  %v2611_v32 = vld [vmem:[%s2916_s23 + $0x274] sm:$0xf] }
  0xfa   : > { %2508 = vmatmul.msk.bf16.gmra.mxu3 %vm811_vm1, %v2358_v30  ;;  %v1441_v37 = vmax.f32 %v1225_v25, 0.0  ;;  %v2179_v30 = vld [vmem:[%s2916_s23 + $0xf8] sm:$0xf0] }
  0xfb   : > { %v1578_v41 = vpack.c.bf16 %v1486_v34, %v1486_v34  ;;  %v2371_v25 = vld [vmem:[%s2916_s23 + $0x278] sm:$0xf0] }
  0xfc   : > { %v1533_v42 = vpack.c.bf16 %v1441_v37, %v1441_v37  ;;  %v1100_v43 = vpop.f32.mrf.mxu2  ;;  %v2182_v37 = vor.u32 %v2563_v29, %v2179_v30 }
  0xfd   : > { %v3153_v45 = vpop.f32.mrf.mxu3  ;;  %1671 = vst.msk [vmem:[%s3035_s12 + $0xd8] sm:$0xf] %vm1616_vm2, %v1578_v41  ;;  %v1101_v33 = vadd.f32 %v3021_v57, %v1100_v43  ;;  %v988_v47 = vpop.f32.mrf.mxu0 }
  0xfe   : > { %v1229_v46 = vpop.f32.mrf.mxu1  ;;  %1626 = vst.msk [vmem:[%s3035_s12 + $0x24] sm:$0xf] %vm1616_vm2, %v1533_v42  ;;  %v989_v49 = vadd.f32 %v3021_v57, %v988_v47  ;;  %v2374_v42 = vor.u32 %v2611_v32, %v2371_v25  ;;  %v2177_v47 = vld [vmem:[%s2916_s23 + $0xf0] sm:$0xf] }
  0xff   : > { %v1340_v50 = vadd.f32 %v3110_v51, %v1101_v33 }
 0x100   : > { %v1228_v39 = vadd.f32 %v1227_v28, %v989_v49  ;;  %1027 = vmatmul.bf16.gmra.mxu0 %v2162_v44 }
 0x101   : > { %v1487_v52 = vmax.f32 %v1340_v50, 0.0  ;;  %1142 = vmatmul.bf16.gmra.mxu2 %v2346_v48  ;;  %v2564_v48 = vld [vmem:[%s2916_s23 + $0xf4] sm:$0xf0]  ;;  %v2361_v50 = vld [vmem:[%s2916_s23 + $0x260] sm:$0xf] }
 0x102   : > { %v1442_v55 = vmax.f32 %v1228_v39, 0.0  ;;  %v2610_v39 = vld [vmem:[%s2916_s23 + $0x264] sm:$0xf0] }
 0x103   : > { %v1579_v60 = vpack.c.bf16 %v1487_v52, %v1487_v52 }
 0x104   : > { %v1534_v61 = vpack.c.bf16 %v1442_v55, %v1442_v55  ;;  %v1103_v62 = vpop.f32.mrf.mxu2  ;;  %v2178_v55 = vor.u32 %v2564_v48, %v2177_v47 }
 0x105   : > { %v3166_v0 = vpop.f32.mrf.mxu3  ;;  %1672 = vst.msk [vmem:[%s3035_s12 + $0xdc] sm:$0xf] %vm1616_vm2, %v1579_v60  ;;  %v1104_v51 = vadd.f32 %v3021_v57, %v1103_v62  ;;  %v990_v2 = vpop.f32.mrf.mxu0 }
 0x106   : > { %v1232_v1 = vpop.f32.mrf.mxu1  ;;  %1627 = vst.msk [vmem:[%s3035_s12 + $0x28] sm:$0xf] %vm1616_vm2, %v1534_v61  ;;  %v991_v4 = vadd.f32 %v3021_v57, %v990_v2  ;;  %v2362_v61 = vor.u32 %v2610_v39, %v2361_v50  ;;  %v2565_v2 = vld [vmem:[%s2916_s23 + $0x104] sm:$0xf] }
 0x107   : > { %v1343_v5 = vadd.f32 %v3125_v6, %v1104_v51 }
 0x108   : > { %v1230_v58 = vadd.f32 %v1229_v46, %v991_v4 }
 0x109   : > { %2485 = vmatmul.msk.bf16.gmra.mxu1 %vm811_vm1, %v2174_v63  ;;  %v1488_v7 = vmax.f32 %v1343_v5, 0.0  ;;  %v2613_v5 = vld [vmem:[%s2916_s23 + $0x284] sm:$0xf] }
 0x10a   : > { %2509 = vmatmul.msk.bf16.gmra.mxu3 %vm811_vm1, %v2366_v3  ;;  %v1443_v12 = vmax.f32 %v1230_v58, 0.0  ;;  %v2187_v3 = vld [vmem:[%s2916_s23 + $0x108] sm:$0xf0] }
 0x10b   : > { %v1580_v15 = vpack.c.bf16 %v1488_v7, %v1488_v7  ;;  %v2379_v58 = vld [vmem:[%s2916_s23 + $0x288] sm:$0xf0] }
 0x10c   : > { %v1535_v16 = vpack.c.bf16 %v1443_v12, %v1443_v12  ;;  %v1105_v17 = vpop.f32.mrf.mxu2  ;;  %v2190_v12 = vor.u32 %v2565_v2, %v2187_v3 }
 0x10d   : > { %v3181_v19 = vpop.f32.mrf.mxu3  ;;  %1673 = vst.msk [vmem:[%s3035_s12 + $0xe0] sm:$0xf] %vm1616_vm2, %v1580_v15  ;;  %v1106_v6 = vadd.f32 %v3021_v57, %v1105_v17  ;;  %v993_v21 = vpop.f32.mrf.mxu0 }
 0x10e   : > { %v1234_v20 = vpop.f32.mrf.mxu1  ;;  %1628 = vst.msk [vmem:[%s3035_s12 + $0x2c] sm:$0xf] %vm1616_vm2, %v1535_v16  ;;  %v994_v24 = vadd.f32 %v3021_v57, %v993_v21  ;;  %v2382_v16 = vor.u32 %v2613_v5, %v2379_v58  ;;  %v2185_v21 = vld [vmem:[%s2916_s23 + $0x100] sm:$0xf] }
 0x10f   : > { %v1345_v26 = vadd.f32 %v3138_v27, %v1106_v6 }
 0x110   : > { %v1233_v14 = vadd.f32 %v1232_v1, %v994_v24  ;;  %1032 = vmatmul.bf16.gmra.mxu0 %v2170_v18 }
 0x111   : > { %v1489_v28 = vmax.f32 %v1345_v26, 0.0  ;;  %1147 = vmatmul.bf16.gmra.mxu2 %v2354_v22  ;;  %v2566_v22 = vld [vmem:[%s2916_s23 + $0x104] sm:$0xf0]  ;;  %v2369_v26 = vld [vmem:[%s2916_s23 + $0x270] sm:$0xf] }
 0x112   : > { %v1444_v31 = vmax.f32 %v1233_v14, 0.0  ;;  %v2612_v14 = vld [vmem:[%s2916_s23 + $0x274] sm:$0xf0] }
 0x113   : > { %v1581_v34 = vpack.c.bf16 %v1489_v28, %v1489_v28 }
 0x114   : > { %v1536_v35 = vpack.c.bf16 %v1444_v31, %v1444_v31  ;;  %v1108_v36 = vpop.f32.mrf.mxu2  ;;  %v2186_v31 = vor.u32 %v2566_v22, %v2185_v21 }
 0x115   : > { %v3194_v38 = vpop.f32.mrf.mxu3  ;;  %1674 = vst.msk [vmem:[%s3035_s12 + $0xe4] sm:$0xf] %vm1616_vm2, %v1581_v34  ;;  %v1109_v27 = vadd.f32 %v3021_v57, %v1108_v36  ;;  %v995_v41 = vpop.f32.mrf.mxu0 }
 0x116   : > { %v1237_v40 = vpop.f32.mrf.mxu1  ;;  %1629 = vst.msk [vmem:[%s3035_s12 + $0x30] sm:$0xf] %vm1616_vm2, %v1536_v35  ;;  %v996_v43 = vadd.f32 %v3021_v57, %v995_v41  ;;  %v2370_v35 = vor.u32 %v2612_v14, %v2369_v26  ;;  %v2567_v41 = vld [vmem:[%s2916_s23 + $0x114] sm:$0xf] }
 0x117   : > { %v1348_v44 = vadd.f32 %v3153_v45, %v1109_v27 }
 0x118   : > { %v1235_v33 = vadd.f32 %v1234_v20, %v996_v43 }
 0x119   : > { %2486 = vmatmul.msk.bf16.gmra.mxu1 %vm811_vm1, %v2182_v37  ;;  %v1490_v46 = vmax.f32 %v1348_v44, 0.0  ;;  %v2615_v44 = vld [vmem:[%s2916_s23 + $0x294] sm:$0xf] }
 0x11a   : > { %2510 = vmatmul.msk.bf16.gmra.mxu3 %vm811_vm1, %v2374_v42  ;;  %v1445_v49 = vmax.f32 %v1235_v33, 0.0  ;;  %v2195_v42 = vld [vmem:[%s2916_s23 + $0x118] sm:$0xf0] }
 0x11b   : > { %v1582_v52 = vpack.c.bf16 %v1490_v46, %v1490_v46  ;;  %v2387_v33 = vld [vmem:[%s2916_s23 + $0x298] sm:$0xf0] }
 0x11c   : > { %v1537_v53 = vpack.c.bf16 %v1445_v49, %v1445_v49  ;;  %v1110_v54 = vpop.f32.mrf.mxu2  ;;  %v2198_v49 = vor.u32 %v2567_v41, %v2195_v42 }
 0x11d   : > { %v3209_v56 = vpop.f32.mrf.mxu3  ;;  %1675 = vst.msk [vmem:[%s3035_s12 + $0xe8] sm:$0xf] %vm1616_vm2, %v1582_v52  ;;  %v1111_v45 = vadd.f32 %v3021_v57, %v1110_v54  ;;  %v998_v60 = vpop.f32.mrf.mxu0 }
 0x11e   : > { %v1239_v59 = vpop.f32.mrf.mxu1  ;;  %1630 = vst.msk [vmem:[%s3035_s12 + $0x34] sm:$0xf] %vm1616_vm2, %v1537_v53  ;;  %v999_v62 = vadd.f32 %v3021_v57, %v998_v60  ;;  %v2390_v53 = vor.u32 %v2615_v44, %v2387_v33  ;;  %v2193_v60 = vld [vmem:[%s2916_s23 + $0x110] sm:$0xf] }
 0x11f   : > { %v1350_v63 = vadd.f32 %v3166_v0, %v1111_v45 }
 0x120   : > { %v1238_v51 = vadd.f32 %v1237_v40, %v999_v62  ;;  %1037 = vmatmul.bf16.gmra.mxu0 %v2178_v55 }
 0x121   : > { %v1491_v1 = vmax.f32 %v1350_v63, 0.0  ;;  %1152 = vmatmul.bf16.gmra.mxu2 %v2362_v61  ;;  %v2568_v61 = vld [vmem:[%s2916_s23 + $0x114] sm:$0xf0]  ;;  %v2377_v63 = vld [vmem:[%s2916_s23 + $0x280] sm:$0xf] }
 0x122   : > { %v1446_v4 = vmax.f32 %v1238_v51, 0.0  ;;  %v2614_v51 = vld [vmem:[%s2916_s23 + $0x284] sm:$0xf0] }
 0x123   : > { %v1583_v7 = vpack.c.bf16 %v1491_v1, %v1491_v1 }
 0x124   : > { %v1538_v8 = vpack.c.bf16 %v1446_v4, %v1446_v4  ;;  %v1113_v10 = vpop.f32.mrf.mxu2  ;;  %v2194_v4 = vor.u32 %v2568_v61, %v2193_v60 }
 0x125   : > { %v3222_v13 = vpop.f32.mrf.mxu3  ;;  %1676 = vst.msk [vmem:[%s3035_s12 + $0xec] sm:$0xf] %vm1616_vm2, %v1583_v7  ;;  %v1114_v0 = vadd.f32 %v3021_v57, %v1113_v10  ;;  %v1000_v15 = vpop.f32.mrf.mxu0 }
 0x126   : > { %v1242_v11 = vpop.f32.mrf.mxu1  ;;  %1631 = vst.msk [vmem:[%s3035_s12 + $0x38] sm:$0xf] %vm1616_vm2, %v1538_v8  ;;  %v1001_v17 = vadd.f32 %v3021_v57, %v1000_v15  ;;  %v2378_v8 = vor.u32 %v2614_v51, %v2377_v63  ;;  %v2569_v15 = vld [vmem:[%s2916_s23 + $0x124] sm:$0xf] }
 0x127   : > { %v1353_v18 = vadd.f32 %v3181_v19, %v1114_v0 }
 0x128   : > { %v1240_v6 = vadd.f32 %v1239_v59, %v1001_v17 }
 0x129   : > { %2487 = vmatmul.msk.bf16.gmra.mxu1 %vm811_vm1, %v2190_v12  ;;  %v1492_v20 = vmax.f32 %v1353_v18, 0.0  ;;  %v2617_v18 = vld [vmem:[%s2916_s23 + $0x2a4] sm:$0xf] }
 0x12a   : > { %2511 = vmatmul.msk.bf16.gmra.mxu3 %vm811_vm1, %v2382_v16  ;;  %v1447_v24 = vmax.f32 %v1240_v6, 0.0  ;;  %v2203_v16 = vld [vmem:[%s2916_s23 + $0x128] sm:$0xf0] }
 0x12b   : > { %v1584_v28 = vpack.c.bf16 %v1492_v20, %v1492_v20  ;;  %v2395_v6 = vld [vmem:[%s2916_s23 + $0x2a8] sm:$0xf0] }
 0x12c   : > { %v1539_v29 = vpack.c.bf16 %v1447_v24, %v1447_v24  ;;  %v1115_v30 = vpop.f32.mrf.mxu2  ;;  %v2206_v24 = vor.u32 %v2569_v15, %v2203_v16 }
 0x12d   : > { %v3237_v32 = vpop.f32.mrf.mxu3  ;;  %1677 = vst.msk [vmem:[%s3035_s12 + $0xf0] sm:$0xf] %vm1616_vm2, %v1584_v28  ;;  %v1116_v19 = vadd.f32 %v3021_v57, %v1115_v30  ;;  %v1003_v34 = vpop.f32.mrf.mxu0 }
 0x12e   : > { %v1244_v25 = vpop.f32.mrf.mxu1  ;;  %1632 = vst.msk [vmem:[%s3035_s12 + $0x3c] sm:$0xf] %vm1616_vm2, %v1539_v29  ;;  %v1004_v36 = vadd.f32 %v3021_v57, %v1003_v34  ;;  %v2398_v29 = vor.u32 %v2617_v18, %v2395_v6  ;;  %v2201_v34 = vld [vmem:[%s2916_s23 + $0x120] sm:$0xf] }
 0x12f   : > { %v1355_v37 = vadd.f32 %v3194_v38, %v1116_v19 }
 0x130   : > { %v1243_v27 = vadd.f32 %v1242_v11, %v1004_v36  ;;  %1042 = vmatmul.bf16.gmra.mxu0 %v2186_v31 }
 0x131   : > { %v1493_v40 = vmax.f32 %v1355_v37, 0.0  ;;  %1157 = vmatmul.bf16.gmra.mxu2 %v2370_v35  ;;  %v2570_v35 = vld [vmem:[%s2916_s23 + $0x124] sm:$0xf0]  ;;  %v2385_v37 = vld [vmem:[%s2916_s23 + $0x290] sm:$0xf] }
 0x132   : > { %v1448_v43 = vmax.f32 %v1243_v27, 0.0  ;;  %v2616_v27 = vld [vmem:[%s2916_s23 + $0x294] sm:$0xf0] }
 0x133   : > { %v1585_v46 = vpack.c.bf16 %v1493_v40, %v1493_v40 }
 0x134   : > { %v1540_v47 = vpack.c.bf16 %v1448_v43, %v1448_v43  ;;  %v1118_v48 = vpop.f32.mrf.mxu2  ;;  %v2202_v43 = vor.u32 %v2570_v35, %v2201_v34 }
 0x135   : > { %v3250_v50 = vpop.f32.mrf.mxu3  ;;  %1678 = vst.msk [vmem:[%s3035_s12 + $0xf4] sm:$0xf] %vm1616_vm2, %v1585_v46  ;;  %v1119_v38 = vadd.f32 %v3021_v57, %v1118_v48  ;;  %v1005_v52 = vpop.f32.mrf.mxu0 }
 0x136   : > { %v1247_v39 = vpop.f32.mrf.mxu1  ;;  %1633 = vst.msk [vmem:[%s3035_s12 + $0x40] sm:$0xf] %vm1616_vm2, %v1540_v47  ;;  %v1006_v54 = vadd.f32 %v3021_v57, %v1005_v52  ;;  %v2386_v47 = vor.u32 %v2616_v27, %v2385_v37  ;;  %v2571_v52 = vld [vmem:[%s2916_s23 + $0x134] sm:$0xf] }
 0x137   : > { %v1358_v55 = vadd.f32 %v3209_v56, %v1119_v38 }
 0x138   : > { %v1245_v45 = vadd.f32 %v1244_v25, %v1006_v54 }
 0x139   : > { %2488 = vmatmul.msk.bf16.gmra.mxu1 %vm811_vm1, %v2198_v49  ;;  %v1494_v59 = vmax.f32 %v1358_v55, 0.0  ;;  %v2619_v55 = vld [vmem:[%s2916_s23 + $0x2b4] sm:$0xf] }
 0x13a   : > { %2512 = vmatmul.msk.bf16.gmra.mxu3 %vm811_vm1, %v2390_v53  ;;  %v1449_v62 = vmax.f32 %v1245_v45, 0.0  ;;  %v2211_v53 = vld [vmem:[%s2916_s23 + $0x138] sm:$0xf0] }
 0x13b   : > { %v1586_v1 = vpack.c.bf16 %v1494_v59, %v1494_v59  ;;  %v2403_v45 = vld [vmem:[%s2916_s23 + $0x2b8] sm:$0xf0] }
 0x13c   : > { %v1541_v2 = vpack.c.bf16 %v1449_v62, %v1449_v62  ;;  %v1120_v3 = vpop.f32.mrf.mxu2  ;;  %v2214_v62 = vor.u32 %v2571_v52, %v2211_v53 }
 0x13d   : > { %v3265_v5 = vpop.f32.mrf.mxu3  ;;  %1679 = vst.msk [vmem:[%s3035_s12 + $0xf8] sm:$0xf] %vm1616_vm2, %v1586_v1  ;;  %v1121_v56 = vadd.f32 %v3021_v57, %v1120_v3  ;;  %v1008_v7 = vpop.f32.mrf.mxu0 }
 0x13e   : > { %v1249_v58 = vpop.f32.mrf.mxu1  ;;  %1634 = vst.msk [vmem:[%s3035_s12 + $0x44] sm:$0xf] %vm1616_vm2, %v1541_v2  ;;  %v1009_v10 = vadd.f32 %v3021_v57, %v1008_v7  ;;  %v2406_v2 = vor.u32 %v2619_v55, %v2403_v45  ;;  %v2209_v7 = vld [vmem:[%s2916_s23 + $0x130] sm:$0xf] }
 0x13f   : > { %v1360_v12 = vadd.f32 %v3222_v13, %v1121_v56 }
 0x140   : > { %v1248_v0 = vadd.f32 %v1247_v39, %v1009_v10  ;;  %1047 = vmatmul.bf16.gmra.mxu0 %v2194_v4 }
 0x141   : > { %v1495_v11 = vmax.f32 %v1360_v12, 0.0  ;;  %1162 = vmatmul.bf16.gmra.mxu2 %v2378_v8  ;;  %v2572_v8 = vld [vmem:[%s2916_s23 + $0x134] sm:$0xf0]  ;;  %v2393_v12 = vld [vmem:[%s2916_s23 + $0x2a0] sm:$0xf] }
 0x142   : > { %v1450_v17 = vmax.f32 %v1248_v0, 0.0  ;;  %v2618_v0 = vld [vmem:[%s2916_s23 + $0x2a4] sm:$0xf0] }
 0x143   : > { %v1587_v20 = vpack.c.bf16 %v1495_v11, %v1495_v11 }
 0x144   : > { %v1542_v21 = vpack.c.bf16 %v1450_v17, %v1450_v17  ;;  %v1123_v22 = vpop.f32.mrf.mxu2  ;;  %v2210_v17 = vor.u32 %v2572_v8, %v2209_v7 }
 0x145   : > { %v3278_v26 = vpop.f32.mrf.mxu3  ;;  %1680 = vst.msk [vmem:[%s3035_s12 + $0xfc] sm:$0xf] %vm1616_vm2, %v1587_v20  ;;  %v1124_v13 = vadd.f32 %v3021_v57, %v1123_v22  ;;  %v1010_v28 = vpop.f32.mrf.mxu0 }
 0x146   : > { %v1252_v14 = vpop.f32.mrf.mxu1  ;;  %1635 = vst.msk [vmem:[%s3035_s12 + $0x48] sm:$0xf] %vm1616_vm2, %v1542_v21  ;;  %v1011_v30 = vadd.f32 %v3021_v57, %v1010_v28  ;;  %v2394_v21 = vor.u32 %v2618_v0, %v2393_v12  ;;  %v2573_v28 = vld [vmem:[%s2916_s23 + $0x144] sm:$0xf] }
 0x147   : > { %v1363_v31 = vadd.f32 %v3237_v32, %v1124_v13 }
 0x148   : > { %v1250_v19 = vadd.f32 %v1249_v58, %v1011_v30 }
 0x149   : > { %2489 = vmatmul.msk.bf16.gmra.mxu1 %vm811_vm1, %v2206_v24  ;;  %v1496_v25 = vmax.f32 %v1363_v31, 0.0  ;;  %v2621_v31 = vld [vmem:[%s2916_s23 + $0x2c4] sm:$0xf] }
 0x14a   : > { %2513 = vmatmul.msk.bf16.gmra.mxu3 %vm811_vm1, %v2398_v29  ;;  %v1451_v36 = vmax.f32 %v1250_v19, 0.0  ;;  %v2219_v29 = vld [vmem:[%s2916_s23 + $0x148] sm:$0xf0] }
 0x14b   : > { %v1588_v40 = vpack.c.bf16 %v1496_v25, %v1496_v25  ;;  %v2411_v19 = vld [vmem:[%s2916_s23 + $0x2c8] sm:$0xf0] }
 0x14c   : > { %v1543_v41 = vpack.c.bf16 %v1451_v36, %v1451_v36  ;;  %v1125_v42 = vpop.f32.mrf.mxu2  ;;  %v2222_v36 = vor.u32 %v2573_v28, %v2219_v29 }
 0x14d   : > { %v3293_v44 = vpop.f32.mrf.mxu3  ;;  %1681 = vst.msk [vmem:[%s3035_s12 + $0x100] sm:$0xf] %vm1616_vm2, %v1588_v40  ;;  %v1126_v32 = vadd.f32 %v3021_v57, %v1125_v42  ;;  %v1013_v46 = vpop.f32.mrf.mxu0 }
 0x14e   : > { %v1254_v33 = vpop.f32.mrf.mxu1  ;;  %1636 = vst.msk [vmem:[%s3035_s12 + $0x4c] sm:$0xf] %vm1616_vm2, %v1543_v41  ;;  %v1014_v48 = vadd.f32 %v3021_v57, %v1013_v46  ;;  %v2414_v41 = vor.u32 %v2621_v31, %v2411_v19  ;;  %v2217_v46 = vld [vmem:[%s2916_s23 + $0x140] sm:$0xf] }
 0x14f   : > { %v1365_v49 = vadd.f32 %v3250_v50, %v1126_v32 }
 0x150   : > { %v1253_v38 = vadd.f32 %v1252_v14, %v1014_v48  ;;  %1052 = vmatmul.bf16.gmra.mxu0 %v2202_v43 }
 0x151   : > { %v1497_v39 = vmax.f32 %v1365_v49, 0.0  ;;  %1167 = vmatmul.bf16.gmra.mxu2 %v2386_v47  ;;  %v2574_v47 = vld [vmem:[%s2916_s23 + $0x144] sm:$0xf0]  ;;  %v2401_v49 = vld [vmem:[%s2916_s23 + $0x2b0] sm:$0xf] }
 0x152   : > { %v1452_v54 = vmax.f32 %v1253_v38, 0.0  ;;  %v2620_v38 = vld [vmem:[%s2916_s23 + $0x2b4] sm:$0xf0] }
 0x153   : > { %v1589_v59 = vpack.c.bf16 %v1497_v39, %v1497_v39 }
 0x154   : > { %v1544_v60 = vpack.c.bf16 %v1452_v54, %v1452_v54  ;;  %v1128_v61 = vpop.f32.mrf.mxu2 }
 0x155   : > { %v3306_v63 = vpop.f32.mrf.mxu3  ;;  %1682 = vst.msk [vmem:[%s3035_s12 + $0x104] sm:$0xf] %vm1616_vm2, %v1589_v59  ;;  %v1129_v50 = vadd.f32 %v3021_v57, %v1128_v61  ;;  %v1015_v1 = vpop.f32.mrf.mxu0 }
 0x156   : > { %v1257_v51 = vpop.f32.mrf.mxu1  ;;  %1637 = vst.msk [vmem:[%s3035_s12 + $0x50] sm:$0xf] %vm1616_vm2, %v1544_v60  ;;  %v1016_v3 = vadd.f32 %v3021_v57, %v1015_v1  ;;  %v2402_v60 = vor.u32 %v2620_v38, %v2401_v49  ;;  %v2575_v1 = vld [vmem:[%s2916_s23 + $0x154] sm:$0xf] }
 0x157   : > { %v1368_v4 = vadd.f32 %v3265_v5, %v1129_v50 }
 0x158   : > { %v1255_v56 = vadd.f32 %v1254_v33, %v1016_v3 }
 0x159   : > { %2490 = vmatmul.msk.bf16.gmra.mxu1 %vm811_vm1, %v2214_v62  ;;  %v1498_v58 = vmax.f32 %v1368_v4, 0.0  ;;  %v2623_v4 = vld [vmem:[%s2916_s23 + $0x2d4] sm:$0xf] }
 0x15a   : > { %2514 = vmatmul.msk.bf16.gmra.mxu3 %vm811_vm1, %v2406_v2  ;;  %v1453_v10 = vmax.f32 %v1255_v56, 0.0  ;;  %v2227_v2 = vld [vmem:[%s2916_s23 + $0x158] sm:$0xf0] }
 0x15b   : > { %v1590_v11 = vpack.c.bf16 %v1498_v58, %v1498_v58  ;;  %v2419_v56 = vld [vmem:[%s2916_s23 + $0x2d8] sm:$0xf0] }
 0x15c   : > { %v1545_v15 = vpack.c.bf16 %v1453_v10, %v1453_v10  ;;  %v1130_v16 = vpop.f32.mrf.mxu2  ;;  %v2230_v10 = vor.u32 %v2575_v1, %v2227_v2 }
 0x15d   : > { %v3321_v18 = vpop.f32.mrf.mxu3  ;;  %1683 = vst.msk [vmem:[%s3035_s12 + $0x108] sm:$0xf] %vm1616_vm2, %v1590_v11  ;;  %v1131_v5 = vadd.f32 %v3021_v57, %v1130_v16  ;;  %v1018_v20 = vpop.f32.mrf.mxu0 }
 0x15e   : > { %v1259_v6 = vpop.f32.mrf.mxu1  ;;  %1638 = vst.msk [vmem:[%s3035_s12 + $0x54] sm:$0xf] %vm1616_vm2, %v1545_v15  ;;  %v1019_v22 = vadd.f32 %v3021_v57, %v1018_v20  ;;  %v2422_v15 = vor.u32 %v2623_v4, %v2419_v56  ;;  %v2225_v20 = vld [vmem:[%s2916_s23 + $0x150] sm:$0xf] }
 0x15f   : > { %v1370_v24 = vadd.f32 %v3278_v26, %v1131_v5 }
 0x160   : > { %v1258_v13 = vadd.f32 %v1257_v51, %v1019_v22  ;;  %1057 = vmatmul.bf16.gmra.mxu0 %v2210_v17 }
 0x161   : > { %v1499_v14 = vmax.f32 %v1370_v24, 0.0  ;;  %1172 = vmatmul.bf16.gmra.mxu2 %v2394_v21  ;;  %v2576_v21 = vld [vmem:[%s2916_s23 + $0x154] sm:$0xf0]  ;;  %v2409_v24 = vld [vmem:[%s2916_s23 + $0x2c0] sm:$0xf] }
 0x162   : > { %v1454_v30 = vmax.f32 %v1258_v13, 0.0  ;;  %v2622_v13 = vld [vmem:[%s2916_s23 + $0x2c4] sm:$0xf0] }
 0x163   : > { %v1591_v25 = vpack.c.bf16 %v1499_v14, %v1499_v14 }
 0x164   : > { %v1546_v34 = vpack.c.bf16 %v1454_v30, %v1454_v30  ;;  %v1133_v35 = vpop.f32.mrf.mxu2  ;;  %v2226_v30 = vor.u32 %v2576_v21, %v2225_v20 }
 0x165   : > { %v3334_v37 = vpop.f32.mrf.mxu3  ;;  %1684 = vst.msk [vmem:[%s3035_s12 + $0x10c] sm:$0xf] %vm1616_vm2, %v1591_v25  ;;  %v1134_v26 = vadd.f32 %v3021_v57, %v1133_v35  ;;  %v1020_v40 = vpop.f32.mrf.mxu0 }
 0x166   : > { %v1262_v27 = vpop.f32.mrf.mxu1  ;;  %1639 = vst.msk [vmem:[%s3035_s12 + $0x58] sm:$0xf] %vm1616_vm2, %v1546_v34  ;;  %v1021_v42 = vadd.f32 %v3021_v57, %v1020_v40  ;;  %v2218_v57 = vor.u32 %v2574_v47, %v2217_v46  ;;  %v2410_v34 = vor.u32 %v2622_v13, %v2409_v24  ;;  %v2577_v40 = vld [vmem:[%s2916_s23 + $0x164] sm:$0xf] }
 0x167   : > { %v1373_v43 = vadd.f32 %v3293_v44, %v1134_v26  ;;  %v3356_v44 = vld [vmem:[%s3677_s2] ss:$0 sm:$0xff] }
 0x168   : > { %v1260_v32 = vadd.f32 %v1259_v6, %v1021_v42 }
 0x169   : > { %2491 = vmatmul.msk.bf16.gmra.mxu1 %vm811_vm1, %v2222_v36  ;;  %v1500_v33 = vmax.f32 %v1373_v43, 0.0 }
 0x16a   : > { %2515 = vmatmul.msk.bf16.gmra.mxu3 %vm811_vm1, %v2414_v41  ;;  %v1455_v48 = vmax.f32 %v1260_v32, 0.0  ;;  %v2235_v41 = vld [vmem:[%s2916_s23 + $0x168] sm:$0xf0] }
 0x16b   : > { %v1592_v39 = vpack.c.bf16 %v1500_v33, %v1500_v33  ;;  %v2238_v46 = vor.u32 %v2577_v40, %v2235_v41 }
 0x16c   : > { %v1547_v52 = vpack.c.bf16 %v1455_v48, %v1455_v48  ;;  %v1135_v53 = vpop.f32.mrf.mxu2 }
 0x16d   : > { %v3349_v54 = vpop.f32.mrf.mxu3  ;;  %1685 = vst.msk [vmem:[%s3035_s12 + $0x110] sm:$0xf] %vm1616_vm2, %v1592_v39  ;;  %v1136_v55 = vadd.f32 %v3356_v44, %v1135_v53  ;;  %v1023_v59 = vpop.f32.mrf.mxu0 }
 0x16e   : > { %v1264_v45 = vpop.f32.mrf.mxu1  ;;  %1640 = vst.msk [vmem:[%s3035_s12 + $0x5c] sm:$0xf] %vm1616_vm2, %v1547_v52  ;;  %v1024_v61 = vadd.f32 %v3356_v44, %v1023_v59  ;;  %v2417_v59 = vld [vmem:[%s2916_s23 + $0x2d0] sm:$0xf] }
 0x16f   : > { %v1375_v62 = vadd.f32 %v3306_v63, %v1136_v55  ;;  %v2578_v55 = vld [vmem:[%s2916_s23 + $0x164] sm:$0xf0] }
 0x170   : > { %v1263_v50 = vadd.f32 %v1262_v27, %v1024_v61  ;;  %1062 = vmatmul.bf16.gmra.mxu0 %v2218_v57  ;;  %v2233_v57 = vld [vmem:[%s2916_s23 + $0x160] sm:$0xf] }
 0x171   : > { %v1501_v51 = vmax.f32 %v1375_v62, 0.0  ;;  %1177 = vmatmul.bf16.gmra.mxu2 %v2402_v60  ;;  %v2624_v60 = vld [vmem:[%s2916_s23 + $0x2d4] sm:$0xf0] }
 0x172   : > { %v1456_v3 = vmax.f32 %v1263_v50, 0.0  ;;  %v2418_v4 = vor.u32 %v2624_v60, %v2417_v59 }
 0x173   : > { %v1593_v58 = vpack.c.bf16 %v1501_v51, %v1501_v51  ;;  %v2234_v51 = vor.u32 %v2578_v55, %v2233_v57 }
 0x174   : > { %v1548_v7 = vpack.c.bf16 %v1456_v3, %v1456_v3  ;;  %v1138_v8 = vpop.f32.mrf.mxu2 }
 0x175   : > { %v3367_v12 = vpop.f32.mrf.mxu3  ;;  %1686 = vst.msk [vmem:[%s3035_s12 + $0x114] sm:$0xf] %vm1616_vm2, %v1593_v58  ;;  %v1139_v63 = vadd.f32 %v3356_v44, %v1138_v8  ;;  %v1025_v11 = vpop.f32.mrf.mxu0 }
 0x176   : > { %v1267_v0 = vpop.f32.mrf.mxu1  ;;  %1641 = vst.msk [vmem:[%s3035_s12 + $0x60] sm:$0xf] %vm1616_vm2, %v1548_v7  ;;  %v1026_v16 = vadd.f32 %v3356_v44, %v1025_v11 }
 0x177   : > { %v1378_v17 = vadd.f32 %v3321_v18, %v1139_v63  ;;  %v2243_v63 = vld [vmem:[%s2916_s23 + $0x178] sm:$0xf0] }
 0x178   : > { %v1265_v5 = vadd.f32 %v1264_v45, %v1026_v16 }
 0x179   : > { %2492 = vmatmul.msk.bf16.gmra.mxu1 %vm811_vm1, %v2230_v10  ;;  %v1502_v6 = vmax.f32 %v1378_v17, 0.0  ;;  %v2579_v10 = vld [vmem:[%s2916_s23 + $0x174] sm:$0xf] }
 0x17a   : > { %2516 = vmatmul.msk.bf16.gmra.mxu3 %vm811_vm1, %v2422_v15  ;;  %v1457_v22 = vmax.f32 %v1265_v5, 0.0  ;;  %v2246_v17 = vor.u32 %v2579_v10, %v2243_v63 }
 0x17b   : > { %v1594_v14 = vpack.c.bf16 %v1502_v6, %v1502_v6 }
 0x17c   : > { %v1549_v28 = vpack.c.bf16 %v1457_v22, %v1457_v22  ;;  %v1140_v29 = vpop.f32.mrf.mxu2 }
 0x17d   : > { %v3382_v31 = vpop.f32.mrf.mxu3  ;;  %1687 = vst.msk [vmem:[%s3035_s12 + $0x118] sm:$0xf] %vm1616_vm2, %v1594_v14  ;;  %v1141_v18 = vadd.f32 %v3356_v44, %v1140_v29  ;;  %v1028_v25 = vpop.f32.mrf.mxu0 }
 0x17e   : > { %v1269_v19 = vpop.f32.mrf.mxu1  ;;  %1642 = vst.msk [vmem:[%s3035_s12 + $0x64] sm:$0xf] %vm1616_vm2, %v1549_v28  ;;  %v1029_v35 = vadd.f32 %v3356_v44, %v1028_v25 }
 0x17f   : > { %v1380_v36 = vadd.f32 %v3334_v37, %v1141_v18 }
 0x180   : > { %v1268_v26 = vadd.f32 %v1267_v0, %v1029_v35  ;;  %1067 = vmatmul.bf16.gmra.mxu0 %v2226_v30 }
 0x181   : > { %v1503_v27 = vmax.f32 %v1380_v36, 0.0  ;;  %1182 = vmatmul.bf16.gmra.mxu2 %v2410_v34 }
 0x182   : > { %v1458_v42 = vmax.f32 %v1268_v26, 0.0 }
 0x183   : > { %v1595_v43 = vpack.c.bf16 %v1503_v27, %v1503_v27 }
 0x184   : > { %v1550_v32 = vpack.c.bf16 %v1458_v42, %v1458_v42  ;;  %v1143_v33 = vpop.f32.mrf.mxu2 }
 0x185   : > { %v1389_v47 = vpop.f32.mrf.mxu3  ;;  %1688 = vst.msk [vmem:[%s3035_s12 + $0x11c] sm:$0xf] %vm1616_vm2, %v1595_v43  ;;  %v1144_v37 = vadd.f32 %v3356_v44, %v1143_v33  ;;  %v1030_v49 = vpop.f32.mrf.mxu0 }
 0x186   : > { %v1272_v48 = vpop.f32.mrf.mxu1  ;;  %1643 = vst.msk [vmem:[%s3035_s12 + $0x68] sm:$0xf] %vm1616_vm2, %v1550_v32  ;;  %v1031_v38 = vadd.f32 %v3356_v44, %v1030_v49 }
 0x187   : > { %v1383_v39 = vadd.f32 %v3349_v54, %v1144_v37 }
 0x188   : > { %v1270_v52 = vadd.f32 %v1269_v19, %v1031_v38 }
 0x189   : > { %2493 = vmatmul.msk.bf16.gmra.mxu1 %vm811_vm1, %v2238_v46  ;;  %v1504_v53 = vmax.f32 %v1383_v39, 0.0 }
 0x18a   : > { %v1459_v45 = vmax.f32 %v1270_v52, 0.0 }
 0x18b   : > { %v1596_v61 = vpack.c.bf16 %v1504_v53, %v1504_v53 }
 0x18c   : > { %v1551_v62 = vpack.c.bf16 %v1459_v45, %v1459_v45  ;;  %v1145_v50 = vpop.f32.mrf.mxu2 }
 0x18d   : > { %v1392_v1 = vpop.f32.mrf.mxu3  ;;  %1689 = vst.msk [vmem:[%s3035_s12 + $0x120] sm:$0xf] %vm1616_vm2, %v1596_v61  ;;  %v1146_v54 = vadd.f32 %v3356_v44, %v1145_v50  ;;  %v1033_v3 = vpop.f32.mrf.mxu0 }
 0x18e   : > { %v1274_v2 = vpop.f32.mrf.mxu1  ;;  %1644 = vst.msk [vmem:[%s3035_s12 + $0x6c] sm:$0xf] %vm1616_vm2, %v1551_v62  ;;  %v1034_v56 = vadd.f32 %v3356_v44, %v1033_v3 }
 0x18f   : > { %v1385_v58 = vadd.f32 %v3367_v12, %v1146_v54 }
 0x190   : > { %v1273_v7 = vadd.f32 %v1272_v48, %v1034_v56  ;;  %1072 = vmatmul.bf16.gmra.mxu0 %v2234_v51 }
 0x191   : > { %v1505_v8 = vmax.f32 %v1385_v58, 0.0  ;;  %1187 = vmatmul.bf16.gmra.mxu2 %v2418_v4 }
 0x192   : > { %v1460_v0 = vmax.f32 %v1273_v7, 0.0 }
 0x193   : > { %v1597_v11 = vpack.c.bf16 %v1505_v8, %v1505_v8 }
 0x194   : > { %v1552_v15 = vpack.c.bf16 %v1460_v0, %v1460_v0  ;;  %v1148_v16 = vpop.f32.mrf.mxu2 }
 0x195   : > { %v1394_v5 = vpop.f32.mrf.mxu3  ;;  %1690 = vst.msk [vmem:[%s3035_s12 + $0x124] sm:$0xf] %vm1616_vm2, %v1597_v11  ;;  %v1149_v6 = vadd.f32 %v3356_v44, %v1148_v16  ;;  %v1035_v12 = vpop.f32.mrf.mxu0 }
 0x196   : > { %v1277_v20 = vpop.f32.mrf.mxu1  ;;  %1645 = vst.msk [vmem:[%s3035_s12 + $0x70] sm:$0xf] %vm1616_vm2, %v1552_v15  ;;  %v1036_v21 = vadd.f32 %v3356_v44, %v1035_v12 }
 0x197   : > { %v1388_v22 = vadd.f32 %v3382_v31, %v1149_v6 }
 0x198   : > { %v1275_v24 = vadd.f32 %v1274_v2, %v1036_v21 }
 0x199   : > { %2494 = vmatmul.msk.bf16.gmra.mxu1 %vm811_vm1, %v2246_v17  ;;  %v1506_v13 = vmax.f32 %v1388_v22, 0.0 }
 0x19a   : > { %v1461_v14 = vmax.f32 %v1275_v24, 0.0 }
 0x19b   : > { %v1598_v28 = vpack.c.bf16 %v1506_v13, %v1506_v13 }
 0x19c   : > { %v1553_v29 = vpack.c.bf16 %v1461_v14, %v1461_v14  ;;  %v1150_v30 = vpop.f32.mrf.mxu2 }
 0x19d   : > { %v1397_v18 = vpop.f32.mrf.mxu3  ;;  %1691 = vst.msk [vmem:[%s3035_s12 + $0x128] sm:$0xf] %vm1616_vm2, %v1598_v28  ;;  %v1151_v19 = vadd.f32 %v3356_v44, %v1150_v30  ;;  %v1038_v34 = vpop.f32.mrf.mxu0 }
 0x19e   : > { %v1279_v25 = vpop.f32.mrf.mxu1  ;;  %1646 = vst.msk [vmem:[%s3035_s12 + $0x74] sm:$0xf] %vm1616_vm2, %v1553_v29  ;;  %v1039_v31 = vadd.f32 %v3356_v44, %v1038_v34 }
 0x19f   : > { %v1390_v35 = vadd.f32 %v1389_v47, %v1151_v19 }
 0x1a0   : > { %v1278_v36 = vadd.f32 %v1277_v20, %v1039_v31 }
 0x1a1   : > { %v1507_v26 = vmax.f32 %v1390_v35, 0.0 }
 0x1a2   : > { %v1462_v27 = vmax.f32 %v1278_v36, 0.0 }
 0x1a3   : > { %v1599_v40 = vpack.c.bf16 %v1507_v26, %v1507_v26 }
 0x1a4   : > { %v1554_v41 = vpack.c.bf16 %v1462_v27, %v1462_v27  ;;  %v1153_v42 = vpop.f32.mrf.mxu2 }
 0x1a5   : > { %1692 = vst.msk [vmem:[%s3035_s12 + $0x12c] sm:$0xf] %vm1616_vm2, %v1599_v40  ;;  %v1154_v43 = vadd.f32 %v3356_v44, %v1153_v42  ;;  %v1040_v33 = vpop.f32.mrf.mxu0  ;;  %v1399_v37 = vpop.f32.mrf.mxu3 }
 0x1a6   : > { %v1282_v32 = vpop.f32.mrf.mxu1  ;;  %1647 = vst.msk [vmem:[%s3035_s12 + $0x78] sm:$0xf] %vm1616_vm2, %v1554_v41  ;;  %v1041_v46 = vadd.f32 %v3356_v44, %v1040_v33 }
 0x1a7   : > { %v1393_v47 = vadd.f32 %v1392_v1, %v1154_v43 }
 0x1a8   : > { %v1280_v48 = vadd.f32 %v1279_v25, %v1041_v46 }
 0x1a9   : > { %v1508_v49 = vmax.f32 %v1393_v47, 0.0 }
 0x1aa   : > { %v1463_v38 = vmax.f32 %v1280_v48, 0.0 }
 0x1ab   : > { %v1600_v39 = vpack.c.bf16 %v1508_v49, %v1508_v49 }
 0x1ac   : > { %v1555_v52 = vpack.c.bf16 %v1463_v38, %v1463_v38  ;;  %v1155_v53 = vpop.f32.mrf.mxu2 }
 0x1ad   : > { %1693 = vst.msk [vmem:[%s3035_s12 + $0x130] sm:$0xf] %vm1616_vm2, %v1600_v39  ;;  %v1156_v57 = vadd.f32 %v3356_v44, %v1155_v53  ;;  %v1043_v45 = vpop.f32.mrf.mxu0  ;;  %v1402_v62 = vpop.f32.mrf.mxu3 }
 0x1ae   : > { %v1284_v55 = vpop.f32.mrf.mxu1  ;;  %1648 = vst.msk [vmem:[%s3035_s12 + $0x7c] sm:$0xf] %vm1616_vm2, %v1555_v52  ;;  %v1044_v59 = vadd.f32 %v3356_v44, %v1043_v45 }
 0x1af   : > { %v1395_v60 = vadd.f32 %v1394_v5, %v1156_v57 }
 0x1b0   : > { %v1283_v61 = vadd.f32 %v1282_v32, %v1044_v59 }
 0x1b1   : > { %v1509_v50 = vmax.f32 %v1395_v60, 0.0 }
 0x1b2   : > { %v1464_v51 = vmax.f32 %v1283_v61, 0.0 }
 0x1b3   : > { %v1601_v1 = vpack.c.bf16 %v1509_v50, %v1509_v50 }
 0x1b4   : > { %v1556_v54 = vpack.c.bf16 %v1464_v51, %v1464_v51  ;;  %v1158_v2 = vpop.f32.mrf.mxu2 }
 0x1b5   : > { %1694 = vst.msk [vmem:[%s3035_s12 + $0x134] sm:$0xf] %vm1616_vm2, %v1601_v1  ;;  %v1159_v3 = vadd.f32 %v3356_v44, %v1158_v2  ;;  %v1045_v56 = vpop.f32.mrf.mxu0  ;;  %v1404_v0 = vpop.f32.mrf.mxu3 }
 0x1b6   : > { %v1287_v4 = vpop.f32.mrf.mxu1  ;;  %1649 = vst.msk [vmem:[%s3035_s12 + $0x80] sm:$0xf] %vm1616_vm2, %v1556_v54  ;;  %v1046_v58 = vadd.f32 %v3356_v44, %v1045_v56 }
 0x1b7   : > { %v1398_v7 = vadd.f32 %v1397_v18, %v1159_v3 }
 0x1b8   : > { %v1285_v8 = vadd.f32 %v1284_v55, %v1046_v58 }
 0x1b9   : > { %v1510_v10 = vmax.f32 %v1398_v7, 0.0 }
 0x1ba   : > { %v1465_v63 = vmax.f32 %v1285_v8, 0.0 }
 0x1bb   : > { %v1602_v11 = vpack.c.bf16 %v1510_v10, %v1510_v10 }
 0x1bc   : > { %v1557_v15 = vpack.c.bf16 %v1465_v63, %v1465_v63  ;;  %v1160_v16 = vpop.f32.mrf.mxu2 }
 0x1bd   : > { %1695 = vst.msk [vmem:[%s3035_s12 + $0x138] sm:$0xf] %vm1616_vm2, %v1602_v11  ;;  %v1161_v17 = vadd.f32 %v3356_v44, %v1160_v16  ;;  %v1048_v6 = vpop.f32.mrf.mxu0  ;;  %v1407_v29 = vpop.f32.mrf.mxu3 }
 0x1be   : > { %v1289_v5 = vpop.f32.mrf.mxu1  ;;  %1650 = vst.msk [vmem:[%s3035_s12 + $0x84] sm:$0xf] %vm1616_vm2, %v1557_v15  ;;  %v1049_v20 = vadd.f32 %v3356_v44, %v1048_v6 }
 0x1bf   : > { %v1400_v12 = vadd.f32 %v1399_v37, %v1161_v17 }
 0x1c0   : > { %v1288_v21 = vadd.f32 %v1287_v4, %v1049_v20 }
 0x1c1   : > { %v1511_v22 = vmax.f32 %v1400_v12, 0.0 }
 0x1c2   : > { %v1466_v24 = vmax.f32 %v1288_v21, 0.0 }
 0x1c3   : > { %v1603_v13 = vpack.c.bf16 %v1511_v22, %v1511_v22 }
 0x1c4   : > { %v1558_v14 = vpack.c.bf16 %v1466_v24, %v1466_v24  ;;  %v1163_v28 = vpop.f32.mrf.mxu2 }
 0x1c5   : > { %1696 = vst.msk [vmem:[%s3035_s12 + $0x13c] sm:$0xf] %vm1616_vm2, %v1603_v13  ;;  %v1164_v30 = vadd.f32 %v3356_v44, %v1163_v28  ;;  %v1050_v19 = vpop.f32.mrf.mxu0  ;;  %v1409_v33 = vpop.f32.mrf.mxu3 }
 0x1c6   : > { %v1292_v18 = vpop.f32.mrf.mxu1  ;;  %1651 = vst.msk [vmem:[%s3035_s12 + $0x88] sm:$0xf] %vm1616_vm2, %v1558_v14  ;;  %v1051_v25 = vadd.f32 %v3356_v44, %v1050_v19 }
 0x1c7   : > { %v1403_v34 = vadd.f32 %v1402_v62, %v1164_v30 }
 0x1c8   : > { %v1290_v31 = vadd.f32 %v1289_v5, %v1051_v25 }
 0x1c9   : > { %v1512_v35 = vmax.f32 %v1403_v34, 0.0 }
 0x1ca   : > { %v1467_v36 = vmax.f32 %v1290_v31, 0.0 }
 0x1cb   : > { %v1604_v26 = vpack.c.bf16 %v1512_v35, %v1512_v35 }
 0x1cc   : > { %v1559_v27 = vpack.c.bf16 %v1467_v36, %v1467_v36  ;;  %v1165_v40 = vpop.f32.mrf.mxu2 }
 0x1cd   : > { %1697 = vst.msk [vmem:[%s3035_s12 + $0x140] sm:$0xf] %vm1616_vm2, %v1604_v26  ;;  %v1166_v41 = vadd.f32 %v3356_v44, %v1165_v40  ;;  %v1053_v43 = vpop.f32.mrf.mxu0  ;;  %v1412_v60 = vpop.f32.mrf.mxu3 }
 0x1ce   : > { %v1294_v42 = vpop.f32.mrf.mxu1  ;;  %1652 = vst.msk [vmem:[%s3035_s12 + $0x8c] sm:$0xf] %vm1616_vm2, %v1559_v27  ;;  %v1054_v32 = vadd.f32 %v3356_v44, %v1053_v43 }
 0x1cf   : > { %v1405_v46 = vadd.f32 %v1404_v0, %v1166_v41 }
 0x1d0   : > { %v1293_v37 = vadd.f32 %v1292_v18, %v1054_v32 }
 0x1d1   : > { %v1513_v47 = vmax.f32 %v1405_v46, 0.0 }
 0x1d2   : > { %v1468_v48 = vmax.f32 %v1293_v37, 0.0 }
 0x1d3   : > { %v1605_v49 = vpack.c.bf16 %v1513_v47, %v1513_v47 }
 0x1d4   : > { %v1560_v38 = vpack.c.bf16 %v1468_v48, %v1468_v48  ;;  %v1168_v39 = vpop.f32.mrf.mxu2 }
 0x1d5   : > { %1698 = vst.msk [vmem:[%s3035_s12 + $0x144] sm:$0xf] %vm1616_vm2, %v1605_v49  ;;  %v1169_v52 = vadd.f32 %v3356_v44, %v1168_v39  ;;  %v1055_v57 = vpop.f32.mrf.mxu0  ;;  %v1414_v10 = vpop.f32.mrf.mxu3 }
 0x1d6   : > { %v1297_v53 = vpop.f32.mrf.mxu1  ;;  %1653 = vst.msk [vmem:[%s3035_s12 + $0x90] sm:$0xf] %vm1616_vm2, %v1560_v38  ;;  %v1056_v55 = vadd.f32 %v3356_v44, %v1055_v57 }
 0x1d7   : > { %v1408_v45 = vadd.f32 %v1407_v29, %v1169_v52 }
 0x1d8   : > { %v1295_v59 = vadd.f32 %v1294_v42, %v1056_v55 }
 0x1d9   : > { %v1514_v61 = vmax.f32 %v1408_v45, 0.0 }
 0x1da   : > { %v1469_v62 = vmax.f32 %v1295_v59, 0.0 }
 0x1db   : > { %v1606_v50 = vpack.c.bf16 %v1514_v61, %v1514_v61 }
 0x1dc   : > { %v1561_v51 = vpack.c.bf16 %v1469_v62, %v1469_v62  ;;  %v1170_v1 = vpop.f32.mrf.mxu2 }
 0x1dd   : > { %1699 = vst.msk [vmem:[%s3035_s12 + $0x148] sm:$0xf] %vm1616_vm2, %v1606_v50  ;;  %v1171_v54 = vadd.f32 %v3356_v44, %v1170_v1  ;;  %v1058_v3 = vpop.f32.mrf.mxu0  ;;  %v1417_v14 = vpop.f32.mrf.mxu3 }
 0x1de   : > { %v1299_v2 = vpop.f32.mrf.mxu1  ;;  %1654 = vst.msk [vmem:[%s3035_s12 + $0x94] sm:$0xf] %vm1616_vm2, %v1561_v51  ;;  %v1059_v4 = vadd.f32 %v3356_v44, %v1058_v3 }
 0x1df   : > { %v1410_v56 = vadd.f32 %v1409_v33, %v1171_v54 }
 0x1e0   : > { %v1298_v58 = vadd.f32 %v1297_v53, %v1059_v4 }
 0x1e1   : > { %v1515_v7 = vmax.f32 %v1410_v56, 0.0 }
 0x1e2   : > { %v1470_v8 = vmax.f32 %v1298_v58, 0.0 }
 0x1e3   : > { %v1607_v63 = vpack.c.bf16 %v1515_v7, %v1515_v7 }
 0x1e4   : > { %v1562_v0 = vpack.c.bf16 %v1470_v8, %v1470_v8  ;;  %v1173_v11 = vpop.f32.mrf.mxu2 }
 0x1e5   : > { %1700 = vst.msk [vmem:[%s3035_s12 + $0x14c] sm:$0xf] %vm1616_vm2, %v1607_v63  ;;  %v1174_v15 = vadd.f32 %v3356_v44, %v1173_v11  ;;  %v1060_v17 = vpop.f32.mrf.mxu0  ;;  %v1419_v43 = vpop.f32.mrf.mxu3 }
 0x1e6   : > { %v1302_v16 = vpop.f32.mrf.mxu1  ;;  %1655 = vst.msk [vmem:[%s3035_s12 + $0x98] sm:$0xf] %vm1616_vm2, %v1562_v0  ;;  %v1061_v5 = vadd.f32 %v3356_v44, %v1060_v17 }
 0x1e7   : > { %v1413_v6 = vadd.f32 %v1412_v60, %v1174_v15 }
 0x1e8   : > { %v1300_v20 = vadd.f32 %v1299_v2, %v1061_v5 }
 0x1e9   : > { %v1516_v12 = vmax.f32 %v1413_v6, 0.0 }
 0x1ea   : > { %v1471_v21 = vmax.f32 %v1300_v20, 0.0 }
 0x1eb   : > { %v1608_v22 = vpack.c.bf16 %v1516_v12, %v1516_v12 }
 0x1ec   : > { %v1563_v24 = vpack.c.bf16 %v1471_v21, %v1471_v21  ;;  %v1175_v13 = vpop.f32.mrf.mxu2  ;;  %v1079_v21 = vadd.f32 %v3356_v44, %v3031_v9 }
 0x1ed   : > { %1701 = vst.msk [vmem:[%s3035_s12 + $0x150] sm:$0xf] %vm1616_vm2, %v1608_v22  ;;  %v1176_v28 = vadd.f32 %v3356_v44, %v1175_v13  ;;  %v1063_v30 = vpop.f32.mrf.mxu0  ;;  %v1422_v45 = vpop.f32.mrf.mxu3 }
 0x1ee   : > { %v1304_v29 = vpop.f32.mrf.mxu1  ;;  %1656 = vst.msk [vmem:[%s3035_s12 + $0x9c] sm:$0xf] %vm1616_vm2, %v1563_v24  ;;  %v1064_v18 = vadd.f32 %v3356_v44, %v1063_v30 }
 0x1ef   : > { %v1415_v19 = vadd.f32 %v1414_v10, %v1176_v28 }
 0x1f0   : > { %v1303_v25 = vadd.f32 %v1302_v16, %v1064_v18 }
 0x1f1   : > { %v1517_v34 = vmax.f32 %v1415_v19, 0.0 }
 0x1f2   : > { %v1472_v31 = vmax.f32 %v1303_v25, 0.0 }
 0x1f3   : > { %v1609_v35 = vpack.c.bf16 %v1517_v34, %v1517_v34 }
 0x1f4   : > { %v1564_v36 = vpack.c.bf16 %v1472_v31, %v1472_v31  ;;  %v1178_v26 = vpop.f32.mrf.mxu2 }
 0x1f5   : > { %1702 = vst.msk [vmem:[%s3035_s12 + $0x154] sm:$0xf] %vm1616_vm2, %v1609_v35  ;;  %v1179_v27 = vadd.f32 %v3356_v44, %v1178_v26  ;;  %v1065_v41 = vpop.f32.mrf.mxu0  ;;  %v1424_v7 = vpop.f32.mrf.mxu3  ;;  %v1081_v26 = vadd.f32 %v3356_v44, %v3046_v23 }
 0x1f6   : > { %v1307_v40 = vpop.f32.mrf.mxu1  ;;  %1657 = vst.msk [vmem:[%s3035_s12 + $0xa0] sm:$0xf] %vm1616_vm2, %v1564_v36  ;;  %v1066_v42 = vadd.f32 %v3356_v44, %v1065_v41 }
 0x1f7   : > { %v1418_v32 = vadd.f32 %v1417_v14, %v1179_v27 }
 0x1f8   : > { %v1305_v33 = vadd.f32 %v1304_v29, %v1066_v42 }
 0x1f9   : > { %v1518_v46 = vmax.f32 %v1418_v32, 0.0 }
 0x1fa   : > { %v1473_v37 = vmax.f32 %v1305_v33, 0.0 }
 0x1fb   : > { %v1610_v47 = vpack.c.bf16 %v1518_v46, %v1518_v46 }
 0x1fc   : > { %v1565_v48 = vpack.c.bf16 %v1473_v37, %v1473_v37  ;;  %v1180_v49 = vpop.f32.mrf.mxu2 }
 0x1fd   : > { %1703 = vst.msk [vmem:[%s3035_s12 + $0x158] sm:$0xf] %vm1616_vm2, %v1610_v47  ;;  %v1181_v38 = vadd.f32 %v3356_v44, %v1180_v49  ;;  %v1068_v52 = vpop.f32.mrf.mxu0  ;;  %v1427_v24 = vpop.f32.mrf.mxu3 }
 0x1fe   : > { %v1309_v39 = vpop.f32.mrf.mxu1  ;;  %1658 = vst.msk [vmem:[%s3035_s12 + $0xa4] sm:$0xf] %vm1616_vm2, %v1565_v48  ;;  %v1069_v53 = vadd.f32 %v3356_v44, %v1068_v52 }
 0x1ff   : > { %v1420_v57 = vadd.f32 %v1419_v43, %v1181_v38 }
 0x200   : > { %v1308_v55 = vadd.f32 %v1307_v40, %v1069_v53 }
 0x201   : > { %v1519_v59 = vmax.f32 %v1420_v57, 0.0 }
 0x202   : > { %v1474_v60 = vmax.f32 %v1308_v55, 0.0 }
 0x203   : > { %v1611_v61 = vpack.c.bf16 %v1519_v59, %v1519_v59 }
 0x204   : > { %v1566_v62 = vpack.c.bf16 %v1474_v60, %v1474_v60  ;;  %v1183_v50 = vpop.f32.mrf.mxu2 }
 0x205   : > { %1704 = vst.msk [vmem:[%s3035_s12 + $0x15c] sm:$0xf] %vm1616_vm2, %v1611_v61  ;;  %v1184_v51 = vadd.f32 %v3356_v44, %v1183_v50  ;;  %v1070_v54 = vpop.f32.mrf.mxu0  ;;  %v1429_v43 = vpop.f32.mrf.mxu3 }
 0x206   : > { %v1312_v1 = vpop.f32.mrf.mxu1  ;;  %1659 = vst.msk [vmem:[%s3035_s12 + $0xa8] sm:$0xf] %vm1616_vm2, %v1566_v62  ;;  %v1071_v2 = vadd.f32 %v3356_v44, %v1070_v54 }
 0x207   : > { %v1423_v3 = vadd.f32 %v1422_v45, %v1184_v51 }
 0x208   : > { %v1310_v4 = vadd.f32 %v1309_v39, %v1071_v2 }
 0x209   : > { %v1520_v56 = vmax.f32 %v1423_v3, 0.0 }
 0x20a   : > { %v1475_v58 = vmax.f32 %v1310_v4, 0.0 }
 0x20b   : > { %v1612_v8 = vpack.c.bf16 %v1520_v56, %v1520_v56 }
 0x20c   : > { %v1567_v10 = vpack.c.bf16 %v1475_v58, %v1475_v58  ;;  %v1185_v63 = vpop.f32.mrf.mxu2 }
 0x20d   : > { %1705 = vst.msk [vmem:[%s3035_s12 + $0x160] sm:$0xf] %vm1616_vm2, %v1612_v8  ;;  %v1186_v0 = vadd.f32 %v3356_v44, %v1185_v63  ;;  %v1073_v15 = vpop.f32.mrf.mxu0 }
 0x20e   : > { %v1314_v11 = vpop.f32.mrf.mxu1  ;;  %1660 = vst.msk [vmem:[%s3035_s12 + $0xac] sm:$0xf] %vm1616_vm2, %v1567_v10  ;;  %v1074_v16 = vadd.f32 %v3356_v44, %v1073_v15 }
 0x20f   : > { %v1425_v17 = vadd.f32 %v1424_v7, %v1186_v0 }
 0x210   : > { %v1313_v5 = vadd.f32 %v1312_v1, %v1074_v16 }
 0x211   : > { %v1521_v6 = vmax.f32 %v1425_v17, 0.0 }
 0x212   : > { %v1476_v20 = vmax.f32 %v1313_v5, 0.0 }
 0x213   : > { %v1613_v12 = vpack.c.bf16 %v1521_v6, %v1521_v6 }
 0x214   : > { %v1568_v22 = vpack.c.bf16 %v1476_v20, %v1476_v20  ;;  %v1188_v13 = vpop.f32.mrf.mxu2 }
 0x215   : > { %1706 = vst.msk [vmem:[%s3035_s12 + $0x164] sm:$0xf] %vm1616_vm2, %v1613_v12  ;;  %v1189_v14 = vadd.f32 %v3356_v44, %v1188_v13  ;;  %v1075_v29 = vpop.f32.mrf.mxu0 }
 0x216   : > { %v1317_v28 = vpop.f32.mrf.mxu1  ;;  %1661 = vst.msk [vmem:[%s3035_s12 + $0xb0] sm:$0xf] %vm1616_vm2, %v1568_v22  ;;  %v1076_v18 = vadd.f32 %v3356_v44, %v1075_v29 }
 0x217   : > { %v1318_v30 = vadd.f32 %v1317_v28, %v1079_v21  ;;  %v1428_v19 = vadd.f32 %v1427_v24, %v1189_v14 }
 0x218   : > { %v1315_v9 = vadd.f32 %v1314_v11, %v1076_v18 }
 0x219   : > { %v1478_v25 = vmax.f32 %v1318_v30, 0.0  ;;  %v1522_v34 = vmax.f32 %v1428_v19, 0.0 }
 0x21a   : > { %v1477_v35 = vmax.f32 %v1315_v9, 0.0 }
 0x21b   : > { %v1570_v31 = vpack.c.bf16 %v1478_v25, %v1478_v25  ;;  %v1614_v36 = vpack.c.bf16 %v1522_v34, %v1522_v34 }
 0x21c   : > { %v1569_v27 = vpack.c.bf16 %v1477_v35, %v1477_v35  ;;  %v1190_v40 = vpop.f32.mrf.mxu2 }
 0x21d   : > { %1663 = vst.msk [vmem:[%s3035_s12 + $0xb8] sm:$0xf] %vm1616_vm2, %v1570_v31  ;;  %v1191_v41 = vadd.f32 %v3356_v44, %v1190_v40 }
 0x21e   : > { %1707 = vst.msk [vmem:[%s3035_s12 + $0x168] sm:$0xf] %vm1616_vm2, %v1614_v36  ;;  %v1319_v42 = vpop.f32.mrf.mxu1 }
 0x21f   : > { %1662 = vst.msk [vmem:[%s3035_s12 + $0xb4] sm:$0xf] %vm1616_vm2, %v1569_v27  ;;  %v1320_v32 = vadd.f32 %v1319_v42, %v1081_v26  ;;  %v1430_v33 = vadd.f32 %v1429_v43, %v1191_v41 }
 0x221   : > { %v1479_v46 = vmax.f32 %v1320_v32, 0.0  ;;  %v1523_v37 = vmax.f32 %v1430_v33, 0.0 }
 0x222   : > { %1715 = sbr.rel (!%p2877_p4) target bundleno = 615 (0x267), region = 36 }
 0x223   : > { %v1571_v47 = vpack.c.bf16 %v1479_v46, %v1479_v46  ;;  %v1615_v48 = vpack.c.bf16 %v1523_v37, %v1523_v37 }
 0x225   : > { %1664 = vst.msk [vmem:[%s3035_s12 + $0xbc] sm:$0xf] %vm1616_vm2, %v1571_v47 }
 0x226   : > { %1708 = vst.msk [vmem:[%s3035_s12 + $0x16c] sm:$0xf] %vm1616_vm2, %v1615_v48 }
 0x227   : > { %s3689_s14 = smov (!%p1718_p8, %s1717_s14), 92 }
 0x228   : > { %s2517_s23 = sshll.u32 %s3689_s14, 2 }
 0x229   : > { %p2520_p9 = scmp.eq.s32.totalorder %s2517_s23, 0 }
 0x22a   : > { %s3546_s24 = sshrl.u32 (!%p2520_p9), %s3689_s14, 5 }
 0x22b   : > { %1726 = sbr.rel (%p2520_p9) target bundleno = 615 (0x267), region = 40  ;;  %p2521_p10 = scmp.le.s32.totalorder (!%p2520_p9), %s3546_s24, 0 }
 0x230   : > { %2005 = sbr.rel (%p2521_p10) target bundleno = 598 (0x256), region = 112  ;;  %s3680_s15 = smov (!%p2521_p10), %s3540_s22 }
 0x231   : > { %s3681_s20 = smov (!%p2521_p10), %s3035_s12  ;;  %s3555_s25 = smov (!%p2521_p10), 0  }
 0x232   : > { %s3557_s26 = smov (!%p2521_p10), 0  }
 0x235 LB: >> { %v1743_v23 = vld [vmem:[%s2806_s20] sm:$0xf]  ;;  %v1745_v44 = vld [vmem:[%s2806_s20 + $0x4] sm:$0xf]  ;;  %v1747_v49 = vld [vmem:[%s2806_s20 + $0x8] sm:$0xf]  ;;  %s2814_s26 = sphi %s3557_s26, %s1737_s26   ;;  %s2810_s25 = sphi %s3555_s25, %s3684_s25   ;;  %s2806_s20 = sphi %s3681_s20, %s3683_s20   ;;  %s2802_s15 = sphi %s3680_s15, %s3682_s15  }
 0x236   : >> { %1744 = vst [vmem:[%s2802_s15] sm:$0xf] %v1743_v23  ;;  %v1749_v38 = vld [vmem:[%s2806_s20 + $0xc] sm:$0xf]  ;;  %v1751_v39 = vld [vmem:[%s2806_s20 + $0x10] sm:$0xf]  ;;  %s1807_s27 = sadd.s32 1, %s2810_s25 }
 0x237   : >> { %1746 = vst [vmem:[%s2802_s15 + $0x4] sm:$0xf] %v1745_v44  ;;  %v1753_v52 = vld [vmem:[%s2806_s20 + $0x14] sm:$0xf]  ;;  %v1755_v53 = vld [vmem:[%s2806_s20 + $0x18] sm:$0xf]  ;;  %p1808_p11 = scmp.ge.s32.totalorder %s1807_s27, %s3546_s24 }
 0x238   : >> { %1748 = vst [vmem:[%s2802_s15 + $0x8] sm:$0xf] %v1747_v49  ;;  %v1757_v57 = vld [vmem:[%s2806_s20 + $0x1c] sm:$0xf]  ;;  %v1759_v55 = vld [vmem:[%s2806_s20 + $0x20] sm:$0xf] }
 0x239   : >> { %1750 = vst [vmem:[%s2802_s15 + $0xc] sm:$0xf] %v1749_v38  ;;  %v1761_v45 = vld [vmem:[%s2806_s20 + $0x24] sm:$0xf]  ;;  %v1763_v59 = vld [vmem:[%s2806_s20 + $0x28] sm:$0xf] }
 0x23a   : >> { %1752 = vst [vmem:[%s2802_s15 + $0x10] sm:$0xf] %v1751_v39  ;;  %v1765_v60 = vld [vmem:[%s2806_s20 + $0x2c] sm:$0xf]  ;;  %v1767_v61 = vld [vmem:[%s2806_s20 + $0x30] sm:$0xf] }
 0x23b   : >> { %1754 = vst [vmem:[%s2802_s15 + $0x14] sm:$0xf] %v1753_v52  ;;  %v1769_v62 = vld [vmem:[%s2806_s20 + $0x34] sm:$0xf]  ;;  %v1771_v50 = vld [vmem:[%s2806_s20 + $0x38] sm:$0xf] }
 0x23c   : >> { %1756 = vst [vmem:[%s2802_s15 + $0x18] sm:$0xf] %v1755_v53  ;;  %v1773_v51 = vld [vmem:[%s2806_s20 + $0x3c] sm:$0xf]  ;;  %v1775_v1 = vld [vmem:[%s2806_s20 + $0x40] sm:$0xf] }
 0x23d   : >> { %1758 = vst [vmem:[%s2802_s15 + $0x1c] sm:$0xf] %v1757_v57  ;;  %v1777_v54 = vld [vmem:[%s2806_s20 + $0x44] sm:$0xf]  ;;  %s3691_s27 = smov (%p1808_p11, %s1807_s27), 0  ;;  %s1737_s26 = sadd.s32 1, %s2814_s26  }
 0x23e   : >> { %1760 = vst [vmem:[%s2802_s15 + $0x20] sm:$0xf] %v1759_v55  ;;  %v1779_v2 = vld [vmem:[%s2806_s20 + $0x48] sm:$0xf]  ;;  %v1781_v3 = vld [vmem:[%s2806_s20 + $0x4c] sm:$0xf]  ;;  %p1736_p12 = scmp.ge.s32.totalorder %s1737_s26, %s3546_s24  ;;  %s3684_s25 = smov %s3691_s27 }
 0x23f   : >> { %1762 = vst [vmem:[%s2802_s15 + $0x24] sm:$0xf] %v1761_v45  ;;  %s2522_s28 = sshll.u32 %s3691_s27, 7  ;;  %v1783_v4 = vld [vmem:[%s2806_s20 + $0x50] sm:$0xf] }
 0x240   : >> { %1764 = vst [vmem:[%s2802_s15 + $0x28] sm:$0xf] %v1763_v59  ;;  %s3616_s29 = scalar_lea.vmem %s3035_s12, %s2522_s28 [#allocation2]   ;;  %s1813_s30 = scalar_lea.vmem %s3540_s22, %s2522_s28   ;;  %v1785_v56 = vld [vmem:[%s2806_s20 + $0x54] sm:$0xf]  ;;  %v1787_v58 = vld [vmem:[%s2806_s20 + $0x58] sm:$0xf] }
 0x241   : >> { %1766 = vst [vmem:[%s2802_s15 + $0x2c] sm:$0xf] %v1765_v60  ;;  %v1789_v7 = vld [vmem:[%s2806_s20 + $0x5c] sm:$0xf]  ;;  %v1791_v8 = vld [vmem:[%s2806_s20 + $0x60] sm:$0xf] }
 0x242   : >> { %1768 = vst [vmem:[%s2802_s15 + $0x30] sm:$0xf] %v1767_v61  ;;  %v1793_v10 = vld [vmem:[%s2806_s20 + $0x64] sm:$0xf]  ;;  %v1795_v63 = vld [vmem:[%s2806_s20 + $0x68] sm:$0xf] }
 0x243   : >> { %1770 = vst [vmem:[%s2802_s15 + $0x34] sm:$0xf] %v1769_v62  ;;  %v1797_v0 = vld [vmem:[%s2806_s20 + $0x6c] sm:$0xf]  ;;  %v1799_v11 = vld [vmem:[%s2806_s20 + $0x70] sm:$0xf] }
 0x244   : >> { %1772 = vst [vmem:[%s2802_s15 + $0x38] sm:$0xf] %v1771_v50  ;;  %v1801_v15 = vld [vmem:[%s2806_s20 + $0x74] sm:$0xf]  ;;  %v1803_v16 = vld [vmem:[%s2806_s20 + $0x78] sm:$0xf] }
 0x245   : >> { %1774 = vst [vmem:[%s2802_s15 + $0x3c] sm:$0xf] %v1773_v51  ;;  %v1805_v17 = vld [vmem:[%s2806_s20 + $0x7c] sm:$0xf]  ;;  %s3683_s20 = smov %s3616_s29 }
 0x246   : >> { %1776 = vst [vmem:[%s2802_s15 + $0x40] sm:$0xf] %v1775_v1 }
 0x247   : >> { %1778 = vst [vmem:[%s2802_s15 + $0x44] sm:$0xf] %v1777_v54 }
 0x248   : >> { %1780 = vst [vmem:[%s2802_s15 + $0x48] sm:$0xf] %v1779_v2 }
 0x249   : >> { %1782 = vst [vmem:[%s2802_s15 + $0x4c] sm:$0xf] %v1781_v3 }
 0x24a   : >> { %1784 = vst [vmem:[%s2802_s15 + $0x50] sm:$0xf] %v1783_v4 }
 0x24b   : >> { %1786 = vst [vmem:[%s2802_s15 + $0x54] sm:$0xf] %v1785_v56 }
 0x24c   : >> { %1788 = vst [vmem:[%s2802_s15 + $0x58] sm:$0xf] %v1787_v58 }
 0x24d   : >> { %1790 = vst [vmem:[%s2802_s15 + $0x5c] sm:$0xf] %v1789_v7 }
 0x24e   : >> { %1792 = vst [vmem:[%s2802_s15 + $0x60] sm:$0xf] %v1791_v8 }
 0x24f   : >> { %1794 = vst [vmem:[%s2802_s15 + $0x64] sm:$0xf] %v1793_v10 }
 0x250   : >> { %1796 = vst [vmem:[%s2802_s15 + $0x68] sm:$0xf] %v1795_v63 }
 0x251   : >> { %1798 = vst [vmem:[%s2802_s15 + $0x6c] sm:$0xf] %v1797_v0  ;;  %1739 = sbr.rel (!%p1736_p12) target bundleno = 565 (0x235), region = 118 }
 0x252   : >> { %1800 = vst [vmem:[%s2802_s15 + $0x70] sm:$0xf] %v1799_v11 }
 0x253   : >> { %1802 = vst [vmem:[%s2802_s15 + $0x74] sm:$0xf] %v1801_v15 }
 0x254   : >> { %1804 = vst [vmem:[%s2802_s15 + $0x78] sm:$0xf] %v1803_v16 }
 0x255   : >> { %1806 = vst [vmem:[%s2802_s15 + $0x7c] sm:$0xf] %v1805_v17  ;;  %s3682_s15 = smov %s1813_s30 }
 0x256 PF: > { %s3657_s4 = sand.u32 31, %s3689_s14   ;;  %s2638_s5 = sshll.u32 %s3546_s24, 7 }
 0x257   : > { %s1818_s6 = scalar_lea.vmem %s3035_s12, %s2638_s5 [#allocation2]   ;;  %s1820_s7 = scalar_lea.vmem %s3540_s22, %s2638_s5  }
 0x258   : > { %p2527_p13 = scmp.le.s32.totalorder %s3657_s4, 0 }
 0x259   : > { %s2816_s8 = smov (!%p2527_p13), %s1820_s7   ;;  %s2820_s9 = smov (!%p2527_p13), %s1818_s6  }
 0x25a   : > { %2019 = sbr.rel (%p2527_p13) target bundleno = 615 (0x267), region = 123  ;;  %s2824_s10 = smov (!%p2527_p13), 0  }
 0x25b   : > { %s2828_s11 = smov (!%p2527_p13), 0  }
 0x25f LB: >> { %v1830_v5 = vld [vmem:[%s2822_s9] sm:$0xf]  ;;  %s1832_s14 = sadd.s32 1, %s2826_s10  ;;  %s1824_s11 = sadd.s32 1, %s2830_s11   ;;  %s2830_s11 = sphi %s2828_s11, %s1824_s11   ;;  %s2826_s10 = sphi %s2824_s10, %s2825_s10   ;;  %s2822_s9 = sphi %s2820_s9, %s1837_s9   ;;  %s2818_s8 = sphi %s2816_s8, %s1838_s8  }
 0x260   : >> { %1831 = vst [vmem:[%s2818_s8] sm:$0xf] %v1830_v5  ;;  %p1833_p0 = scmp.ge.s32.totalorder %s1832_s14, %s3657_s4  ;;  %p1823_p1 = scmp.ge.s32.totalorder %s1824_s11, %s3657_s4 }
 0x262   : >> { %s3693_s14 = smov (%p1833_p0, %s1832_s14), 0  ;;  %1826 = sbr.rel (!%p1823_p1) target bundleno = 607 (0x25f), region = 129 }
 0x263   : >> { %s2528_s12 = sshll.u32 %s3693_s14, 2  ;;  %s2825_s10 = smov %s3693_s14  }
 0x264   : >> { %s1837_s9 = scalar_lea.vmem %s1818_s6, %s2528_s12 [#allocation2]   ;;  %s1838_s8 = scalar_lea.vmem %s1820_s7, %s2528_s12  }
 0x267 PF: > { %p10_p2 = scmp.ge.s32.totalorder %s2867_s16, 4   ;;  %s3685_s12 = smov %s2794_s13 }
 0x268   : > { %s3686_s13 = smov %s2875_s19  ;;  %s3687_s14 = smov %s2867_s16 }
 0x269   :  { %12 = sbr.rel (!%p10_p2) target bundleno = 2 (0x2), region = 140 }

// kernel: siamrpn_forward.11
= control target key start
LH: loop header
LB: loop body
LE: loop exit
PB: predicated region body
PF: predicated region fallthrough
CT: control target
= control target key end

     0   :  { %s1181_s12 = smov 0   ;;  %s1183_s13 = smov 0   ;;  %s1443_s0 = inlined_call_operand.vmem [shape: bf16[242,144], index: 0, kind: input, shape index: {}]   ;;  %s1444_s1 = inlined_call_operand.vmem [shape: bf16[144,24], index: 1, kind: input, shape index: {}]   ;;  %s1445_s2 = inlined_call_operand.vmem [shape: f32[1,24], index: 2, kind: input, shape index: {}]   ;;  %s1446_s3 = inlined_call_operand.vmem [shape: bf16[242,24], index: 3, kind: output, shape index: {}]  }
   0x1   :  { %s1185_s14 = smov 0  }
   0x2 LB: > { %s1194_s15 = sadd.s32 4294967295, %s1127_s14   ;;  %s1196_s16 = sadd.s32 1, %s1127_s14   ;;  %s1127_s14 = sphi %s1185_s14, %s1455_s14   ;;  %s1123_s13 = sphi %s1183_s13, %s1454_s13   ;;  %s1119_s12 = sphi %s1181_s12, %s1453_s12  }
   0x3   : > { %s85_s17 = ssub.s32 %s1127_s14, %s1196_s16  ;;  %s88_s18 = sadd.s32 1, %s1123_s13 }
   0x4   : > { %p86_p0 = scmp.eq.s32.totalorder %s85_s17, 0  ;;  %p98_p1 = scmp.ne.s32.totalorder %s1123_s13, %s1119_s12 }
   0x5   : > { %p99_p2 = scmp.eq.s32.totalorder %s1194_s15, 1  ;;  %p816_p3 = scmp.ge.s32.totalorder %s1127_s14, 1 }
   0x6   : > { %s1204_s19 = scalar_select %p86_p0, %s1123_s13, %s88_s18  }
   0x7   : > { %p1206_p4 = por %p99_p2, %p98_p1  ;;  %p149_p5 = scmp.lt.s32.totalorder %s1127_s14, 3 }
   0x9   : > { %p150_p6 = pnand %p816_p3, %p149_p5 }
   0xa   : > { %s1217_s25 = sshll.u32 (!%p150_p6), %s1194_s15, 4  ;;  %s175_s27 = sand.u32 (!%p150_p6), 1, %s1119_s12  }
   0xb   : > { %153 = sbr.rel (%p150_p6) target bundleno = 293 (0x125), region = 32  ;;  %p184_p7 = scmp.lt.s32.totalorder (!%p150_p6), %s1217_s25, 30 }
  0x10   : > { %v970_v0 = vld [vmem:[%s1444_s1 + $0x38] sm:$0xff]  ;;  %v971_v1 = vld [vmem:[%s1444_s1 + $0x40] sm:$0xff]  ;;  %v969_v2 = vld [vmem:[%s1444_s1 + $0x30] sm:$0xff]  ;;  %s185_s28 = scalar_select %p184_p7, %s1217_s25, 30  ;;  %vm365_vm0 = vcmask 130048   ;;  %vm520_vm1 = vcmask 191488  }
  0x11   : > { %390 = vmatpush.bf16.msra.mxu0 %v970_v0  ;;  %975 = vmatpush.bf16.msra.mxu2 %v970_v0  ;;  %v968_v3 = vld [vmem:[%s1444_s1 + $0x28] sm:$0xff]  ;;  %v967_v7 = vld [vmem:[%s1444_s1 + $0x20] sm:$0xff]  ;;  %v966_v11 = vld [vmem:[%s1444_s1 + $0x18] sm:$0xff]  ;;  %s545_s12 = ssub.s32 (%p1206_p4), 31, %s1217_s25  ;;  %s972_s30 = sshll.u32 (%p1206_p4), %s1194_s15, 6 }
  0x12   : > { %446 = vmatpush.bf16.msra.mxu1 %v971_v1  ;;  %983 = vmatpush.bf16.msra.mxu3 %v971_v1  ;;  %s946_s29 = sshll.u32 %s185_s28, 3  ;;  %v965_v12 = vld [vmem:[%s1444_s1 + $0x10] sm:$0xff]  ;;  %v964_v16 = vld [vmem:[%s1444_s1 + $0x8] sm:$0xff]  ;;  %v963_v19 = vld [vmem:[%s1444_s1] sm:$0xff]  ;;  %s817_s28 = sshll.u32 %s175_s27, 6 }
  0x13   : > { %s1227_s5 = scalar_lea.vmem %s1443_s0, %s946_s29  ;;  %v1290_v60 = vld [vmem:[%s1445_s2] ss:$0 sm:$0xff]  ;;  %s1294_s29 = scalar_lea.vmem [#allocation2], %s817_s28  }
  0x14   : > { %v947_v4 = vld [vmem:[%s1227_s5 + $0x4] sm:$0xf]  ;;  %v825_v5 = vld [vmem:[%s1227_s5 + $0x8] sm:$0xf0]  ;;  %v957_v8 = vld [vmem:[%s1227_s5 + $0x54] sm:$0xf]  ;;  %s1350_s6 = scalar_lea.vmem (%p1206_p4), %s1446_s3, %s972_s30  }
  0x15   : > { %391 = vmatpush.bf16.msra.mxu0 %v969_v2  ;;  %976 = vmatpush.bf16.msra.mxu2 %v969_v2  ;;  %v828_v6 = vor.u32 %v947_v4, %v825_v5  ;;  %v865_v9 = vld [vmem:[%s1227_s5 + $0x58] sm:$0xf0]  ;;  %v949_v13 = vld [vmem:[%s1227_s5 + $0x14] sm:$0xf]  ;;  %v959_v17 = vld [vmem:[%s1227_s5 + $0x64] sm:$0xf] }
  0x16   : > { %v868_v10 = vor.u32 %v957_v8, %v865_v9  ;;  %v833_v14 = vld [vmem:[%s1227_s5 + $0x18] sm:$0xf0]  ;;  %v873_v18 = vld [vmem:[%s1227_s5 + $0x68] sm:$0xf0]  ;;  %v823_v20 = vld [vmem:[%s1227_s5] sm:$0xf] }
  0x17   : > { %921 = vmatmul.msk.bf16.vlgmr.msra.gmra.mxu1 %vm365_vm0, %v828_v6  ;;  %v836_v15 = vor.u32 %v949_v13, %v833_v14  ;;  %v948_v21 = vld [vmem:[%s1227_s5 + $0x4] sm:$0xf0]  ;;  %v876_v22 = vor.u32 %v959_v17, %v873_v18  ;;  %v855_v23 = vld [vmem:[%s1227_s5 + $0x40] sm:$0xf]  ;;  %v951_v27 = vld [vmem:[%s1227_s5 + $0x24] sm:$0xf] }
  0x18   : > { %926 = vmatmul.msk.bf16.vlgmr.msra.gmra.mxu3 %vm365_vm0, %v868_v10  ;;  %v956_v24 = vld [vmem:[%s1227_s5 + $0x44] sm:$0xf0]  ;;  %v824_v25 = vor.u32 %v948_v21, %v823_v20  ;;  %v841_v28 = vld [vmem:[%s1227_s5 + $0x28] sm:$0xf0]  ;;  %v961_v30 = vld [vmem:[%s1227_s5 + $0x74] sm:$0xf] }
  0x19   : > { %392 = vmatpush.bf16.msra.mxu0 %v968_v3  ;;  %977 = vmatpush.bf16.msra.mxu2 %v968_v3  ;;  %v856_v26 = vor.u32 %v956_v24, %v855_v23  ;;  %v844_v29 = vor.u32 %v951_v27, %v841_v28  ;;  %v881_v31 = vld [vmem:[%s1227_s5 + $0x78] sm:$0xf0]  ;;  %v831_v32 = vld [vmem:[%s1227_s5 + $0x10] sm:$0xf]  ;;  %v950_v33 = vld [vmem:[%s1227_s5 + $0x14] sm:$0xf0] }
  0x1a   : > { %v884_v34 = vor.u32 %v961_v30, %v881_v31  ;;  %v863_v35 = vld [vmem:[%s1227_s5 + $0x50] sm:$0xf]  ;;  %v958_v36 = vld [vmem:[%s1227_s5 + $0x54] sm:$0xf0]  ;;  %v832_v37 = vor.u32 %v950_v33, %v831_v32  ;;  %v953_v39 = vld [vmem:[%s1227_s5 + $0x34] sm:$0xf] }
  0x1b   : > { %v864_v38 = vor.u32 %v958_v36, %v863_v35  ;;  %v849_v40 = vld [vmem:[%s1227_s5 + $0x38] sm:$0xf0]  ;;  %v839_v42 = vld [vmem:[%s1227_s5 + $0x20] sm:$0xf]  ;;  %v952_v43 = vld [vmem:[%s1227_s5 + $0x24] sm:$0xf0] }
  0x1c   : > { %v852_v41 = vor.u32 %v953_v39, %v849_v40  ;;  %v871_v44 = vld [vmem:[%s1227_s5 + $0x60] sm:$0xf]  ;;  %v960_v45 = vld [vmem:[%s1227_s5 + $0x64] sm:$0xf0]  ;;  %v840_v46 = vor.u32 %v952_v43, %v839_v42  ;;  %v955_v48 = vld [vmem:[%s1227_s5 + $0x44] sm:$0xf] }
  0x1d   : > { %393 = vmatpush.bf16.msra.mxu0 %v967_v7  ;;  %978 = vmatpush.bf16.msra.mxu2 %v967_v7  ;;  %v872_v47 = vor.u32 %v960_v45, %v871_v44  ;;  %v857_v49 = vld [vmem:[%s1227_s5 + $0x48] sm:$0xf0]  ;;  %v847_v51 = vld [vmem:[%s1227_s5 + $0x30] sm:$0xf]  ;;  %v954_v52 = vld [vmem:[%s1227_s5 + $0x34] sm:$0xf0] }
  0x1e   : > { %v860_v50 = vor.u32 %v955_v48, %v857_v49  ;;  %v879_v53 = vld [vmem:[%s1227_s5 + $0x70] sm:$0xf]  ;;  %v962_v54 = vld [vmem:[%s1227_s5 + $0x74] sm:$0xf0]  ;;  %v848_v55 = vor.u32 %v954_v52, %v847_v51  ;;  %p546_p8 = scmp.lt.s32.totalorder (%p1206_p4), %s545_s12, 16 }
  0x1f   : > { %v880_v56 = vor.u32 %v962_v54, %v879_v53 }
  0x21   : > { %394 = vmatpush.bf16.msra.mxu0 %v966_v11  ;;  %979 = vmatpush.bf16.msra.mxu2 %v966_v11 }
  0x25   : > { %395 = vmatpush.bf16.msra.mxu0 %v965_v12  ;;  %980 = vmatpush.bf16.msra.mxu2 %v965_v12 }
  0x27   : > { %922 = vmatmul.msk.bf16.gmra.mxu1 %vm365_vm0, %v836_v15 }
  0x28   : > { %927 = vmatmul.msk.bf16.gmra.mxu3 %vm365_vm0, %v876_v22 }
  0x29   : > { %396 = vmatpush.bf16.msra.mxu0 %v964_v16  ;;  %981 = vmatpush.bf16.msra.mxu2 %v964_v16 }
  0x2d   : > { %397 = vmatpush.bf16.msra.mxu0 %v963_v19  ;;  %982 = vmatpush.bf16.msra.mxu2 %v963_v19 }
  0x30   : > { %398 = vmatmul.bf16.vlgmr.msra.gmra.mxu0 %v824_v25  ;;  %418 = vmatmul.bf16.vlgmr.msra.gmra.mxu2 %v856_v26 }
  0x37   : > { %923 = vmatmul.msk.bf16.gmra.mxu1 %vm365_vm0, %v844_v29 }
  0x38   : > { %928 = vmatmul.msk.bf16.gmra.mxu3 %vm365_vm0, %v884_v34 }
  0x40   : > { %403 = vmatmul.bf16.gmra.mxu0 %v832_v37  ;;  %423 = vmatmul.bf16.gmra.mxu2 %v864_v38 }
  0x47   : > { %924 = vmatmul.msk.bf16.gmra.mxu1 %vm365_vm0, %v852_v41 }
  0x50   : > { %408 = vmatmul.bf16.gmra.mxu0 %v840_v46  ;;  %428 = vmatmul.bf16.gmra.mxu2 %v872_v47 }
  0x57   : > { %925 = vmatmul.msk.bf16.gmra.mxu1 %vm365_vm0, %v860_v50 }
  0x60   : > { %413 = vmatmul.bf16.gmra.mxu0 %v848_v55  ;;  %433 = vmatmul.bf16.gmra.mxu2 %v880_v56 }
  0x94   : > { %v448_v57 = vpop.f32.mrf.mxu1 }
  0x9b   : > { %v473_v11 = vpop.f32.mrf.mxu3 }
  0x9c   : > { %v450_v58 = vpop.f32.mrf.mxu1 }
  0xa3   : > { %v475_v23 = vpop.f32.mrf.mxu3 }
  0xa4   : > { %v453_v59 = vpop.f32.mrf.mxu1 }
  0xab   : > { %v478_v37 = vpop.f32.mrf.mxu3 }
  0xac   : > { %v455_v63 = vpop.f32.mrf.mxu1 }
  0xad   : > { %v399_v61 = vpop.f32.mrf.mxu0 }
  0xae   : > { %v400_v62 = vadd.f32 %v1290_v60, %v399_v61 }
  0xb0   : > { %v449_v0 = vadd.f32 %v448_v57, %v400_v62 }
  0xb2   : > { %v488_v1 = vmax.f32 %v449_v0, 0.0 }
  0xb3   : > { %v419_v3 = vpop.f32.mrf.mxu2  ;;  %v480_v54 = vpop.f32.mrf.mxu3 }
  0xb4   : > { %v504_v2 = vpack.c.bf16 %v488_v1, %v488_v1  ;;  %v458_v6 = vpop.f32.mrf.mxu1  ;;  %v420_v43 = vadd.f32 %v1290_v60, %v419_v3 }
  0xb5   : > { %v401_v4 = vpop.f32.mrf.mxu0 }
  0xb6   : > { %521 = vst.msk [vmem:[%s1294_s29] sm:$0xf] %vm520_vm1, %v504_v2  ;;  %v402_v5 = vadd.f32 %v1290_v60, %v401_v4 }
  0xb8   : > { %v451_v7 = vadd.f32 %v450_v58, %v402_v5 }
  0xba   : > { %v489_v8 = vmax.f32 %v451_v7, 0.0 }
  0xbb   : > { %v421_v10 = vpop.f32.mrf.mxu2 }
  0xbc   : > { %v505_v9 = vpack.c.bf16 %v489_v8, %v489_v8  ;;  %v460_v14 = vpop.f32.mrf.mxu1 }
  0xbd   : > { %v404_v12 = vpop.f32.mrf.mxu0 }
  0xbe   : > { %522 = vst.msk [vmem:[%s1294_s29 + $0x4] sm:$0xf] %vm520_vm1, %v505_v9  ;;  %v405_v13 = vadd.f32 %v1290_v60, %v404_v12 }
  0xc0   : > { %v454_v15 = vadd.f32 %v453_v59, %v405_v13  ;;  %v422_v59 = vadd.f32 %v1290_v60, %v421_v10  ;;  %v483_v10 = vpop.f32.mrf.mxu3 }
  0xc2   : > { %v490_v16 = vmax.f32 %v454_v15, 0.0 }
  0xc3   : > { %v424_v18 = vpop.f32.mrf.mxu2 }
  0xc4   : > { %v506_v17 = vpack.c.bf16 %v490_v16, %v490_v16  ;;  %v425_v19 = vadd.f32 %v1290_v60, %v424_v18  ;;  %v463_v22 = vpop.f32.mrf.mxu1 }
  0xc5   : > { %v406_v20 = vpop.f32.mrf.mxu0 }
  0xc6   : > { %523 = vst.msk [vmem:[%s1294_s29 + $0x8] sm:$0xf] %vm520_vm1, %v506_v17  ;;  %v407_v21 = vadd.f32 %v1290_v60, %v406_v20  ;;  %v474_v24 = vadd.f32 %v473_v11, %v425_v19 }
  0xc8   : > { %v456_v25 = vadd.f32 %v455_v63, %v407_v21  ;;  %v498_v26 = vmax.f32 %v474_v24, 0.0 }
  0xca   : > { %v491_v27 = vmax.f32 %v456_v25, 0.0  ;;  %v514_v28 = vpack.c.bf16 %v498_v26, %v498_v26 }
  0xcb   : > { %v426_v30 = vpop.f32.mrf.mxu2 }
  0xcc   : > { %v507_v29 = vpack.c.bf16 %v491_v27, %v491_v27  ;;  %531 = vst.msk [vmem:[%s1294_s29 + $0x28] sm:$0xf] %vm520_vm1, %v514_v28  ;;  %v427_v31 = vadd.f32 %v1290_v60, %v426_v30  ;;  %v465_v34 = vpop.f32.mrf.mxu1 }
  0xcd   : > { %v409_v32 = vpop.f32.mrf.mxu0 }
  0xce   : > { %524 = vst.msk [vmem:[%s1294_s29 + $0xc] sm:$0xf] %vm520_vm1, %v507_v29  ;;  %v410_v33 = vadd.f32 %v1290_v60, %v409_v32  ;;  %v476_v35 = vadd.f32 %v475_v23, %v427_v31  ;;  %v485_v23 = vpop.f32.mrf.mxu3 }
  0xd0   : > { %v459_v36 = vadd.f32 %v458_v6, %v410_v33  ;;  %v499_v38 = vmax.f32 %v476_v35, 0.0 }
  0xd2   : > { %v492_v39 = vmax.f32 %v459_v36, 0.0  ;;  %v515_v40 = vpack.c.bf16 %v499_v38, %v499_v38 }
  0xd3   : > { %v429_v42 = vpop.f32.mrf.mxu2 }
  0xd4   : > { %v508_v41 = vpack.c.bf16 %v492_v39, %v492_v39  ;;  %532 = vst.msk [vmem:[%s1294_s29 + $0x2c] sm:$0xf] %vm520_vm1, %v515_v40  ;;  %v430_v44 = vadd.f32 %v1290_v60, %v429_v42  ;;  %v468_v47 = vpop.f32.mrf.mxu1 }
  0xd5   : > { %v411_v45 = vpop.f32.mrf.mxu0  ;;  %v469_v49 = vadd.f32 %v468_v47, %v420_v43 }
  0xd6   : > { %525 = vst.msk [vmem:[%s1294_s29 + $0x10] sm:$0xf] %vm520_vm1, %v508_v41  ;;  %v412_v46 = vadd.f32 %v1290_v60, %v411_v45  ;;  %v479_v48 = vadd.f32 %v478_v37, %v430_v44 }
  0xd7   : > { %v496_v52 = vmax.f32 %v469_v49, 0.0 }
  0xd8   : > { %v461_v50 = vadd.f32 %v460_v14, %v412_v46  ;;  %v500_v51 = vmax.f32 %v479_v48, 0.0 }
  0xd9   : > { %v512_v56 = vpack.c.bf16 %v496_v52, %v496_v52 }
  0xda   : > { %v493_v53 = vmax.f32 %v461_v50, 0.0  ;;  %v516_v55 = vpack.c.bf16 %v500_v51, %v500_v51 }
  0xdb   : > { %v431_v58 = vpop.f32.mrf.mxu2  ;;  %529 = vst.msk [vmem:[%s1294_s29 + $0x20] sm:$0xf] %vm520_vm1, %v512_v56 }
  0xdc   : > { %v509_v57 = vpack.c.bf16 %v493_v53, %v493_v53  ;;  %533 = vst.msk [vmem:[%s1294_s29 + $0x30] sm:$0xf] %vm520_vm1, %v516_v55  ;;  %v432_v61 = vadd.f32 %v1290_v60, %v431_v58  ;;  %v470_v0 = vpop.f32.mrf.mxu1 }
  0xdd   : > { %v414_v62 = vpop.f32.mrf.mxu0  ;;  %v471_v2 = vadd.f32 %v470_v0, %v422_v59 }
  0xde   : > { %526 = vst.msk [vmem:[%s1294_s29 + $0x14] sm:$0xf] %vm520_vm1, %v509_v57  ;;  %v415_v63 = vadd.f32 %v1290_v60, %v414_v62  ;;  %v481_v1 = vadd.f32 %v480_v54, %v432_v61 }
  0xdf   : > { %v497_v5 = vmax.f32 %v471_v2, 0.0 }
  0xe0   : > { %v464_v3 = vadd.f32 %v463_v22, %v415_v63  ;;  %v501_v4 = vmax.f32 %v481_v1, 0.0 }
  0xe1   : > { %v513_v8 = vpack.c.bf16 %v497_v5, %v497_v5 }
  0xe2   : > { %v494_v6 = vmax.f32 %v464_v3, 0.0  ;;  %v517_v7 = vpack.c.bf16 %v501_v4, %v501_v4 }
  0xe3   : > { %v434_v11 = vpop.f32.mrf.mxu2  ;;  %530 = vst.msk [vmem:[%s1294_s29 + $0x24] sm:$0xf] %vm520_vm1, %v513_v8 }
  0xe4   : > { %v510_v9 = vpack.c.bf16 %v494_v6, %v494_v6  ;;  %534 = vst.msk [vmem:[%s1294_s29 + $0x34] sm:$0xf] %vm520_vm1, %v517_v7  ;;  %v435_v12 = vadd.f32 %v1290_v60, %v434_v11 }
  0xe5   : > { %v416_v13 = vpop.f32.mrf.mxu0 }
  0xe6   : > { %527 = vst.msk [vmem:[%s1294_s29 + $0x18] sm:$0xf] %vm520_vm1, %v510_v9  ;;  %v417_v14 = vadd.f32 %v1290_v60, %v416_v13  ;;  %v484_v15 = vadd.f32 %v483_v10, %v435_v12 }
  0xe8   : > { %v466_v16 = vadd.f32 %v465_v34, %v417_v14  ;;  %v502_v17 = vmax.f32 %v484_v15, 0.0 }
  0xea   : > { %v495_v18 = vmax.f32 %v466_v16, 0.0  ;;  %v518_v19 = vpack.c.bf16 %v502_v17, %v502_v17 }
  0xeb   : > { %v436_v21 = vpop.f32.mrf.mxu2 }
  0xec   : > { %v511_v20 = vpack.c.bf16 %v495_v18, %v495_v18  ;;  %535 = vst.msk [vmem:[%s1294_s29 + $0x38] sm:$0xf] %vm520_vm1, %v518_v19  ;;  %v437_v22 = vadd.f32 %v1290_v60, %v436_v21 }
  0xee   : > { %528 = vst.msk [vmem:[%s1294_s29 + $0x1c] sm:$0xf] %vm520_vm1, %v511_v20  ;;  %v486_v24 = vadd.f32 %v485_v23, %v437_v22 }
  0xf0   : > { %v503_v25 = vmax.f32 %v486_v24, 0.0  ;;  %543 = sbr.rel (!%p1206_p4) target bundleno = 293 (0x125), region = 36 }
  0xf2   : > { %v519_v26 = vpack.c.bf16 %v503_v25, %v503_v25 }
  0xf4   : > { %536 = vst.msk [vmem:[%s1294_s29 + $0x3c] sm:$0xf] %vm520_vm1, %v519_v26 }
  0xf5   : > { %s1457_s12 = smov (!%p546_p8, %s545_s12), 16 }
  0xf6   : > { %s931_s7 = sshll.u32 %s1457_s12, 2 }
  0xf7   : > { %p934_p9 = scmp.eq.s32.totalorder %s931_s7, 0 }
  0xf8   : > { %s1356_s8 = sshrl.u32 (!%p934_p9), %s1457_s12, 4 }
  0xf9   : > { %554 = sbr.rel (%p934_p9) target bundleno = 293 (0x125), region = 40  ;;  %p935_p10 = scmp.le.s32.totalorder (!%p934_p9), %s1356_s8, 0 }
  0xfe   : > { %769 = sbr.rel (%p935_p10) target bundleno = 276 (0x114), region = 112  ;;  %s1448_s15 = smov (!%p935_p10), %s1350_s6 }
  0xff   : > { %s1449_s20 = smov (!%p935_p10), %s1294_s29  ;;  %s1365_s25 = smov (!%p935_p10), 0  }
 0x100   : > { %s1367_s9 = smov (!%p935_p10), 0  }
 0x103 LB: >> { %v571_v60 = vld [vmem:[%s1135_s20] sm:$0xf]  ;;  %v573_v27 = vld [vmem:[%s1135_s20 + $0x4] sm:$0xf]  ;;  %v575_v28 = vld [vmem:[%s1135_s20 + $0x8] sm:$0xf]  ;;  %s1143_s9 = sphi %s1367_s9, %s565_s9   ;;  %s1139_s25 = sphi %s1365_s25, %s1452_s25   ;;  %s1135_s20 = sphi %s1449_s20, %s1451_s20   ;;  %s1131_s15 = sphi %s1448_s15, %s1450_s15  }
 0x104   : >> { %572 = vst [vmem:[%s1131_s15] sm:$0xf] %v571_v60  ;;  %v577_v29 = vld [vmem:[%s1135_s20 + $0xc] sm:$0xf]  ;;  %s603_s10 = sadd.s32 1, %s1139_s25  ;;  %v579_v30 = vld [vmem:[%s1135_s20 + $0x10] sm:$0xf] }
 0x105   : >> { %574 = vst [vmem:[%s1131_s15 + $0x4] sm:$0xf] %v573_v27  ;;  %v581_v31 = vld [vmem:[%s1135_s20 + $0x14] sm:$0xf]  ;;  %p604_p11 = scmp.ge.s32.totalorder %s603_s10, %s1356_s8  ;;  %v583_v32 = vld [vmem:[%s1135_s20 + $0x18] sm:$0xf] }
 0x106   : >> { %576 = vst [vmem:[%s1131_s15 + $0x8] sm:$0xf] %v575_v28  ;;  %v585_v33 = vld [vmem:[%s1135_s20 + $0x1c] sm:$0xf]  ;;  %v587_v34 = vld [vmem:[%s1135_s20 + $0x20] sm:$0xf] }
 0x107   : >> { %578 = vst [vmem:[%s1131_s15 + $0xc] sm:$0xf] %v577_v29  ;;  %v589_v35 = vld [vmem:[%s1135_s20 + $0x24] sm:$0xf]  ;;  %s1459_s10 = smov (%p604_p11, %s603_s10), 0  ;;  %s565_s9 = sadd.s32 1, %s1143_s9  }
 0x108   : >> { %580 = vst [vmem:[%s1131_s15 + $0x10] sm:$0xf] %v579_v30  ;;  %v591_v36 = vld [vmem:[%s1135_s20 + $0x28] sm:$0xf]  ;;  %v593_v37 = vld [vmem:[%s1135_s20 + $0x2c] sm:$0xf]  ;;  %p564_p12 = scmp.ge.s32.totalorder %s565_s9, %s1356_s8  ;;  %s1452_s25 = smov %s1459_s10 }
 0x109   : >> { %582 = vst [vmem:[%s1131_s15 + $0x14] sm:$0xf] %v581_v31  ;;  %s936_s11 = sshll.u32 %s1459_s10, 6  ;;  %v595_v38 = vld [vmem:[%s1135_s20 + $0x30] sm:$0xf] }
 0x10a   : >> { %584 = vst [vmem:[%s1131_s15 + $0x18] sm:$0xf] %v583_v32  ;;  %s608_s14 = scalar_lea.vmem %s1294_s29, %s936_s11 [#allocation2]   ;;  %s609_s17 = scalar_lea.vmem %s1350_s6, %s936_s11   ;;  %v597_v39 = vld [vmem:[%s1135_s20 + $0x34] sm:$0xf]  ;;  %v599_v40 = vld [vmem:[%s1135_s20 + $0x38] sm:$0xf] }
 0x10b   : >> { %586 = vst [vmem:[%s1131_s15 + $0x1c] sm:$0xf] %v585_v33  ;;  %v601_v41 = vld [vmem:[%s1135_s20 + $0x3c] sm:$0xf]  ;;  %s1451_s20 = smov %s608_s14 }
 0x10c   : >> { %588 = vst [vmem:[%s1131_s15 + $0x20] sm:$0xf] %v587_v34 }
 0x10d   : >> { %590 = vst [vmem:[%s1131_s15 + $0x24] sm:$0xf] %v589_v35 }
 0x10e   : >> { %592 = vst [vmem:[%s1131_s15 + $0x28] sm:$0xf] %v591_v36 }
 0x10f   : >> { %594 = vst [vmem:[%s1131_s15 + $0x2c] sm:$0xf] %v593_v37  ;;  %567 = sbr.rel (!%p564_p12) target bundleno = 259 (0x103), region = 118 }
 0x110   : >> { %596 = vst [vmem:[%s1131_s15 + $0x30] sm:$0xf] %v595_v38 }
 0x111   : >> { %598 = vst [vmem:[%s1131_s15 + $0x34] sm:$0xf] %v597_v39 }
 0x112   : >> { %600 = vst [vmem:[%s1131_s15 + $0x38] sm:$0xf] %v599_v40 }
 0x113   : >> { %602 = vst [vmem:[%s1131_s15 + $0x3c] sm:$0xf] %v601_v41  ;;  %s1450_s15 = smov %s609_s17 }
 0x114 PF: > { %s1425_s18 = sand.u32 15, %s1457_s12   ;;  %s973_s21 = sshll.u32 %s1356_s8, 6 }
 0x115   : > { %s614_s22 = scalar_lea.vmem %s1294_s29, %s973_s21 [#allocation2]   ;;  %s616_s23 = scalar_lea.vmem %s1350_s6, %s973_s21  }
 0x116   : > { %p941_p13 = scmp.le.s32.totalorder %s1425_s18, 0 }
 0x117   : > { %s1145_s24 = smov (!%p941_p13), %s616_s23   ;;  %s1149_s26 = smov (!%p941_p13), %s614_s22  }
 0x118   : > { %783 = sbr.rel (%p941_p13) target bundleno = 293 (0x125), region = 123  ;;  %s1153_s27 = smov (!%p941_p13), 0  }
 0x119   : > { %s1157_s28 = smov (!%p941_p13), 0  }
 0x11d LB: >> { %v626_v42 = vld [vmem:[%s1151_s26] sm:$0xf]  ;;  %s628_s12 = sadd.s32 1, %s1155_s27  ;;  %s620_s28 = sadd.s32 1, %s1159_s28   ;;  %s1159_s28 = sphi %s1157_s28, %s620_s28   ;;  %s1155_s27 = sphi %s1153_s27, %s1154_s27   ;;  %s1151_s26 = sphi %s1149_s26, %s633_s26   ;;  %s1147_s24 = sphi %s1145_s24, %s634_s24  }
 0x11e   : >> { %627 = vst [vmem:[%s1147_s24] sm:$0xf] %v626_v42  ;;  %p629_p0 = scmp.ge.s32.totalorder %s628_s12, %s1425_s18  ;;  %p619_p1 = scmp.ge.s32.totalorder %s620_s28, %s1425_s18 }
 0x120   : >> { %s1461_s12 = smov (%p629_p0, %s628_s12), 0  ;;  %622 = sbr.rel (!%p619_p1) target bundleno = 285 (0x11d), region = 129 }
 0x121   : >> { %s942_s29 = sshll.u32 %s1461_s12, 2  ;;  %s1154_s27 = smov %s1461_s12  }
 0x122   : >> { %s633_s26 = scalar_lea.vmem %s614_s22, %s942_s29 [#allocation2]   ;;  %s634_s24 = scalar_lea.vmem %s616_s23, %s942_s29  }
 0x125 PF: > { %p10_p2 = scmp.ge.s32.totalorder %s1196_s16, 4   ;;  %s1453_s12 = smov %s1123_s13 }
 0x126   : > { %s1454_s13 = smov %s1204_s19  ;;  %s1455_s14 = smov %s1196_s16 }
 0x127   :  { %12 = sbr.rel (!%p10_p2) target bundleno = 2 (0x2), region = 140 }

// kernel: siamrpn_forward.12
= control target key start
LH: loop header
LB: loop body
LE: loop exit
PB: predicated region body
PF: predicated region fallthrough
CT: control target
= control target key end

     0   :  { %s1149_s12 = smov 0   ;;  %s1151_s13 = smov 0   ;;  %s1381_s0 = inlined_call_operand.vmem [shape: bf16[162,216], index: 0, kind: input, shape index: {}]   ;;  %s1382_s1 = inlined_call_operand.vmem [shape: bf16[216,24], index: 1, kind: input, shape index: {}]   ;;  %s1383_s2 = inlined_call_operand.vmem [shape: f32[1,24], index: 2, kind: input, shape index: {}]   ;;  %s1384_s3 = inlined_call_operand.vmem [shape: bf16[162,24], index: 3, kind: output, shape index: {}]  }
   0x1   :  { %s1153_s14 = smov 0  }
   0x2 LB: > { %s1162_s15 = sadd.s32 4294967295, %s1095_s14   ;;  %s1164_s16 = sadd.s32 1, %s1095_s14   ;;  %s1095_s14 = sphi %s1153_s14, %s1392_s14   ;;  %s1091_s13 = sphi %s1151_s13, %s1391_s13   ;;  %s1087_s12 = sphi %s1149_s12, %s1390_s12  }
   0x3   : > { %s85_s17 = ssub.s32 %s1095_s14, %s1164_s16  ;;  %s88_s18 = sadd.s32 1, %s1091_s13 }
   0x4   : > { %p86_p0 = scmp.eq.s32.totalorder %s85_s17, 0  ;;  %p98_p1 = scmp.ne.s32.totalorder %s1091_s13, %s1087_s12 }
   0x5   : > { %p99_p2 = scmp.eq.s32.totalorder %s1162_s15, 1  ;;  %p782_p3 = scmp.ge.s32.totalorder %s1095_s14, 1 }
   0x6   : > { %s1172_s19 = scalar_select %p86_p0, %s1091_s13, %s88_s18  }
   0x7   : > { %p1174_p4 = por %p99_p2, %p98_p1  ;;  %p149_p5 = scmp.lt.s32.totalorder %s1095_s14, 3 }
   0x9   : > { %p150_p6 = pnand %p782_p3, %p149_p5 }
   0xa   : > { %s1188_s27 = smul.u32 (!%p150_p6), 12, %s1162_s15  ;;  %s175_s10 = sand.u32 (!%p150_p6), 1, %s1087_s12  }
   0xb   : > { %153 = sbr.rel (%p150_p6) target bundleno = 293 (0x125), region = 32 }
   0xc   : > { %p184_p7 = scmp.lt.s32.totalorder (!%p150_p6), %s1188_s27, 20  ;;  %s944_s11 = smul.u32 (!%p150_p6), 48, %s175_s10 }
   0xe   : > { %s1267_s14 = scalar_lea.vmem (!%p150_p6), [#allocation2], %s944_s11  }
  0x10   : > { %v923_v0 = vld [vmem:[%s1382_s1 + $0x38] sm:$0xff]  ;;  %v239_v1 = vld [vmem:[%s1382_s1 + $0x68] sm:$0xf]  ;;  %vm398_vm0 = vcmask 1043456   ;;  %v922_v3 = vld [vmem:[%s1382_s1 + $0x30] sm:$0xff]  ;;  %s185_s9 = scalar_select %p184_p7, %s1188_s27, 20 }
  0x11   : > { %v351_v2 = vunpack.c.l.b16 %v239_v1  ;;  %402 = vmatpush.bf16.msra.mxu0 %v923_v0  ;;  %930 = vmatpush.bf16.msra.mxu2 %v923_v0  ;;  %v928_v6 = vld [vmem:[%s1382_s1 + $0x60] sm:$0xff]  ;;  %v921_v7 = vld [vmem:[%s1382_s1 + $0x28] sm:$0xff]  ;;  %v927_v8 = vld [vmem:[%s1382_s1 + $0x58] sm:$0xff]  ;;  %vm379_vm1 = vcmask 719872   ;;  %vm504_vm2 = vcmask 191488   ;;  %s525_s12 = ssub.s32 (%p1174_p4), 21, %s1188_s27 }
  0x12   : > { %v920_v9 = vld [vmem:[%s1382_s1 + $0x20] sm:$0xff]  ;;  %v926_v10 = vld [vmem:[%s1382_s1 + $0x50] sm:$0xff]  ;;  %v919_v11 = vld [vmem:[%s1382_s1 + $0x18] sm:$0xff]  ;;  %s903_s18 = sshll.u32 %s185_s9, 3  ;;  %s929_s17 = smul.u32 (%p1174_p4), 48, %s1162_s15 }
  0x13   : > { %v365_v4 = vpack.c.b16 %v351_v2, %v351_v2  ;;  %v925_v12 = vld [vmem:[%s1382_s1 + $0x48] sm:$0xff]  ;;  %v918_v13 = vld [vmem:[%s1382_s1 + $0x10] sm:$0xff]  ;;  %s1219_s28 = scalar_lea.vmem %s1381_s0, %s903_s18  ;;  %v924_v14 = vld [vmem:[%s1382_s1 + $0x40] sm:$0xff]  ;;  %p526_p8 = scmp.lt.s32.totalorder (%p1174_p4), %s525_s12, 12 }
  0x14   : > { %v917_v15 = vld [vmem:[%s1382_s1 + $0x8] sm:$0xff]  ;;  %v904_v16 = vld [vmem:[%s1219_s28 + $0x4] sm:$0xf]  ;;  %v787_v22 = vld [vmem:[%s1219_s28] sm:$0xf]  ;;  %s1311_s22 = scalar_lea.vmem (%p1174_p4), %s1384_s3, %s929_s17  }
  0x15   : > { %v400_v5 = vsel %vm398_vm0, %v365_v4, 0  ;;  %403 = vmatpush.bf16.msra.mxu0 %v922_v3  ;;  %931 = vmatpush.bf16.msra.mxu2 %v922_v3  ;;  %v789_v17 = vld [vmem:[%s1219_s28 + $0x8] sm:$0xf0]  ;;  %v912_v18 = vld [vmem:[%s1219_s28 + $0x44] sm:$0xf] }
  0x16   : > { %443 = vmatpush.bf16.msra.mxu1 %v400_v5  ;;  %938 = vmatpush.bf16.msra.mxu3 %v400_v5  ;;  %v821_v19 = vld [vmem:[%s1219_s28 + $0x48] sm:$0xf0]  ;;  %v792_v20 = vor.u32 %v904_v16, %v789_v17  ;;  %v916_v21 = vld [vmem:[%s1382_s1] sm:$0xff]  ;;  %v905_v23 = vld [vmem:[%s1219_s28 + $0x4] sm:$0xf0] }
  0x17   : > { %v824_v24 = vor.u32 %v912_v18, %v821_v19  ;;  %v811_v25 = vld [vmem:[%s1219_s28 + $0x30] sm:$0xf]  ;;  %v911_v26 = vld [vmem:[%s1219_s28 + $0x34] sm:$0xf0]  ;;  %v788_v27 = vor.u32 %v905_v23, %v787_v22  ;;  %v906_v29 = vld [vmem:[%s1219_s28 + $0x14] sm:$0xf] }
  0x18   : > { %v812_v28 = vor.u32 %v911_v26, %v811_v25  ;;  %v797_v30 = vld [vmem:[%s1219_s28 + $0x18] sm:$0xf0]  ;;  %v914_v31 = vld [vmem:[%s1219_s28 + $0x54] sm:$0xf]  ;;  %v795_v34 = vld [vmem:[%s1219_s28 + $0x10] sm:$0xf] }
  0x19   : > { %404 = vmatpush.bf16.msra.mxu0 %v921_v7  ;;  %932 = vmatpush.bf16.msra.mxu2 %v921_v7  ;;  %v829_v32 = vld [vmem:[%s1219_s28 + $0x58] sm:$0xf0]  ;;  %v800_v33 = vor.u32 %v906_v29, %v797_v30  ;;  %v907_v35 = vld [vmem:[%s1219_s28 + $0x14] sm:$0xf0]  ;;  %v819_v37 = vld [vmem:[%s1219_s28 + $0x40] sm:$0xf] }
  0x1a   : > { %444 = vmatpush.bf16.msra.mxu1 %v928_v6  ;;  %939 = vmatpush.bf16.msra.mxu3 %v928_v6  ;;  %v832_v36 = vor.u32 %v914_v31, %v829_v32  ;;  %v913_v38 = vld [vmem:[%s1219_s28 + $0x44] sm:$0xf0]  ;;  %v796_v39 = vor.u32 %v907_v35, %v795_v34  ;;  %v908_v41 = vld [vmem:[%s1219_s28 + $0x24] sm:$0xf]  ;;  %v805_v42 = vld [vmem:[%s1219_s28 + $0x28] sm:$0xf0] }
  0x1b   : > { %v820_v40 = vor.u32 %v913_v38, %v819_v37  ;;  %v808_v43 = vor.u32 %v908_v41, %v805_v42  ;;  %v803_v44 = vld [vmem:[%s1219_s28 + $0x20] sm:$0xf]  ;;  %v909_v45 = vld [vmem:[%s1219_s28 + $0x24] sm:$0xf0]  ;;  %v827_v46 = vld [vmem:[%s1219_s28 + $0x50] sm:$0xf] }
  0x1c   : > { %v915_v47 = vld [vmem:[%s1219_s28 + $0x54] sm:$0xf0]  ;;  %v804_v48 = vor.u32 %v909_v45, %v803_v44  ;;  %v910_v50 = vld [vmem:[%s1219_s28 + $0x34] sm:$0xf]  ;;  %v813_v51 = vld [vmem:[%s1219_s28 + $0x38] sm:$0xf0] }
  0x1d   : > { %405 = vmatpush.bf16.msra.mxu0 %v920_v9  ;;  %933 = vmatpush.bf16.msra.mxu2 %v920_v9  ;;  %v828_v49 = vor.u32 %v915_v47, %v827_v46  ;;  %v816_v52 = vor.u32 %v910_v50, %v813_v51  ;;  %v1263_v54 = vld [vmem:[%s1383_s2] ss:$0 sm:$0xff] }
  0x1e   : > { %445 = vmatpush.bf16.msra.mxu1 %v927_v8  ;;  %940 = vmatpush.bf16.msra.mxu3 %v927_v8 }
  0x21   : > { %406 = vmatpush.bf16.msra.mxu0 %v919_v11  ;;  %934 = vmatpush.bf16.msra.mxu2 %v919_v11 }
  0x22   : > { %446 = vmatpush.bf16.msra.mxu1 %v926_v10  ;;  %941 = vmatpush.bf16.msra.mxu3 %v926_v10 }
  0x25   : > { %407 = vmatpush.bf16.msra.mxu0 %v918_v13  ;;  %935 = vmatpush.bf16.msra.mxu2 %v918_v13 }
  0x26   : > { %447 = vmatpush.bf16.msra.mxu1 %v925_v12  ;;  %942 = vmatpush.bf16.msra.mxu3 %v925_v12 }
  0x29   : > { %408 = vmatpush.bf16.msra.mxu0 %v917_v15  ;;  %936 = vmatpush.bf16.msra.mxu2 %v917_v15 }
  0x2a   : > { %448 = vmatpush.bf16.msra.mxu1 %v924_v14  ;;  %943 = vmatpush.bf16.msra.mxu3 %v924_v14 }
  0x2d   : > { %885 = vmatmul.msk.bf16.vlgmr.msra.gmra.mxu1 %vm379_vm1, %v792_v20  ;;  %409 = vmatpush.bf16.msra.mxu0 %v916_v21 }
  0x2e   : > { %889 = vmatmul.msk.bf16.vlgmr.msra.gmra.mxu3 %vm379_vm1, %v824_v24  ;;  %937 = vmatpush.bf16.msra.mxu2 %v916_v21 }
  0x30   : > { %410 = vmatmul.bf16.vlgmr.msra.gmra.mxu0 %v788_v27 }
  0x31   : > { %425 = vmatmul.bf16.vlgmr.msra.gmra.mxu2 %v812_v28 }
  0x3d   : > { %886 = vmatmul.msk.bf16.gmra.mxu1 %vm379_vm1, %v800_v33 }
  0x3e   : > { %890 = vmatmul.msk.bf16.gmra.mxu3 %vm379_vm1, %v832_v36 }
  0x40   : > { %415 = vmatmul.bf16.gmra.mxu0 %v796_v39 }
  0x41   : > { %430 = vmatmul.bf16.gmra.mxu2 %v820_v40 }
  0x4d   : > { %887 = vmatmul.msk.bf16.gmra.mxu1 %vm379_vm1, %v808_v43 }
  0x50   : > { %420 = vmatmul.bf16.gmra.mxu0 %v804_v48 }
  0x51   : > { %435 = vmatmul.bf16.gmra.mxu2 %v828_v49 }
  0x5d   : > { %888 = vmatmul.msk.bf16.gmra.mxu1 %vm379_vm1, %v816_v52 }
  0xaa   : > { %v450_v53 = vpop.f32.mrf.mxu1 }
  0xad   : > { %v411_v55 = vpop.f32.mrf.mxu0 }
  0xae   : > { %v412_v56 = vadd.f32 %v1263_v54, %v411_v55 }
  0xb0   : > { %v451_v57 = vadd.f32 %v450_v53, %v412_v56 }
  0xb1   : > { %v470_v8 = vpop.f32.mrf.mxu3 }
  0xb2   : > { %v452_v58 = vpop.f32.mrf.mxu1  ;;  %v480_v59 = vmax.f32 %v451_v57, 0.0 }
  0xb4   : > { %v492_v60 = vpack.c.bf16 %v480_v59, %v480_v59  ;;  %v426_v61 = vpop.f32.mrf.mxu2 }
  0xb5   : > { %v413_v62 = vpop.f32.mrf.mxu0  ;;  %v427_v41 = vadd.f32 %v1263_v54, %v426_v61 }
  0xb6   : > { %505 = vst.msk [vmem:[%s1267_s14] sm:$0xf] %vm504_vm2, %v492_v60  ;;  %v414_v63 = vadd.f32 %v1263_v54, %v413_v62 }
  0xb8   : > { %v453_v0 = vadd.f32 %v452_v58, %v414_v63 }
  0xb9   : > { %v472_v21 = vpop.f32.mrf.mxu3 }
  0xba   : > { %v455_v1 = vpop.f32.mrf.mxu1  ;;  %v481_v2 = vmax.f32 %v453_v0, 0.0 }
  0xbc   : > { %v493_v3 = vpack.c.bf16 %v481_v2, %v481_v2  ;;  %v428_v4 = vpop.f32.mrf.mxu2 }
  0xbd   : > { %v416_v5 = vpop.f32.mrf.mxu0  ;;  %v429_v56 = vadd.f32 %v1263_v54, %v428_v4 }
  0xbe   : > { %506 = vst.msk [vmem:[%s1267_s14 + $0x4] sm:$0xf] %vm504_vm2, %v493_v3  ;;  %v417_v6 = vadd.f32 %v1263_v54, %v416_v5 }
  0xc0   : > { %v456_v7 = vadd.f32 %v455_v1, %v417_v6 }
  0xc1   : > { %v475_v35 = vpop.f32.mrf.mxu3 }
  0xc2   : > { %v457_v9 = vpop.f32.mrf.mxu1  ;;  %v482_v10 = vmax.f32 %v456_v7, 0.0 }
  0xc4   : > { %v494_v11 = vpack.c.bf16 %v482_v10, %v482_v10  ;;  %v431_v12 = vpop.f32.mrf.mxu2 }
  0xc5   : > { %v432_v13 = vadd.f32 %v1263_v54, %v431_v12  ;;  %v418_v14 = vpop.f32.mrf.mxu0 }
  0xc6   : > { %507 = vst.msk [vmem:[%s1267_s14 + $0x8] sm:$0xf] %vm504_vm2, %v494_v11  ;;  %v419_v15 = vadd.f32 %v1263_v54, %v418_v14 }
  0xc7   : > { %v471_v16 = vadd.f32 %v470_v8, %v432_v13 }
  0xc8   : > { %v458_v17 = vadd.f32 %v457_v9, %v419_v15 }
  0xc9   : > { %v488_v18 = vmax.f32 %v471_v16, 0.0  ;;  %v477_v53 = vpop.f32.mrf.mxu3 }
  0xca   : > { %v460_v19 = vpop.f32.mrf.mxu1  ;;  %v483_v20 = vmax.f32 %v458_v17, 0.0 }
  0xcb   : > { %v500_v22 = vpack.c.bf16 %v488_v18, %v488_v18 }
  0xcc   : > { %v495_v23 = vpack.c.bf16 %v483_v20, %v483_v20  ;;  %v433_v24 = vpop.f32.mrf.mxu2 }
  0xcd   : > { %513 = vst.msk [vmem:[%s1267_s14 + $0x20] sm:$0xf] %vm504_vm2, %v500_v22  ;;  %v434_v25 = vadd.f32 %v1263_v54, %v433_v24  ;;  %v421_v26 = vpop.f32.mrf.mxu0 }
  0xce   : > { %508 = vst.msk [vmem:[%s1267_s14 + $0xc] sm:$0xf] %vm504_vm2, %v495_v23  ;;  %v422_v27 = vadd.f32 %v1263_v54, %v421_v26 }
  0xcf   : > { %v473_v28 = vadd.f32 %v472_v21, %v434_v25 }
  0xd0   : > { %v461_v29 = vadd.f32 %v460_v19, %v422_v27 }
  0xd1   : > { %v489_v30 = vmax.f32 %v473_v28, 0.0 }
  0xd2   : > { %v462_v31 = vpop.f32.mrf.mxu1  ;;  %v484_v32 = vmax.f32 %v461_v29, 0.0 }
  0xd3   : > { %v501_v33 = vpack.c.bf16 %v489_v30, %v489_v30 }
  0xd4   : > { %v496_v34 = vpack.c.bf16 %v484_v32, %v484_v32  ;;  %v436_v36 = vpop.f32.mrf.mxu2 }
  0xd5   : > { %514 = vst.msk [vmem:[%s1267_s14 + $0x24] sm:$0xf] %vm504_vm2, %v501_v33  ;;  %v437_v37 = vadd.f32 %v1263_v54, %v436_v36  ;;  %v423_v38 = vpop.f32.mrf.mxu0 }
  0xd6   : > { %509 = vst.msk [vmem:[%s1267_s14 + $0x10] sm:$0xf] %vm504_vm2, %v496_v34  ;;  %v424_v39 = vadd.f32 %v1263_v54, %v423_v38 }
  0xd7   : > { %v476_v40 = vadd.f32 %v475_v35, %v437_v37 }
  0xd8   : > { %v463_v42 = vadd.f32 %v462_v31, %v424_v39 }
  0xd9   : > { %v490_v43 = vmax.f32 %v476_v40, 0.0 }
  0xda   : > { %v465_v44 = vpop.f32.mrf.mxu1  ;;  %v485_v45 = vmax.f32 %v463_v42, 0.0 }
  0xdb   : > { %v466_v46 = vadd.f32 %v465_v44, %v427_v41  ;;  %v502_v47 = vpack.c.bf16 %v490_v43, %v490_v43 }
  0xdc   : > { %v497_v48 = vpack.c.bf16 %v485_v45, %v485_v45  ;;  %v438_v50 = vpop.f32.mrf.mxu2 }
  0xdd   : > { %v486_v49 = vmax.f32 %v466_v46, 0.0  ;;  %515 = vst.msk [vmem:[%s1267_s14 + $0x28] sm:$0xf] %vm504_vm2, %v502_v47  ;;  %v439_v51 = vadd.f32 %v1263_v54, %v438_v50 }
  0xde   : > { %510 = vst.msk [vmem:[%s1267_s14 + $0x14] sm:$0xf] %vm504_vm2, %v497_v48 }
  0xdf   : > { %v498_v52 = vpack.c.bf16 %v486_v49, %v486_v49  ;;  %v478_v55 = vadd.f32 %v477_v53, %v439_v51 }
  0xe1   : > { %511 = vst.msk [vmem:[%s1267_s14 + $0x18] sm:$0xf] %vm504_vm2, %v498_v52  ;;  %v491_v57 = vmax.f32 %v478_v55, 0.0 }
  0xe2   : > { %v467_v58 = vpop.f32.mrf.mxu1 }
  0xe3   : > { %v468_v59 = vadd.f32 %v467_v58, %v429_v56  ;;  %v503_v60 = vpack.c.bf16 %v491_v57, %v491_v57 }
  0xe5   : > { %v487_v61 = vmax.f32 %v468_v59, 0.0  ;;  %516 = vst.msk [vmem:[%s1267_s14 + $0x2c] sm:$0xf] %vm504_vm2, %v503_v60  ;;  %523 = sbr.rel (!%p1174_p4) target bundleno = 293 (0x125), region = 36 }
  0xe7   : > { %v499_v62 = vpack.c.bf16 %v487_v61, %v487_v61 }
  0xe9   : > { %512 = vst.msk [vmem:[%s1267_s14 + $0x1c] sm:$0xf] %vm504_vm2, %v499_v62 }
  0xea   : > { %s1394_s12 = smov (!%p526_p8, %s525_s12), 12 }
  0xeb   : > { %s891_s23 = sshll.u32 %s1394_s12, 2 }
  0xec   : > { %p894_p9 = scmp.eq.s32.totalorder %s891_s23, 0 }
  0xed   : > { %1035 = sdivrem.u32 (!%p894_p9), %s1394_s12, 12 }
  0xee   : > { %534 = sbr.rel (%p894_p9) target bundleno = 293 (0x125), region = 40 }
  0xf6   : > { %s1317_s20 = spop.drf %1035 }
  0xf7   : > { %s1037_s24 = spop.drf %1035  ;;  %p895_p10 = scmp.le.s32.totalorder %s1317_s20, 0 }
  0xf8   : > { %s1386_s15 = smov (!%p895_p10), %s1311_s22  ;;  %s1387_s27 = smov (!%p895_p10), %s1267_s14 }
  0xf9   : > { %735 = sbr.rel (%p895_p10) target bundleno = 267 (0x10b), region = 112  ;;  %s1326_s25 = smov (!%p895_p10), 0  }
  0xfa   : > { %s1328_s26 = smov (!%p895_p10), 0  }
  0xfe LB: >> { %v552_v54 = vld [vmem:[%s1103_s27] sm:$0xf]  ;;  %v554_v63 = vld [vmem:[%s1103_s27 + $0x4] sm:$0xf]  ;;  %v556_v0 = vld [vmem:[%s1103_s27 + $0x8] sm:$0xf]  ;;  %s1111_s26 = sphi %s1328_s26, %s546_s26   ;;  %s1107_s25 = sphi %s1326_s25, %s1389_s25   ;;  %s1103_s27 = sphi %s1387_s27, %s581_s27   ;;  %s1099_s15 = sphi %s1386_s15, %s1388_s15  }
  0xff   : >> { %553 = vst [vmem:[%s1099_s15] sm:$0xf] %v552_v54  ;;  %v558_v1 = vld [vmem:[%s1103_s27 + $0xc] sm:$0xf]  ;;  %s576_s28 = sadd.s32 1, %s1107_s25  ;;  %v560_v2 = vld [vmem:[%s1103_s27 + $0x10] sm:$0xf] }
 0x100   : >> { %555 = vst [vmem:[%s1099_s15 + $0x4] sm:$0xf] %v554_v63  ;;  %p577_p11 = scmp.ge.s32.totalorder %s576_s28, %s1317_s20  ;;  %v562_v3 = vld [vmem:[%s1103_s27 + $0x14] sm:$0xf]  ;;  %v564_v4 = vld [vmem:[%s1103_s27 + $0x18] sm:$0xf] }
 0x101   : >> { %557 = vst [vmem:[%s1099_s15 + $0x8] sm:$0xf] %v556_v0  ;;  %v566_v5 = vld [vmem:[%s1103_s27 + $0x1c] sm:$0xf]  ;;  %v568_v6 = vld [vmem:[%s1103_s27 + $0x20] sm:$0xf] }
 0x102   : >> { %559 = vst [vmem:[%s1099_s15 + $0xc] sm:$0xf] %v558_v1  ;;  %s1396_s28 = smov (%p577_p11, %s576_s28), 0  ;;  %v570_v7 = vld [vmem:[%s1103_s27 + $0x24] sm:$0xf]  ;;  %s546_s26 = sadd.s32 1, %s1111_s26  }
 0x103   : >> { %561 = vst [vmem:[%s1099_s15 + $0x10] sm:$0xf] %v560_v2  ;;  %s579_s29 = smul.u32 48, %s1396_s28  ;;  %v572_v8 = vld [vmem:[%s1103_s27 + $0x28] sm:$0xf]  ;;  %p545_p12 = scmp.ge.s32.totalorder %s546_s26, %s1317_s20 }
 0x104   : >> { %563 = vst [vmem:[%s1099_s15 + $0x14] sm:$0xf] %v562_v3  ;;  %v574_v9 = vld [vmem:[%s1103_s27 + $0x2c] sm:$0xf]  ;;  %s1389_s25 = smov %s1396_s28 }
 0x105   : >> { %565 = vst [vmem:[%s1099_s15 + $0x18] sm:$0xf] %v564_v4  ;;  %s581_s27 = scalar_lea.vmem %s1267_s14, %s579_s29 [#allocation2]   ;;  %s582_s30 = scalar_lea.vmem %s1311_s22, %s579_s29  }
 0x106   : >> { %567 = vst [vmem:[%s1099_s15 + $0x1c] sm:$0xf] %v566_v5  ;;  %548 = sbr.rel (!%p545_p12) target bundleno = 254 (0xfe), region = 118 }
 0x107   : >> { %569 = vst [vmem:[%s1099_s15 + $0x20] sm:$0xf] %v568_v6 }
 0x108   : >> { %571 = vst [vmem:[%s1099_s15 + $0x24] sm:$0xf] %v570_v7 }
 0x109   : >> { %573 = vst [vmem:[%s1099_s15 + $0x28] sm:$0xf] %v572_v8 }
 0x10a   : >> { %575 = vst [vmem:[%s1099_s15 + $0x2c] sm:$0xf] %v574_v9  ;;  %s1388_s15 = smov %s582_s30 }
 0x10b PF: > { %1038 = sdivrem.u32 %s1394_s12, 12 }
 0x10c   : > { %s896_s4 = smul.u32 48, %s1317_s20 }
 0x10e   : > { %s1366_s5 = scalar_lea.vmem %s1267_s14, %s896_s4 [#allocation2]   ;;  %s589_s6 = scalar_lea.vmem %s1311_s22, %s896_s4  }
 0x114   : > { %s1039_s7 = spop.drf %1038 }
 0x115   : > { %s1040_s8 = spop.drf %1038 }
 0x116   : > { %p898_p13 = scmp.le.s32.totalorder %s1040_s8, 0 }
 0x117   : > { %s1113_s9 = smov (!%p898_p13), %s589_s6   ;;  %s1117_s10 = smov (!%p898_p13), %s1366_s5  }
 0x118   : > { %749 = sbr.rel (%p898_p13) target bundleno = 293 (0x125), region = 123  ;;  %s1121_s11 = smov (!%p898_p13), 0  }
 0x119   : > { %s1125_s17 = smov (!%p898_p13), 0  }
 0x11d LB: >> { %v599_v10 = vld [vmem:[%s1119_s10] sm:$0xf]  ;;  %s601_s14 = sadd.s32 1, %s1123_s11  ;;  %s593_s17 = sadd.s32 1, %s1127_s17   ;;  %s1127_s17 = sphi %s1125_s17, %s593_s17   ;;  %s1123_s11 = sphi %s1121_s11, %s1122_s11   ;;  %s1119_s10 = sphi %s1117_s10, %s606_s10   ;;  %s1115_s9 = sphi %s1113_s9, %s607_s9  }
 0x11e   : >> { %600 = vst [vmem:[%s1115_s9] sm:$0xf] %v599_v10  ;;  %p602_p0 = scmp.ge.s32.totalorder %s601_s14, %s1040_s8  ;;  %p592_p1 = scmp.ge.s32.totalorder %s593_s17, %s1040_s8 }
 0x120   : >> { %s1398_s14 = smov (%p602_p0, %s601_s14), 0  ;;  %595 = sbr.rel (!%p592_p1) target bundleno = 285 (0x11d), region = 129 }
 0x121   : >> { %s899_s12 = sshll.u32 %s1398_s14, 2  ;;  %s1122_s11 = smov %s1398_s14  }
 0x122   : >> { %s606_s10 = scalar_lea.vmem %s1366_s5, %s899_s12 [#allocation2]   ;;  %s607_s9 = scalar_lea.vmem %s589_s6, %s899_s12  }
 0x125 PF: > { %p10_p2 = scmp.ge.s32.totalorder %s1164_s16, 4   ;;  %s1390_s12 = smov %s1091_s13 }
 0x126   : > { %s1391_s13 = smov %s1172_s19  ;;  %s1392_s14 = smov %s1164_s16 }
 0x127   :  { %12 = sbr.rel (!%p10_p2) target bundleno = 2 (0x2), region = 140 }

// kernel: siamrpn_forward.13
= control target key start
LH: loop header
LB: loop body
LE: loop exit
PB: predicated region body
PF: predicated region fallthrough
CT: control target
= control target key end

     0   :  { %vm222_vm0 = vcmask 1043456   ;;  %vm200_vm1 = vcmask 719872   ;;  %vm325_vm2 = vcmask 125952   ;;  %vm338_vm3 = vcmask 122880   ;;  %s704_s1 = inlined_call_operand.vmem [shape: bf16[216,16], index: 1, kind: input, shape index: {}]   ;;  %s705_s0 = inlined_call_operand.vmem [shape: bf16[98,216], index: 0, kind: input, shape index: {}]   ;;  %s706_s2 = inlined_call_operand.vmem [shape: f32[1,16], index: 2, kind: input, shape index: {}]   ;;  %s707_s3 = inlined_call_operand.vmem [shape: bf16[98,16], index: 3, kind: output, shape index: {}]  }
   0x1   :  { %v470_v0 = vld [vmem:[%s704_s1 + $0x38] sm:$0xff]  ;;  %v54_v1 = vld [vmem:[%s704_s1 + $0x68] sm:$0xf]  ;;  %v469_v3 = vld [vmem:[%s704_s1 + $0x30] sm:$0xff] }
   0x2   :  { %v172_v2 = vunpack.c.l.b16 %v54_v1  ;;  %226 = vmatpush.bf16.msra.mxu0 %v470_v0  ;;  %476 = vmatpush.bf16.msra.mxu2 %v470_v0  ;;  %v475_v6 = vld [vmem:[%s704_s1 + $0x60] sm:$0xff]  ;;  %v468_v7 = vld [vmem:[%s704_s1 + $0x28] sm:$0xff]  ;;  %v474_v8 = vld [vmem:[%s704_s1 + $0x58] sm:$0xff] }
   0x3   :  { %v467_v9 = vld [vmem:[%s704_s1 + $0x20] sm:$0xff]  ;;  %v473_v10 = vld [vmem:[%s704_s1 + $0x50] sm:$0xff]  ;;  %v466_v11 = vld [vmem:[%s704_s1 + $0x18] sm:$0xff] }
   0x4   :  { %v186_v4 = vpack.c.b16 %v172_v2, %v172_v2  ;;  %v472_v12 = vld [vmem:[%s704_s1 + $0x48] sm:$0xff]  ;;  %v465_v13 = vld [vmem:[%s704_s1 + $0x10] sm:$0xff]  ;;  %v471_v14 = vld [vmem:[%s704_s1 + $0x40] sm:$0xff] }
   0x5   :  { %v464_v15 = vld [vmem:[%s704_s1 + $0x8] sm:$0xff]  ;;  %v451_v16 = vld [vmem:[%s705_s0 + $0x4] sm:$0xf]  ;;  %v346_v22 = vld [vmem:[%s705_s0] sm:$0xf] }
   0x6   :  { %v224_v5 = vsel %vm222_vm0, %v186_v4, 0  ;;  %227 = vmatpush.bf16.msra.mxu0 %v469_v3  ;;  %477 = vmatpush.bf16.msra.mxu2 %v469_v3  ;;  %v348_v17 = vld [vmem:[%s705_s0 + $0x8] sm:$0xf0]  ;;  %v459_v18 = vld [vmem:[%s705_s0 + $0x44] sm:$0xf] }
   0x7   :  { %271 = vmatpush.bf16.msra.mxu1 %v224_v5  ;;  %484 = vmatpush.bf16.msra.mxu3 %v224_v5  ;;  %v380_v19 = vld [vmem:[%s705_s0 + $0x48] sm:$0xf0]  ;;  %v351_v20 = vor.u32 %v451_v16, %v348_v17  ;;  %v463_v21 = vld [vmem:[%s704_s1] sm:$0xff]  ;;  %v452_v23 = vld [vmem:[%s705_s0 + $0x4] sm:$0xf0] }
   0x8   :  { %v383_v24 = vor.u32 %v459_v18, %v380_v19  ;;  %v370_v25 = vld [vmem:[%s705_s0 + $0x30] sm:$0xf]  ;;  %v458_v26 = vld [vmem:[%s705_s0 + $0x34] sm:$0xf0]  ;;  %v347_v27 = vor.u32 %v452_v23, %v346_v22  ;;  %v453_v29 = vld [vmem:[%s705_s0 + $0x14] sm:$0xf] }
   0x9   :  { %v371_v28 = vor.u32 %v458_v26, %v370_v25  ;;  %v356_v30 = vld [vmem:[%s705_s0 + $0x18] sm:$0xf0]  ;;  %v461_v31 = vld [vmem:[%s705_s0 + $0x54] sm:$0xf]  ;;  %v354_v34 = vld [vmem:[%s705_s0 + $0x10] sm:$0xf] }
   0xa   :  { %228 = vmatpush.bf16.msra.mxu0 %v468_v7  ;;  %478 = vmatpush.bf16.msra.mxu2 %v468_v7  ;;  %v388_v32 = vld [vmem:[%s705_s0 + $0x58] sm:$0xf0]  ;;  %v359_v33 = vor.u32 %v453_v29, %v356_v30  ;;  %v454_v35 = vld [vmem:[%s705_s0 + $0x14] sm:$0xf0]  ;;  %v378_v37 = vld [vmem:[%s705_s0 + $0x40] sm:$0xf] }
   0xb   :  { %272 = vmatpush.bf16.msra.mxu1 %v475_v6  ;;  %485 = vmatpush.bf16.msra.mxu3 %v475_v6  ;;  %v391_v36 = vor.u32 %v461_v31, %v388_v32  ;;  %v460_v38 = vld [vmem:[%s705_s0 + $0x44] sm:$0xf0]  ;;  %v355_v39 = vor.u32 %v454_v35, %v354_v34  ;;  %v27_v41 = vld [vmem:[%s705_s0 + $0x60] sm:$0x11]  ;;  %v364_v43 = vld [vmem:[%s705_s0 + $0x28] sm:$0xf0] }
   0xc   :  { %v379_v40 = vor.u32 %v460_v38, %v378_v37  ;;  %v455_v42 = vld [vmem:[%s705_s0 + $0x24] sm:$0xf]  ;;  %v97_v44 = vunpack.c.h.b16 %v27_v41  ;;  %v362_v46 = vld [vmem:[%s705_s0 + $0x20] sm:$0xf]  ;;  %v456_v47 = vld [vmem:[%s705_s0 + $0x24] sm:$0xf0]  ;;  %v96_v56 = vunpack.c.l.b16 %v27_v41 }
   0xd   :  { %v367_v45 = vor.u32 %v455_v42, %v364_v43  ;;  %v386_v49 = vld [vmem:[%s705_s0 + $0x50] sm:$0xf]  ;;  %v462_v50 = vld [vmem:[%s705_s0 + $0x54] sm:$0xf0]  ;;  %v363_v51 = vor.u32 %v456_v47, %v362_v46  ;;  %v457_v53 = vld [vmem:[%s705_s0 + $0x34] sm:$0xf] }
   0xe   :  { %229 = vmatpush.bf16.msra.mxu0 %v467_v9  ;;  %479 = vmatpush.bf16.msra.mxu2 %v467_v9  ;;  %v111_v48 = vpack.c.b16 %v97_v44, %v97_v44  ;;  %v387_v52 = vor.u32 %v462_v50, %v386_v49  ;;  %v372_v54 = vld [vmem:[%s705_s0 + $0x38] sm:$0xf0]  ;;  %v110_v57 = vpack.c.b16 %v96_v56, %v96_v56  ;;  %v638_v59 = vld [vmem:[%s706_s2] ss:$0 sm:$0xff] }
   0xf   :  { %273 = vmatpush.bf16.msra.mxu1 %v474_v8  ;;  %486 = vmatpush.bf16.msra.mxu3 %v474_v8  ;;  %v375_v55 = vor.u32 %v457_v53, %v372_v54 }
  0x12   :  { %230 = vmatpush.bf16.msra.mxu0 %v466_v11  ;;  %480 = vmatpush.bf16.msra.mxu2 %v466_v11 }
  0x13   :  { %274 = vmatpush.bf16.msra.mxu1 %v473_v10  ;;  %487 = vmatpush.bf16.msra.mxu3 %v473_v10 }
  0x16   :  { %231 = vmatpush.bf16.msra.mxu0 %v465_v13  ;;  %481 = vmatpush.bf16.msra.mxu2 %v465_v13 }
  0x17   :  { %275 = vmatpush.bf16.msra.mxu1 %v472_v12  ;;  %488 = vmatpush.bf16.msra.mxu3 %v472_v12 }
  0x1a   :  { %232 = vmatpush.bf16.msra.mxu0 %v464_v15  ;;  %482 = vmatpush.bf16.msra.mxu2 %v464_v15 }
  0x1b   :  { %276 = vmatpush.bf16.msra.mxu1 %v471_v14  ;;  %489 = vmatpush.bf16.msra.mxu3 %v471_v14 }
  0x1e   :  { %444 = vmatmul.msk.bf16.vlgmr.msra.gmra.mxu1 %vm200_vm1, %v351_v20  ;;  %233 = vmatpush.bf16.msra.mxu0 %v463_v21 }
  0x1f   :  { %448 = vmatmul.msk.bf16.vlgmr.msra.gmra.mxu3 %vm200_vm1, %v383_v24  ;;  %483 = vmatpush.bf16.msra.mxu2 %v463_v21 }
  0x21   :  { %234 = vmatmul.bf16.vlgmr.msra.gmra.mxu0 %v347_v27 }
  0x22   :  { %249 = vmatmul.bf16.vlgmr.msra.gmra.mxu2 %v371_v28 }
  0x2e   :  { %445 = vmatmul.msk.bf16.gmra.mxu1 %vm200_vm1, %v359_v33 }
  0x2f   :  { %449 = vmatmul.msk.bf16.gmra.mxu3 %vm200_vm1, %v391_v36 }
  0x31   :  { %239 = vmatmul.bf16.gmra.mxu0 %v355_v39 }
  0x32   :  { %254 = vmatmul.bf16.gmra.mxu2 %v379_v40 }
  0x3e   :  { %446 = vmatmul.msk.bf16.gmra.mxu1 %vm200_vm1, %v367_v45 }
  0x3f   :  { %450 = vmatmul.msk.bf16.gmra.mxu3 %vm200_vm1, %v111_v48 }
  0x41   :  { %244 = vmatmul.bf16.gmra.mxu0 %v363_v51 }
  0x42   :  { %259 = vmatmul.bf16.gmra.mxu2 %v387_v52 }
  0x4e   :  { %447 = vmatmul.msk.bf16.gmra.mxu1 %vm200_vm1, %v375_v55 }
  0x52   :  { %264 = vmatmul.bf16.gmra.mxu2 %v110_v57 }
  0x9b   :  { %v278_v58 = vpop.f32.mrf.mxu1 }
  0x9e   :  { %v235_v60 = vpop.f32.mrf.mxu0 }
  0x9f   :  { %v236_v61 = vadd.f32 %v638_v59, %v235_v60 }
  0xa1   :  { %v279_v62 = vadd.f32 %v278_v58, %v236_v61 }
  0xa2   :  { %v298_v63 = vpop.f32.mrf.mxu3 }
  0xa3   :  { %v280_v0 = vpop.f32.mrf.mxu1  ;;  %v312_v1 = vpack.c.bf16 %v279_v62, %v279_v62 }
  0xa5   :  { %326 = vst.msk [vmem:[%s707_s3] sm:$0xf] %vm325_vm2, %v312_v1  ;;  %v250_v2 = vpop.f32.mrf.mxu2 }
  0xa6   :  { %v237_v3 = vpop.f32.mrf.mxu0  ;;  %v251_v41 = vadd.f32 %v638_v59, %v250_v2 }
  0xa7   :  { %v238_v4 = vadd.f32 %v638_v59, %v237_v3 }
  0xa9   :  { %v281_v5 = vadd.f32 %v280_v0, %v238_v4 }
  0xaa   :  { %v300_v6 = vpop.f32.mrf.mxu3 }
  0xab   :  { %v283_v7 = vpop.f32.mrf.mxu1  ;;  %v313_v8 = vpack.c.bf16 %v281_v5, %v281_v5 }
  0xad   :  { %327 = vst.msk [vmem:[%s707_s3 + $0x4] sm:$0xf] %vm325_vm2, %v313_v8  ;;  %v252_v9 = vpop.f32.mrf.mxu2 }
  0xae   :  { %v240_v10 = vpop.f32.mrf.mxu0  ;;  %v253_v52 = vadd.f32 %v638_v59, %v252_v9 }
  0xaf   :  { %v241_v11 = vadd.f32 %v638_v59, %v240_v10 }
  0xb1   :  { %v284_v12 = vadd.f32 %v283_v7, %v241_v11 }
  0xb2   :  { %v303_v13 = vpop.f32.mrf.mxu3 }
  0xb3   :  { %v285_v14 = vpop.f32.mrf.mxu1  ;;  %v314_v15 = vpack.c.bf16 %v284_v12, %v284_v12 }
  0xb5   :  { %328 = vst.msk [vmem:[%s707_s3 + $0x8] sm:$0xf] %vm325_vm2, %v314_v15  ;;  %v255_v16 = vpop.f32.mrf.mxu2 }
  0xb6   :  { %v256_v17 = vadd.f32 %v638_v59, %v255_v16  ;;  %v242_v18 = vpop.f32.mrf.mxu0 }
  0xb7   :  { %v243_v19 = vadd.f32 %v638_v59, %v242_v18 }
  0xb8   :  { %v299_v20 = vadd.f32 %v298_v63, %v256_v17 }
  0xb9   :  { %v286_v21 = vadd.f32 %v285_v14, %v243_v19 }
  0xba   :  { %v305_v22 = vpop.f32.mrf.mxu3  ;;  %v320_v23 = vpack.c.bf16 %v299_v20, %v299_v20 }
  0xbb   :  { %v288_v24 = vpop.f32.mrf.mxu1  ;;  %v315_v25 = vpack.c.bf16 %v286_v21, %v286_v21 }
  0xbc   :  { %334 = vst.msk [vmem:[%s707_s3 + $0x20] sm:$0xf] %vm325_vm2, %v320_v23 }
  0xbd   :  { %329 = vst.msk [vmem:[%s707_s3 + $0xc] sm:$0xf] %vm325_vm2, %v315_v25  ;;  %v257_v26 = vpop.f32.mrf.mxu2 }
  0xbe   :  { %v258_v27 = vadd.f32 %v638_v59, %v257_v26  ;;  %v245_v28 = vpop.f32.mrf.mxu0 }
  0xbf   :  { %v246_v29 = vadd.f32 %v638_v59, %v245_v28 }
  0xc0   :  { %v301_v30 = vadd.f32 %v300_v6, %v258_v27 }
  0xc1   :  { %v289_v31 = vadd.f32 %v288_v24, %v246_v29 }
  0xc2   :  { %v308_v32 = vpop.f32.mrf.mxu3  ;;  %v321_v33 = vpack.c.bf16 %v301_v30, %v301_v30 }
  0xc3   :  { %v290_v34 = vpop.f32.mrf.mxu1  ;;  %v316_v35 = vpack.c.bf16 %v289_v31, %v289_v31 }
  0xc4   :  { %335 = vst.msk [vmem:[%s707_s3 + $0x24] sm:$0xf] %vm325_vm2, %v321_v33 }
  0xc5   :  { %330 = vst.msk [vmem:[%s707_s3 + $0x10] sm:$0xf] %vm325_vm2, %v316_v35  ;;  %v260_v36 = vpop.f32.mrf.mxu2 }
  0xc6   :  { %v261_v37 = vadd.f32 %v638_v59, %v260_v36  ;;  %v247_v38 = vpop.f32.mrf.mxu0 }
  0xc7   :  { %v248_v39 = vadd.f32 %v638_v59, %v247_v38 }
  0xc8   :  { %v304_v40 = vadd.f32 %v303_v13, %v261_v37 }
  0xc9   :  { %v291_v42 = vadd.f32 %v290_v34, %v248_v39 }
  0xca   :  { %v310_v43 = vpop.f32.mrf.mxu3  ;;  %v322_v44 = vpack.c.bf16 %v304_v40, %v304_v40 }
  0xcb   :  { %v293_v45 = vpop.f32.mrf.mxu1  ;;  %v317_v46 = vpack.c.bf16 %v291_v42, %v291_v42 }
  0xcc   :  { %v294_v47 = vadd.f32 %v293_v45, %v251_v41  ;;  %336 = vst.msk [vmem:[%s707_s3 + $0x28] sm:$0xf] %vm325_vm2, %v322_v44 }
  0xcd   :  { %331 = vst.msk [vmem:[%s707_s3 + $0x14] sm:$0xf] %vm325_vm2, %v317_v46  ;;  %v262_v49 = vpop.f32.mrf.mxu2 }
  0xce   :  { %v318_v48 = vpack.c.bf16 %v294_v47, %v294_v47  ;;  %v263_v50 = vadd.f32 %v638_v59, %v262_v49 }
  0xd0   :  { %332 = vst.msk [vmem:[%s707_s3 + $0x18] sm:$0xf] %vm325_vm2, %v318_v48  ;;  %v306_v51 = vadd.f32 %v305_v22, %v263_v50 }
  0xd2   :  { %v323_v53 = vpack.c.bf16 %v306_v51, %v306_v51 }
  0xd3   :  { %v295_v54 = vpop.f32.mrf.mxu1 }
  0xd4   :  { %v296_v55 = vadd.f32 %v295_v54, %v253_v52  ;;  %337 = vst.msk [vmem:[%s707_s3 + $0x2c] sm:$0xf] %vm325_vm2, %v323_v53 }
  0xd5   :  { %v265_v57 = vpop.f32.mrf.mxu2 }
  0xd6   :  { %v319_v56 = vpack.c.bf16 %v296_v55, %v296_v55  ;;  %v266_v58 = vadd.f32 %v638_v59, %v265_v57 }
  0xd8   :  { %333 = vst.msk [vmem:[%s707_s3 + $0x1c] sm:$0xf] %vm325_vm2, %v319_v56  ;;  %v309_v60 = vadd.f32 %v308_v32, %v266_v58 }
  0xda   :  { %v324_v61 = vpack.c.bf16 %v309_v60, %v309_v60 }
  0xdc   :  { %339 = vst.msk [vmem:[%s707_s3 + $0x30] sm:$0x1] %vm338_vm3, %v324_v61 }
  0xdd   :  { %v267_v62 = vpop.f32.mrf.mxu2 }

// kernel: siamrpn_forward.14
= control target key start
LH: loop header
LB: loop body
LE: loop exit
PB: predicated region body
PF: predicated region fallthrough
CT: control target
= control target key end

     0   :  { %vm131_vm0 = vcmask 130048   ;;  %vm207_vm1 = vcmask 388096   ;;  %vm214_vm2 = vcmask 385024   ;;  %s429_s1 = inlined_call_operand.vmem [shape: bf16[144,48], index: 1, kind: input, shape index: {}]   ;;  %s430_s0 = inlined_call_operand.vmem [shape: bf16[50,144], index: 0, kind: input, shape index: {}]   ;;  %s431_s2 = inlined_call_operand.vmem [shape: f32[1,48], index: 2, kind: input, shape index: {}]   ;;  %s432_s3 = inlined_call_operand.vmem [shape: bf16[50,48], index: 3, kind: output, shape index: {}]  }
   0x1   :  { %v297_v0 = vld [vmem:[%s429_s1 + $0x38] sm:$0xff]  ;;  %v298_v1 = vld [vmem:[%s429_s1 + $0x40] sm:$0xff]  ;;  %v286_v2 = vld [vmem:[%s430_s0 + $0x14] sm:$0xf] }
   0x2   :  { %v232_v3 = vld [vmem:[%s430_s0 + $0x18] sm:$0xf0]  ;;  %144 = vmatpush.bf16.msra.mxu0 %v297_v0  ;;  %299 = vmatpush.bf16.msra.mxu2 %v297_v0  ;;  %v296_v4 = vld [vmem:[%s429_s1 + $0x30] sm:$0xff]  ;;  %v284_v6 = vld [vmem:[%s430_s0 + $0x4] sm:$0xf] }
   0x3   :  { %307 = vmatpush.bf16.msra.mxu3 %v298_v1  ;;  %v235_v5 = vor.u32 %v286_v2, %v232_v3  ;;  %179 = vmatpush.bf16.msra.mxu1 %v298_v1  ;;  %v295_v7 = vld [vmem:[%s429_s1 + $0x28] sm:$0xff]  ;;  %v294_v10 = vld [vmem:[%s429_s1 + $0x20] sm:$0xff]  ;;  %v293_v11 = vld [vmem:[%s429_s1 + $0x18] sm:$0xff] }
   0x4   :  { %v224_v8 = vld [vmem:[%s430_s0 + $0x8] sm:$0xf0]  ;;  %v288_v12 = vld [vmem:[%s430_s0 + $0x24] sm:$0xf]  ;;  %v292_v14 = vld [vmem:[%s429_s1 + $0x10] sm:$0xff] }
   0x5   :  { %v227_v9 = vor.u32 %v284_v6, %v224_v8  ;;  %v240_v13 = vld [vmem:[%s430_s0 + $0x28] sm:$0xf0]  ;;  %v290_v17 = vld [vmem:[%s429_s1] sm:$0xff]  ;;  %v285_v19 = vld [vmem:[%s430_s0 + $0x4] sm:$0xf0] }
   0x6   :  { %145 = vmatpush.bf16.msra.mxu0 %v296_v4  ;;  %300 = vmatpush.bf16.msra.mxu2 %v296_v4  ;;  %v243_v15 = vor.u32 %v288_v12, %v240_v13  ;;  %v291_v16 = vld [vmem:[%s429_s1 + $0x8] sm:$0xff]  ;;  %v222_v18 = vld [vmem:[%s430_s0] sm:$0xf]  ;;  %v21_v22 = vld [vmem:[%s430_s0 + $0x30] sm:$0x11] }
   0x7   :  { %281 = vmatmul.msk.bf16.vlgmr.msra.gmra.mxu3 %vm131_vm0, %v235_v5  ;;  %280 = vmatmul.msk.bf16.vlgmr.msra.gmra.mxu1 %vm131_vm0, %v227_v9  ;;  %v238_v20 = vld [vmem:[%s430_s0 + $0x20] sm:$0xf]  ;;  %v289_v21 = vld [vmem:[%s430_s0 + $0x24] sm:$0xf0]  ;;  %v223_v23 = vor.u32 %v285_v19, %v222_v18  ;;  %v64_v25 = vunpack.c.h.b16 %v21_v22  ;;  %v63_v27 = vunpack.c.l.b16 %v21_v22  ;;  %v230_v28 = vld [vmem:[%s430_s0 + $0x10] sm:$0xf] }
   0x8   :  { %v239_v24 = vor.u32 %v289_v21, %v238_v20  ;;  %v287_v29 = vld [vmem:[%s430_s0 + $0x14] sm:$0xf0]  ;;  %v308_v35 = vld [vmem:[%s431_s2] ss:$0 sm:$0xff] }
   0x9   :  { %v72_v26 = vpack.c.b16 %v64_v25, %v64_v25  ;;  %v231_v30 = vor.u32 %v287_v29, %v230_v28  ;;  %v71_v31 = vpack.c.b16 %v63_v27, %v63_v27 }
   0xa   :  { %146 = vmatpush.bf16.msra.mxu0 %v295_v7  ;;  %301 = vmatpush.bf16.msra.mxu2 %v295_v7 }
   0xe   :  { %147 = vmatpush.bf16.msra.mxu0 %v294_v10  ;;  %302 = vmatpush.bf16.msra.mxu2 %v294_v10 }
  0x12   :  { %148 = vmatpush.bf16.msra.mxu0 %v293_v11  ;;  %303 = vmatpush.bf16.msra.mxu2 %v293_v11 }
  0x16   :  { %149 = vmatpush.bf16.msra.mxu0 %v292_v14  ;;  %304 = vmatpush.bf16.msra.mxu2 %v292_v14 }
  0x17   :  { %282 = vmatmul.msk.bf16.gmra.mxu3 %vm131_vm0, %v243_v15 }
  0x1a   :  { %150 = vmatpush.bf16.msra.mxu0 %v291_v16  ;;  %305 = vmatpush.bf16.msra.mxu2 %v291_v16 }
  0x1e   :  { %151 = vmatpush.bf16.msra.mxu0 %v290_v17  ;;  %306 = vmatpush.bf16.msra.mxu2 %v290_v17 }
  0x21   :  { %152 = vmatmul.bf16.vlgmr.msra.gmra.mxu0 %v223_v23  ;;  %162 = vmatmul.bf16.vlgmr.msra.gmra.mxu2 %v239_v24 }
  0x27   :  { %283 = vmatmul.msk.bf16.gmra.mxu3 %vm131_vm0, %v72_v26 }
  0x31   :  { %157 = vmatmul.bf16.gmra.mxu0 %v231_v30  ;;  %167 = vmatmul.bf16.gmra.mxu2 %v71_v31 }
  0x84   :  { %v181_v36 = vpop.f32.mrf.mxu1 }
  0x8a   :  { %v186_v32 = vpop.f32.mrf.mxu3 }
  0x8c   :  { %v183_v45 = vpop.f32.mrf.mxu1 }
  0x92   :  { %v188_v33 = vpop.f32.mrf.mxu3 }
  0x9a   :  { %v191_v34 = vpop.f32.mrf.mxu3 }
  0x9e   :  { %v153_v37 = vpop.f32.mrf.mxu0 }
  0x9f   :  { %v154_v38 = vadd.f32 %v308_v35, %v153_v37 }
  0xa1   :  { %v182_v39 = vadd.f32 %v181_v36, %v154_v38 }
  0xa2   :  { %v193_v40 = vpop.f32.mrf.mxu3 }
  0xa3   :  { %v200_v41 = vpack.c.bf16 %v182_v39, %v182_v39 }
  0xa4   :  { %v163_v42 = vpop.f32.mrf.mxu2 }
  0xa5   :  { %208 = vst.msk [vmem:[%s432_s3] sm:$0xf] %vm207_vm1, %v200_v41  ;;  %v164_v43 = vadd.f32 %v308_v35, %v163_v42 }
  0xa6   :  { %v155_v44 = vpop.f32.mrf.mxu0 }
  0xa7   :  { %v192_v46 = vadd.f32 %v191_v34, %v164_v43  ;;  %v156_v47 = vadd.f32 %v308_v35, %v155_v44 }
  0xa9   :  { %v204_v48 = vpack.c.bf16 %v192_v46, %v192_v46  ;;  %v184_v49 = vadd.f32 %v183_v45, %v156_v47 }
  0xaa   :  { %v196_v50 = vpop.f32.mrf.mxu3 }
  0xab   :  { %212 = vst.msk [vmem:[%s432_s3 + $0x10] sm:$0xf] %vm207_vm1, %v204_v48  ;;  %v201_v51 = vpack.c.bf16 %v184_v49, %v184_v49 }
  0xac   :  { %v165_v52 = vpop.f32.mrf.mxu2 }
  0xad   :  { %209 = vst.msk [vmem:[%s432_s3 + $0x4] sm:$0xf] %vm207_vm1, %v201_v51  ;;  %v166_v53 = vadd.f32 %v308_v35, %v165_v52 }
  0xae   :  { %v158_v54 = vpop.f32.mrf.mxu0 }
  0xaf   :  { %v194_v55 = vadd.f32 %v193_v40, %v166_v53  ;;  %v159_v56 = vadd.f32 %v308_v35, %v158_v54 }
  0xb1   :  { %v205_v57 = vpack.c.bf16 %v194_v55, %v194_v55  ;;  %v187_v58 = vadd.f32 %v186_v32, %v159_v56 }
  0xb2   :  { %v198_v59 = vpop.f32.mrf.mxu3 }
  0xb3   :  { %213 = vst.msk [vmem:[%s432_s3 + $0x14] sm:$0xf] %vm207_vm1, %v205_v57  ;;  %v202_v60 = vpack.c.bf16 %v187_v58, %v187_v58 }
  0xb4   :  { %v168_v61 = vpop.f32.mrf.mxu2 }
  0xb5   :  { %210 = vst.msk [vmem:[%s432_s3 + $0x8] sm:$0xf] %vm207_vm1, %v202_v60  ;;  %v169_v62 = vadd.f32 %v308_v35, %v168_v61 }
  0xb6   :  { %v160_v63 = vpop.f32.mrf.mxu0 }
  0xb7   :  { %v197_v0 = vadd.f32 %v196_v50, %v169_v62  ;;  %v161_v1 = vadd.f32 %v308_v35, %v160_v63 }
  0xb9   :  { %v206_v2 = vpack.c.bf16 %v197_v0, %v197_v0  ;;  %v189_v3 = vadd.f32 %v188_v33, %v161_v1 }
  0xbb   :  { %215 = vst.msk [vmem:[%s432_s3 + $0x18] sm:$0x1] %vm214_vm2, %v206_v2  ;;  %v203_v4 = vpack.c.bf16 %v189_v3, %v189_v3 }
  0xbc   :  { %v170_v5 = vpop.f32.mrf.mxu2 }
  0xbd   :  { %211 = vst.msk [vmem:[%s432_s3 + $0xc] sm:$0xf] %vm207_vm1, %v203_v4 }

// kernel: siamrpn_forward.15
= control target key start
LH: loop header
LB: loop body
LE: loop exit
PB: predicated region body
PF: predicated region fallthrough
CT: control target
= control target key end

     0   :  { %vm58_vm0 = vcmask 1040384   ;;  %vm45_vm1 = vcmask 15360   ;;  %vm90_vm2 = vcmask 588800   ;;  %vm97_vm3 = vcmask 582656   ;;  %s191_s1 = inlined_call_operand.vmem [shape: bf16[2,72], index: 1, kind: input, shape index: {}]   ;;  %s192_s0 = inlined_call_operand.vmem [shape: bf16[50,2], index: 0, kind: input, shape index: {}]   ;;  %s193_s2 = inlined_call_operand.vmem [shape: f32[1,72], index: 2, kind: input, shape index: {}]   ;;  %s194_s3 = inlined_call_operand.vmem [shape: f32[50,72], index: 3, kind: output, shape index: {}]  }
   0x1   :  { %v22_v0 = vld [vmem:[%s191_s1] sm:$0x1]  ;;  %v120_v3 = vld [vmem:[%s192_s0 + $0x8] sm:$0xff]  ;;  %v21_v4 = vld [vmem:[%s192_s0 + $0x18] sm:$0x1] }
   0x2   :  { %v119_v1 = vld [vmem:[%s192_s0] sm:$0xff]  ;;  %v60_v2 = vsel %vm58_vm0, %v22_v0, 0  ;;  %v121_v5 = vld [vmem:[%s192_s0 + $0x10] sm:$0xff]  ;;  %v40_v6 = vunpack.c.l.b16 %v21_v4 }
   0x3   :  { %69 = vmatpush.bf16.msra.mxu0 %v60_v2  ;;  %122 = vmatpush.bf16.msra.mxu1 %v60_v2  ;;  %v125_v8 = vld [vmem:[%s193_s2] ss:$0 sm:$0xff] }
   0x4   :  { %123 = vmatpush.bf16.msra.mxu2 %v60_v2  ;;  %124 = vmatpush.bf16.msra.mxu3 %v60_v2  ;;  %v44_v7 = vpack.c.b16 %v40_v6, %v40_v6 }
   0x6   :  { %115 = vmatmul.msk.bf16.vlgmr.msra.gmra.mxu0 %vm45_vm1, %v119_v1  ;;  %116 = vmatmul.msk.bf16.vlgmr.msra.gmra.mxu1 %vm45_vm1, %v120_v3 }
   0x7   :  { %117 = vmatmul.msk.bf16.vlgmr.msra.gmra.mxu2 %vm45_vm1, %v121_v5  ;;  %118 = vmatmul.msk.bf16.vlgmr.msra.gmra.mxu3 %vm45_vm1, %v44_v7 }
  0x83   :  { %v71_v9 = vpop.f32.mrf.mxu0  ;;  %v76_v10 = vpop.f32.mrf.mxu1 }
  0x84   :  { %v72_v11 = vadd.f32 %v125_v8, %v71_v9  ;;  %v77_v12 = vadd.f32 %v125_v8, %v76_v10 }
  0x86   :  { %91 = vst.msk [vmem:[%s194_s3] sm:$0xff] %vm90_vm2, %v72_v11 }
  0x87   :  { %93 = vst.msk [vmem:[%s194_s3 + $0x10] sm:$0xff] %vm90_vm2, %v77_v12 }
  0x8a   :  { %v81_v13 = vpop.f32.mrf.mxu2  ;;  %v86_v14 = vpop.f32.mrf.mxu3 }
  0x8b   :  { %v82_v15 = vadd.f32 %v125_v8, %v81_v13  ;;  %v87_v16 = vadd.f32 %v125_v8, %v86_v14  ;;  %v73_v17 = vpop.f32.mrf.mxu0  ;;  %v78_v18 = vpop.f32.mrf.mxu1 }
  0x8c   :  { %v74_v19 = vadd.f32 %v125_v8, %v73_v17  ;;  %v79_v20 = vadd.f32 %v125_v8, %v78_v18 }
  0x8d   :  { %95 = vst.msk [vmem:[%s194_s3 + $0x20] sm:$0xff] %vm90_vm2, %v82_v15 }
  0x8e   :  { %98 = vst.msk [vmem:[%s194_s3 + $0x30] sm:$0x3] %vm97_vm3, %v87_v16 }
  0x8f   :  { %92 = vst.msk [vmem:[%s194_s3 + $0x8] sm:$0xff] %vm90_vm2, %v74_v19 }
  0x90   :  { %94 = vst.msk [vmem:[%s194_s3 + $0x18] sm:$0xff] %vm90_vm2, %v79_v20 }
  0x92   :  { %v83_v21 = vpop.f32.mrf.mxu2  ;;  %v88_v22 = vpop.f32.mrf.mxu3 }
  0x93   :  { %v84_v23 = vadd.f32 %v125_v8, %v83_v21 }
  0x95   :  { %96 = vst.msk [vmem:[%s194_s3 + $0x28] sm:$0xff] %vm90_vm2, %v84_v23 }

// kernel: siamrpn_forward.16
= control target key start
LH: loop header
LB: loop body
LE: loop exit
PB: predicated region body
PF: predicated region fallthrough
CT: control target
= control target key end

     0   :  { %vm164_vm0 = vcmask 130048   ;;  %vm298_vm1 = vcmask 125952   ;;  %vm311_vm2 = vcmask 123904   ;;  %s643_s1 = inlined_call_operand.vmem [shape: bf16[144,16], index: 1, kind: input, shape index: {}]   ;;  %s644_s0 = inlined_call_operand.vmem [shape: bf16[100,144], index: 0, kind: input, shape index: {}]   ;;  %s645_s2 = inlined_call_operand.vmem [shape: f32[1,16], index: 2, kind: input, shape index: {}]   ;;  %s646_s3 = inlined_call_operand.vmem [shape: bf16[100,16], index: 3, kind: output, shape index: {}]  }
   0x1   :  { %v427_v0 = vld [vmem:[%s643_s1 + $0x38] sm:$0xff]  ;;  %v428_v1 = vld [vmem:[%s643_s1 + $0x40] sm:$0xff]  ;;  %v321_v3 = vld [vmem:[%s644_s0 + $0x8] sm:$0xf0] }
   0x2   :  { %v408_v2 = vld [vmem:[%s644_s0 + $0x4] sm:$0xf]  ;;  %186 = vmatpush.bf16.msra.mxu0 %v427_v0  ;;  %429 = vmatpush.bf16.msra.mxu2 %v427_v0  ;;  %v426_v5 = vld [vmem:[%s643_s1 + $0x30] sm:$0xff]  ;;  %v425_v6 = vld [vmem:[%s643_s1 + $0x28] sm:$0xff] }
   0x3   :  { %v324_v4 = vor.u32 %v408_v2, %v321_v3  ;;  %236 = vmatpush.bf16.msra.mxu1 %v428_v1  ;;  %437 = vmatpush.bf16.msra.mxu3 %v428_v1  ;;  %v424_v7 = vld [vmem:[%s643_s1 + $0x20] sm:$0xff]  ;;  %v423_v8 = vld [vmem:[%s643_s1 + $0x18] sm:$0xff]  ;;  %v410_v9 = vld [vmem:[%s644_s0 + $0x14] sm:$0xf] }
   0x4   :  { %v329_v10 = vld [vmem:[%s644_s0 + $0x18] sm:$0xf0]  ;;  %v422_v12 = vld [vmem:[%s643_s1 + $0x10] sm:$0xff]  ;;  %v421_v13 = vld [vmem:[%s643_s1 + $0x8] sm:$0xff] }
   0x5   :  { %v332_v11 = vor.u32 %v410_v9, %v329_v10  ;;  %v418_v14 = vld [vmem:[%s644_s0 + $0x54] sm:$0xf]  ;;  %v361_v15 = vld [vmem:[%s644_s0 + $0x58] sm:$0xf0]  ;;  %v420_v17 = vld [vmem:[%s643_s1] sm:$0xff] }
   0x6   :  { %401 = vmatmul.msk.bf16.vlgmr.msra.gmra.mxu1 %vm164_vm0, %v324_v4  ;;  %187 = vmatpush.bf16.msra.mxu0 %v426_v5  ;;  %v364_v16 = vor.u32 %v418_v14, %v361_v15  ;;  %v319_v18 = vld [vmem:[%s644_s0] sm:$0xf]  ;;  %v409_v19 = vld [vmem:[%s644_s0 + $0x4] sm:$0xf0]  ;;  %v343_v20 = vld [vmem:[%s644_s0 + $0x30] sm:$0xf] }
   0x7   :  { %430 = vmatpush.bf16.msra.mxu2 %v426_v5  ;;  %v415_v21 = vld [vmem:[%s644_s0 + $0x34] sm:$0xf0]  ;;  %v320_v22 = vor.u32 %v409_v19, %v319_v18  ;;  %v412_v24 = vld [vmem:[%s644_s0 + $0x24] sm:$0xf]  ;;  %v337_v25 = vld [vmem:[%s644_s0 + $0x28] sm:$0xf0] }
   0x8   :  { %406 = vmatmul.msk.bf16.vlgmr.msra.gmra.mxu3 %vm164_vm0, %v364_v16  ;;  %v344_v23 = vor.u32 %v415_v21, %v343_v20  ;;  %v340_v26 = vor.u32 %v412_v24, %v337_v25  ;;  %v27_v27 = vld [vmem:[%s644_s0 + $0x60] sm:$0x33]  ;;  %v327_v30 = vld [vmem:[%s644_s0 + $0x10] sm:$0xf]  ;;  %v411_v31 = vld [vmem:[%s644_s0 + $0x14] sm:$0xf0] }
   0x9   :  { %v88_v28 = vunpack.c.h.b16 %v27_v27  ;;  %v351_v32 = vld [vmem:[%s644_s0 + $0x40] sm:$0xf]  ;;  %v417_v33 = vld [vmem:[%s644_s0 + $0x44] sm:$0xf0]  ;;  %v328_v34 = vor.u32 %v411_v31, %v327_v30  ;;  %v414_v36 = vld [vmem:[%s644_s0 + $0x34] sm:$0xf]  ;;  %v87_v48 = vunpack.c.l.b16 %v27_v27 }
   0xa   :  { %188 = vmatpush.bf16.msra.mxu0 %v425_v6  ;;  %v352_v35 = vor.u32 %v417_v33, %v351_v32  ;;  %v345_v37 = vld [vmem:[%s644_s0 + $0x38] sm:$0xf0]  ;;  %v335_v39 = vld [vmem:[%s644_s0 + $0x20] sm:$0xf]  ;;  %v413_v40 = vld [vmem:[%s644_s0 + $0x24] sm:$0xf0] }
   0xb   :  { %431 = vmatpush.bf16.msra.mxu2 %v425_v6  ;;  %v102_v29 = vpack.c.b16 %v88_v28, %v88_v28  ;;  %v348_v38 = vor.u32 %v414_v36, %v345_v37  ;;  %v359_v41 = vld [vmem:[%s644_s0 + $0x50] sm:$0xf]  ;;  %v419_v42 = vld [vmem:[%s644_s0 + $0x54] sm:$0xf0]  ;;  %v336_v43 = vor.u32 %v413_v40, %v335_v39  ;;  %v416_v45 = vld [vmem:[%s644_s0 + $0x44] sm:$0xf]  ;;  %v101_v49 = vpack.c.b16 %v87_v48, %v87_v48 }
   0xc   :  { %v360_v44 = vor.u32 %v419_v42, %v359_v41  ;;  %v353_v46 = vld [vmem:[%s644_s0 + $0x48] sm:$0xf0]  ;;  %v571_v54 = vld [vmem:[%s645_s2] ss:$0 sm:$0xff] }
   0xd   :  { %v356_v47 = vor.u32 %v416_v45, %v353_v46 }
   0xe   :  { %189 = vmatpush.bf16.msra.mxu0 %v424_v7 }
   0xf   :  { %432 = vmatpush.bf16.msra.mxu2 %v424_v7 }
  0x12   :  { %190 = vmatpush.bf16.msra.mxu0 %v423_v8 }
  0x13   :  { %433 = vmatpush.bf16.msra.mxu2 %v423_v8 }
  0x16   :  { %402 = vmatmul.msk.bf16.gmra.mxu1 %vm164_vm0, %v332_v11  ;;  %191 = vmatpush.bf16.msra.mxu0 %v422_v12 }
  0x17   :  { %434 = vmatpush.bf16.msra.mxu2 %v422_v12 }
  0x18   :  { %407 = vmatmul.msk.bf16.gmra.mxu3 %vm164_vm0, %v102_v29 }
  0x1a   :  { %192 = vmatpush.bf16.msra.mxu0 %v421_v13 }
  0x1b   :  { %435 = vmatpush.bf16.msra.mxu2 %v421_v13 }
  0x1e   :  { %193 = vmatpush.bf16.msra.mxu0 %v420_v17 }
  0x1f   :  { %436 = vmatpush.bf16.msra.mxu2 %v420_v17 }
  0x21   :  { %194 = vmatmul.bf16.vlgmr.msra.gmra.mxu0 %v320_v22 }
  0x22   :  { %209 = vmatmul.bf16.vlgmr.msra.gmra.mxu2 %v344_v23 }
  0x26   :  { %403 = vmatmul.msk.bf16.gmra.mxu1 %vm164_vm0, %v340_v26 }
  0x31   :  { %199 = vmatmul.bf16.gmra.mxu0 %v328_v34 }
  0x32   :  { %214 = vmatmul.bf16.gmra.mxu2 %v352_v35 }
  0x36   :  { %404 = vmatmul.msk.bf16.gmra.mxu1 %vm164_vm0, %v348_v38 }
  0x41   :  { %204 = vmatmul.bf16.gmra.mxu0 %v336_v43 }
  0x42   :  { %219 = vmatmul.bf16.gmra.mxu2 %v360_v44 }
  0x46   :  { %405 = vmatmul.msk.bf16.gmra.mxu1 %vm164_vm0, %v356_v47 }
  0x52   :  { %224 = vmatmul.bf16.gmra.mxu2 %v101_v49 }
  0x83   :  { %v238_v50 = vpop.f32.mrf.mxu1 }
  0x8b   :  { %v240_v51 = vpop.f32.mrf.mxu1  ;;  %v263_v56 = vpop.f32.mrf.mxu3 }
  0x93   :  { %v243_v52 = vpop.f32.mrf.mxu1  ;;  %v574_v0 = vpop.f32.mrf.mxu3 }
  0x9b   :  { %v245_v53 = vpop.f32.mrf.mxu1  ;;  %v581_v8 = vpop.f32.mrf.mxu3 }
  0x9e   :  { %v195_v55 = vpop.f32.mrf.mxu0 }
  0x9f   :  { %v196_v57 = vadd.f32 %v571_v54, %v195_v55 }
  0xa1   :  { %v239_v58 = vadd.f32 %v238_v50, %v196_v57 }
  0xa3   :  { %v272_v59 = vmax.f32 %v239_v58, 0.0  ;;  %v248_v60 = vpop.f32.mrf.mxu1  ;;  %v270_v19 = vpop.f32.mrf.mxu3 }
  0xa5   :  { %v285_v61 = vpack.c.bf16 %v272_v59, %v272_v59  ;;  %v210_v62 = vpop.f32.mrf.mxu2 }
  0xa6   :  { %v197_v63 = vpop.f32.mrf.mxu0  ;;  %v211_v11 = vadd.f32 %v571_v54, %v210_v62 }
  0xa7   :  { %299 = vst.msk [vmem:[%s646_s3] sm:$0xf] %vm298_vm1, %v285_v61  ;;  %v198_v1 = vadd.f32 %v571_v54, %v197_v63 }
  0xa9   :  { %v241_v2 = vadd.f32 %v240_v51, %v198_v1 }
  0xab   :  { %v273_v3 = vmax.f32 %v241_v2, 0.0  ;;  %v250_v4 = vpop.f32.mrf.mxu1 }
  0xad   :  { %v286_v5 = vpack.c.bf16 %v273_v3, %v273_v3  ;;  %v212_v6 = vpop.f32.mrf.mxu2 }
  0xae   :  { %v200_v7 = vpop.f32.mrf.mxu0  ;;  %v213_v23 = vadd.f32 %v571_v54, %v212_v6 }
  0xaf   :  { %300 = vst.msk [vmem:[%s646_s3 + $0x4] sm:$0xf] %vm298_vm1, %v286_v5  ;;  %v201_v9 = vadd.f32 %v571_v54, %v200_v7 }
  0xb1   :  { %v244_v10 = vadd.f32 %v243_v52, %v201_v9 }
  0xb3   :  { %v274_v12 = vmax.f32 %v244_v10, 0.0  ;;  %v253_v13 = vpop.f32.mrf.mxu1 }
  0xb4   :  { %v254_v14 = vadd.f32 %v253_v13, %v211_v11 }
  0xb5   :  { %v287_v15 = vpack.c.bf16 %v274_v12, %v274_v12  ;;  %v215_v16 = vpop.f32.mrf.mxu2 }
  0xb6   :  { %v278_v17 = vmax.f32 %v254_v14, 0.0  ;;  %v202_v18 = vpop.f32.mrf.mxu0  ;;  %v216_v34 = vadd.f32 %v571_v54, %v215_v16 }
  0xb7   :  { %301 = vst.msk [vmem:[%s646_s3 + $0x8] sm:$0xf] %vm298_vm1, %v287_v15  ;;  %v203_v20 = vadd.f32 %v571_v54, %v202_v18 }
  0xb8   :  { %v291_v21 = vpack.c.bf16 %v278_v17, %v278_v17 }
  0xb9   :  { %v246_v22 = vadd.f32 %v245_v53, %v203_v20 }
  0xba   :  { %305 = vst.msk [vmem:[%s646_s3 + $0x18] sm:$0xf] %vm298_vm1, %v291_v21 }
  0xbb   :  { %v275_v24 = vmax.f32 %v246_v22, 0.0  ;;  %v255_v25 = vpop.f32.mrf.mxu1 }
  0xbc   :  { %v256_v26 = vadd.f32 %v255_v25, %v213_v23 }
  0xbd   :  { %v288_v27 = vpack.c.bf16 %v275_v24, %v275_v24  ;;  %v217_v28 = vpop.f32.mrf.mxu2 }
  0xbe   :  { %v279_v29 = vmax.f32 %v256_v26, 0.0  ;;  %v205_v30 = vpop.f32.mrf.mxu0  ;;  %v218_v47 = vadd.f32 %v571_v54, %v217_v28 }
  0xbf   :  { %302 = vst.msk [vmem:[%s646_s3 + $0xc] sm:$0xf] %vm298_vm1, %v288_v27  ;;  %v206_v31 = vadd.f32 %v571_v54, %v205_v30 }
  0xc0   :  { %v292_v32 = vpack.c.bf16 %v279_v29, %v279_v29 }
  0xc1   :  { %v249_v33 = vadd.f32 %v248_v60, %v206_v31 }
  0xc2   :  { %306 = vst.msk [vmem:[%s646_s3 + $0x1c] sm:$0xf] %vm298_vm1, %v292_v32 }
  0xc3   :  { %v276_v35 = vmax.f32 %v249_v33, 0.0  ;;  %v258_v36 = vpop.f32.mrf.mxu1 }
  0xc4   :  { %v259_v37 = vadd.f32 %v258_v36, %v216_v34 }
  0xc5   :  { %v289_v38 = vpack.c.bf16 %v276_v35, %v276_v35  ;;  %v220_v39 = vpop.f32.mrf.mxu2 }
  0xc6   :  { %v280_v40 = vmax.f32 %v259_v37, 0.0  ;;  %v221_v41 = vadd.f32 %v571_v54, %v220_v39  ;;  %v207_v42 = vpop.f32.mrf.mxu0 }
  0xc7   :  { %303 = vst.msk [vmem:[%s646_s3 + $0x10] sm:$0xf] %vm298_vm1, %v289_v38  ;;  %v208_v43 = vadd.f32 %v571_v54, %v207_v42 }
  0xc8   :  { %v293_v44 = vpack.c.bf16 %v280_v40, %v280_v40  ;;  %v264_v45 = vadd.f32 %v263_v56, %v221_v41 }
  0xc9   :  { %v251_v46 = vadd.f32 %v250_v4, %v208_v43 }
  0xca   :  { %307 = vst.msk [vmem:[%s646_s3 + $0x20] sm:$0xf] %vm298_vm1, %v293_v44  ;;  %v282_v48 = vmax.f32 %v264_v45, 0.0 }
  0xcb   :  { %v277_v49 = vmax.f32 %v251_v46, 0.0  ;;  %v260_v50 = vpop.f32.mrf.mxu1 }
  0xcc   :  { %v295_v51 = vpack.c.bf16 %v282_v48, %v282_v48  ;;  %v261_v52 = vadd.f32 %v260_v50, %v218_v47 }
  0xcd   :  { %v290_v53 = vpack.c.bf16 %v277_v49, %v277_v49  ;;  %v222_v55 = vpop.f32.mrf.mxu2 }
  0xce   :  { %309 = vst.msk [vmem:[%s646_s3 + $0x28] sm:$0xf] %vm298_vm1, %v295_v51  ;;  %v281_v56 = vmax.f32 %v261_v52, 0.0  ;;  %v223_v57 = vadd.f32 %v571_v54, %v222_v55 }
  0xcf   :  { %304 = vst.msk [vmem:[%s646_s3 + $0x14] sm:$0xf] %vm298_vm1, %v290_v53 }
  0xd0   :  { %v294_v58 = vpack.c.bf16 %v281_v56, %v281_v56  ;;  %v266_v59 = vadd.f32 %v574_v0, %v223_v57 }
  0xd2   :  { %308 = vst.msk [vmem:[%s646_s3 + $0x24] sm:$0xf] %vm298_vm1, %v294_v58  ;;  %v283_v60 = vmax.f32 %v266_v59, 0.0 }
  0xd4   :  { %v296_v61 = vpack.c.bf16 %v283_v60, %v283_v60 }
  0xd5   :  { %v225_v62 = vpop.f32.mrf.mxu2 }
  0xd6   :  { %310 = vst.msk [vmem:[%s646_s3 + $0x2c] sm:$0xf] %vm298_vm1, %v296_v61  ;;  %v226_v63 = vadd.f32 %v571_v54, %v225_v62 }
  0xd8   :  { %v269_v1 = vadd.f32 %v581_v8, %v226_v63 }
  0xda   :  { %v284_v2 = vmax.f32 %v269_v1, 0.0 }
  0xdc   :  { %v297_v0 = vpack.c.bf16 %v284_v2, %v284_v2 }
  0xdd   :  { %v227_v3 = vpop.f32.mrf.mxu2 }
  0xde   :  { %312 = vst.msk [vmem:[%s646_s3 + $0x30] sm:$0x3] %vm311_vm2, %v297_v0 }

// kernel: siamrpn_forward.17
= control target key start
LH: loop header
LB: loop body
LE: loop exit
PB: predicated region body
PF: predicated region fallthrough
CT: control target
= control target key end

     0   :  { %vm504_vm0 = vcmask 56320   ;;  %s930_s1 = inlined_call_operand.vmem [shape: bf16[768,7], index: 1, kind: input, shape index: {}]   ;;  %s931_s2 = inlined_call_operand.vmem [shape: f32[1,7], index: 2, kind: input, shape index: {}]   ;;  %s932_s0 = inlined_call_operand.vmem [shape: bf16[8,768], index: 0, kind: input, shape index: {}]   ;;  %s933_s3 = inlined_call_operand.vmem [shape: f32[8,7], index: 3, kind: output, shape index: {}]  }
   0x1   :  { %v709_v0 = vld [vmem:[%s930_s1 + $0x38] sm:$0xff]  ;;  %v708_v2 = vld [vmem:[%s930_s1 + $0x30] sm:$0xff]  ;;  %v707_v8 = vld [vmem:[%s930_s1 + $0x28] sm:$0xff] }
   0x2   :  { %v717_v1 = vld [vmem:[%s930_s1 + $0x78] sm:$0xff]  ;;  %426 = vmatpush.bf16.msra.mxu0 %v709_v0  ;;  %v716_v3 = vld [vmem:[%s930_s1 + $0x70] sm:$0xff]  ;;  %v715_v9 = vld [vmem:[%s930_s1 + $0x68] sm:$0xff] }
   0x3   :  { %439 = vmatpush.bf16.msra.mxu1 %v717_v1  ;;  %v725_v4 = vld [vmem:[%s930_s1 + $0xb8] sm:$0xff]  ;;  %v724_v6 = vld [vmem:[%s930_s1 + $0xb0] sm:$0xff]  ;;  %v723_v10 = vld [vmem:[%s930_s1 + $0xa8] sm:$0xff] }
   0x4   :  { %v733_v5 = vld [vmem:[%s930_s1 + $0xf8] sm:$0xff]  ;;  %452 = vmatpush.bf16.msra.mxu2 %v725_v4  ;;  %v732_v7 = vld [vmem:[%s930_s1 + $0xf0] sm:$0xff]  ;;  %v731_v11 = vld [vmem:[%s930_s1 + $0xe8] sm:$0xff] }
   0x5   :  { %465 = vmatpush.bf16.msra.mxu3 %v733_v5  ;;  %v706_v12 = vld [vmem:[%s930_s1 + $0x20] sm:$0xff]  ;;  %v705_v16 = vld [vmem:[%s930_s1 + $0x18] sm:$0xff]  ;;  %v704_v20 = vld [vmem:[%s930_s1 + $0x10] sm:$0xff] }
   0x6   :  { %427 = vmatpush.bf16.msra.mxu0 %v708_v2  ;;  %v714_v13 = vld [vmem:[%s930_s1 + $0x60] sm:$0xff]  ;;  %v713_v17 = vld [vmem:[%s930_s1 + $0x58] sm:$0xff]  ;;  %v712_v21 = vld [vmem:[%s930_s1 + $0x50] sm:$0xff] }
   0x7   :  { %440 = vmatpush.bf16.msra.mxu1 %v716_v3  ;;  %v722_v14 = vld [vmem:[%s930_s1 + $0xa0] sm:$0xff]  ;;  %v721_v18 = vld [vmem:[%s930_s1 + $0x98] sm:$0xff]  ;;  %v720_v22 = vld [vmem:[%s930_s1 + $0x90] sm:$0xff] }
   0x8   :  { %453 = vmatpush.bf16.msra.mxu2 %v724_v6  ;;  %v730_v15 = vld [vmem:[%s930_s1 + $0xe0] sm:$0xff]  ;;  %v729_v19 = vld [vmem:[%s930_s1 + $0xd8] sm:$0xff]  ;;  %v728_v23 = vld [vmem:[%s930_s1 + $0xd0] sm:$0xff] }
   0x9   :  { %466 = vmatpush.bf16.msra.mxu3 %v732_v7  ;;  %v703_v24 = vld [vmem:[%s930_s1 + $0x8] sm:$0xff]  ;;  %v14_v26 = vld [vmem:[%s932_s0] sm:$0xff]  ;;  %v741_v34 = vld [vmem:[%s930_s1 + $0x138] sm:$0xff] }
   0xa   :  { %428 = vmatpush.bf16.msra.mxu0 %v707_v8  ;;  %v711_v25 = vld [vmem:[%s930_s1 + $0x48] sm:$0xff]  ;;  %v120_v29 = vunpack.c.l.b16 %v14_v26  ;;  %v121_v30 = vunpack.c.h.b16 %v14_v26  ;;  %v702_v32 = vld [vmem:[%s930_s1] sm:$0xff]  ;;  %v749_v35 = vld [vmem:[%s930_s1 + $0x178] sm:$0xff] }
   0xb   :  { %441 = vmatpush.bf16.msra.mxu1 %v715_v9  ;;  %v719_v27 = vld [vmem:[%s930_s1 + $0x88] sm:$0xff]  ;;  %v710_v33 = vld [vmem:[%s930_s1 + $0x40] sm:$0xff]  ;;  %v740_v42 = vld [vmem:[%s930_s1 + $0x130] sm:$0xff] }
   0xc   :  { %454 = vmatpush.bf16.msra.mxu2 %v723_v10  ;;  %v727_v28 = vld [vmem:[%s930_s1 + $0xc8] sm:$0xff]  ;;  %v718_v36 = vld [vmem:[%s930_s1 + $0x80] sm:$0xff]  ;;  %v126_v40 = vpack.c.b16 %v120_v29, %v120_v29  ;;  %v127_v41 = vpack.c.b16 %v121_v30, %v121_v30  ;;  %v748_v43 = vld [vmem:[%s930_s1 + $0x170] sm:$0xff] }
   0xd   :  { %467 = vmatpush.bf16.msra.mxu3 %v731_v11  ;;  %v15_v31 = vld [vmem:[%s932_s0 + $0x8] sm:$0xff]  ;;  %v726_v37 = vld [vmem:[%s930_s1 + $0xc0] sm:$0xff]  ;;  %v737_v50 = vld [vmem:[%s930_s1 + $0x118] sm:$0xff] }
   0xe   :  { %429 = vmatpush.bf16.msra.mxu0 %v706_v12  ;;  %v122_v38 = vunpack.c.l.b16 %v15_v31  ;;  %v123_v39 = vunpack.c.h.b16 %v15_v31  ;;  %v739_v46 = vld [vmem:[%s930_s1 + $0x128] sm:$0xff]  ;;  %v738_v48 = vld [vmem:[%s930_s1 + $0x120] sm:$0xff]  ;;  %v745_v51 = vld [vmem:[%s930_s1 + $0x158] sm:$0xff] }
   0xf   :  { %442 = vmatpush.bf16.msra.mxu1 %v714_v13  ;;  %v747_v47 = vld [vmem:[%s930_s1 + $0x168] sm:$0xff]  ;;  %v746_v49 = vld [vmem:[%s930_s1 + $0x160] sm:$0xff]  ;;  %v736_v52 = vld [vmem:[%s930_s1 + $0x110] sm:$0xff] }
  0x10   :  { %455 = vmatpush.bf16.msra.mxu2 %v722_v14  ;;  %v128_v44 = vpack.c.b16 %v122_v38, %v122_v38  ;;  %v129_v45 = vpack.c.b16 %v123_v39, %v123_v39  ;;  %v744_v53 = vld [vmem:[%s930_s1 + $0x150] sm:$0xff]  ;;  %v735_v54 = vld [vmem:[%s930_s1 + $0x108] sm:$0xff]  ;;  %v734_v59 = vld [vmem:[%s930_s1 + $0x100] sm:$0xff] }
  0x11   :  { %468 = vmatpush.bf16.msra.mxu3 %v730_v15  ;;  %v743_v55 = vld [vmem:[%s930_s1 + $0x148] sm:$0xff]  ;;  %v16_v56 = vld [vmem:[%s932_s0 + $0x10] sm:$0xff]  ;;  %v742_v60 = vld [vmem:[%s930_s1 + $0x140] sm:$0xff] }
  0x12   :  { %430 = vmatpush.bf16.msra.mxu0 %v705_v16  ;;  %v124_v57 = vunpack.c.l.b16 %v16_v56  ;;  %v125_v58 = vunpack.c.h.b16 %v16_v56  ;;  %v750_v5 = vld [vmem:[%s931_s2] ss:$0 sm:$0xff] }
  0x13   :  { %443 = vmatpush.bf16.msra.mxu1 %v713_v17 }
  0x14   :  { %456 = vmatpush.bf16.msra.mxu2 %v721_v18  ;;  %v130_v61 = vpack.c.b16 %v124_v57, %v124_v57  ;;  %v131_v62 = vpack.c.b16 %v125_v58, %v125_v58 }
  0x15   :  { %469 = vmatpush.bf16.msra.mxu3 %v729_v19 }
  0x16   :  { %431 = vmatpush.bf16.msra.mxu0 %v704_v20 }
  0x17   :  { %444 = vmatpush.bf16.msra.mxu1 %v712_v21 }
  0x18   :  { %457 = vmatpush.bf16.msra.mxu2 %v720_v22 }
  0x19   :  { %470 = vmatpush.bf16.msra.mxu3 %v728_v23 }
  0x1a   :  { %432 = vmatpush.bf16.msra.mxu0 %v703_v24 }
  0x1b   :  { %445 = vmatpush.bf16.msra.mxu1 %v711_v25 }
  0x1c   :  { %458 = vmatpush.bf16.msra.mxu2 %v719_v27 }
  0x1d   :  { %471 = vmatpush.bf16.msra.mxu3 %v727_v28 }
  0x1e   :  { %433 = vmatpush.bf16.msra.mxu0 %v702_v32 }
  0x1f   :  { %446 = vmatpush.bf16.msra.mxu1 %v710_v33 }
  0x20   :  { %459 = vmatpush.bf16.msra.mxu2 %v718_v36 }
  0x21   :  { %472 = vmatpush.bf16.msra.mxu3 %v726_v37  ;;  %434 = vmatmul.bf16.vlgmr.msra.gmra.mxu0 %v126_v40 }
  0x22   :  { %478 = vmatpush.bf16.msrb.mxu0 %v741_v34  ;;  %447 = vmatmul.bf16.vlgmr.msra.gmra.mxu1 %v127_v41 }
  0x23   :  { %491 = vmatpush.bf16.msrb.mxu1 %v749_v35  ;;  %460 = vmatmul.bf16.vlgmr.msra.gmra.mxu2 %v128_v44 }
  0x24   :  { %473 = vmatmul.bf16.vlgmr.msra.gmra.mxu3 %v129_v45 }
  0x26   :  { %479 = vmatpush.bf16.msrb.mxu0 %v740_v42 }
  0x27   :  { %492 = vmatpush.bf16.msrb.mxu1 %v748_v43 }
  0x2a   :  { %480 = vmatpush.bf16.msrb.mxu0 %v739_v46 }
  0x2b   :  { %493 = vmatpush.bf16.msrb.mxu1 %v747_v47 }
  0x2e   :  { %481 = vmatpush.bf16.msrb.mxu0 %v738_v48 }
  0x2f   :  { %494 = vmatpush.bf16.msrb.mxu1 %v746_v49 }
  0x32   :  { %482 = vmatpush.bf16.msrb.mxu0 %v737_v50 }
  0x33   :  { %495 = vmatpush.bf16.msrb.mxu1 %v745_v51 }
  0x36   :  { %483 = vmatpush.bf16.msrb.mxu0 %v736_v52 }
  0x37   :  { %496 = vmatpush.bf16.msrb.mxu1 %v744_v53 }
  0x3a   :  { %484 = vmatpush.bf16.msrb.mxu0 %v735_v54 }
  0x3b   :  { %497 = vmatpush.bf16.msrb.mxu1 %v743_v55 }
  0x3e   :  { %485 = vmatpush.bf16.msrb.mxu0 %v734_v59 }
  0x3f   :  { %498 = vmatpush.bf16.msrb.mxu1 %v742_v60 }
  0x41   :  { %486 = vmatmul.bf16.vlgmr.msrb.gmra.mxu0 %v130_v61 }
  0x42   :  { %499 = vmatmul.bf16.vlgmr.msrb.gmra.mxu1 %v131_v62 }
  0x9e   :  { %v435_v63 = vpop.f32.mrf.mxu0 }
  0x9f   :  { %v448_v0 = vpop.f32.mrf.mxu1  ;;  %v436_v6 = vadd.f32 %v750_v5, %v435_v63 }
  0xa1   :  { %v449_v9 = vadd.f32 %v448_v0, %v436_v6 }
  0xa6   :  { %v437_v1 = vpop.f32.mrf.mxu0  ;;  %v461_v3 = vpop.f32.mrf.mxu2 }
  0xa7   :  { %v450_v2 = vpop.f32.mrf.mxu1  ;;  %v474_v4 = vpop.f32.mrf.mxu3  ;;  %v462_v10 = vadd.f32 %v461_v3, %v449_v9 }
  0xa9   :  { %v475_v11 = vadd.f32 %v474_v4, %v462_v10 }
  0xae   :  { %v463_v7 = vpop.f32.mrf.mxu2 }
  0xaf   :  { %v476_v8 = vpop.f32.mrf.mxu3 }
  0xbe   :  { %v487_v12 = vpop.f32.mrf.mxu0 }
  0xbf   :  { %v500_v13 = vpop.f32.mrf.mxu1  ;;  %v488_v14 = vadd.f32 %v487_v12, %v475_v11 }
  0xc1   :  { %v501_v15 = vadd.f32 %v500_v13, %v488_v14 }
  0xc3   :  { %505 = vst.msk [vmem:[%s933_s3] sm:$0xff] %vm504_vm0, %v501_v15 }
  0xc6   :  { %v489_v16 = vpop.f32.mrf.mxu0 }
  0xc7   :  { %v502_v17 = vpop.f32.mrf.mxu1 }

</bundles_post_ra>
